<compile_context>
chip_gen: v7x
topology: tpu7x:2x2x1
jax: 0.10.0
libtpu: 0.0.40
codegen_flags: <defaults>
</compile_context>

<pallas_src>
import functools

import jax
import jax.numpy as jnp
from jax.experimental import pallas as pl
from jax.experimental.pallas import tpu as pltpu


def _reattention_kernel(
    # inputs
    x_ref,      # (1, Np, C)   all rows of x for this batch element
    wq_ref,     # (C, C)
    bq_ref,     # (1, C)
    wkv_ref,    # (C, 2C)
    bkv_ref,    # (1, 2C)
    wmix_ref,   # (H, H)  SMEM  folded: reatten_scale * diag(bn_scale) @ conv1x1.weight
    bmix_ref,   # (H,)    SMEM  folded: reatten_scale * (bn_scale*conv.bias + bn_bias)
    wproj_ref,  # (C, C)
    bproj_ref,  # (1, C)
    # outputs
    out_ref,    # (1, tq, C)
    attn_ref,   # (1, H, tq, Np)
    # scratch
    kv_s,       # (Np, 2C) VMEM  persists across the query tiles of one batch element
    ctx_s,      # (tq, C)  VMEM
    *,
    num_heads: int,
    head_dim: int,
    q_tile: int,
    n_valid: int,
    scale: float,
):
    H, d, tq = num_heads, head_dim, q_tile
    C = H * d
    n_pad = kv_s.shape[0]
    f32 = jnp.float32
    cd = kv_s.dtype

    # ---- K/V projection: once per batch element (first query tile only). ----
    @pl.when(pl.program_id(1) == 0)
    def _():
        kv = jnp.dot(x_ref[0], wkv_ref[...], preferred_element_type=f32) + bkv_ref[...]
        if n_valid < n_pad:
            # Zero padded key/value rows (the projection bias would otherwise leak into ctx).
            rows = jax.lax.broadcasted_iota(jnp.int32, (n_pad, 2 * C), 0)
            kv = jnp.where(rows < n_valid, kv, 0.0)
        kv_s[...] = kv.astype(cd)

    # ---- Q projection for this tile (query rows sliced from the resident x block). ----
    row0 = pl.multiple_of(pl.program_id(1) * tq, tq)
    x_q = x_ref[0, pl.ds(row0, tq), :]                                    # (tq, C)
    q = jnp.dot(x_q, wq_ref[...], preferred_element_type=f32) + bq_ref[...]
    q = (q * scale).astype(cd)

    # ---- Per-head scores + softmax (exact normalization: attn is an external output). ----
    probs = []
    for h in range(H):
        k_h = kv_s[:, h * d:(h + 1) * d]                                  # (Np, d)
        s = jnp.einsum("qd,kd->qk", q[:, h * d:(h + 1) * d], k_h,
                       preferred_element_type=f32)                        # (tq, Np) MXU
        if n_valid < n_pad:
            cols = jax.lax.broadcasted_iota(jnp.int32, (tq, n_pad), 1)
            s = jnp.where(cols < n_valid, s, -1e30)                       # mask padded keys
        s = s - jnp.max(s, axis=-1, keepdims=True)
        e = jnp.exp(s)                                                    # EUP
        probs.append(e / jnp.sum(e, axis=-1, keepdims=True))

    # ---- Head mixing (folded conv1x1 + BN(eval) + reatten_scale), output-head major:
    #      one (tq, Np) accumulator per output head, stored to the attn map exactly once,
    #      then fed straight into that head's attn@V matmul. ----
    for g in range(H):
        acc = wmix_ref[g, 0] * probs[0]
        for h in range(1, H):
            acc = acc + wmix_ref[g, h] * probs[h]
        acc = acc + bmix_ref[g]
        attn_ref[0, g] = acc.astype(attn_ref.dtype)
        v_g = kv_s[:, C + g * d:C + (g + 1) * d]                          # (Np, d)
        ctx_g = jnp.dot(acc.astype(cd), v_g, preferred_element_type=f32)  # (tq, d)  MXU
        ctx_s[:, g * d:(g + 1) * d] = ctx_g.astype(cd)

    # ---- Output projection. ----
    out = jnp.dot(ctx_s[...], wproj_ref[...], preferred_element_type=f32) + bproj_ref[...]
    out_ref[0] = out.astype(out_ref.dtype)


def _round_up(x, m):
    return -(-x // m) * m


def _pick_q_block(n, requested=None):
    if requested is not None:
        assert n % requested == 0, "q_block must divide the (padded) sequence length"
        assert requested == n or requested % 8 == 0, "q_block must be a multiple of 8"
        return requested
    for cand in (256, 128, 64, 32, 16, 8):
        if n % cand == 0:
            return cand
    return n


def _estimate_vmem_bytes(n_pad, C, H, tq, cd_itemsize, attn_itemsize):
    weights = (C * C + C * 2 * C + C * C) * cd_itemsize + (4 * C) * 4
    return int(
        2 * n_pad * C * cd_itemsize                 # x block (double-buffered)
        + 2 * weights                               # weights/biases (worst case 2 buffers)
        + 2 * tq * C * 4                            # out block
        + 2 * H * tq * n_pad * attn_itemsize        # attn block
        + (2 * n_pad * C + tq * C) * cd_itemsize    # kv_s + ctx_s scratch
        + H * tq * n_pad * 4                        # softmax probs (may spill to VMEM)
    )


def _pick_vmem_limit(est_bytes):
    """Scoped-VMEM limit sized from the actual footprint, clamped below physical VMEM."""
    try:
        cap = int(pltpu.get_tpu_info().vmem_capacity_bytes)
    except Exception:
        cap = 64 * 1024 * 1024          # conservative: v7x per-TensorCore VMEM
    want = max(int(est_bytes * 1.25) + (8 << 20), 32 << 20)
    return int(min(want, cap - (8 << 20)))


def reattention_pallas(x, params, *, num_heads, scale, reatten_scale=1.0,
                       q_block=None, compute_dtype=jnp.float32,
                       attn_dtype=jnp.float32, key_pad_multiple=128):
    """ReAttention forward. Returns (out, attn_next), matching the PyTorch module (eval).

    compute_dtype: MXU operand dtype (bf16 recommended for large models on v6e/v7x;
                   all softmax / mixing math stays f32).
    attn_dtype:    dtype of the returned (B,H,N,N) attention map (bf16 halves its HBM write).
    key_pad_multiple: pad N up to this multiple (lane-dense stores); None -> pad to 8 only.
    """
    B, N, C = x.shape
    H = num_heads
    assert C % H == 0
    d = C // H
    cd = jnp.dtype(compute_dtype)
    attn_dt = jnp.dtype(attn_dtype)

    n_pad = _round_up(N, key_pad_multiple if key_pad_multiple else 8)
    tq = _pick_q_block(n_pad, q_block)

    # Fold conv1x1 bias + BatchNorm(eval) + reatten_scale into one (H,H) matrix + (H,) bias.
    bn_scale = params["bn_scale"].astype(jnp.float32)
    bn_bias = params["bn_bias"].astype(jnp.float32)
    w_mix = (reatten_scale * bn_scale)[:, None] * params["w_conv"].astype(jnp.float32)
    b_mix = reatten_scale * (bn_scale * params["b_conv"].astype(jnp.float32) + bn_bias)

    # Split the fused QKV weight so only the Q columns are touched every query tile.
    w_qkv = params["w_qkv"].astype(jnp.float32)
    b_qkv = params["b_qkv"].reshape(3 * C).astype(jnp.float32)
    w_q = w_qkv[:, :C].astype(cd)
    w_kv = w_qkv[:, C:].astype(cd)
    b_q = b_qkv[:C].reshape(1, C)
    b_kv = b_qkv[C:].reshape(1, 2 * C)
    w_proj = params["w_proj"].astype(cd)
    b_proj = params["b_proj"].reshape(1, C).astype(jnp.float32)

    x_p = x.astype(cd)
    if n_pad != N:
        x_p = jnp.pad(x_p, ((0, 0), (0, n_pad - N), (0, 0)))

    kernel = functools.partial(_reattention_kernel, num_heads=H, head_dim=d,
                               q_tile=tq, n_valid=N, scale=float(scale))
    grid = (B, n_pad // tq)

    def _specs(single_buffer_weights):
        def wspec(shape):
            if single_buffer_weights:
                return pl.BlockSpec(shape, lambda b, i: (0, 0),
                                    pipeline_mode=pl.Buffered(buffer_count=1))
            return pl.BlockSpec(shape, lambda b, i: (0, 0))

        smem = pl.BlockSpec(memory_space=pltpu.MemorySpace.SMEM)
        in_specs = [
            pl.BlockSpec((1, n_pad, C), lambda b, i: (b, 0, 0)),   # x (query rows sliced in-kernel)
            wspec((C, C)),        # W_q
            wspec((1, C)),        # b_q
            wspec((C, 2 * C)),    # W_kv
            wspec((1, 2 * C)),    # b_kv
            smem,                 # folded mix weight (H, H)
            smem,                 # folded mix bias   (H,)
            wspec((C, C)),        # W_proj
            wspec((1, C)),        # b_proj
        ]
        out_specs = (
            pl.BlockSpec((1, tq, C), lambda b, i: (b, i, 0)),          # out
            pl.BlockSpec((1, H, tq, n_pad), lambda b, i: (b, 0, i, 0)),  # attn_next
        )
        return in_specs, out_specs

    flops = int(2 * B * n_pad * C * 3 * C            # fused QKV projection
                + 4 * B * H * n_pad * n_pad * d      # q@k^T and attn@v
                + 2 * B * H * H * n_pad * n_pad      # head mixing (runs on VPU; advisory)
                + 2 * B * n_pad * C * C)             # output projection
    transcendentals = int(B * H * n_pad * n_pad)
    bytes_accessed = int(x_p.size * x_p.dtype.itemsize
                         + (4 * C * C) * cd.itemsize + (4 * C + H * H + H) * 4
                         + B * n_pad * C * 4
                         + B * H * n_pad * n_pad * attn_dt.itemsize)
    vmem_limit = _pick_vmem_limit(
        _estimate_vmem_bytes(n_pad, C, H, tq, cd.itemsize, attn_dt.itemsize))

    def _call(single_buffer_weights):
        in_specs, out_specs = _specs(single_buffer_weights)
        grid_spec = pltpu.PrefetchScalarGridSpec(
            num_scalar_prefetch=0,
            grid=grid,
            in_specs=in_specs,
            out_specs=out_specs,
            scratch_shapes=[
                pltpu.VMEM((n_pad, 2 * C), cd),   # K/V (lane-dense), reused across query tiles
                pltpu.VMEM((tq, C), cd),          # context assembly
            ],
        )
        return pl.pallas_call(
            kernel,
            out_shape=(
                jax.ShapeDtypeStruct((B, n_pad, C), jnp.float32),
                jax.ShapeDtypeStruct((B, H, n_pad, n_pad), attn_dt),
            ),
            grid_spec=grid_spec,
            compiler_params=pltpu.CompilerParams(
                dimension_semantics=("parallel", "arbitrary"),
                vmem_limit_bytes=vmem_limit,
            ),
            cost_estimate=pl.CostEstimate(
                flops=flops,
                transcendentals=transcendentals,
                bytes_accessed=bytes_accessed,
            ),
        )(x_p, w_q, b_q, w_kv, b_kv,
          w_mix.astype(jnp.float32), b_mix.astype(jnp.float32),
          w_proj, b_proj)

    try:
        out_p, attn_p = _call(True)
        jax.block_until_ready((out_p, attn_p))
    except Exception:
        # TODO(synk): pl.Buffered(1) (single-buffered resident weights) rejected by this
        # jax/Mosaic build; retry with default double-buffered weight blocks.
        out_p, attn_p = _call(False)

    if n_pad != N:
        out_p = out_p[:, :N]
        attn_p = attn_p[:, :, :N, :N]
    return out_p, attn_p


def reattention_ref(x, params, *, num_heads, scale, reatten_scale=1.0):
    """Pure-JAX reference, mirroring the PyTorch forward (eval mode)."""
    B, N, C = x.shape
    H = num_heads
    d = C // H
    qkv = x @ params["w_qkv"] + params["b_qkv"].reshape(-1)
    qkv = qkv.reshape(B, N, 3, H, d).transpose(2, 0, 3, 1, 4)
    q, k, v = qkv[0], qkv[1], qkv[2]
    attn = jnp.einsum("bhnd,bhmd->bhnm", q, k) * scale
    attn = jax.nn.softmax(attn, axis=-1)
    attn = jnp.einsum("hg,bgnm->bhnm", params["w_conv"], attn) \
        + params["b_conv"][None, :, None, None]
    attn = attn * params["bn_scale"][None, :, None, None] \
        + params["bn_bias"][None, :, None, None]
    attn = attn * reatten_scale
    ctx = jnp.einsum("bhnm,bhmd->bhnd", attn, v)
    ctx = ctx.transpose(0, 2, 1, 3).reshape(B, N, C)
    out = ctx @ params["w_proj"] + params["b_proj"].reshape(-1)
    return out, attn


def make_params(key, dim, num_heads):
    keys = jax.random.split(key, 10)
    C, H = dim, num_heads
    eps = 1e-5
    # BatchNorm2d (eval): y = (x - mean)/sqrt(var+eps)*gamma + beta
    gamma = 1.0 + 0.1 * jax.random.normal(keys[5], (H,), jnp.float32)
    beta = 0.1 * jax.random.normal(keys[6], (H,), jnp.float32)
    run_mean = 0.05 * jax.random.normal(keys[7], (H,), jnp.float32)
    run_var = 1.0 + 0.1 * jax.random.uniform(keys[8], (H,), jnp.float32)
    bn_scale = gamma / jnp.sqrt(run_var + eps)
    bn_bias = beta - run_mean * bn_scale
    return {
        "w_qkv": 0.1 * jax.random.normal(keys[0], (C, 3 * C), jnp.float32),
        "b_qkv": 0.1 * jax.random.normal(keys[1], (1, 3 * C), jnp.float32),
        "w_conv": 0.3 * jax.random.normal(keys[2], (H, H), jnp.float32),
        "b_conv": 0.1 * jax.random.normal(keys[3], (H,), jnp.float32),
        "bn_scale": bn_scale,
        "bn_bias": bn_bias,
        "w_proj": 0.1 * jax.random.normal(keys[4], (C, C), jnp.float32),
        "b_proj": 0.1 * jax.random.normal(keys[9], (1, C), jnp.float32),
    }


if __name__ == "__main__":
    B, N, C, H = 2, 32, 64, 8            # batch, tokens, dim, heads (head_dim = 8)
    scale = (C // H) ** (-0.5)
    reatten_scale = 1.0                  # transform_scale=False (module default)

    key = jax.random.PRNGKey(0)
    kx, kp = jax.random.split(key)
    x = jax.random.normal(kx, (B, N, C), jnp.float32)
    params = make_params(kp, C, H)

    out_golden, attn_golden = reattention_ref(
        x, params, num_heads=H, scale=scale, reatten_scale=reatten_scale)

    # 1) f32, unpadded path; q_block=16 -> grid=(2, 2), exercises tiling + K/V scratch reuse.
    out, attn = reattention_pallas(
        x, params, num_heads=H, scale=scale, reatten_scale=reatten_scale,
        q_block=16, key_pad_multiple=None, compute_dtype=jnp.float32)
    jax.block_until_ready((out, attn))
    assert out.shape == (B, N, C) and attn.shape == (B, H, N, N)
    assert jnp.allclose(out, out_golden, rtol=5e-3, atol=5e-3), "output mismatch (f32)"
    assert jnp.allclose(attn, attn_golden, rtol=5e-3, atol=5e-3), "attn mismatch (f32)"

    # 2) padded-key path: N=28 padded to 32 in-kernel, exercising the softmax key mask.
    xs = x[:, :28]
    out_g28, attn_g28 = reattention_ref(
        xs, params, num_heads=H, scale=scale, reatten_scale=reatten_scale)
    out28, attn28 = reattention_pallas(
        xs, params, num_heads=H, scale=scale, reatten_scale=reatten_scale,
        q_block=16, key_pad_multiple=32, compute_dtype=jnp.float32)
    jax.block_until_ready((out28, attn28))
    assert out28.shape == (B, 28, C) and attn28.shape == (B, H, 28, 28)
    assert jnp.allclose(out28, out_g28, rtol=5e-3, atol=5e-3), "output mismatch (padded)"
    assert jnp.allclose(attn28, attn_g28, rtol=5e-3, atol=5e-3), "attn mismatch (padded)"

    # 3) bf16 MXU operands + bf16 attn writeback (f32 accumulation / softmax / mixing).
    out16, attn16 = reattention_pallas(
        x, params, num_heads=H, scale=scale, reatten_scale=reatten_scale,
        q_block=16, key_pad_multiple=None,
        compute_dtype=jnp.bfloat16, attn_dtype=jnp.bfloat16)
    jax.block_until_ready((out16, attn16))
    assert jnp.allclose(out16, out_golden, rtol=6e-2, atol=6e-2), "output mismatch (bf16)"
    assert jnp.allclose(attn16.astype(jnp.float32), attn_golden,
                        rtol=6e-2, atol=6e-2), "attn mismatch (bf16)"

    print("KERNEL_OK")
</pallas_src>

<mosaic_0001>
module attributes {stable_mosaic.version = 11 : i64} {
  func.func @_reattention_kernel(%arg0: i32, %arg1: i32, %arg2: memref<1x32x64xf32, #tpu.memory_space<vmem>>, %arg3: memref<64x64xf32, #tpu.memory_space<vmem>>, %arg4: memref<1x64xf32, #tpu.memory_space<vmem>>, %arg5: memref<64x128xf32, #tpu.memory_space<vmem>>, %arg6: memref<1x128xf32, #tpu.memory_space<vmem>>, %arg7: memref<8x8xf32, #tpu.memory_space<smem>>, %arg8: memref<8xf32, #tpu.memory_space<smem>>, %arg9: memref<64x64xf32, #tpu.memory_space<vmem>>, %arg10: memref<1x64xf32, #tpu.memory_space<vmem>>, %arg11: memref<1x16x64xf32, #tpu.memory_space<vmem>>, %arg12: memref<1x8x16x32xf32, #tpu.memory_space<vmem>>, %arg13: memref<32x128xf32, #tpu.memory_space<vmem>>, %arg14: memref<16x64xf32, #tpu.memory_space<vmem>>) attributes {dimension_semantics = [#tpu.dimension_semantics<parallel>, #tpu.dimension_semantics<arbitrary>], iteration_bounds = array<i64: 2, 2>, scalar_prefetch = 0 : i64, scratch_operands = 2 : i64, tpu.core_type = #tpu.core_type<tc>, window_params = [{transform_indices = @transform_0, window_bounds = array<i64: 1, 32, 64>}, {pipeline_mode = #tpu.pipeline_mode<synchronous>, transform_indices = @transform_1, window_bounds = array<i64: 64, 64>}, {pipeline_mode = #tpu.pipeline_mode<synchronous>, transform_indices = @transform_2, window_bounds = array<i64: 1, 64>}, {pipeline_mode = #tpu.pipeline_mode<synchronous>, transform_indices = @transform_3, window_bounds = array<i64: 64, 128>}, {pipeline_mode = #tpu.pipeline_mode<synchronous>, transform_indices = @transform_4, window_bounds = array<i64: 1, 128>}, {transform_indices = @transform_5, window_bounds = array<i64: 8, 8>}, {transform_indices = @transform_6, window_bounds = array<i64: 8>}, {pipeline_mode = #tpu.pipeline_mode<synchronous>, transform_indices = @transform_7, window_bounds = array<i64: 64, 64>}, {pipeline_mode = #tpu.pipeline_mode<synchronous>, transform_indices = @transform_8, window_bounds = array<i64: 1, 64>}, {transform_indices = @transform_9, window_bounds = array<i64: 1, 16, 64>}, {transform_indices = @transform_10, window_bounds = array<i64: 1, 8, 16, 32>}]} {
    %c0_i32 = arith.constant 0 : i32
    %0 = arith.cmpi eq, %arg1, %c0_i32 : i32
    %1 = arith.extui %0 : i1 to i32
    %c0_i32_0 = arith.constant 0 : i32
    %2 = arith.cmpi ne, %1, %c0_i32_0 : i32
    scf.if %2 {
      %c0_243 = arith.constant 0 : index
      %c0_244 = arith.constant 0 : index
      %c0_245 = arith.constant 0 : index
      %440 = vector.load %arg2[%c0_243, %c0_244, %c0_245] : memref<1x32x64xf32, #tpu.memory_space<vmem>>, vector<1x32x64xf32>
      %441 = vector.shape_cast %440 : vector<1x32x64xf32> to vector<32x64xf32>
      %c0_246 = arith.constant 0 : index
      %c0_247 = arith.constant 0 : index
      %442 = vector.load %arg5[%c0_246, %c0_247] : memref<64x128xf32, #tpu.memory_space<vmem>>, vector<64x128xf32>
      %cst_248 = arith.constant dense<0.000000e+00> : vector<32x128xf32>
      %443 = tpu.matmul %441, %442, %cst_248 {dimension_numbers = #tpu.dot_dimension_numbers<[1], [0], [0], [1], [0, 0, 1, 1], [], []>} : vector<32x64xf32>, vector<64x128xf32>, vector<32x128xf32> -> vector<32x128xf32>
      %c0_249 = arith.constant 0 : index
      %c0_250 = arith.constant 0 : index
      %444 = vector.load %arg6[%c0_249, %c0_250] : memref<1x128xf32, #tpu.memory_space<vmem>>, vector<1x128xf32>
      %445 = vector.broadcast %444 : vector<1x128xf32> to vector<32x128xf32>
      %446 = arith.addf %443, %445 : vector<32x128xf32>
      %c0_251 = arith.constant 0 : index
      %c0_252 = arith.constant 0 : index
      %447 = vector.load %arg13[%c0_251, %c0_252] : memref<32x128xf32, #tpu.memory_space<vmem>>, vector<32x128xf32>
      tpu.vector_store %arg13[%c0_251, %c0_252], %446 {strides = array<i32>} : memref<32x128xf32, #tpu.memory_space<vmem>>, vector<32x128xf32>,
    } else {
    }
    %c16_i32 = arith.constant 16 : i32
    %3 = arith.muli %arg1, %c16_i32 : i32
    %4 = tpu.assume_multiple %3, 16 : i32
    %c0 = arith.constant 0 : index
    %5 = arith.index_cast %4 : i32 to index
    %c0_1 = arith.constant 0 : index
    %6 = vector.load %arg2[%c0, %5, %c0_1] : memref<1x32x64xf32, #tpu.memory_space<vmem>>, vector<1x16x64xf32>
    %7 = vector.shape_cast %6 : vector<1x16x64xf32> to vector<16x64xf32>
    %c0_2 = arith.constant 0 : index
    %c0_3 = arith.constant 0 : index
    %8 = vector.load %arg3[%c0_2, %c0_3] : memref<64x64xf32, #tpu.memory_space<vmem>>, vector<64x64xf32>
    %cst = arith.constant dense<0.000000e+00> : vector<16x64xf32>
    %9 = tpu.matmul %7, %8, %cst {dimension_numbers = #tpu.dot_dimension_numbers<[1], [0], [0], [1], [0, 0, 1, 1], [], []>} : vector<16x64xf32>, vector<64x64xf32>, vector<16x64xf32> -> vector<16x64xf32>
    %c0_4 = arith.constant 0 : index
    %c0_5 = arith.constant 0 : index
    %10 = vector.load %arg4[%c0_4, %c0_5] : memref<1x64xf32, #tpu.memory_space<vmem>>, vector<1x64xf32>
    %11 = vector.broadcast %10 : vector<1x64xf32> to vector<16x64xf32>
    %12 = arith.addf %9, %11 : vector<16x64xf32>
    %cst_6 = arith.constant 0.353553385 : f32
    %13 = vector.broadcast %cst_6 : f32 to vector<16x64xf32>
    %14 = arith.mulf %12, %13 : vector<16x64xf32>
    %c0_7 = arith.constant 0 : index
    %c0_8 = arith.constant 0 : index
    %15 = vector.load %arg13[%c0_7, %c0_8] : memref<32x128xf32, #tpu.memory_space<vmem>>, vector<32x8xf32>
    %16 = vector.extract_strided_slice %14 {offsets = [0, 0], sizes = [16, 8], strides = [1, 1]} : vector<16x64xf32> to vector<16x8xf32>
    "tpu.trace_start"() <{level = 10 : i32, message = "qd,kd->qk"}> : () -> ()
    %cst_9 = arith.constant dense<0.000000e+00> : vector<16x32xf32>
    %17 = tpu.matmul %16, %15, %cst_9 {dimension_numbers = #tpu.dot_dimension_numbers<[1], [1], [0], [0], [0, 0, 1, 0], [], []>} : vector<16x8xf32>, vector<32x8xf32>, vector<16x32xf32> -> vector<16x32xf32>
    "tpu.trace_stop"() : () -> ()
    %cst_10 = arith.constant dense<0xFF800000> : vector<16xf32>
    %18 = vector.multi_reduction <maximumf>, %17, %cst_10 [1] : vector<16x32xf32> to vector<16xf32>
    %19 = vector.shape_cast %18 : vector<16xf32> to vector<16x1xf32>
    %20 = vector.broadcast %19 : vector<16x1xf32> to vector<16x32xf32>
    %21 = arith.subf %17, %20 : vector<16x32xf32>
    %22 = math.exp %21 : vector<16x32xf32>
    %cst_11 = arith.constant dense<0.000000e+00> : vector<16xf32>
    %23 = vector.multi_reduction <add>, %22, %cst_11 [1] : vector<16x32xf32> to vector<16xf32>
    %24 = vector.shape_cast %23 : vector<16xf32> to vector<16x1xf32>
    %25 = vector.broadcast %24 : vector<16x1xf32> to vector<16x32xf32>
    %26 = arith.divf %22, %25 : vector<16x32xf32>
    %c0_12 = arith.constant 0 : index
    %c8 = arith.constant 8 : index
    %27 = vector.load %arg13[%c0_12, %c8] : memref<32x128xf32, #tpu.memory_space<vmem>>, vector<32x8xf32>
    %28 = vector.extract_strided_slice %14 {offsets = [0, 8], sizes = [16, 8], strides = [1, 1]} : vector<16x64xf32> to vector<16x8xf32>
    "tpu.trace_start"() <{level = 10 : i32, message = "qd,kd->qk"}> : () -> ()
    %cst_13 = arith.constant dense<0.000000e+00> : vector<16x32xf32>
    %29 = tpu.matmul %28, %27, %cst_13 {dimension_numbers = #tpu.dot_dimension_numbers<[1], [1], [0], [0], [0, 0, 1, 0], [], []>} : vector<16x8xf32>, vector<32x8xf32>, vector<16x32xf32> -> vector<16x32xf32>
    "tpu.trace_stop"() : () -> ()
    %cst_14 = arith.constant dense<0xFF800000> : vector<16xf32>
    %30 = vector.multi_reduction <maximumf>, %29, %cst_14 [1] : vector<16x32xf32> to vector<16xf32>
    %31 = vector.shape_cast %30 : vector<16xf32> to vector<16x1xf32>
    %32 = vector.broadcast %31 : vector<16x1xf32> to vector<16x32xf32>
    %33 = arith.subf %29, %32 : vector<16x32xf32>
    %34 = math.exp %33 : vector<16x32xf32>
    %cst_15 = arith.constant dense<0.000000e+00> : vector<16xf32>
    %35 = vector.multi_reduction <add>, %34, %cst_15 [1] : vector<16x32xf32> to vector<16xf32>
    %36 = vector.shape_cast %35 : vector<16xf32> to vector<16x1xf32>
    %37 = vector.broadcast %36 : vector<16x1xf32> to vector<16x32xf32>
    %38 = arith.divf %34, %37 : vector<16x32xf32>
    %c0_16 = arith.constant 0 : index
    %c16 = arith.constant 16 : index
    %39 = vector.load %arg13[%c0_16, %c16] : memref<32x128xf32, #tpu.memory_space<vmem>>, vector<32x8xf32>
    %40 = vector.extract_strided_slice %14 {offsets = [0, 16], sizes = [16, 8], strides = [1, 1]} : vector<16x64xf32> to vector<16x8xf32>
    "tpu.trace_start"() <{level = 10 : i32, message = "qd,kd->qk"}> : () -> ()
    %cst_17 = arith.constant dense<0.000000e+00> : vector<16x32xf32>
    %41 = tpu.matmul %40, %39, %cst_17 {dimension_numbers = #tpu.dot_dimension_numbers<[1], [1], [0], [0], [0, 0, 1, 0], [], []>} : vector<16x8xf32>, vector<32x8xf32>, vector<16x32xf32> -> vector<16x32xf32>
    "tpu.trace_stop"() : () -> ()
    %cst_18 = arith.constant dense<0xFF800000> : vector<16xf32>
    %42 = vector.multi_reduction <maximumf>, %41, %cst_18 [1] : vector<16x32xf32> to vector<16xf32>
    %43 = vector.shape_cast %42 : vector<16xf32> to vector<16x1xf32>
    %44 = vector.broadcast %43 : vector<16x1xf32> to vector<16x32xf32>
    %45 = arith.subf %41, %44 : vector<16x32xf32>
    %46 = math.exp %45 : vector<16x32xf32>
    %cst_19 = arith.constant dense<0.000000e+00> : vector<16xf32>
    %47 = vector.multi_reduction <add>, %46, %cst_19 [1] : vector<16x32xf32> to vector<16xf32>
    %48 = vector.shape_cast %47 : vector<16xf32> to vector<16x1xf32>
    %49 = vector.broadcast %48 : vector<16x1xf32> to vector<16x32xf32>
    %50 = arith.divf %46, %49 : vector<16x32xf32>
    %c0_20 = arith.constant 0 : index
    %c24 = arith.constant 24 : index
    %51 = vector.load %arg13[%c0_20, %c24] : memref<32x128xf32, #tpu.memory_space<vmem>>, vector<32x8xf32>
    %52 = vector.extract_strided_slice %14 {offsets = [0, 24], sizes = [16, 8], strides = [1, 1]} : vector<16x64xf32> to vector<16x8xf32>
    "tpu.trace_start"() <{level = 10 : i32, message = "qd,kd->qk"}> : () -> ()
    %cst_21 = arith.constant dense<0.000000e+00> : vector<16x32xf32>
    %53 = tpu.matmul %52, %51, %cst_21 {dimension_numbers = #tpu.dot_dimension_numbers<[1], [1], [0], [0], [0, 0, 1, 0], [], []>} : vector<16x8xf32>, vector<32x8xf32>, vector<16x32xf32> -> vector<16x32xf32>
    "tpu.trace_stop"() : () -> ()
    %cst_22 = arith.constant dense<0xFF800000> : vector<16xf32>
    %54 = vector.multi_reduction <maximumf>, %53, %cst_22 [1] : vector<16x32xf32> to vector<16xf32>
    %55 = vector.shape_cast %54 : vector<16xf32> to vector<16x1xf32>
    %56 = vector.broadcast %55 : vector<16x1xf32> to vector<16x32xf32>
    %57 = arith.subf %53, %56 : vector<16x32xf32>
    %58 = math.exp %57 : vector<16x32xf32>
    %cst_23 = arith.constant dense<0.000000e+00> : vector<16xf32>
    %59 = vector.multi_reduction <add>, %58, %cst_23 [1] : vector<16x32xf32> to vector<16xf32>
    %60 = vector.shape_cast %59 : vector<16xf32> to vector<16x1xf32>
    %61 = vector.broadcast %60 : vector<16x1xf32> to vector<16x32xf32>
    %62 = arith.divf %58, %61 : vector<16x32xf32>
    %c0_24 = arith.constant 0 : index
    %c32 = arith.constant 32 : index
    %63 = vector.load %arg13[%c0_24, %c32] : memref<32x128xf32, #tpu.memory_space<vmem>>, vector<32x8xf32>
    %64 = vector.extract_strided_slice %14 {offsets = [0, 32], sizes = [16, 8], strides = [1, 1]} : vector<16x64xf32> to vector<16x8xf32>
    "tpu.trace_start"() <{level = 10 : i32, message = "qd,kd->qk"}> : () -> ()
    %cst_25 = arith.constant dense<0.000000e+00> : vector<16x32xf32>
    %65 = tpu.matmul %64, %63, %cst_25 {dimension_numbers = #tpu.dot_dimension_numbers<[1], [1], [0], [0], [0, 0, 1, 0], [], []>} : vector<16x8xf32>, vector<32x8xf32>, vector<16x32xf32> -> vector<16x32xf32>
    "tpu.trace_stop"() : () -> ()
    %cst_26 = arith.constant dense<0xFF800000> : vector<16xf32>
    %66 = vector.multi_reduction <maximumf>, %65, %cst_26 [1] : vector<16x32xf32> to vector<16xf32>
    %67 = vector.shape_cast %66 : vector<16xf32> to vector<16x1xf32>
    %68 = vector.broadcast %67 : vector<16x1xf32> to vector<16x32xf32>
    %69 = arith.subf %65, %68 : vector<16x32xf32>
    %70 = math.exp %69 : vector<16x32xf32>
    %cst_27 = arith.constant dense<0.000000e+00> : vector<16xf32>
    %71 = vector.multi_reduction <add>, %70, %cst_27 [1] : vector<16x32xf32> to vector<16xf32>
    %72 = vector.shape_cast %71 : vector<16xf32> to vector<16x1xf32>
    %73 = vector.broadcast %72 : vector<16x1xf32> to vector<16x32xf32>
    %74 = arith.divf %70, %73 : vector<16x32xf32>
    %c0_28 = arith.constant 0 : index
    %c40 = arith.constant 40 : index
    %75 = vector.load %arg13[%c0_28, %c40] : memref<32x128xf32, #tpu.memory_space<vmem>>, vector<32x8xf32>
    %76 = vector.extract_strided_slice %14 {offsets = [0, 40], sizes = [16, 8], strides = [1, 1]} : vector<16x64xf32> to vector<16x8xf32>
    "tpu.trace_start"() <{level = 10 : i32, message = "qd,kd->qk"}> : () -> ()
    %cst_29 = arith.constant dense<0.000000e+00> : vector<16x32xf32>
    %77 = tpu.matmul %76, %75, %cst_29 {dimension_numbers = #tpu.dot_dimension_numbers<[1], [1], [0], [0], [0, 0, 1, 0], [], []>} : vector<16x8xf32>, vector<32x8xf32>, vector<16x32xf32> -> vector<16x32xf32>
    "tpu.trace_stop"() : () -> ()
    %cst_30 = arith.constant dense<0xFF800000> : vector<16xf32>
    %78 = vector.multi_reduction <maximumf>, %77, %cst_30 [1] : vector<16x32xf32> to vector<16xf32>
    %79 = vector.shape_cast %78 : vector<16xf32> to vector<16x1xf32>
    %80 = vector.broadcast %79 : vector<16x1xf32> to vector<16x32xf32>
    %81 = arith.subf %77, %80 : vector<16x32xf32>
    %82 = math.exp %81 : vector<16x32xf32>
    %cst_31 = arith.constant dense<0.000000e+00> : vector<16xf32>
    %83 = vector.multi_reduction <add>, %82, %cst_31 [1] : vector<16x32xf32> to vector<16xf32>
    %84 = vector.shape_cast %83 : vector<16xf32> to vector<16x1xf32>
    %85 = vector.broadcast %84 : vector<16x1xf32> to vector<16x32xf32>
    %86 = arith.divf %82, %85 : vector<16x32xf32>
    %c0_32 = arith.constant 0 : index
    %c48 = arith.constant 48 : index
    %87 = vector.load %arg13[%c0_32, %c48] : memref<32x128xf32, #tpu.memory_space<vmem>>, vector<32x8xf32>
    %88 = vector.extract_strided_slice %14 {offsets = [0, 48], sizes = [16, 8], strides = [1, 1]} : vector<16x64xf32> to vector<16x8xf32>
    "tpu.trace_start"() <{level = 10 : i32, message = "qd,kd->qk"}> : () -> ()
    %cst_33 = arith.constant dense<0.000000e+00> : vector<16x32xf32>
    %89 = tpu.matmul %88, %87, %cst_33 {dimension_numbers = #tpu.dot_dimension_numbers<[1], [1], [0], [0], [0, 0, 1, 0], [], []>} : vector<16x8xf32>, vector<32x8xf32>, vector<16x32xf32> -> vector<16x32xf32>
    "tpu.trace_stop"() : () -> ()
    %cst_34 = arith.constant dense<0xFF800000> : vector<16xf32>
    %90 = vector.multi_reduction <maximumf>, %89, %cst_34 [1] : vector<16x32xf32> to vector<16xf32>
    %91 = vector.shape_cast %90 : vector<16xf32> to vector<16x1xf32>
    %92 = vector.broadcast %91 : vector<16x1xf32> to vector<16x32xf32>
    %93 = arith.subf %89, %92 : vector<16x32xf32>
    %94 = math.exp %93 : vector<16x32xf32>
    %cst_35 = arith.constant dense<0.000000e+00> : vector<16xf32>
    %95 = vector.multi_reduction <add>, %94, %cst_35 [1] : vector<16x32xf32> to vector<16xf32>
    %96 = vector.shape_cast %95 : vector<16xf32> to vector<16x1xf32>
    %97 = vector.broadcast %96 : vector<16x1xf32> to vector<16x32xf32>
    %98 = arith.divf %94, %97 : vector<16x32xf32>
    %c0_36 = arith.constant 0 : index
    %c56 = arith.constant 56 : index
    %99 = vector.load %arg13[%c0_36, %c56] : memref<32x128xf32, #tpu.memory_space<vmem>>, vector<32x8xf32>
    %100 = vector.extract_strided_slice %14 {offsets = [0, 56], sizes = [16, 8], strides = [1, 1]} : vector<16x64xf32> to vector<16x8xf32>
    "tpu.trace_start"() <{level = 10 : i32, message = "qd,kd->qk"}> : () -> ()
    %cst_37 = arith.constant dense<0.000000e+00> : vector<16x32xf32>
    %101 = tpu.matmul %100, %99, %cst_37 {dimension_numbers = #tpu.dot_dimension_numbers<[1], [1], [0], [0], [0, 0, 1, 0], [], []>} : vector<16x8xf32>, vector<32x8xf32>, vector<16x32xf32> -> vector<16x32xf32>
    "tpu.trace_stop"() : () -> ()
    %cst_38 = arith.constant dense<0xFF800000> : vector<16xf32>
    %102 = vector.multi_reduction <maximumf>, %101, %cst_38 [1] : vector<16x32xf32> to vector<16xf32>
    %103 = vector.shape_cast %102 : vector<16xf32> to vector<16x1xf32>
    %104 = vector.broadcast %103 : vector<16x1xf32> to vector<16x32xf32>
    %105 = arith.subf %101, %104 : vector<16x32xf32>
    %106 = math.exp %105 : vector<16x32xf32>
    %cst_39 = arith.constant dense<0.000000e+00> : vector<16xf32>
    %107 = vector.multi_reduction <add>, %106, %cst_39 [1] : vector<16x32xf32> to vector<16xf32>
    %108 = vector.shape_cast %107 : vector<16xf32> to vector<16x1xf32>
    %109 = vector.broadcast %108 : vector<16x1xf32> to vector<16x32xf32>
    %110 = arith.divf %106, %109 : vector<16x32xf32>
    %c0_40 = arith.constant 0 : index
    %c0_41 = arith.constant 0 : index
    %111 = memref.load %arg7[%c0_40, %c0_41] : memref<8x8xf32, #tpu.memory_space<smem>>
    %112 = vector.broadcast %111 : f32 to vector<16x32xf32>
    %113 = arith.mulf %112, %26 : vector<16x32xf32>
    %c0_42 = arith.constant 0 : index
    %c1 = arith.constant 1 : index
    %114 = memref.load %arg7[%c0_42, %c1] : memref<8x8xf32, #tpu.memory_space<smem>>
    %115 = vector.broadcast %114 : f32 to vector<16x32xf32>
    %116 = arith.mulf %115, %38 : vector<16x32xf32>
    %117 = arith.addf %113, %116 : vector<16x32xf32>
    %c0_43 = arith.constant 0 : index
    %c2 = arith.constant 2 : index
    %118 = memref.load %arg7[%c0_43, %c2] : memref<8x8xf32, #tpu.memory_space<smem>>
    %119 = vector.broadcast %118 : f32 to vector<16x32xf32>
    %120 = arith.mulf %119, %50 : vector<16x32xf32>
    %121 = arith.addf %117, %120 : vector<16x32xf32>
    %c0_44 = arith.constant 0 : index
    %c3 = arith.constant 3 : index
    %122 = memref.load %arg7[%c0_44, %c3] : memref<8x8xf32, #tpu.memory_space<smem>>
    %123 = vector.broadcast %122 : f32 to vector<16x32xf32>
    %124 = arith.mulf %123, %62 : vector<16x32xf32>
    %125 = arith.addf %121, %124 : vector<16x32xf32>
    %c0_45 = arith.constant 0 : index
    %c4 = arith.constant 4 : index
    %126 = memref.load %arg7[%c0_45, %c4] : memref<8x8xf32, #tpu.memory_space<smem>>
    %127 = vector.broadcast %126 : f32 to vector<16x32xf32>
    %128 = arith.mulf %127, %74 : vector<16x32xf32>
    %129 = arith.addf %125, %128 : vector<16x32xf32>
    %c0_46 = arith.constant 0 : index
    %c5 = arith.constant 5 : index
    %130 = memref.load %arg7[%c0_46, %c5] : memref<8x8xf32, #tpu.memory_space<smem>>
    %131 = vector.broadcast %130 : f32 to vector<16x32xf32>
    %132 = arith.mulf %131, %86 : vector<16x32xf32>
    %133 = arith.addf %129, %132 : vector<16x32xf32>
    %c0_47 = arith.constant 0 : index
    %c6 = arith.constant 6 : index
    %134 = memref.load %arg7[%c0_47, %c6] : memref<8x8xf32, #tpu.memory_space<smem>>
    %135 = vector.broadcast %134 : f32 to vector<16x32xf32>
    %136 = arith.mulf %135, %98 : vector<16x32xf32>
    %137 = arith.addf %133, %136 : vector<16x32xf32>
    %c0_48 = arith.constant 0 : index
    %c7 = arith.constant 7 : index
    %138 = memref.load %arg7[%c0_48, %c7] : memref<8x8xf32, #tpu.memory_space<smem>>
    %139 = vector.broadcast %138 : f32 to vector<16x32xf32>
    %140 = arith.mulf %139, %110 : vector<16x32xf32>
    %141 = arith.addf %137, %140 : vector<16x32xf32>
    %c0_49 = arith.constant 0 : index
    %142 = memref.load %arg8[%c0_49] : memref<8xf32, #tpu.memory_space<smem>>
    %143 = vector.broadcast %142 : f32 to vector<16x32xf32>
    %144 = arith.addf %141, %143 : vector<16x32xf32>
    %c0_50 = arith.constant 0 : index
    %c0_51 = arith.constant 0 : index
    %c0_52 = arith.constant 0 : index
    %c0_53 = arith.constant 0 : index
    %145 = vector.load %arg12[%c0_50, %c0_51, %c0_52, %c0_53] : memref<1x8x16x32xf32, #tpu.memory_space<vmem>>, vector<1x1x16x32xf32>
    %146 = vector.shape_cast %145 : vector<1x1x16x32xf32> to vector<16x32xf32>
    %147 = vector.shape_cast %144 : vector<16x32xf32> to vector<1x1x16x32xf32>
    tpu.vector_store %arg12[%c0_50, %c0_51, %c0_52, %c0_53], %147 {strides = array<i32>} : memref<1x8x16x32xf32, #tpu.memory_space<vmem>>, vector<1x1x16x32xf32>,
    %c0_54 = arith.constant 0 : index
    %c64 = arith.constant 64 : index
    %148 = vector.load %arg13[%c0_54, %c64] : memref<32x128xf32, #tpu.memory_space<vmem>>, vector<32x8xf32>
    %cst_55 = arith.constant dense<0.000000e+00> : vector<16x8xf32>
    %149 = tpu.matmul %144, %148, %cst_55 {dimension_numbers = #tpu.dot_dimension_numbers<[1], [0], [0], [1], [0, 0, 1, 1], [], []>} : vector<16x32xf32>, vector<32x8xf32>, vector<16x8xf32> -> vector<16x8xf32>
    %c0_56 = arith.constant 0 : index
    %c0_57 = arith.constant 0 : index
    %150 = vector.load %arg14[%c0_56, %c0_57] : memref<16x64xf32, #tpu.memory_space<vmem>>, vector<16x8xf32>
    tpu.vector_store %arg14[%c0_56, %c0_57], %149 {strides = array<i32>} : memref<16x64xf32, #tpu.memory_space<vmem>>, vector<16x8xf32>,
    %c1_58 = arith.constant 1 : index
    %c0_59 = arith.constant 0 : index
    %151 = memref.load %arg7[%c1_58, %c0_59] : memref<8x8xf32, #tpu.memory_space<smem>>
    %152 = vector.broadcast %151 : f32 to vector<16x32xf32>
    %153 = arith.mulf %152, %26 : vector<16x32xf32>
    %c1_60 = arith.constant 1 : index
    %c1_61 = arith.constant 1 : index
    %154 = memref.load %arg7[%c1_60, %c1_61] : memref<8x8xf32, #tpu.memory_space<smem>>
    %155 = vector.broadcast %154 : f32 to vector<16x32xf32>
    %156 = arith.mulf %155, %38 : vector<16x32xf32>
    %157 = arith.addf %153, %156 : vector<16x32xf32>
    %c1_62 = arith.constant 1 : index
    %c2_63 = arith.constant 2 : index
    %158 = memref.load %arg7[%c1_62, %c2_63] : memref<8x8xf32, #tpu.memory_space<smem>>
    %159 = vector.broadcast %158 : f32 to vector<16x32xf32>
    %160 = arith.mulf %159, %50 : vector<16x32xf32>
    %161 = arith.addf %157, %160 : vector<16x32xf32>
    %c1_64 = arith.constant 1 : index
    %c3_65 = arith.constant 3 : index
    %162 = memref.load %arg7[%c1_64, %c3_65] : memref<8x8xf32, #tpu.memory_space<smem>>
    %163 = vector.broadcast %162 : f32 to vector<16x32xf32>
    %164 = arith.mulf %163, %62 : vector<16x32xf32>
    %165 = arith.addf %161, %164 : vector<16x32xf32>
    %c1_66 = arith.constant 1 : index
    %c4_67 = arith.constant 4 : index
    %166 = memref.load %arg7[%c1_66, %c4_67] : memref<8x8xf32, #tpu.memory_space<smem>>
    %167 = vector.broadcast %166 : f32 to vector<16x32xf32>
    %168 = arith.mulf %167, %74 : vector<16x32xf32>
    %169 = arith.addf %165, %168 : vector<16x32xf32>
    %c1_68 = arith.constant 1 : index
    %c5_69 = arith.constant 5 : index
    %170 = memref.load %arg7[%c1_68, %c5_69] : memref<8x8xf32, #tpu.memory_space<smem>>
    %171 = vector.broadcast %170 : f32 to vector<16x32xf32>
    %172 = arith.mulf %171, %86 : vector<16x32xf32>
    %173 = arith.addf %169, %172 : vector<16x32xf32>
    %c1_70 = arith.constant 1 : index
    %c6_71 = arith.constant 6 : index
    %174 = memref.load %arg7[%c1_70, %c6_71] : memref<8x8xf32, #tpu.memory_space<smem>>
    %175 = vector.broadcast %174 : f32 to vector<16x32xf32>
    %176 = arith.mulf %175, %98 : vector<16x32xf32>
    %177 = arith.addf %173, %176 : vector<16x32xf32>
    %c1_72 = arith.constant 1 : index
    %c7_73 = arith.constant 7 : index
    %178 = memref.load %arg7[%c1_72, %c7_73] : memref<8x8xf32, #tpu.memory_space<smem>>
    %179 = vector.broadcast %178 : f32 to vector<16x32xf32>
    %180 = arith.mulf %179, %110 : vector<16x32xf32>
    %181 = arith.addf %177, %180 : vector<16x32xf32>
    %c1_74 = arith.constant 1 : index
    %182 = memref.load %arg8[%c1_74] : memref<8xf32, #tpu.memory_space<smem>>
    %183 = vector.broadcast %182 : f32 to vector<16x32xf32>
    %184 = arith.addf %181, %183 : vector<16x32xf32>
    %c0_75 = arith.constant 0 : index
    %c1_76 = arith.constant 1 : index
    %c0_77 = arith.constant 0 : index
    %c0_78 = arith.constant 0 : index
    %185 = vector.load %arg12[%c0_75, %c1_76, %c0_77, %c0_78] : memref<1x8x16x32xf32, #tpu.memory_space<vmem>>, vector<1x1x16x32xf32>
    %186 = vector.shape_cast %185 : vector<1x1x16x32xf32> to vector<16x32xf32>
    %187 = vector.shape_cast %184 : vector<16x32xf32> to vector<1x1x16x32xf32>
    tpu.vector_store %arg12[%c0_75, %c1_76, %c0_77, %c0_78], %187 {strides = array<i32>} : memref<1x8x16x32xf32, #tpu.memory_space<vmem>>, vector<1x1x16x32xf32>,
    %c0_79 = arith.constant 0 : index
    %c72 = arith.constant 72 : index
    %188 = vector.load %arg13[%c0_79, %c72] : memref<32x128xf32, #tpu.memory_space<vmem>>, vector<32x8xf32>
    %cst_80 = arith.constant dense<0.000000e+00> : vector<16x8xf32>
    %189 = tpu.matmul %184, %188, %cst_80 {dimension_numbers = #tpu.dot_dimension_numbers<[1], [0], [0], [1], [0, 0, 1, 1], [], []>} : vector<16x32xf32>, vector<32x8xf32>, vector<16x8xf32> -> vector<16x8xf32>
    %c0_81 = arith.constant 0 : index
    %c8_82 = arith.constant 8 : index
    %190 = vector.load %arg14[%c0_81, %c8_82] : memref<16x64xf32, #tpu.memory_space<vmem>>, vector<16x8xf32>
    tpu.vector_store %arg14[%c0_81, %c8_82], %189 {strides = array<i32>} : memref<16x64xf32, #tpu.memory_space<vmem>>, vector<16x8xf32>,
    %c2_83 = arith.constant 2 : index
    %c0_84 = arith.constant 0 : index
    %191 = memref.load %arg7[%c2_83, %c0_84] : memref<8x8xf32, #tpu.memory_space<smem>>
    %192 = vector.broadcast %191 : f32 to vector<16x32xf32>
    %193 = arith.mulf %192, %26 : vector<16x32xf32>
    %c2_85 = arith.constant 2 : index
    %c1_86 = arith.constant 1 : index
    %194 = memref.load %arg7[%c2_85, %c1_86] : memref<8x8xf32, #tpu.memory_space<smem>>
    %195 = vector.broadcast %194 : f32 to vector<16x32xf32>
    %196 = arith.mulf %195, %38 : vector<16x32xf32>
    %197 = arith.addf %193, %196 : vector<16x32xf32>
    %c2_87 = arith.constant 2 : index
    %c2_88 = arith.constant 2 : index
    %198 = memref.load %arg7[%c2_87, %c2_88] : memref<8x8xf32, #tpu.memory_space<smem>>
    %199 = vector.broadcast %198 : f32 to vector<16x32xf32>
    %200 = arith.mulf %199, %50 : vector<16x32xf32>
    %201 = arith.addf %197, %200 : vector<16x32xf32>
    %c2_89 = arith.constant 2 : index
    %c3_90 = arith.constant 3 : index
    %202 = memref.load %arg7[%c2_89, %c3_90] : memref<8x8xf32, #tpu.memory_space<smem>>
    %203 = vector.broadcast %202 : f32 to vector<16x32xf32>
    %204 = arith.mulf %203, %62 : vector<16x32xf32>
    %205 = arith.addf %201, %204 : vector<16x32xf32>
    %c2_91 = arith.constant 2 : index
    %c4_92 = arith.constant 4 : index
    %206 = memref.load %arg7[%c2_91, %c4_92] : memref<8x8xf32, #tpu.memory_space<smem>>
    %207 = vector.broadcast %206 : f32 to vector<16x32xf32>
    %208 = arith.mulf %207, %74 : vector<16x32xf32>
    %209 = arith.addf %205, %208 : vector<16x32xf32>
    %c2_93 = arith.constant 2 : index
    %c5_94 = arith.constant 5 : index
    %210 = memref.load %arg7[%c2_93, %c5_94] : memref<8x8xf32, #tpu.memory_space<smem>>
    %211 = vector.broadcast %210 : f32 to vector<16x32xf32>
    %212 = arith.mulf %211, %86 : vector<16x32xf32>
    %213 = arith.addf %209, %212 : vector<16x32xf32>
    %c2_95 = arith.constant 2 : index
    %c6_96 = arith.constant 6 : index
    %214 = memref.load %arg7[%c2_95, %c6_96] : memref<8x8xf32, #tpu.memory_space<smem>>
    %215 = vector.broadcast %214 : f32 to vector<16x32xf32>
    %216 = arith.mulf %215, %98 : vector<16x32xf32>
    %217 = arith.addf %213, %216 : vector<16x32xf32>
    %c2_97 = arith.constant 2 : index
    %c7_98 = arith.constant 7 : index
    %218 = memref.load %arg7[%c2_97, %c7_98] : memref<8x8xf32, #tpu.memory_space<smem>>
    %219 = vector.broadcast %218 : f32 to vector<16x32xf32>
    %220 = arith.mulf %219, %110 : vector<16x32xf32>
    %221 = arith.addf %217, %220 : vector<16x32xf32>
    %c2_99 = arith.constant 2 : index
    %222 = memref.load %arg8[%c2_99] : memref<8xf32, #tpu.memory_space<smem>>
    %223 = vector.broadcast %222 : f32 to vector<16x32xf32>
    %224 = arith.addf %221, %223 : vector<16x32xf32>
    %c0_100 = arith.constant 0 : index
    %c2_101 = arith.constant 2 : index
    %c0_102 = arith.constant 0 : index
    %c0_103 = arith.constant 0 : index
    %225 = vector.load %arg12[%c0_100, %c2_101, %c0_102, %c0_103] : memref<1x8x16x32xf32, #tpu.memory_space<vmem>>, vector<1x1x16x32xf32>
    %226 = vector.shape_cast %225 : vector<1x1x16x32xf32> to vector<16x32xf32>
    %227 = vector.shape_cast %224 : vector<16x32xf32> to vector<1x1x16x32xf32>
    tpu.vector_store %arg12[%c0_100, %c2_101, %c0_102, %c0_103], %227 {strides = array<i32>} : memref<1x8x16x32xf32, #tpu.memory_space<vmem>>, vector<1x1x16x32xf32>,
    %c0_104 = arith.constant 0 : index
    %c80 = arith.constant 80 : index
    %228 = vector.load %arg13[%c0_104, %c80] : memref<32x128xf32, #tpu.memory_space<vmem>>, vector<32x8xf32>
    %cst_105 = arith.constant dense<0.000000e+00> : vector<16x8xf32>
    %229 = tpu.matmul %224, %228, %cst_105 {dimension_numbers = #tpu.dot_dimension_numbers<[1], [0], [0], [1], [0, 0, 1, 1], [], []>} : vector<16x32xf32>, vector<32x8xf32>, vector<16x8xf32> -> vector<16x8xf32>
    %c0_106 = arith.constant 0 : index
    %c16_107 = arith.constant 16 : index
    %230 = vector.load %arg14[%c0_106, %c16_107] : memref<16x64xf32, #tpu.memory_space<vmem>>, vector<16x8xf32>
    tpu.vector_store %arg14[%c0_106, %c16_107], %229 {strides = array<i32>} : memref<16x64xf32, #tpu.memory_space<vmem>>, vector<16x8xf32>,
    %c3_108 = arith.constant 3 : index
    %c0_109 = arith.constant 0 : index
    %231 = memref.load %arg7[%c3_108, %c0_109] : memref<8x8xf32, #tpu.memory_space<smem>>
    %232 = vector.broadcast %231 : f32 to vector<16x32xf32>
    %233 = arith.mulf %232, %26 : vector<16x32xf32>
    %c3_110 = arith.constant 3 : index
    %c1_111 = arith.constant 1 : index
    %234 = memref.load %arg7[%c3_110, %c1_111] : memref<8x8xf32, #tpu.memory_space<smem>>
    %235 = vector.broadcast %234 : f32 to vector<16x32xf32>
    %236 = arith.mulf %235, %38 : vector<16x32xf32>
    %237 = arith.addf %233, %236 : vector<16x32xf32>
    %c3_112 = arith.constant 3 : index
    %c2_113 = arith.constant 2 : index
    %238 = memref.load %arg7[%c3_112, %c2_113] : memref<8x8xf32, #tpu.memory_space<smem>>
    %239 = vector.broadcast %238 : f32 to vector<16x32xf32>
    %240 = arith.mulf %239, %50 : vector<16x32xf32>
    %241 = arith.addf %237, %240 : vector<16x32xf32>
    %c3_114 = arith.constant 3 : index
    %c3_115 = arith.constant 3 : index
    %242 = memref.load %arg7[%c3_114, %c3_115] : memref<8x8xf32, #tpu.memory_space<smem>>
    %243 = vector.broadcast %242 : f32 to vector<16x32xf32>
    %244 = arith.mulf %243, %62 : vector<16x32xf32>
    %245 = arith.addf %241, %244 : vector<16x32xf32>
    %c3_116 = arith.constant 3 : index
    %c4_117 = arith.constant 4 : index
    %246 = memref.load %arg7[%c3_116, %c4_117] : memref<8x8xf32, #tpu.memory_space<smem>>
    %247 = vector.broadcast %246 : f32 to vector<16x32xf32>
    %248 = arith.mulf %247, %74 : vector<16x32xf32>
    %249 = arith.addf %245, %248 : vector<16x32xf32>
    %c3_118 = arith.constant 3 : index
    %c5_119 = arith.constant 5 : index
    %250 = memref.load %arg7[%c3_118, %c5_119] : memref<8x8xf32, #tpu.memory_space<smem>>
    %251 = vector.broadcast %250 : f32 to vector<16x32xf32>
    %252 = arith.mulf %251, %86 : vector<16x32xf32>
    %253 = arith.addf %249, %252 : vector<16x32xf32>
    %c3_120 = arith.constant 3 : index
    %c6_121 = arith.constant 6 : index
    %254 = memref.load %arg7[%c3_120, %c6_121] : memref<8x8xf32, #tpu.memory_space<smem>>
    %255 = vector.broadcast %254 : f32 to vector<16x32xf32>
    %256 = arith.mulf %255, %98 : vector<16x32xf32>
    %257 = arith.addf %253, %256 : vector<16x32xf32>
    %c3_122 = arith.constant 3 : index
    %c7_123 = arith.constant 7 : index
    %258 = memref.load %arg7[%c3_122, %c7_123] : memref<8x8xf32, #tpu.memory_space<smem>>
    %259 = vector.broadcast %258 : f32 to vector<16x32xf32>
    %260 = arith.mulf %259, %110 : vector<16x32xf32>
    %261 = arith.addf %257, %260 : vector<16x32xf32>
    %c3_124 = arith.constant 3 : index
    %262 = memref.load %arg8[%c3_124] : memref<8xf32, #tpu.memory_space<smem>>
    %263 = vector.broadcast %262 : f32 to vector<16x32xf32>
    %264 = arith.addf %261, %263 : vector<16x32xf32>
    %c0_125 = arith.constant 0 : index
    %c3_126 = arith.constant 3 : index
    %c0_127 = arith.constant 0 : index
    %c0_128 = arith.constant 0 : index
    %265 = vector.load %arg12[%c0_125, %c3_126, %c0_127, %c0_128] : memref<1x8x16x32xf32, #tpu.memory_space<vmem>>, vector<1x1x16x32xf32>
    %266 = vector.shape_cast %265 : vector<1x1x16x32xf32> to vector<16x32xf32>
    %267 = vector.shape_cast %264 : vector<16x32xf32> to vector<1x1x16x32xf32>
    tpu.vector_store %arg12[%c0_125, %c3_126, %c0_127, %c0_128], %267 {strides = array<i32>} : memref<1x8x16x32xf32, #tpu.memory_space<vmem>>, vector<1x1x16x32xf32>,
    %c0_129 = arith.constant 0 : index
    %c88 = arith.constant 88 : index
    %268 = vector.load %arg13[%c0_129, %c88] : memref<32x128xf32, #tpu.memory_space<vmem>>, vector<32x8xf32>
    %cst_130 = arith.constant dense<0.000000e+00> : vector<16x8xf32>
    %269 = tpu.matmul %264, %268, %cst_130 {dimension_numbers = #tpu.dot_dimension_numbers<[1], [0], [0], [1], [0, 0, 1, 1], [], []>} : vector<16x32xf32>, vector<32x8xf32>, vector<16x8xf32> -> vector<16x8xf32>
    %c0_131 = arith.constant 0 : index
    %c24_132 = arith.constant 24 : index
    %270 = vector.load %arg14[%c0_131, %c24_132] : memref<16x64xf32, #tpu.memory_space<vmem>>, vector<16x8xf32>
    tpu.vector_store %arg14[%c0_131, %c24_132], %269 {strides = array<i32>} : memref<16x64xf32, #tpu.memory_space<vmem>>, vector<16x8xf32>,
    %c4_133 = arith.constant 4 : index
    %c0_134 = arith.constant 0 : index
    %271 = memref.load %arg7[%c4_133, %c0_134] : memref<8x8xf32, #tpu.memory_space<smem>>
    %272 = vector.broadcast %271 : f32 to vector<16x32xf32>
    %273 = arith.mulf %272, %26 : vector<16x32xf32>
    %c4_135 = arith.constant 4 : index
    %c1_136 = arith.constant 1 : index
    %274 = memref.load %arg7[%c4_135, %c1_136] : memref<8x8xf32, #tpu.memory_space<smem>>
    %275 = vector.broadcast %274 : f32 to vector<16x32xf32>
    %276 = arith.mulf %275, %38 : vector<16x32xf32>
    %277 = arith.addf %273, %276 : vector<16x32xf32>
    %c4_137 = arith.constant 4 : index
    %c2_138 = arith.constant 2 : index
    %278 = memref.load %arg7[%c4_137, %c2_138] : memref<8x8xf32, #tpu.memory_space<smem>>
    %279 = vector.broadcast %278 : f32 to vector<16x32xf32>
    %280 = arith.mulf %279, %50 : vector<16x32xf32>
    %281 = arith.addf %277, %280 : vector<16x32xf32>
    %c4_139 = arith.constant 4 : index
    %c3_140 = arith.constant 3 : index
    %282 = memref.load %arg7[%c4_139, %c3_140] : memref<8x8xf32, #tpu.memory_space<smem>>
    %283 = vector.broadcast %282 : f32 to vector<16x32xf32>
    %284 = arith.mulf %283, %62 : vector<16x32xf32>
    %285 = arith.addf %281, %284 : vector<16x32xf32>
    %c4_141 = arith.constant 4 : index
    %c4_142 = arith.constant 4 : index
    %286 = memref.load %arg7[%c4_141, %c4_142] : memref<8x8xf32, #tpu.memory_space<smem>>
    %287 = vector.broadcast %286 : f32 to vector<16x32xf32>
    %288 = arith.mulf %287, %74 : vector<16x32xf32>
    %289 = arith.addf %285, %288 : vector<16x32xf32>
    %c4_143 = arith.constant 4 : index
    %c5_144 = arith.constant 5 : index
    %290 = memref.load %arg7[%c4_143, %c5_144] : memref<8x8xf32, #tpu.memory_space<smem>>
    %291 = vector.broadcast %290 : f32 to vector<16x32xf32>
    %292 = arith.mulf %291, %86 : vector<16x32xf32>
    %293 = arith.addf %289, %292 : vector<16x32xf32>
    %c4_145 = arith.constant 4 : index
    %c6_146 = arith.constant 6 : index
    %294 = memref.load %arg7[%c4_145, %c6_146] : memref<8x8xf32, #tpu.memory_space<smem>>
    %295 = vector.broadcast %294 : f32 to vector<16x32xf32>
    %296 = arith.mulf %295, %98 : vector<16x32xf32>
    %297 = arith.addf %293, %296 : vector<16x32xf32>
    %c4_147 = arith.constant 4 : index
    %c7_148 = arith.constant 7 : index
    %298 = memref.load %arg7[%c4_147, %c7_148] : memref<8x8xf32, #tpu.memory_space<smem>>
    %299 = vector.broadcast %298 : f32 to vector<16x32xf32>
    %300 = arith.mulf %299, %110 : vector<16x32xf32>
    %301 = arith.addf %297, %300 : vector<16x32xf32>
    %c4_149 = arith.constant 4 : index
    %302 = memref.load %arg8[%c4_149] : memref<8xf32, #tpu.memory_space<smem>>
    %303 = vector.broadcast %302 : f32 to vector<16x32xf32>
    %304 = arith.addf %301, %303 : vector<16x32xf32>
    %c0_150 = arith.constant 0 : index
    %c4_151 = arith.constant 4 : index
    %c0_152 = arith.constant 0 : index
    %c0_153 = arith.constant 0 : index
    %305 = vector.load %arg12[%c0_150, %c4_151, %c0_152, %c0_153] : memref<1x8x16x32xf32, #tpu.memory_space<vmem>>, vector<1x1x16x32xf32>
    %306 = vector.shape_cast %305 : vector<1x1x16x32xf32> to vector<16x32xf32>
    %307 = vector.shape_cast %304 : vector<16x32xf32> to vector<1x1x16x32xf32>
    tpu.vector_store %arg12[%c0_150, %c4_151, %c0_152, %c0_153], %307 {strides = array<i32>} : memref<1x8x16x32xf32, #tpu.memory_space<vmem>>, vector<1x1x16x32xf32>,
    %c0_154 = arith.constant 0 : index
    %c96 = arith.constant 96 : index
    %308 = vector.load %arg13[%c0_154, %c96] : memref<32x128xf32, #tpu.memory_space<vmem>>, vector<32x8xf32>
    %cst_155 = arith.constant dense<0.000000e+00> : vector<16x8xf32>
    %309 = tpu.matmul %304, %308, %cst_155 {dimension_numbers = #tpu.dot_dimension_numbers<[1], [0], [0], [1], [0, 0, 1, 1], [], []>} : vector<16x32xf32>, vector<32x8xf32>, vector<16x8xf32> -> vector<16x8xf32>
    %c0_156 = arith.constant 0 : index
    %c32_157 = arith.constant 32 : index
    %310 = vector.load %arg14[%c0_156, %c32_157] : memref<16x64xf32, #tpu.memory_space<vmem>>, vector<16x8xf32>
    tpu.vector_store %arg14[%c0_156, %c32_157], %309 {strides = array<i32>} : memref<16x64xf32, #tpu.memory_space<vmem>>, vector<16x8xf32>,
    %c5_158 = arith.constant 5 : index
    %c0_159 = arith.constant 0 : index
    %311 = memref.load %arg7[%c5_158, %c0_159] : memref<8x8xf32, #tpu.memory_space<smem>>
    %312 = vector.broadcast %311 : f32 to vector<16x32xf32>
    %313 = arith.mulf %312, %26 : vector<16x32xf32>
    %c5_160 = arith.constant 5 : index
    %c1_161 = arith.constant 1 : index
    %314 = memref.load %arg7[%c5_160, %c1_161] : memref<8x8xf32, #tpu.memory_space<smem>>
    %315 = vector.broadcast %314 : f32 to vector<16x32xf32>
    %316 = arith.mulf %315, %38 : vector<16x32xf32>
    %317 = arith.addf %313, %316 : vector<16x32xf32>
    %c5_162 = arith.constant 5 : index
    %c2_163 = arith.constant 2 : index
    %318 = memref.load %arg7[%c5_162, %c2_163] : memref<8x8xf32, #tpu.memory_space<smem>>
    %319 = vector.broadcast %318 : f32 to vector<16x32xf32>
    %320 = arith.mulf %319, %50 : vector<16x32xf32>
    %321 = arith.addf %317, %320 : vector<16x32xf32>
    %c5_164 = arith.constant 5 : index
    %c3_165 = arith.constant 3 : index
    %322 = memref.load %arg7[%c5_164, %c3_165] : memref<8x8xf32, #tpu.memory_space<smem>>
    %323 = vector.broadcast %322 : f32 to vector<16x32xf32>
    %324 = arith.mulf %323, %62 : vector<16x32xf32>
    %325 = arith.addf %321, %324 : vector<16x32xf32>
    %c5_166 = arith.constant 5 : index
    %c4_167 = arith.constant 4 : index
    %326 = memref.load %arg7[%c5_166, %c4_167] : memref<8x8xf32, #tpu.memory_space<smem>>
    %327 = vector.broadcast %326 : f32 to vector<16x32xf32>
    %328 = arith.mulf %327, %74 : vector<16x32xf32>
    %329 = arith.addf %325, %328 : vector<16x32xf32>
    %c5_168 = arith.constant 5 : index
    %c5_169 = arith.constant 5 : index
    %330 = memref.load %arg7[%c5_168, %c5_169] : memref<8x8xf32, #tpu.memory_space<smem>>
    %331 = vector.broadcast %330 : f32 to vector<16x32xf32>
    %332 = arith.mulf %331, %86 : vector<16x32xf32>
    %333 = arith.addf %329, %332 : vector<16x32xf32>
    %c5_170 = arith.constant 5 : index
    %c6_171 = arith.constant 6 : index
    %334 = memref.load %arg7[%c5_170, %c6_171] : memref<8x8xf32, #tpu.memory_space<smem>>
    %335 = vector.broadcast %334 : f32 to vector<16x32xf32>
    %336 = arith.mulf %335, %98 : vector<16x32xf32>
    %337 = arith.addf %333, %336 : vector<16x32xf32>
    %c5_172 = arith.constant 5 : index
    %c7_173 = arith.constant 7 : index
    %338 = memref.load %arg7[%c5_172, %c7_173] : memref<8x8xf32, #tpu.memory_space<smem>>
    %339 = vector.broadcast %338 : f32 to vector<16x32xf32>
    %340 = arith.mulf %339, %110 : vector<16x32xf32>
    %341 = arith.addf %337, %340 : vector<16x32xf32>
    %c5_174 = arith.constant 5 : index
    %342 = memref.load %arg8[%c5_174] : memref<8xf32, #tpu.memory_space<smem>>
    %343 = vector.broadcast %342 : f32 to vector<16x32xf32>
    %344 = arith.addf %341, %343 : vector<16x32xf32>
    %c0_175 = arith.constant 0 : index
    %c5_176 = arith.constant 5 : index
    %c0_177 = arith.constant 0 : index
    %c0_178 = arith.constant 0 : index
    %345 = vector.load %arg12[%c0_175, %c5_176, %c0_177, %c0_178] : memref<1x8x16x32xf32, #tpu.memory_space<vmem>>, vector<1x1x16x32xf32>
    %346 = vector.shape_cast %345 : vector<1x1x16x32xf32> to vector<16x32xf32>
    %347 = vector.shape_cast %344 : vector<16x32xf32> to vector<1x1x16x32xf32>
    tpu.vector_store %arg12[%c0_175, %c5_176, %c0_177, %c0_178], %347 {strides = array<i32>} : memref<1x8x16x32xf32, #tpu.memory_space<vmem>>, vector<1x1x16x32xf32>,
    %c0_179 = arith.constant 0 : index
    %c104 = arith.constant 104 : index
    %348 = vector.load %arg13[%c0_179, %c104] : memref<32x128xf32, #tpu.memory_space<vmem>>, vector<32x8xf32>
    %cst_180 = arith.constant dense<0.000000e+00> : vector<16x8xf32>
    %349 = tpu.matmul %344, %348, %cst_180 {dimension_numbers = #tpu.dot_dimension_numbers<[1], [0], [0], [1], [0, 0, 1, 1], [], []>} : vector<16x32xf32>, vector<32x8xf32>, vector<16x8xf32> -> vector<16x8xf32>
    %c0_181 = arith.constant 0 : index
    %c40_182 = arith.constant 40 : index
    %350 = vector.load %arg14[%c0_181, %c40_182] : memref<16x64xf32, #tpu.memory_space<vmem>>, vector<16x8xf32>
    tpu.vector_store %arg14[%c0_181, %c40_182], %349 {strides = array<i32>} : memref<16x64xf32, #tpu.memory_space<vmem>>, vector<16x8xf32>,
    %c6_183 = arith.constant 6 : index
    %c0_184 = arith.constant 0 : index
    %351 = memref.load %arg7[%c6_183, %c0_184] : memref<8x8xf32, #tpu.memory_space<smem>>
    %352 = vector.broadcast %351 : f32 to vector<16x32xf32>
    %353 = arith.mulf %352, %26 : vector<16x32xf32>
    %c6_185 = arith.constant 6 : index
    %c1_186 = arith.constant 1 : index
    %354 = memref.load %arg7[%c6_185, %c1_186] : memref<8x8xf32, #tpu.memory_space<smem>>
    %355 = vector.broadcast %354 : f32 to vector<16x32xf32>
    %356 = arith.mulf %355, %38 : vector<16x32xf32>
    %357 = arith.addf %353, %356 : vector<16x32xf32>
    %c6_187 = arith.constant 6 : index
    %c2_188 = arith.constant 2 : index
    %358 = memref.load %arg7[%c6_187, %c2_188] : memref<8x8xf32, #tpu.memory_space<smem>>
    %359 = vector.broadcast %358 : f32 to vector<16x32xf32>
    %360 = arith.mulf %359, %50 : vector<16x32xf32>
    %361 = arith.addf %357, %360 : vector<16x32xf32>
    %c6_189 = arith.constant 6 : index
    %c3_190 = arith.constant 3 : index
    %362 = memref.load %arg7[%c6_189, %c3_190] : memref<8x8xf32, #tpu.memory_space<smem>>
    %363 = vector.broadcast %362 : f32 to vector<16x32xf32>
    %364 = arith.mulf %363, %62 : vector<16x32xf32>
    %365 = arith.addf %361, %364 : vector<16x32xf32>
    %c6_191 = arith.constant 6 : index
    %c4_192 = arith.constant 4 : index
    %366 = memref.load %arg7[%c6_191, %c4_192] : memref<8x8xf32, #tpu.memory_space<smem>>
    %367 = vector.broadcast %366 : f32 to vector<16x32xf32>
    %368 = arith.mulf %367, %74 : vector<16x32xf32>
    %369 = arith.addf %365, %368 : vector<16x32xf32>
    %c6_193 = arith.constant 6 : index
    %c5_194 = arith.constant 5 : index
    %370 = memref.load %arg7[%c6_193, %c5_194] : memref<8x8xf32, #tpu.memory_space<smem>>
    %371 = vector.broadcast %370 : f32 to vector<16x32xf32>
    %372 = arith.mulf %371, %86 : vector<16x32xf32>
    %373 = arith.addf %369, %372 : vector<16x32xf32>
    %c6_195 = arith.constant 6 : index
    %c6_196 = arith.constant 6 : index
    %374 = memref.load %arg7[%c6_195, %c6_196] : memref<8x8xf32, #tpu.memory_space<smem>>
    %375 = vector.broadcast %374 : f32 to vector<16x32xf32>
    %376 = arith.mulf %375, %98 : vector<16x32xf32>
    %377 = arith.addf %373, %376 : vector<16x32xf32>
    %c6_197 = arith.constant 6 : index
    %c7_198 = arith.constant 7 : index
    %378 = memref.load %arg7[%c6_197, %c7_198] : memref<8x8xf32, #tpu.memory_space<smem>>
    %379 = vector.broadcast %378 : f32 to vector<16x32xf32>
    %380 = arith.mulf %379, %110 : vector<16x32xf32>
    %381 = arith.addf %377, %380 : vector<16x32xf32>
    %c6_199 = arith.constant 6 : index
    %382 = memref.load %arg8[%c6_199] : memref<8xf32, #tpu.memory_space<smem>>
    %383 = vector.broadcast %382 : f32 to vector<16x32xf32>
    %384 = arith.addf %381, %383 : vector<16x32xf32>
    %c0_200 = arith.constant 0 : index
    %c6_201 = arith.constant 6 : index
    %c0_202 = arith.constant 0 : index
    %c0_203 = arith.constant 0 : index
    %385 = vector.load %arg12[%c0_200, %c6_201, %c0_202, %c0_203] : memref<1x8x16x32xf32, #tpu.memory_space<vmem>>, vector<1x1x16x32xf32>
    %386 = vector.shape_cast %385 : vector<1x1x16x32xf32> to vector<16x32xf32>
    %387 = vector.shape_cast %384 : vector<16x32xf32> to vector<1x1x16x32xf32>
    tpu.vector_store %arg12[%c0_200, %c6_201, %c0_202, %c0_203], %387 {strides = array<i32>} : memref<1x8x16x32xf32, #tpu.memory_space<vmem>>, vector<1x1x16x32xf32>,
    %c0_204 = arith.constant 0 : index
    %c112 = arith.constant 112 : index
    %388 = vector.load %arg13[%c0_204, %c112] : memref<32x128xf32, #tpu.memory_space<vmem>>, vector<32x8xf32>
    %cst_205 = arith.constant dense<0.000000e+00> : vector<16x8xf32>
    %389 = tpu.matmul %384, %388, %cst_205 {dimension_numbers = #tpu.dot_dimension_numbers<[1], [0], [0], [1], [0, 0, 1, 1], [], []>} : vector<16x32xf32>, vector<32x8xf32>, vector<16x8xf32> -> vector<16x8xf32>
    %c0_206 = arith.constant 0 : index
    %c48_207 = arith.constant 48 : index
    %390 = vector.load %arg14[%c0_206, %c48_207] : memref<16x64xf32, #tpu.memory_space<vmem>>, vector<16x8xf32>
    tpu.vector_store %arg14[%c0_206, %c48_207], %389 {strides = array<i32>} : memref<16x64xf32, #tpu.memory_space<vmem>>, vector<16x8xf32>,
    %c7_208 = arith.constant 7 : index
    %c0_209 = arith.constant 0 : index
    %391 = memref.load %arg7[%c7_208, %c0_209] : memref<8x8xf32, #tpu.memory_space<smem>>
    %392 = vector.broadcast %391 : f32 to vector<16x32xf32>
    %393 = arith.mulf %392, %26 : vector<16x32xf32>
    %c7_210 = arith.constant 7 : index
    %c1_211 = arith.constant 1 : index
    %394 = memref.load %arg7[%c7_210, %c1_211] : memref<8x8xf32, #tpu.memory_space<smem>>
    %395 = vector.broadcast %394 : f32 to vector<16x32xf32>
    %396 = arith.mulf %395, %38 : vector<16x32xf32>
    %397 = arith.addf %393, %396 : vector<16x32xf32>
    %c7_212 = arith.constant 7 : index
    %c2_213 = arith.constant 2 : index
    %398 = memref.load %arg7[%c7_212, %c2_213] : memref<8x8xf32, #tpu.memory_space<smem>>
    %399 = vector.broadcast %398 : f32 to vector<16x32xf32>
    %400 = arith.mulf %399, %50 : vector<16x32xf32>
    %401 = arith.addf %397, %400 : vector<16x32xf32>
    %c7_214 = arith.constant 7 : index
    %c3_215 = arith.constant 3 : index
    %402 = memref.load %arg7[%c7_214, %c3_215] : memref<8x8xf32, #tpu.memory_space<smem>>
    %403 = vector.broadcast %402 : f32 to vector<16x32xf32>
    %404 = arith.mulf %403, %62 : vector<16x32xf32>
    %405 = arith.addf %401, %404 : vector<16x32xf32>
    %c7_216 = arith.constant 7 : index
    %c4_217 = arith.constant 4 : index
    %406 = memref.load %arg7[%c7_216, %c4_217] : memref<8x8xf32, #tpu.memory_space<smem>>
    %407 = vector.broadcast %406 : f32 to vector<16x32xf32>
    %408 = arith.mulf %407, %74 : vector<16x32xf32>
    %409 = arith.addf %405, %408 : vector<16x32xf32>
    %c7_218 = arith.constant 7 : index
    %c5_219 = arith.constant 5 : index
    %410 = memref.load %arg7[%c7_218, %c5_219] : memref<8x8xf32, #tpu.memory_space<smem>>
    %411 = vector.broadcast %410 : f32 to vector<16x32xf32>
    %412 = arith.mulf %411, %86 : vector<16x32xf32>
    %413 = arith.addf %409, %412 : vector<16x32xf32>
    %c7_220 = arith.constant 7 : index
    %c6_221 = arith.constant 6 : index
    %414 = memref.load %arg7[%c7_220, %c6_221] : memref<8x8xf32, #tpu.memory_space<smem>>
    %415 = vector.broadcast %414 : f32 to vector<16x32xf32>
    %416 = arith.mulf %415, %98 : vector<16x32xf32>
    %417 = arith.addf %413, %416 : vector<16x32xf32>
    %c7_222 = arith.constant 7 : index
    %c7_223 = arith.constant 7 : index
    %418 = memref.load %arg7[%c7_222, %c7_223] : memref<8x8xf32, #tpu.memory_space<smem>>
    %419 = vector.broadcast %418 : f32 to vector<16x32xf32>
    %420 = arith.mulf %419, %110 : vector<16x32xf32>
    %421 = arith.addf %417, %420 : vector<16x32xf32>
    %c7_224 = arith.constant 7 : index
    %422 = memref.load %arg8[%c7_224] : memref<8xf32, #tpu.memory_space<smem>>
    %423 = vector.broadcast %422 : f32 to vector<16x32xf32>
    %424 = arith.addf %421, %423 : vector<16x32xf32>
    %c0_225 = arith.constant 0 : index
    %c7_226 = arith.constant 7 : index
    %c0_227 = arith.constant 0 : index
    %c0_228 = arith.constant 0 : index
    %425 = vector.load %arg12[%c0_225, %c7_226, %c0_227, %c0_228] : memref<1x8x16x32xf32, #tpu.memory_space<vmem>>, vector<1x1x16x32xf32>
    %426 = vector.shape_cast %425 : vector<1x1x16x32xf32> to vector<16x32xf32>
    %427 = vector.shape_cast %424 : vector<16x32xf32> to vector<1x1x16x32xf32>
    tpu.vector_store %arg12[%c0_225, %c7_226, %c0_227, %c0_228], %427 {strides = array<i32>} : memref<1x8x16x32xf32, #tpu.memory_space<vmem>>, vector<1x1x16x32xf32>,
    %c0_229 = arith.constant 0 : index
    %c120 = arith.constant 120 : index
    %428 = vector.load %arg13[%c0_229, %c120] : memref<32x128xf32, #tpu.memory_space<vmem>>, vector<32x8xf32>
    %cst_230 = arith.constant dense<0.000000e+00> : vector<16x8xf32>
    %429 = tpu.matmul %424, %428, %cst_230 {dimension_numbers = #tpu.dot_dimension_numbers<[1], [0], [0], [1], [0, 0, 1, 1], [], []>} : vector<16x32xf32>, vector<32x8xf32>, vector<16x8xf32> -> vector<16x8xf32>
    %c0_231 = arith.constant 0 : index
    %c56_232 = arith.constant 56 : index
    %430 = vector.load %arg14[%c0_231, %c56_232] : memref<16x64xf32, #tpu.memory_space<vmem>>, vector<16x8xf32>
    tpu.vector_store %arg14[%c0_231, %c56_232], %429 {strides = array<i32>} : memref<16x64xf32, #tpu.memory_space<vmem>>, vector<16x8xf32>,
    %c0_233 = arith.constant 0 : index
    %c0_234 = arith.constant 0 : index
    %431 = vector.load %arg14[%c0_233, %c0_234] : memref<16x64xf32, #tpu.memory_space<vmem>>, vector<16x64xf32>
    %c0_235 = arith.constant 0 : index
    %c0_236 = arith.constant 0 : index
    %432 = vector.load %arg9[%c0_235, %c0_236] : memref<64x64xf32, #tpu.memory_space<vmem>>, vector<64x64xf32>
    %cst_237 = arith.constant dense<0.000000e+00> : vector<16x64xf32>
    %433 = tpu.matmul %431, %432, %cst_237 {dimension_numbers = #tpu.dot_dimension_numbers<[1], [0], [0], [1], [0, 0, 1, 1], [], []>} : vector<16x64xf32>, vector<64x64xf32>, vector<16x64xf32> -> vector<16x64xf32>
    %c0_238 = arith.constant 0 : index
    %c0_239 = arith.constant 0 : index
    %434 = vector.load %arg10[%c0_238, %c0_239] : memref<1x64xf32, #tpu.memory_space<vmem>>, vector<1x64xf32>
    %435 = vector.broadcast %434 : vector<1x64xf32> to vector<16x64xf32>
    %436 = arith.addf %433, %435 : vector<16x64xf32>
    %c0_240 = arith.constant 0 : index
    %c0_241 = arith.constant 0 : index
    %c0_242 = arith.constant 0 : index
    %437 = vector.load %arg11[%c0_240, %c0_241, %c0_242] : memref<1x16x64xf32, #tpu.memory_space<vmem>>, vector<1x16x64xf32>
    %438 = vector.shape_cast %437 : vector<1x16x64xf32> to vector<16x64xf32>
    %439 = vector.shape_cast %436 : vector<16x64xf32> to vector<1x16x64xf32>
    tpu.vector_store %arg11[%c0_240, %c0_241, %c0_242], %439 {strides = array<i32>} : memref<1x16x64xf32, #tpu.memory_space<vmem>>, vector<1x16x64xf32>,
    return
  }
  func.func @transform_0(%arg0: i32, %arg1: i32) -> (i32, i32, i32) {
    %c0_i32 = arith.constant 0 : i32
    %c0_i32_0 = arith.constant 0 : i32
    %c0_i32_1 = arith.constant 0 : i32
    return %arg0, %c0_i32, %c0_i32_0 : i32, i32, i32
  }
  func.func @transform_1(%arg0: i32, %arg1: i32) -> (i32, i32) {
    %c0_i32 = arith.constant 0 : i32
    %c0_i32_0 = arith.constant 0 : i32
    %c0_i32_1 = arith.constant 0 : i32
    return %c0_i32, %c0_i32_0 : i32, i32
  }
  func.func @transform_2(%arg0: i32, %arg1: i32) -> (i32, i32) {
    %c0_i32 = arith.constant 0 : i32
    %c0_i32_0 = arith.constant 0 : i32
    %c0_i32_1 = arith.constant 0 : i32
    return %c0_i32, %c0_i32_0 : i32, i32
  }
  func.func @transform_3(%arg0: i32, %arg1: i32) -> (i32, i32) {
    %c0_i32 = arith.constant 0 : i32
    %c0_i32_0 = arith.constant 0 : i32
    %c0_i32_1 = arith.constant 0 : i32
    return %c0_i32, %c0_i32_0 : i32, i32
  }
  func.func @transform_4(%arg0: i32, %arg1: i32) -> (i32, i32) {
    %c0_i32 = arith.constant 0 : i32
    %c0_i32_0 = arith.constant 0 : i32
    %c0_i32_1 = arith.constant 0 : i32
    return %c0_i32, %c0_i32_0 : i32, i32
  }
  func.func @transform_5(%arg0: i32, %arg1: i32) -> (i32, i32) {
    %c0_i32 = arith.constant 0 : i32
    %c0_i32_0 = arith.constant 0 : i32
    %c0_i32_1 = arith.constant 0 : i32
    return %c0_i32, %c0_i32_0 : i32, i32
  }
  func.func @transform_6(%arg0: i32, %arg1: i32) -> i32 {
    %c0_i32 = arith.constant 0 : i32
    %c0_i32_0 = arith.constant 0 : i32
    return %c0_i32 : i32
  }
  func.func @transform_7(%arg0: i32, %arg1: i32) -> (i32, i32) {
    %c0_i32 = arith.constant 0 : i32
    %c0_i32_0 = arith.constant 0 : i32
    %c0_i32_1 = arith.constant 0 : i32
    return %c0_i32, %c0_i32_0 : i32, i32
  }
  func.func @transform_8(%arg0: i32, %arg1: i32) -> (i32, i32) {
    %c0_i32 = arith.constant 0 : i32
    %c0_i32_0 = arith.constant 0 : i32
    %c0_i32_1 = arith.constant 0 : i32
    return %c0_i32, %c0_i32_0 : i32, i32
  }
  func.func @transform_9(%arg0: i32, %arg1: i32) -> (i32, i32, i32) {
    %c0_i32 = arith.constant 0 : i32
    %c0_i32_0 = arith.constant 0 : i32
    return %arg0, %arg1, %c0_i32 : i32, i32, i32
  }
  func.func @transform_10(%arg0: i32, %arg1: i32) -> (i32, i32, i32, i32) {
    %c0_i32 = arith.constant 0 : i32
    %c0_i32_0 = arith.constant 0 : i32
    %c0_i32_1 = arith.constant 0 : i32
    return %arg0, %c0_i32, %arg1, %c0_i32_0 : i32, i32, i32, i32
  }
}

module attributes {stable_mosaic.version = 11 : i64} {
  func.func @_reattention_kernel(%arg0: i32, %arg1: i32, %arg2: memref<1x32x64xf32, #tpu.memory_space<vmem>>, %arg3: memref<64x64xf32, #tpu.memory_space<vmem>>, %arg4: memref<1x64xf32, #tpu.memory_space<vmem>>, %arg5: memref<64x128xf32, #tpu.memory_space<vmem>>, %arg6: memref<1x128xf32, #tpu.memory_space<vmem>>, %arg7: memref<8x8xf32, #tpu.memory_space<smem>>, %arg8: memref<8xf32, #tpu.memory_space<smem>>, %arg9: memref<64x64xf32, #tpu.memory_space<vmem>>, %arg10: memref<1x64xf32, #tpu.memory_space<vmem>>, %arg11: memref<1x16x64xf32, #tpu.memory_space<vmem>>, %arg12: memref<1x8x16x32xf32, #tpu.memory_space<vmem>>, %arg13: memref<32x128xf32, #tpu.memory_space<vmem>>, %arg14: memref<16x64xf32, #tpu.memory_space<vmem>>) attributes {dimension_semantics = [#tpu.dimension_semantics<parallel>, #tpu.dimension_semantics<arbitrary>], iteration_bounds = array<i64: 2, 2>, scalar_prefetch = 0 : i64, scratch_operands = 2 : i64, tpu.core_type = #tpu.core_type<tc>, window_params = [{transform_indices = @transform_0, window_bounds = array<i64: 1, 32, 64>}, {pipeline_mode = #tpu.pipeline_mode<synchronous>, transform_indices = @transform_1, window_bounds = array<i64: 64, 64>}, {pipeline_mode = #tpu.pipeline_mode<synchronous>, transform_indices = @transform_2, window_bounds = array<i64: 1, 64>}, {pipeline_mode = #tpu.pipeline_mode<synchronous>, transform_indices = @transform_3, window_bounds = array<i64: 64, 128>}, {pipeline_mode = #tpu.pipeline_mode<synchronous>, transform_indices = @transform_4, window_bounds = array<i64: 1, 128>}, {transform_indices = @transform_5, window_bounds = array<i64: 8, 8>}, {transform_indices = @transform_6, window_bounds = array<i64: 8>}, {pipeline_mode = #tpu.pipeline_mode<synchronous>, transform_indices = @transform_7, window_bounds = array<i64: 64, 64>}, {pipeline_mode = #tpu.pipeline_mode<synchronous>, transform_indices = @transform_8, window_bounds = array<i64: 1, 64>}, {transform_indices = @transform_9, window_bounds = array<i64: 1, 16, 64>}, {transform_indices = @transform_10, window_bounds = array<i64: 1, 8, 16, 32>}]} {
    %c0_i32 = arith.constant 0 : i32
    %0 = arith.cmpi eq, %arg1, %c0_i32 : i32
    %1 = arith.extui %0 : i1 to i32
    %c0_i32_0 = arith.constant 0 : i32
    %2 = arith.cmpi ne, %1, %c0_i32_0 : i32
    scf.if %2 {
      %c0_243 = arith.constant 0 : index
      %c0_244 = arith.constant 0 : index
      %c0_245 = arith.constant 0 : index
      %440 = vector.load %arg2[%c0_243, %c0_244, %c0_245] : memref<1x32x64xf32, #tpu.memory_space<vmem>>, vector<1x32x64xf32>
      %441 = vector.shape_cast %440 : vector<1x32x64xf32> to vector<32x64xf32>
      %c0_246 = arith.constant 0 : index
      %c0_247 = arith.constant 0 : index
      %442 = vector.load %arg5[%c0_246, %c0_247] : memref<64x128xf32, #tpu.memory_space<vmem>>, vector<64x128xf32>
      %cst_248 = arith.constant dense<0.000000e+00> : vector<32x128xf32>
      %443 = tpu.matmul %441, %442, %cst_248 {dimension_numbers = #tpu.dot_dimension_numbers<[1], [0], [0], [1], [0, 0, 1, 1], [], []>} : vector<32x64xf32>, vector<64x128xf32>, vector<32x128xf32> -> vector<32x128xf32>
      %c0_249 = arith.constant 0 : index
      %c0_250 = arith.constant 0 : index
      %444 = vector.load %arg6[%c0_249, %c0_250] : memref<1x128xf32, #tpu.memory_space<vmem>>, vector<1x128xf32>
      %445 = vector.broadcast %444 : vector<1x128xf32> to vector<32x128xf32>
      %446 = arith.addf %443, %445 : vector<32x128xf32>
      %c0_251 = arith.constant 0 : index
      %c0_252 = arith.constant 0 : index
      %447 = vector.load %arg13[%c0_251, %c0_252] : memref<32x128xf32, #tpu.memory_space<vmem>>, vector<32x128xf32>
      tpu.vector_store %arg13[%c0_251, %c0_252], %446 {strides = array<i32>} : memref<32x128xf32, #tpu.memory_space<vmem>>, vector<32x128xf32>,
    } else {
    }
    %c16_i32 = arith.constant 16 : i32
    %3 = arith.muli %arg1, %c16_i32 : i32
    %4 = tpu.assume_multiple %3, 16 : i32
    %c0 = arith.constant 0 : index
    %5 = arith.index_cast %4 : i32 to index
    %c0_1 = arith.constant 0 : index
    %6 = vector.load %arg2[%c0, %5, %c0_1] : memref<1x32x64xf32, #tpu.memory_space<vmem>>, vector<1x16x64xf32>
    %7 = vector.shape_cast %6 : vector<1x16x64xf32> to vector<16x64xf32>
    %c0_2 = arith.constant 0 : index
    %c0_3 = arith.constant 0 : index
    %8 = vector.load %arg3[%c0_2, %c0_3] : memref<64x64xf32, #tpu.memory_space<vmem>>, vector<64x64xf32>
    %cst = arith.constant dense<0.000000e+00> : vector<16x64xf32>
    %9 = tpu.matmul %7, %8, %cst {dimension_numbers = #tpu.dot_dimension_numbers<[1], [0], [0], [1], [0, 0, 1, 1], [], []>} : vector<16x64xf32>, vector<64x64xf32>, vector<16x64xf32> -> vector<16x64xf32>
    %c0_4 = arith.constant 0 : index
    %c0_5 = arith.constant 0 : index
    %10 = vector.load %arg4[%c0_4, %c0_5] : memref<1x64xf32, #tpu.memory_space<vmem>>, vector<1x64xf32>
    %11 = vector.broadcast %10 : vector<1x64xf32> to vector<16x64xf32>
    %12 = arith.addf %9, %11 : vector<16x64xf32>
    %cst_6 = arith.constant 0.353553385 : f32
    %13 = vector.broadcast %cst_6 : f32 to vector<16x64xf32>
    %14 = arith.mulf %12, %13 : vector<16x64xf32>
    %c0_7 = arith.constant 0 : index
    %c0_8 = arith.constant 0 : index
    %15 = vector.load %arg13[%c0_7, %c0_8] : memref<32x128xf32, #tpu.memory_space<vmem>>, vector<32x8xf32>
    %16 = vector.extract_strided_slice %14 {offsets = [0, 0], sizes = [16, 8], strides = [1, 1]} : vector<16x64xf32> to vector<16x8xf32>
    "tpu.trace_start"() <{level = 10 : i32, message = "qd,kd->qk"}> : () -> ()
    %cst_9 = arith.constant dense<0.000000e+00> : vector<16x32xf32>
    %17 = tpu.matmul %16, %15, %cst_9 {dimension_numbers = #tpu.dot_dimension_numbers<[1], [1], [0], [0], [0, 0, 1, 0], [], []>} : vector<16x8xf32>, vector<32x8xf32>, vector<16x32xf32> -> vector<16x32xf32>
    "tpu.trace_stop"() : () -> ()
    %cst_10 = arith.constant dense<0xFF800000> : vector<16xf32>
    %18 = vector.multi_reduction <maximumf>, %17, %cst_10 [1] : vector<16x32xf32> to vector<16xf32>
    %19 = vector.shape_cast %18 : vector<16xf32> to vector<16x1xf32>
    %20 = vector.broadcast %19 : vector<16x1xf32> to vector<16x32xf32>
    %21 = arith.subf %17, %20 : vector<16x32xf32>
    %22 = math.exp %21 : vector<16x32xf32>
    %cst_11 = arith.constant dense<0.000000e+00> : vector<16xf32>
    %23 = vector.multi_reduction <add>, %22, %cst_11 [1] : vector<16x32xf32> to vector<16xf32>
    %24 = vector.shape_cast %23 : vector<16xf32> to vector<16x1xf32>
    %25 = vector.broadcast %24 : vector<16x1xf32> to vector<16x32xf32>
    %26 = arith.divf %22, %25 : vector<16x32xf32>
    %c0_12 = arith.constant 0 : index
    %c8 = arith.constant 8 : index
    %27 = vector.load %arg13[%c0_12, %c8] : memref<32x128xf32, #tpu.memory_space<vmem>>, vector<32x8xf32>
    %28 = vector.extract_strided_slice %14 {offsets = [0, 8], sizes = [16, 8], strides = [1, 1]} : vector<16x64xf32> to vector<16x8xf32>
    "tpu.trace_start"() <{level = 10 : i32, message = "qd,kd->qk"}> : () -> ()
    %cst_13 = arith.constant dense<0.000000e+00> : vector<16x32xf32>
    %29 = tpu.matmul %28, %27, %cst_13 {dimension_numbers = #tpu.dot_dimension_numbers<[1], [1], [0], [0], [0, 0, 1, 0], [], []>} : vector<16x8xf32>, vector<32x8xf32>, vector<16x32xf32> -> vector<16x32xf32>
    "tpu.trace_stop"() : () -> ()
    %cst_14 = arith.constant dense<0xFF800000> : vector<16xf32>
    %30 = vector.multi_reduction <maximumf>, %29, %cst_14 [1] : vector<16x32xf32> to vector<16xf32>
    %31 = vector.shape_cast %30 : vector<16xf32> to vector<16x1xf32>
    %32 = vector.broadcast %31 : vector<16x1xf32> to vector<16x32xf32>
    %33 = arith.subf %29, %32 : vector<16x32xf32>
    %34 = math.exp %33 : vector<16x32xf32>
    %cst_15 = arith.constant dense<0.000000e+00> : vector<16xf32>
    %35 = vector.multi_reduction <add>, %34, %cst_15 [1] : vector<16x32xf32> to vector<16xf32>
    %36 = vector.shape_cast %35 : vector<16xf32> to vector<16x1xf32>
    %37 = vector.broadcast %36 : vector<16x1xf32> to vector<16x32xf32>
    %38 = arith.divf %34, %37 : vector<16x32xf32>
    %c0_16 = arith.constant 0 : index
    %c16 = arith.constant 16 : index
    %39 = vector.load %arg13[%c0_16, %c16] : memref<32x128xf32, #tpu.memory_space<vmem>>, vector<32x8xf32>
    %40 = vector.extract_strided_slice %14 {offsets = [0, 16], sizes = [16, 8], strides = [1, 1]} : vector<16x64xf32> to vector<16x8xf32>
    "tpu.trace_start"() <{level = 10 : i32, message = "qd,kd->qk"}> : () -> ()
    %cst_17 = arith.constant dense<0.000000e+00> : vector<16x32xf32>
    %41 = tpu.matmul %40, %39, %cst_17 {dimension_numbers = #tpu.dot_dimension_numbers<[1], [1], [0], [0], [0, 0, 1, 0], [], []>} : vector<16x8xf32>, vector<32x8xf32>, vector<16x32xf32> -> vector<16x32xf32>
    "tpu.trace_stop"() : () -> ()
    %cst_18 = arith.constant dense<0xFF800000> : vector<16xf32>
    %42 = vector.multi_reduction <maximumf>, %41, %cst_18 [1] : vector<16x32xf32> to vector<16xf32>
    %43 = vector.shape_cast %42 : vector<16xf32> to vector<16x1xf32>
    %44 = vector.broadcast %43 : vector<16x1xf32> to vector<16x32xf32>
    %45 = arith.subf %41, %44 : vector<16x32xf32>
    %46 = math.exp %45 : vector<16x32xf32>
    %cst_19 = arith.constant dense<0.000000e+00> : vector<16xf32>
    %47 = vector.multi_reduction <add>, %46, %cst_19 [1] : vector<16x32xf32> to vector<16xf32>
    %48 = vector.shape_cast %47 : vector<16xf32> to vector<16x1xf32>
    %49 = vector.broadcast %48 : vector<16x1xf32> to vector<16x32xf32>
    %50 = arith.divf %46, %49 : vector<16x32xf32>
    %c0_20 = arith.constant 0 : index
    %c24 = arith.constant 24 : index
    %51 = vector.load %arg13[%c0_20, %c24] : memref<32x128xf32, #tpu.memory_space<vmem>>, vector<32x8xf32>
    %52 = vector.extract_strided_slice %14 {offsets = [0, 24], sizes = [16, 8], strides = [1, 1]} : vector<16x64xf32> to vector<16x8xf32>
    "tpu.trace_start"() <{level = 10 : i32, message = "qd,kd->qk"}> : () -> ()
    %cst_21 = arith.constant dense<0.000000e+00> : vector<16x32xf32>
    %53 = tpu.matmul %52, %51, %cst_21 {dimension_numbers = #tpu.dot_dimension_numbers<[1], [1], [0], [0], [0, 0, 1, 0], [], []>} : vector<16x8xf32>, vector<32x8xf32>, vector<16x32xf32> -> vector<16x32xf32>
    "tpu.trace_stop"() : () -> ()
    %cst_22 = arith.constant dense<0xFF800000> : vector<16xf32>
    %54 = vector.multi_reduction <maximumf>, %53, %cst_22 [1] : vector<16x32xf32> to vector<16xf32>
    %55 = vector.shape_cast %54 : vector<16xf32> to vector<16x1xf32>
    %56 = vector.broadcast %55 : vector<16x1xf32> to vector<16x32xf32>
    %57 = arith.subf %53, %56 : vector<16x32xf32>
    %58 = math.exp %57 : vector<16x32xf32>
    %cst_23 = arith.constant dense<0.000000e+00> : vector<16xf32>
    %59 = vector.multi_reduction <add>, %58, %cst_23 [1] : vector<16x32xf32> to vector<16xf32>
    %60 = vector.shape_cast %59 : vector<16xf32> to vector<16x1xf32>
    %61 = vector.broadcast %60 : vector<16x1xf32> to vector<16x32xf32>
    %62 = arith.divf %58, %61 : vector<16x32xf32>
    %c0_24 = arith.constant 0 : index
    %c32 = arith.constant 32 : index
    %63 = vector.load %arg13[%c0_24, %c32] : memref<32x128xf32, #tpu.memory_space<vmem>>, vector<32x8xf32>
    %64 = vector.extract_strided_slice %14 {offsets = [0, 32], sizes = [16, 8], strides = [1, 1]} : vector<16x64xf32> to vector<16x8xf32>
    "tpu.trace_start"() <{level = 10 : i32, message = "qd,kd->qk"}> : () -> ()
    %cst_25 = arith.constant dense<0.000000e+00> : vector<16x32xf32>
    %65 = tpu.matmul %64, %63, %cst_25 {dimension_numbers = #tpu.dot_dimension_numbers<[1], [1], [0], [0], [0, 0, 1, 0], [], []>} : vector<16x8xf32>, vector<32x8xf32>, vector<16x32xf32> -> vector<16x32xf32>
    "tpu.trace_stop"() : () -> ()
    %cst_26 = arith.constant dense<0xFF800000> : vector<16xf32>
    %66 = vector.multi_reduction <maximumf>, %65, %cst_26 [1] : vector<16x32xf32> to vector<16xf32>
    %67 = vector.shape_cast %66 : vector<16xf32> to vector<16x1xf32>
    %68 = vector.broadcast %67 : vector<16x1xf32> to vector<16x32xf32>
    %69 = arith.subf %65, %68 : vector<16x32xf32>
    %70 = math.exp %69 : vector<16x32xf32>
    %cst_27 = arith.constant dense<0.000000e+00> : vector<16xf32>
    %71 = vector.multi_reduction <add>, %70, %cst_27 [1] : vector<16x32xf32> to vector<16xf32>
    %72 = vector.shape_cast %71 : vector<16xf32> to vector<16x1xf32>
    %73 = vector.broadcast %72 : vector<16x1xf32> to vector<16x32xf32>
    %74 = arith.divf %70, %73 : vector<16x32xf32>
    %c0_28 = arith.constant 0 : index
    %c40 = arith.constant 40 : index
    %75 = vector.load %arg13[%c0_28, %c40] : memref<32x128xf32, #tpu.memory_space<vmem>>, vector<32x8xf32>
    %76 = vector.extract_strided_slice %14 {offsets = [0, 40], sizes = [16, 8], strides = [1, 1]} : vector<16x64xf32> to vector<16x8xf32>
    "tpu.trace_start"() <{level = 10 : i32, message = "qd,kd->qk"}> : () -> ()
    %cst_29 = arith.constant dense<0.000000e+00> : vector<16x32xf32>
    %77 = tpu.matmul %76, %75, %cst_29 {dimension_numbers = #tpu.dot_dimension_numbers<[1], [1], [0], [0], [0, 0, 1, 0], [], []>} : vector<16x8xf32>, vector<32x8xf32>, vector<16x32xf32> -> vector<16x32xf32>
    "tpu.trace_stop"() : () -> ()
    %cst_30 = arith.constant dense<0xFF800000> : vector<16xf32>
    %78 = vector.multi_reduction <maximumf>, %77, %cst_30 [1] : vector<16x32xf32> to vector<16xf32>
    %79 = vector.shape_cast %78 : vector<16xf32> to vector<16x1xf32>
    %80 = vector.broadcast %79 : vector<16x1xf32> to vector<16x32xf32>
    %81 = arith.subf %77, %80 : vector<16x32xf32>
    %82 = math.exp %81 : vector<16x32xf32>
    %cst_31 = arith.constant dense<0.000000e+00> : vector<16xf32>
    %83 = vector.multi_reduction <add>, %82, %cst_31 [1] : vector<16x32xf32> to vector<16xf32>
    %84 = vector.shape_cast %83 : vector<16xf32> to vector<16x1xf32>
    %85 = vector.broadcast %84 : vector<16x1xf32> to vector<16x32xf32>
    %86 = arith.divf %82, %85 : vector<16x32xf32>
    %c0_32 = arith.constant 0 : index
    %c48 = arith.constant 48 : index
    %87 = vector.load %arg13[%c0_32, %c48] : memref<32x128xf32, #tpu.memory_space<vmem>>, vector<32x8xf32>
    %88 = vector.extract_strided_slice %14 {offsets = [0, 48], sizes = [16, 8], strides = [1, 1]} : vector<16x64xf32> to vector<16x8xf32>
    "tpu.trace_start"() <{level = 10 : i32, message = "qd,kd->qk"}> : () -> ()
    %cst_33 = arith.constant dense<0.000000e+00> : vector<16x32xf32>
    %89 = tpu.matmul %88, %87, %cst_33 {dimension_numbers = #tpu.dot_dimension_numbers<[1], [1], [0], [0], [0, 0, 1, 0], [], []>} : vector<16x8xf32>, vector<32x8xf32>, vector<16x32xf32> -> vector<16x32xf32>
    "tpu.trace_stop"() : () -> ()
    %cst_34 = arith.constant dense<0xFF800000> : vector<16xf32>
    %90 = vector.multi_reduction <maximumf>, %89, %cst_34 [1] : vector<16x32xf32> to vector<16xf32>
    %91 = vector.shape_cast %90 : vector<16xf32> to vector<16x1xf32>
    %92 = vector.broadcast %91 : vector<16x1xf32> to vector<16x32xf32>
    %93 = arith.subf %89, %92 : vector<16x32xf32>
    %94 = math.exp %93 : vector<16x32xf32>
    %cst_35 = arith.constant dense<0.000000e+00> : vector<16xf32>
    %95 = vector.multi_reduction <add>, %94, %cst_35 [1] : vector<16x32xf32> to vector<16xf32>
    %96 = vector.shape_cast %95 : vector<16xf32> to vector<16x1xf32>
    %97 = vector.broadcast %96 : vector<16x1xf32> to vector<16x32xf32>
    %98 = arith.divf %94, %97 : vector<16x32xf32>
    %c0_36 = arith.constant 0 : index
    %c56 = arith.constant 56 : index
    %99 = vector.load %arg13[%c0_36, %c56] : memref<32x128xf32, #tpu.memory_space<vmem>>, vector<32x8xf32>
    %100 = vector.extract_strided_slice %14 {offsets = [0, 56], sizes = [16, 8], strides = [1, 1]} : vector<16x64xf32> to vector<16x8xf32>
    "tpu.trace_start"() <{level = 10 : i32, message = "qd,kd->qk"}> : () -> ()
    %cst_37 = arith.constant dense<0.000000e+00> : vector<16x32xf32>
    %101 = tpu.matmul %100, %99, %cst_37 {dimension_numbers = #tpu.dot_dimension_numbers<[1], [1], [0], [0], [0, 0, 1, 0], [], []>} : vector<16x8xf32>, vector<32x8xf32>, vector<16x32xf32> -> vector<16x32xf32>
    "tpu.trace_stop"() : () -> ()
    %cst_38 = arith.constant dense<0xFF800000> : vector<16xf32>
    %102 = vector.multi_reduction <maximumf>, %101, %cst_38 [1] : vector<16x32xf32> to vector<16xf32>
    %103 = vector.shape_cast %102 : vector<16xf32> to vector<16x1xf32>
    %104 = vector.broadcast %103 : vector<16x1xf32> to vector<16x32xf32>
    %105 = arith.subf %101, %104 : vector<16x32xf32>
    %106 = math.exp %105 : vector<16x32xf32>
    %cst_39 = arith.constant dense<0.000000e+00> : vector<16xf32>
    %107 = vector.multi_reduction <add>, %106, %cst_39 [1] : vector<16x32xf32> to vector<16xf32>
    %108 = vector.shape_cast %107 : vector<16xf32> to vector<16x1xf32>
    %109 = vector.broadcast %108 : vector<16x1xf32> to vector<16x32xf32>
    %110 = arith.divf %106, %109 : vector<16x32xf32>
    %c0_40 = arith.constant 0 : index
    %c0_41 = arith.constant 0 : index
    %111 = memref.load %arg7[%c0_40, %c0_41] : memref<8x8xf32, #tpu.memory_space<smem>>
    %112 = vector.broadcast %111 : f32 to vector<16x32xf32>
    %113 = arith.mulf %112, %26 : vector<16x32xf32>
    %c0_42 = arith.constant 0 : index
    %c1 = arith.constant 1 : index
    %114 = memref.load %arg7[%c0_42, %c1] : memref<8x8xf32, #tpu.memory_space<smem>>
    %115 = vector.broadcast %114 : f32 to vector<16x32xf32>
    %116 = arith.mulf %115, %38 : vector<16x32xf32>
    %117 = arith.addf %113, %116 : vector<16x32xf32>
    %c0_43 = arith.constant 0 : index
    %c2 = arith.constant 2 : index
    %118 = memref.load %arg7[%c0_43, %c2] : memref<8x8xf32, #tpu.memory_space<smem>>
    %119 = vector.broadcast %118 : f32 to vector<16x32xf32>
    %120 = arith.mulf %119, %50 : vector<16x32xf32>
    %121 = arith.addf %117, %120 : vector<16x32xf32>
    %c0_44 = arith.constant 0 : index
    %c3 = arith.constant 3 : index
    %122 = memref.load %arg7[%c0_44, %c3] : memref<8x8xf32, #tpu.memory_space<smem>>
    %123 = vector.broadcast %122 : f32 to vector<16x32xf32>
    %124 = arith.mulf %123, %62 : vector<16x32xf32>
    %125 = arith.addf %121, %124 : vector<16x32xf32>
    %c0_45 = arith.constant 0 : index
    %c4 = arith.constant 4 : index
    %126 = memref.load %arg7[%c0_45, %c4] : memref<8x8xf32, #tpu.memory_space<smem>>
    %127 = vector.broadcast %126 : f32 to vector<16x32xf32>
    %128 = arith.mulf %127, %74 : vector<16x32xf32>
    %129 = arith.addf %125, %128 : vector<16x32xf32>
    %c0_46 = arith.constant 0 : index
    %c5 = arith.constant 5 : index
    %130 = memref.load %arg7[%c0_46, %c5] : memref<8x8xf32, #tpu.memory_space<smem>>
    %131 = vector.broadcast %130 : f32 to vector<16x32xf32>
    %132 = arith.mulf %131, %86 : vector<16x32xf32>
    %133 = arith.addf %129, %132 : vector<16x32xf32>
    %c0_47 = arith.constant 0 : index
    %c6 = arith.constant 6 : index
    %134 = memref.load %arg7[%c0_47, %c6] : memref<8x8xf32, #tpu.memory_space<smem>>
    %135 = vector.broadcast %134 : f32 to vector<16x32xf32>
    %136 = arith.mulf %135, %98 : vector<16x32xf32>
    %137 = arith.addf %133, %136 : vector<16x32xf32>
    %c0_48 = arith.constant 0 : index
    %c7 = arith.constant 7 : index
    %138 = memref.load %arg7[%c0_48, %c7] : memref<8x8xf32, #tpu.memory_space<smem>>
    %139 = vector.broadcast %138 : f32 to vector<16x32xf32>
    %140 = arith.mulf %139, %110 : vector<16x32xf32>
    %141 = arith.addf %137, %140 : vector<16x32xf32>
    %c0_49 = arith.constant 0 : index
    %142 = memref.load %arg8[%c0_49] : memref<8xf32, #tpu.memory_space<smem>>
    %143 = vector.broadcast %142 : f32 to vector<16x32xf32>
    %144 = arith.addf %141, %143 : vector<16x32xf32>
    %c0_50 = arith.constant 0 : index
    %c0_51 = arith.constant 0 : index
    %c0_52 = arith.constant 0 : index
    %c0_53 = arith.constant 0 : index
    %145 = vector.load %arg12[%c0_50, %c0_51, %c0_52, %c0_53] : memref<1x8x16x32xf32, #tpu.memory_space<vmem>>, vector<1x1x16x32xf32>
    %146 = vector.shape_cast %145 : vector<1x1x16x32xf32> to vector<16x32xf32>
    %147 = vector.shape_cast %144 : vector<16x32xf32> to vector<1x1x16x32xf32>
    tpu.vector_store %arg12[%c0_50, %c0_51, %c0_52, %c0_53], %147 {strides = array<i32>} : memref<1x8x16x32xf32, #tpu.memory_space<vmem>>, vector<1x1x16x32xf32>,
    %c0_54 = arith.constant 0 : index
    %c64 = arith.constant 64 : index
    %148 = vector.load %arg13[%c0_54, %c64] : memref<32x128xf32, #tpu.memory_space<vmem>>, vector<32x8xf32>
    %cst_55 = arith.constant dense<0.000000e+00> : vector<16x8xf32>
    %149 = tpu.matmul %144, %148, %cst_55 {dimension_numbers = #tpu.dot_dimension_numbers<[1], [0], [0], [1], [0, 0, 1, 1], [], []>} : vector<16x32xf32>, vector<32x8xf32>, vector<16x8xf32> -> vector<16x8xf32>
    %c0_56 = arith.constant 0 : index
    %c0_57 = arith.constant 0 : index
    %150 = vector.load %arg14[%c0_56, %c0_57] : memref<16x64xf32, #tpu.memory_space<vmem>>, vector<16x8xf32>
    tpu.vector_store %arg14[%c0_56, %c0_57], %149 {strides = array<i32>} : memref<16x64xf32, #tpu.memory_space<vmem>>, vector<16x8xf32>,
    %c1_58 = arith.constant 1 : index
    %c0_59 = arith.constant 0 : index
    %151 = memref.load %arg7[%c1_58, %c0_59] : memref<8x8xf32, #tpu.memory_space<smem>>
    %152 = vector.broadcast %151 : f32 to vector<16x32xf32>
    %153 = arith.mulf %152, %26 : vector<16x32xf32>
    %c1_60 = arith.constant 1 : index
    %c1_61 = arith.constant 1 : index
    %154 = memref.load %arg7[%c1_60, %c1_61] : memref<8x8xf32, #tpu.memory_space<smem>>
    %155 = vector.broadcast %154 : f32 to vector<16x32xf32>
    %156 = arith.mulf %155, %38 : vector<16x32xf32>
    %157 = arith.addf %153, %156 : vector<16x32xf32>
    %c1_62 = arith.constant 1 : index
    %c2_63 = arith.constant 2 : index
    %158 = memref.load %arg7[%c1_62, %c2_63] : memref<8x8xf32, #tpu.memory_space<smem>>
    %159 = vector.broadcast %158 : f32 to vector<16x32xf32>
    %160 = arith.mulf %159, %50 : vector<16x32xf32>
    %161 = arith.addf %157, %160 : vector<16x32xf32>
    %c1_64 = arith.constant 1 : index
    %c3_65 = arith.constant 3 : index
    %162 = memref.load %arg7[%c1_64, %c3_65] : memref<8x8xf32, #tpu.memory_space<smem>>
    %163 = vector.broadcast %162 : f32 to vector<16x32xf32>
    %164 = arith.mulf %163, %62 : vector<16x32xf32>
    %165 = arith.addf %161, %164 : vector<16x32xf32>
    %c1_66 = arith.constant 1 : index
    %c4_67 = arith.constant 4 : index
    %166 = memref.load %arg7[%c1_66, %c4_67] : memref<8x8xf32, #tpu.memory_space<smem>>
    %167 = vector.broadcast %166 : f32 to vector<16x32xf32>
    %168 = arith.mulf %167, %74 : vector<16x32xf32>
    %169 = arith.addf %165, %168 : vector<16x32xf32>
    %c1_68 = arith.constant 1 : index
    %c5_69 = arith.constant 5 : index
    %170 = memref.load %arg7[%c1_68, %c5_69] : memref<8x8xf32, #tpu.memory_space<smem>>
    %171 = vector.broadcast %170 : f32 to vector<16x32xf32>
    %172 = arith.mulf %171, %86 : vector<16x32xf32>
    %173 = arith.addf %169, %172 : vector<16x32xf32>
    %c1_70 = arith.constant 1 : index
    %c6_71 = arith.constant 6 : index
    %174 = memref.load %arg7[%c1_70, %c6_71] : memref<8x8xf32, #tpu.memory_space<smem>>
    %175 = vector.broadcast %174 : f32 to vector<16x32xf32>
    %176 = arith.mulf %175, %98 : vector<16x32xf32>
    %177 = arith.addf %173, %176 : vector<16x32xf32>
    %c1_72 = arith.constant 1 : index
    %c7_73 = arith.constant 7 : index
    %178 = memref.load %arg7[%c1_72, %c7_73] : memref<8x8xf32, #tpu.memory_space<smem>>
    %179 = vector.broadcast %178 : f32 to vector<16x32xf32>
    %180 = arith.mulf %179, %110 : vector<16x32xf32>
    %181 = arith.addf %177, %180 : vector<16x32xf32>
    %c1_74 = arith.constant 1 : index
    %182 = memref.load %arg8[%c1_74] : memref<8xf32, #tpu.memory_space<smem>>
    %183 = vector.broadcast %182 : f32 to vector<16x32xf32>
    %184 = arith.addf %181, %183 : vector<16x32xf32>
    %c0_75 = arith.constant 0 : index
    %c1_76 = arith.constant 1 : index
    %c0_77 = arith.constant 0 : index
    %c0_78 = arith.constant 0 : index
    %185 = vector.load %arg12[%c0_75, %c1_76, %c0_77, %c0_78] : memref<1x8x16x32xf32, #tpu.memory_space<vmem>>, vector<1x1x16x32xf32>
    %186 = vector.shape_cast %185 : vector<1x1x16x32xf32> to vector<16x32xf32>
    %187 = vector.shape_cast %184 : vector<16x32xf32> to vector<1x1x16x32xf32>
    tpu.vector_store %arg12[%c0_75, %c1_76, %c0_77, %c0_78], %187 {strides = array<i32>} : memref<1x8x16x32xf32, #tpu.memory_space<vmem>>, vector<1x1x16x32xf32>,
    %c0_79 = arith.constant 0 : index
    %c72 = arith.constant 72 : index
    %188 = vector.load %arg13[%c0_79, %c72] : memref<32x128xf32, #tpu.memory_space<vmem>>, vector<32x8xf32>
    %cst_80 = arith.constant dense<0.000000e+00> : vector<16x8xf32>
    %189 = tpu.matmul %184, %188, %cst_80 {dimension_numbers = #tpu.dot_dimension_numbers<[1], [0], [0], [1], [0, 0, 1, 1], [], []>} : vector<16x32xf32>, vector<32x8xf32>, vector<16x8xf32> -> vector<16x8xf32>
    %c0_81 = arith.constant 0 : index
    %c8_82 = arith.constant 8 : index
    %190 = vector.load %arg14[%c0_81, %c8_82] : memref<16x64xf32, #tpu.memory_space<vmem>>, vector<16x8xf32>
    tpu.vector_store %arg14[%c0_81, %c8_82], %189 {strides = array<i32>} : memref<16x64xf32, #tpu.memory_space<vmem>>, vector<16x8xf32>,
    %c2_83 = arith.constant 2 : index
    %c0_84 = arith.constant 0 : index
    %191 = memref.load %arg7[%c2_83, %c0_84] : memref<8x8xf32, #tpu.memory_space<smem>>
    %192 = vector.broadcast %191 : f32 to vector<16x32xf32>
    %193 = arith.mulf %192, %26 : vector<16x32xf32>
    %c2_85 = arith.constant 2 : index
    %c1_86 = arith.constant 1 : index
    %194 = memref.load %arg7[%c2_85, %c1_86] : memref<8x8xf32, #tpu.memory_space<smem>>
    %195 = vector.broadcast %194 : f32 to vector<16x32xf32>
    %196 = arith.mulf %195, %38 : vector<16x32xf32>
    %197 = arith.addf %193, %196 : vector<16x32xf32>
    %c2_87 = arith.constant 2 : index
    %c2_88 = arith.constant 2 : index
    %198 = memref.load %arg7[%c2_87, %c2_88] : memref<8x8xf32, #tpu.memory_space<smem>>
    %199 = vector.broadcast %198 : f32 to vector<16x32xf32>
    %200 = arith.mulf %199, %50 : vector<16x32xf32>
    %201 = arith.addf %197, %200 : vector<16x32xf32>
    %c2_89 = arith.constant 2 : index
    %c3_90 = arith.constant 3 : index
    %202 = memref.load %arg7[%c2_89, %c3_90] : memref<8x8xf32, #tpu.memory_space<smem>>
    %203 = vector.broadcast %202 : f32 to vector<16x32xf32>
    %204 = arith.mulf %203, %62 : vector<16x32xf32>
    %205 = arith.addf %201, %204 : vector<16x32xf32>
    %c2_91 = arith.constant 2 : index
    %c4_92 = arith.constant 4 : index
    %206 = memref.load %arg7[%c2_91, %c4_92] : memref<8x8xf32, #tpu.memory_space<smem>>
    %207 = vector.broadcast %206 : f32 to vector<16x32xf32>
    %208 = arith.mulf %207, %74 : vector<16x32xf32>
    %209 = arith.addf %205, %208 : vector<16x32xf32>
    %c2_93 = arith.constant 2 : index
    %c5_94 = arith.constant 5 : index
    %210 = memref.load %arg7[%c2_93, %c5_94] : memref<8x8xf32, #tpu.memory_space<smem>>
    %211 = vector.broadcast %210 : f32 to vector<16x32xf32>
    %212 = arith.mulf %211, %86 : vector<16x32xf32>
    %213 = arith.addf %209, %212 : vector<16x32xf32>
    %c2_95 = arith.constant 2 : index
    %c6_96 = arith.constant 6 : index
    %214 = memref.load %arg7[%c2_95, %c6_96] : memref<8x8xf32, #tpu.memory_space<smem>>
    %215 = vector.broadcast %214 : f32 to vector<16x32xf32>
    %216 = arith.mulf %215, %98 : vector<16x32xf32>
    %217 = arith.addf %213, %216 : vector<16x32xf32>
    %c2_97 = arith.constant 2 : index
    %c7_98 = arith.constant 7 : index
    %218 = memref.load %arg7[%c2_97, %c7_98] : memref<8x8xf32, #tpu.memory_space<smem>>
    %219 = vector.broadcast %218 : f32 to vector<16x32xf32>
    %220 = arith.mulf %219, %110 : vector<16x32xf32>
    %221 = arith.addf %217, %220 : vector<16x32xf32>
    %c2_99 = arith.constant 2 : index
    %222 = memref.load %arg8[%c2_99] : memref<8xf32, #tpu.memory_space<smem>>
    %223 = vector.broadcast %222 : f32 to vector<16x32xf32>
    %224 = arith.addf %221, %223 : vector<16x32xf32>
    %c0_100 = arith.constant 0 : index
    %c2_101 = arith.constant 2 : index
    %c0_102 = arith.constant 0 : index
    %c0_103 = arith.constant 0 : index
    %225 = vector.load %arg12[%c0_100, %c2_101, %c0_102, %c0_103] : memref<1x8x16x32xf32, #tpu.memory_space<vmem>>, vector<1x1x16x32xf32>
    %226 = vector.shape_cast %225 : vector<1x1x16x32xf32> to vector<16x32xf32>
    %227 = vector.shape_cast %224 : vector<16x32xf32> to vector<1x1x16x32xf32>
    tpu.vector_store %arg12[%c0_100, %c2_101, %c0_102, %c0_103], %227 {strides = array<i32>} : memref<1x8x16x32xf32, #tpu.memory_space<vmem>>, vector<1x1x16x32xf32>,
    %c0_104 = arith.constant 0 : index
    %c80 = arith.constant 80 : index
    %228 = vector.load %arg13[%c0_104, %c80] : memref<32x128xf32, #tpu.memory_space<vmem>>, vector<32x8xf32>
    %cst_105 = arith.constant dense<0.000000e+00> : vector<16x8xf32>
    %229 = tpu.matmul %224, %228, %cst_105 {dimension_numbers = #tpu.dot_dimension_numbers<[1], [0], [0], [1], [0, 0, 1, 1], [], []>} : vector<16x32xf32>, vector<32x8xf32>, vector<16x8xf32> -> vector<16x8xf32>
    %c0_106 = arith.constant 0 : index
    %c16_107 = arith.constant 16 : index
    %230 = vector.load %arg14[%c0_106, %c16_107] : memref<16x64xf32, #tpu.memory_space<vmem>>, vector<16x8xf32>
    tpu.vector_store %arg14[%c0_106, %c16_107], %229 {strides = array<i32>} : memref<16x64xf32, #tpu.memory_space<vmem>>, vector<16x8xf32>,
    %c3_108 = arith.constant 3 : index
    %c0_109 = arith.constant 0 : index
    %231 = memref.load %arg7[%c3_108, %c0_109] : memref<8x8xf32, #tpu.memory_space<smem>>
    %232 = vector.broadcast %231 : f32 to vector<16x32xf32>
    %233 = arith.mulf %232, %26 : vector<16x32xf32>
    %c3_110 = arith.constant 3 : index
    %c1_111 = arith.constant 1 : index
    %234 = memref.load %arg7[%c3_110, %c1_111] : memref<8x8xf32, #tpu.memory_space<smem>>
    %235 = vector.broadcast %234 : f32 to vector<16x32xf32>
    %236 = arith.mulf %235, %38 : vector<16x32xf32>
    %237 = arith.addf %233, %236 : vector<16x32xf32>
    %c3_112 = arith.constant 3 : index
    %c2_113 = arith.constant 2 : index
    %238 = memref.load %arg7[%c3_112, %c2_113] : memref<8x8xf32, #tpu.memory_space<smem>>
    %239 = vector.broadcast %238 : f32 to vector<16x32xf32>
    %240 = arith.mulf %239, %50 : vector<16x32xf32>
    %241 = arith.addf %237, %240 : vector<16x32xf32>
    %c3_114 = arith.constant 3 : index
    %c3_115 = arith.constant 3 : index
    %242 = memref.load %arg7[%c3_114, %c3_115] : memref<8x8xf32, #tpu.memory_space<smem>>
    %243 = vector.broadcast %242 : f32 to vector<16x32xf32>
    %244 = arith.mulf %243, %62 : vector<16x32xf32>
    %245 = arith.addf %241, %244 : vector<16x32xf32>
    %c3_116 = arith.constant 3 : index
    %c4_117 = arith.constant 4 : index
    %246 = memref.load %arg7[%c3_116, %c4_117] : memref<8x8xf32, #tpu.memory_space<smem>>
    %247 = vector.broadcast %246 : f32 to vector<16x32xf32>
    %248 = arith.mulf %247, %74 : vector<16x32xf32>
    %249 = arith.addf %245, %248 : vector<16x32xf32>
    %c3_118 = arith.constant 3 : index
    %c5_119 = arith.constant 5 : index
    %250 = memref.load %arg7[%c3_118, %c5_119] : memref<8x8xf32, #tpu.memory_space<smem>>
    %251 = vector.broadcast %250 : f32 to vector<16x32xf32>
    %252 = arith.mulf %251, %86 : vector<16x32xf32>
    %253 = arith.addf %249, %252 : vector<16x32xf32>
    %c3_120 = arith.constant 3 : index
    %c6_121 = arith.constant 6 : index
    %254 = memref.load %arg7[%c3_120, %c6_121] : memref<8x8xf32, #tpu.memory_space<smem>>
    %255 = vector.broadcast %254 : f32 to vector<16x32xf32>
    %256 = arith.mulf %255, %98 : vector<16x32xf32>
    %257 = arith.addf %253, %256 : vector<16x32xf32>
    %c3_122 = arith.constant 3 : index
    %c7_123 = arith.constant 7 : index
    %258 = memref.load %arg7[%c3_122, %c7_123] : memref<8x8xf32, #tpu.memory_space<smem>>
    %259 = vector.broadcast %258 : f32 to vector<16x32xf32>
    %260 = arith.mulf %259, %110 : vector<16x32xf32>
    %261 = arith.addf %257, %260 : vector<16x32xf32>
    %c3_124 = arith.constant 3 : index
    %262 = memref.load %arg8[%c3_124] : memref<8xf32, #tpu.memory_space<smem>>
    %263 = vector.broadcast %262 : f32 to vector<16x32xf32>
    %264 = arith.addf %261, %263 : vector<16x32xf32>
    %c0_125 = arith.constant 0 : index
    %c3_126 = arith.constant 3 : index
    %c0_127 = arith.constant 0 : index
    %c0_128 = arith.constant 0 : index
    %265 = vector.load %arg12[%c0_125, %c3_126, %c0_127, %c0_128] : memref<1x8x16x32xf32, #tpu.memory_space<vmem>>, vector<1x1x16x32xf32>
    %266 = vector.shape_cast %265 : vector<1x1x16x32xf32> to vector<16x32xf32>
    %267 = vector.shape_cast %264 : vector<16x32xf32> to vector<1x1x16x32xf32>
    tpu.vector_store %arg12[%c0_125, %c3_126, %c0_127, %c0_128], %267 {strides = array<i32>} : memref<1x8x16x32xf32, #tpu.memory_space<vmem>>, vector<1x1x16x32xf32>,
    %c0_129 = arith.constant 0 : index
    %c88 = arith.constant 88 : index
    %268 = vector.load %arg13[%c0_129, %c88] : memref<32x128xf32, #tpu.memory_space<vmem>>, vector<32x8xf32>
    %cst_130 = arith.constant dense<0.000000e+00> : vector<16x8xf32>
    %269 = tpu.matmul %264, %268, %cst_130 {dimension_numbers = #tpu.dot_dimension_numbers<[1], [0], [0], [1], [0, 0, 1, 1], [], []>} : vector<16x32xf32>, vector<32x8xf32>, vector<16x8xf32> -> vector<16x8xf32>
    %c0_131 = arith.constant 0 : index
    %c24_132 = arith.constant 24 : index
    %270 = vector.load %arg14[%c0_131, %c24_132] : memref<16x64xf32, #tpu.memory_space<vmem>>, vector<16x8xf32>
    tpu.vector_store %arg14[%c0_131, %c24_132], %269 {strides = array<i32>} : memref<16x64xf32, #tpu.memory_space<vmem>>, vector<16x8xf32>,
    %c4_133 = arith.constant 4 : index
    %c0_134 = arith.constant 0 : index
    %271 = memref.load %arg7[%c4_133, %c0_134] : memref<8x8xf32, #tpu.memory_space<smem>>
    %272 = vector.broadcast %271 : f32 to vector<16x32xf32>
    %273 = arith.mulf %272, %26 : vector<16x32xf32>
    %c4_135 = arith.constant 4 : index
    %c1_136 = arith.constant 1 : index
    %274 = memref.load %arg7[%c4_135, %c1_136] : memref<8x8xf32, #tpu.memory_space<smem>>
    %275 = vector.broadcast %274 : f32 to vector<16x32xf32>
    %276 = arith.mulf %275, %38 : vector<16x32xf32>
    %277 = arith.addf %273, %276 : vector<16x32xf32>
    %c4_137 = arith.constant 4 : index
    %c2_138 = arith.constant 2 : index
    %278 = memref.load %arg7[%c4_137, %c2_138] : memref<8x8xf32, #tpu.memory_space<smem>>
    %279 = vector.broadcast %278 : f32 to vector<16x32xf32>
    %280 = arith.mulf %279, %50 : vector<16x32xf32>
    %281 = arith.addf %277, %280 : vector<16x32xf32>
    %c4_139 = arith.constant 4 : index
    %c3_140 = arith.constant 3 : index
    %282 = memref.load %arg7[%c4_139, %c3_140] : memref<8x8xf32, #tpu.memory_space<smem>>
    %283 = vector.broadcast %282 : f32 to vector<16x32xf32>
    %284 = arith.mulf %283, %62 : vector<16x32xf32>
    %285 = arith.addf %281, %284 : vector<16x32xf32>
    %c4_141 = arith.constant 4 : index
    %c4_142 = arith.constant 4 : index
    %286 = memref.load %arg7[%c4_141, %c4_142] : memref<8x8xf32, #tpu.memory_space<smem>>
    %287 = vector.broadcast %286 : f32 to vector<16x32xf32>
    %288 = arith.mulf %287, %74 : vector<16x32xf32>
    %289 = arith.addf %285, %288 : vector<16x32xf32>
    %c4_143 = arith.constant 4 : index
    %c5_144 = arith.constant 5 : index
    %290 = memref.load %arg7[%c4_143, %c5_144] : memref<8x8xf32, #tpu.memory_space<smem>>
    %291 = vector.broadcast %290 : f32 to vector<16x32xf32>
    %292 = arith.mulf %291, %86 : vector<16x32xf32>
    %293 = arith.addf %289, %292 : vector<16x32xf32>
    %c4_145 = arith.constant 4 : index
    %c6_146 = arith.constant 6 : index
    %294 = memref.load %arg7[%c4_145, %c6_146] : memref<8x8xf32, #tpu.memory_space<smem>>
    %295 = vector.broadcast %294 : f32 to vector<16x32xf32>
    %296 = arith.mulf %295, %98 : vector<16x32xf32>
    %297 = arith.addf %293, %296 : vector<16x32xf32>
    %c4_147 = arith.constant 4 : index
    %c7_148 = arith.constant 7 : index
    %298 = memref.load %arg7[%c4_147, %c7_148] : memref<8x8xf32, #tpu.memory_space<smem>>
    %299 = vector.broadcast %298 : f32 to vector<16x32xf32>
    %300 = arith.mulf %299, %110 : vector<16x32xf32>
    %301 = arith.addf %297, %300 : vector<16x32xf32>
    %c4_149 = arith.constant 4 : index
    %302 = memref.load %arg8[%c4_149] : memref<8xf32, #tpu.memory_space<smem>>
    %303 = vector.broadcast %302 : f32 to vector<16x32xf32>
    %304 = arith.addf %301, %303 : vector<16x32xf32>
    %c0_150 = arith.constant 0 : index
    %c4_151 = arith.constant 4 : index
    %c0_152 = arith.constant 0 : index
    %c0_153 = arith.constant 0 : index
    %305 = vector.load %arg12[%c0_150, %c4_151, %c0_152, %c0_153] : memref<1x8x16x32xf32, #tpu.memory_space<vmem>>, vector<1x1x16x32xf32>
    %306 = vector.shape_cast %305 : vector<1x1x16x32xf32> to vector<16x32xf32>
    %307 = vector.shape_cast %304 : vector<16x32xf32> to vector<1x1x16x32xf32>
    tpu.vector_store %arg12[%c0_150, %c4_151, %c0_152, %c0_153], %307 {strides = array<i32>} : memref<1x8x16x32xf32, #tpu.memory_space<vmem>>, vector<1x1x16x32xf32>,
    %c0_154 = arith.constant 0 : index
    %c96 = arith.constant 96 : index
    %308 = vector.load %arg13[%c0_154, %c96] : memref<32x128xf32, #tpu.memory_space<vmem>>, vector<32x8xf32>
    %cst_155 = arith.constant dense<0.000000e+00> : vector<16x8xf32>
    %309 = tpu.matmul %304, %308, %cst_155 {dimension_numbers = #tpu.dot_dimension_numbers<[1], [0], [0], [1], [0, 0, 1, 1], [], []>} : vector<16x32xf32>, vector<32x8xf32>, vector<16x8xf32> -> vector<16x8xf32>
    %c0_156 = arith.constant 0 : index
    %c32_157 = arith.constant 32 : index
    %310 = vector.load %arg14[%c0_156, %c32_157] : memref<16x64xf32, #tpu.memory_space<vmem>>, vector<16x8xf32>
    tpu.vector_store %arg14[%c0_156, %c32_157], %309 {strides = array<i32>} : memref<16x64xf32, #tpu.memory_space<vmem>>, vector<16x8xf32>,
    %c5_158 = arith.constant 5 : index
    %c0_159 = arith.constant 0 : index
    %311 = memref.load %arg7[%c5_158, %c0_159] : memref<8x8xf32, #tpu.memory_space<smem>>
    %312 = vector.broadcast %311 : f32 to vector<16x32xf32>
    %313 = arith.mulf %312, %26 : vector<16x32xf32>
    %c5_160 = arith.constant 5 : index
    %c1_161 = arith.constant 1 : index
    %314 = memref.load %arg7[%c5_160, %c1_161] : memref<8x8xf32, #tpu.memory_space<smem>>
    %315 = vector.broadcast %314 : f32 to vector<16x32xf32>
    %316 = arith.mulf %315, %38 : vector<16x32xf32>
    %317 = arith.addf %313, %316 : vector<16x32xf32>
    %c5_162 = arith.constant 5 : index
    %c2_163 = arith.constant 2 : index
    %318 = memref.load %arg7[%c5_162, %c2_163] : memref<8x8xf32, #tpu.memory_space<smem>>
    %319 = vector.broadcast %318 : f32 to vector<16x32xf32>
    %320 = arith.mulf %319, %50 : vector<16x32xf32>
    %321 = arith.addf %317, %320 : vector<16x32xf32>
    %c5_164 = arith.constant 5 : index
    %c3_165 = arith.constant 3 : index
    %322 = memref.load %arg7[%c5_164, %c3_165] : memref<8x8xf32, #tpu.memory_space<smem>>
    %323 = vector.broadcast %322 : f32 to vector<16x32xf32>
    %324 = arith.mulf %323, %62 : vector<16x32xf32>
    %325 = arith.addf %321, %324 : vector<16x32xf32>
    %c5_166 = arith.constant 5 : index
    %c4_167 = arith.constant 4 : index
    %326 = memref.load %arg7[%c5_166, %c4_167] : memref<8x8xf32, #tpu.memory_space<smem>>
    %327 = vector.broadcast %326 : f32 to vector<16x32xf32>
    %328 = arith.mulf %327, %74 : vector<16x32xf32>
    %329 = arith.addf %325, %328 : vector<16x32xf32>
    %c5_168 = arith.constant 5 : index
    %c5_169 = arith.constant 5 : index
    %330 = memref.load %arg7[%c5_168, %c5_169] : memref<8x8xf32, #tpu.memory_space<smem>>
    %331 = vector.broadcast %330 : f32 to vector<16x32xf32>
    %332 = arith.mulf %331, %86 : vector<16x32xf32>
    %333 = arith.addf %329, %332 : vector<16x32xf32>
    %c5_170 = arith.constant 5 : index
    %c6_171 = arith.constant 6 : index
    %334 = memref.load %arg7[%c5_170, %c6_171] : memref<8x8xf32, #tpu.memory_space<smem>>
    %335 = vector.broadcast %334 : f32 to vector<16x32xf32>
    %336 = arith.mulf %335, %98 : vector<16x32xf32>
    %337 = arith.addf %333, %336 : vector<16x32xf32>
    %c5_172 = arith.constant 5 : index
    %c7_173 = arith.constant 7 : index
    %338 = memref.load %arg7[%c5_172, %c7_173] : memref<8x8xf32, #tpu.memory_space<smem>>
    %339 = vector.broadcast %338 : f32 to vector<16x32xf32>
    %340 = arith.mulf %339, %110 : vector<16x32xf32>
    %341 = arith.addf %337, %340 : vector<16x32xf32>
    %c5_174 = arith.constant 5 : index
    %342 = memref.load %arg8[%c5_174] : memref<8xf32, #tpu.memory_space<smem>>
    %343 = vector.broadcast %342 : f32 to vector<16x32xf32>
    %344 = arith.addf %341, %343 : vector<16x32xf32>
    %c0_175 = arith.constant 0 : index
    %c5_176 = arith.constant 5 : index
    %c0_177 = arith.constant 0 : index
    %c0_178 = arith.constant 0 : index
    %345 = vector.load %arg12[%c0_175, %c5_176, %c0_177, %c0_178] : memref<1x8x16x32xf32, #tpu.memory_space<vmem>>, vector<1x1x16x32xf32>
    %346 = vector.shape_cast %345 : vector<1x1x16x32xf32> to vector<16x32xf32>
    %347 = vector.shape_cast %344 : vector<16x32xf32> to vector<1x1x16x32xf32>
    tpu.vector_store %arg12[%c0_175, %c5_176, %c0_177, %c0_178], %347 {strides = array<i32>} : memref<1x8x16x32xf32, #tpu.memory_space<vmem>>, vector<1x1x16x32xf32>,
    %c0_179 = arith.constant 0 : index
    %c104 = arith.constant 104 : index
    %348 = vector.load %arg13[%c0_179, %c104] : memref<32x128xf32, #tpu.memory_space<vmem>>, vector<32x8xf32>
    %cst_180 = arith.constant dense<0.000000e+00> : vector<16x8xf32>
    %349 = tpu.matmul %344, %348, %cst_180 {dimension_numbers = #tpu.dot_dimension_numbers<[1], [0], [0], [1], [0, 0, 1, 1], [], []>} : vector<16x32xf32>, vector<32x8xf32>, vector<16x8xf32> -> vector<16x8xf32>
    %c0_181 = arith.constant 0 : index
    %c40_182 = arith.constant 40 : index
    %350 = vector.load %arg14[%c0_181, %c40_182] : memref<16x64xf32, #tpu.memory_space<vmem>>, vector<16x8xf32>
    tpu.vector_store %arg14[%c0_181, %c40_182], %349 {strides = array<i32>} : memref<16x64xf32, #tpu.memory_space<vmem>>, vector<16x8xf32>,
    %c6_183 = arith.constant 6 : index
    %c0_184 = arith.constant 0 : index
    %351 = memref.load %arg7[%c6_183, %c0_184] : memref<8x8xf32, #tpu.memory_space<smem>>
    %352 = vector.broadcast %351 : f32 to vector<16x32xf32>
    %353 = arith.mulf %352, %26 : vector<16x32xf32>
    %c6_185 = arith.constant 6 : index
    %c1_186 = arith.constant 1 : index
    %354 = memref.load %arg7[%c6_185, %c1_186] : memref<8x8xf32, #tpu.memory_space<smem>>
    %355 = vector.broadcast %354 : f32 to vector<16x32xf32>
    %356 = arith.mulf %355, %38 : vector<16x32xf32>
    %357 = arith.addf %353, %356 : vector<16x32xf32>
    %c6_187 = arith.constant 6 : index
    %c2_188 = arith.constant 2 : index
    %358 = memref.load %arg7[%c6_187, %c2_188] : memref<8x8xf32, #tpu.memory_space<smem>>
    %359 = vector.broadcast %358 : f32 to vector<16x32xf32>
    %360 = arith.mulf %359, %50 : vector<16x32xf32>
    %361 = arith.addf %357, %360 : vector<16x32xf32>
    %c6_189 = arith.constant 6 : index
    %c3_190 = arith.constant 3 : index
    %362 = memref.load %arg7[%c6_189, %c3_190] : memref<8x8xf32, #tpu.memory_space<smem>>
    %363 = vector.broadcast %362 : f32 to vector<16x32xf32>
    %364 = arith.mulf %363, %62 : vector<16x32xf32>
    %365 = arith.addf %361, %364 : vector<16x32xf32>
    %c6_191 = arith.constant 6 : index
    %c4_192 = arith.constant 4 : index
    %366 = memref.load %arg7[%c6_191, %c4_192] : memref<8x8xf32, #tpu.memory_space<smem>>
    %367 = vector.broadcast %366 : f32 to vector<16x32xf32>
    %368 = arith.mulf %367, %74 : vector<16x32xf32>
    %369 = arith.addf %365, %368 : vector<16x32xf32>
    %c6_193 = arith.constant 6 : index
    %c5_194 = arith.constant 5 : index
    %370 = memref.load %arg7[%c6_193, %c5_194] : memref<8x8xf32, #tpu.memory_space<smem>>
    %371 = vector.broadcast %370 : f32 to vector<16x32xf32>
    %372 = arith.mulf %371, %86 : vector<16x32xf32>
    %373 = arith.addf %369, %372 : vector<16x32xf32>
    %c6_195 = arith.constant 6 : index
    %c6_196 = arith.constant 6 : index
    %374 = memref.load %arg7[%c6_195, %c6_196] : memref<8x8xf32, #tpu.memory_space<smem>>
    %375 = vector.broadcast %374 : f32 to vector<16x32xf32>
    %376 = arith.mulf %375, %98 : vector<16x32xf32>
    %377 = arith.addf %373, %376 : vector<16x32xf32>
    %c6_197 = arith.constant 6 : index
    %c7_198 = arith.constant 7 : index
    %378 = memref.load %arg7[%c6_197, %c7_198] : memref<8x8xf32, #tpu.memory_space<smem>>
    %379 = vector.broadcast %378 : f32 to vector<16x32xf32>
    %380 = arith.mulf %379, %110 : vector<16x32xf32>
    %381 = arith.addf %377, %380 : vector<16x32xf32>
    %c6_199 = arith.constant 6 : index
    %382 = memref.load %arg8[%c6_199] : memref<8xf32, #tpu.memory_space<smem>>
    %383 = vector.broadcast %382 : f32 to vector<16x32xf32>
    %384 = arith.addf %381, %383 : vector<16x32xf32>
    %c0_200 = arith.constant 0 : index
    %c6_201 = arith.constant 6 : index
    %c0_202 = arith.constant 0 : index
    %c0_203 = arith.constant 0 : index
    %385 = vector.load %arg12[%c0_200, %c6_201, %c0_202, %c0_203] : memref<1x8x16x32xf32, #tpu.memory_space<vmem>>, vector<1x1x16x32xf32>
    %386 = vector.shape_cast %385 : vector<1x1x16x32xf32> to vector<16x32xf32>
    %387 = vector.shape_cast %384 : vector<16x32xf32> to vector<1x1x16x32xf32>
    tpu.vector_store %arg12[%c0_200, %c6_201, %c0_202, %c0_203], %387 {strides = array<i32>} : memref<1x8x16x32xf32, #tpu.memory_space<vmem>>, vector<1x1x16x32xf32>,
    %c0_204 = arith.constant 0 : index
    %c112 = arith.constant 112 : index
    %388 = vector.load %arg13[%c0_204, %c112] : memref<32x128xf32, #tpu.memory_space<vmem>>, vector<32x8xf32>
    %cst_205 = arith.constant dense<0.000000e+00> : vector<16x8xf32>
    %389 = tpu.matmul %384, %388, %cst_205 {dimension_numbers = #tpu.dot_dimension_numbers<[1], [0], [0], [1], [0, 0, 1, 1], [], []>} : vector<16x32xf32>, vector<32x8xf32>, vector<16x8xf32> -> vector<16x8xf32>
    %c0_206 = arith.constant 0 : index
    %c48_207 = arith.constant 48 : index
    %390 = vector.load %arg14[%c0_206, %c48_207] : memref<16x64xf32, #tpu.memory_space<vmem>>, vector<16x8xf32>
    tpu.vector_store %arg14[%c0_206, %c48_207], %389 {strides = array<i32>} : memref<16x64xf32, #tpu.memory_space<vmem>>, vector<16x8xf32>,
    %c7_208 = arith.constant 7 : index
    %c0_209 = arith.constant 0 : index
    %391 = memref.load %arg7[%c7_208, %c0_209] : memref<8x8xf32, #tpu.memory_space<smem>>
    %392 = vector.broadcast %391 : f32 to vector<16x32xf32>
    %393 = arith.mulf %392, %26 : vector<16x32xf32>
    %c7_210 = arith.constant 7 : index
    %c1_211 = arith.constant 1 : index
    %394 = memref.load %arg7[%c7_210, %c1_211] : memref<8x8xf32, #tpu.memory_space<smem>>
    %395 = vector.broadcast %394 : f32 to vector<16x32xf32>
    %396 = arith.mulf %395, %38 : vector<16x32xf32>
    %397 = arith.addf %393, %396 : vector<16x32xf32>
    %c7_212 = arith.constant 7 : index
    %c2_213 = arith.constant 2 : index
    %398 = memref.load %arg7[%c7_212, %c2_213] : memref<8x8xf32, #tpu.memory_space<smem>>
    %399 = vector.broadcast %398 : f32 to vector<16x32xf32>
    %400 = arith.mulf %399, %50 : vector<16x32xf32>
    %401 = arith.addf %397, %400 : vector<16x32xf32>
    %c7_214 = arith.constant 7 : index
    %c3_215 = arith.constant 3 : index
    %402 = memref.load %arg7[%c7_214, %c3_215] : memref<8x8xf32, #tpu.memory_space<smem>>
    %403 = vector.broadcast %402 : f32 to vector<16x32xf32>
    %404 = arith.mulf %403, %62 : vector<16x32xf32>
    %405 = arith.addf %401, %404 : vector<16x32xf32>
    %c7_216 = arith.constant 7 : index
    %c4_217 = arith.constant 4 : index
    %406 = memref.load %arg7[%c7_216, %c4_217] : memref<8x8xf32, #tpu.memory_space<smem>>
    %407 = vector.broadcast %406 : f32 to vector<16x32xf32>
    %408 = arith.mulf %407, %74 : vector<16x32xf32>
    %409 = arith.addf %405, %408 : vector<16x32xf32>
    %c7_218 = arith.constant 7 : index
    %c5_219 = arith.constant 5 : index
    %410 = memref.load %arg7[%c7_218, %c5_219] : memref<8x8xf32, #tpu.memory_space<smem>>
    %411 = vector.broadcast %410 : f32 to vector<16x32xf32>
    %412 = arith.mulf %411, %86 : vector<16x32xf32>
    %413 = arith.addf %409, %412 : vector<16x32xf32>
    %c7_220 = arith.constant 7 : index
    %c6_221 = arith.constant 6 : index
    %414 = memref.load %arg7[%c7_220, %c6_221] : memref<8x8xf32, #tpu.memory_space<smem>>
    %415 = vector.broadcast %414 : f32 to vector<16x32xf32>
    %416 = arith.mulf %415, %98 : vector<16x32xf32>
    %417 = arith.addf %413, %416 : vector<16x32xf32>
    %c7_222 = arith.constant 7 : index
    %c7_223 = arith.constant 7 : index
    %418 = memref.load %arg7[%c7_222, %c7_223] : memref<8x8xf32, #tpu.memory_space<smem>>
    %419 = vector.broadcast %418 : f32 to vector<16x32xf32>
    %420 = arith.mulf %419, %110 : vector<16x32xf32>
    %421 = arith.addf %417, %420 : vector<16x32xf32>
    %c7_224 = arith.constant 7 : index
    %422 = memref.load %arg8[%c7_224] : memref<8xf32, #tpu.memory_space<smem>>
    %423 = vector.broadcast %422 : f32 to vector<16x32xf32>
    %424 = arith.addf %421, %423 : vector<16x32xf32>
    %c0_225 = arith.constant 0 : index
    %c7_226 = arith.constant 7 : index
    %c0_227 = arith.constant 0 : index
    %c0_228 = arith.constant 0 : index
    %425 = vector.load %arg12[%c0_225, %c7_226, %c0_227, %c0_228] : memref<1x8x16x32xf32, #tpu.memory_space<vmem>>, vector<1x1x16x32xf32>
    %426 = vector.shape_cast %425 : vector<1x1x16x32xf32> to vector<16x32xf32>
    %427 = vector.shape_cast %424 : vector<16x32xf32> to vector<1x1x16x32xf32>
    tpu.vector_store %arg12[%c0_225, %c7_226, %c0_227, %c0_228], %427 {strides = array<i32>} : memref<1x8x16x32xf32, #tpu.memory_space<vmem>>, vector<1x1x16x32xf32>,
    %c0_229 = arith.constant 0 : index
    %c120 = arith.constant 120 : index
    %428 = vector.load %arg13[%c0_229, %c120] : memref<32x128xf32, #tpu.memory_space<vmem>>, vector<32x8xf32>
    %cst_230 = arith.constant dense<0.000000e+00> : vector<16x8xf32>
    %429 = tpu.matmul %424, %428, %cst_230 {dimension_numbers = #tpu.dot_dimension_numbers<[1], [0], [0], [1], [0, 0, 1, 1], [], []>} : vector<16x32xf32>, vector<32x8xf32>, vector<16x8xf32> -> vector<16x8xf32>
    %c0_231 = arith.constant 0 : index
    %c56_232 = arith.constant 56 : index
    %430 = vector.load %arg14[%c0_231, %c56_232] : memref<16x64xf32, #tpu.memory_space<vmem>>, vector<16x8xf32>
    tpu.vector_store %arg14[%c0_231, %c56_232], %429 {strides = array<i32>} : memref<16x64xf32, #tpu.memory_space<vmem>>, vector<16x8xf32>,
    %c0_233 = arith.constant 0 : index
    %c0_234 = arith.constant 0 : index
    %431 = vector.load %arg14[%c0_233, %c0_234] : memref<16x64xf32, #tpu.memory_space<vmem>>, vector<16x64xf32>
    %c0_235 = arith.constant 0 : index
    %c0_236 = arith.constant 0 : index
    %432 = vector.load %arg9[%c0_235, %c0_236] : memref<64x64xf32, #tpu.memory_space<vmem>>, vector<64x64xf32>
    %cst_237 = arith.constant dense<0.000000e+00> : vector<16x64xf32>
    %433 = tpu.matmul %431, %432, %cst_237 {dimension_numbers = #tpu.dot_dimension_numbers<[1], [0], [0], [1], [0, 0, 1, 1], [], []>} : vector<16x64xf32>, vector<64x64xf32>, vector<16x64xf32> -> vector<16x64xf32>
    %c0_238 = arith.constant 0 : index
    %c0_239 = arith.constant 0 : index
    %434 = vector.load %arg10[%c0_238, %c0_239] : memref<1x64xf32, #tpu.memory_space<vmem>>, vector<1x64xf32>
    %435 = vector.broadcast %434 : vector<1x64xf32> to vector<16x64xf32>
    %436 = arith.addf %433, %435 : vector<16x64xf32>
    %c0_240 = arith.constant 0 : index
    %c0_241 = arith.constant 0 : index
    %c0_242 = arith.constant 0 : index
    %437 = vector.load %arg11[%c0_240, %c0_241, %c0_242] : memref<1x16x64xf32, #tpu.memory_space<vmem>>, vector<1x16x64xf32>
    %438 = vector.shape_cast %437 : vector<1x16x64xf32> to vector<16x64xf32>
    %439 = vector.shape_cast %436 : vector<16x64xf32> to vector<1x16x64xf32>
    tpu.vector_store %arg11[%c0_240, %c0_241, %c0_242], %439 {strides = array<i32>} : memref<1x16x64xf32, #tpu.memory_space<vmem>>, vector<1x16x64xf32>,
    return
  }
  func.func @transform_0(%arg0: i32, %arg1: i32) -> (i32, i32, i32) {
    %c0_i32 = arith.constant 0 : i32
    %c0_i32_0 = arith.constant 0 : i32
    %c0_i32_1 = arith.constant 0 : i32
    return %arg0, %c0_i32, %c0_i32_0 : i32, i32, i32
  }
  func.func @transform_1(%arg0: i32, %arg1: i32) -> (i32, i32) {
    %c0_i32 = arith.constant 0 : i32
    %c0_i32_0 = arith.constant 0 : i32
    %c0_i32_1 = arith.constant 0 : i32
    return %c0_i32, %c0_i32_0 : i32, i32
  }
  func.func @transform_2(%arg0: i32, %arg1: i32) -> (i32, i32) {
    %c0_i32 = arith.constant 0 : i32
    %c0_i32_0 = arith.constant 0 : i32
    %c0_i32_1 = arith.constant 0 : i32
    return %c0_i32, %c0_i32_0 : i32, i32
  }
  func.func @transform_3(%arg0: i32, %arg1: i32) -> (i32, i32) {
    %c0_i32 = arith.constant 0 : i32
    %c0_i32_0 = arith.constant 0 : i32
    %c0_i32_1 = arith.constant 0 : i32
    return %c0_i32, %c0_i32_0 : i32, i32
  }
  func.func @transform_4(%arg0: i32, %arg1: i32) -> (i32, i32) {
    %c0_i32 = arith.constant 0 : i32
    %c0_i32_0 = arith.constant 0 : i32
    %c0_i32_1 = arith.constant 0 : i32
    return %c0_i32, %c0_i32_0 : i32, i32
  }
  func.func @transform_5(%arg0: i32, %arg1: i32) -> (i32, i32) {
    %c0_i32 = arith.constant 0 : i32
    %c0_i32_0 = arith.constant 0 : i32
    %c0_i32_1 = arith.constant 0 : i32
    return %c0_i32, %c0_i32_0 : i32, i32
  }
  func.func @transform_6(%arg0: i32, %arg1: i32) -> i32 {
    %c0_i32 = arith.constant 0 : i32
    %c0_i32_0 = arith.constant 0 : i32
    return %c0_i32 : i32
  }
  func.func @transform_7(%arg0: i32, %arg1: i32) -> (i32, i32) {
    %c0_i32 = arith.constant 0 : i32
    %c0_i32_0 = arith.constant 0 : i32
    %c0_i32_1 = arith.constant 0 : i32
    return %c0_i32, %c0_i32_0 : i32, i32
  }
  func.func @transform_8(%arg0: i32, %arg1: i32) -> (i32, i32) {
    %c0_i32 = arith.constant 0 : i32
    %c0_i32_0 = arith.constant 0 : i32
    %c0_i32_1 = arith.constant 0 : i32
    return %c0_i32, %c0_i32_0 : i32, i32
  }
  func.func @transform_9(%arg0: i32, %arg1: i32) -> (i32, i32, i32) {
    %c0_i32 = arith.constant 0 : i32
    %c0_i32_0 = arith.constant 0 : i32
    return %arg0, %arg1, %c0_i32 : i32, i32, i32
  }
  func.func @transform_10(%arg0: i32, %arg1: i32) -> (i32, i32, i32, i32) {
    %c0_i32 = arith.constant 0 : i32
    %c0_i32_0 = arith.constant 0 : i32
    %c0_i32_1 = arith.constant 0 : i32
    return %arg0, %c0_i32, %arg1, %c0_i32_0 : i32, i32, i32, i32
  }
}

</mosaic_0001>

<bundles_post_ra>
// kernel: tpu_custom_call.1
= control target key start
LH: loop header
LB: loop body
LE: loop exit
PB: predicated region body
PF: predicated region fallthrough
CT: control target
= control target key end

     0   :  { %s6474_s0 = inlined_call_operand.hbm [shape: f32[2,32,64], index: 0, kind: input, shape index: {}]   ;;  %s6475_s1 = inlined_call_operand.hbm [shape: f32[64,64], index: 1, kind: input, shape index: {}]   ;;  %s6476_s2 = inlined_call_operand.vmem [shape: f32[1,64], index: 2, kind: input, shape index: {}]   ;;  %s6477_s3 = inlined_call_operand.hbm [shape: f32[64,128], index: 3, kind: input, shape index: {}]   ;;  %s6478_s4 = inlined_call_operand.vmem [shape: f32[1,128], index: 4, kind: input, shape index: {}]   ;;  %s6479_s5 = inlined_call_operand.vmem [shape: f32[8,8], index: 5, kind: input, shape index: {}]   ;;  %s6480_s6 = inlined_call_operand.vmem [shape: f32[8], index: 6, kind: input, shape index: {}]   ;;  %s6481_s7 = inlined_call_operand.hbm [shape: f32[64,64], index: 7, kind: input, shape index: {}]   ;;  %s6482_s8 = inlined_call_operand.vmem [shape: f32[1,64], index: 8, kind: input, shape index: {}]   ;;  %s6483_s9 = inlined_call_operand.hbm [shape: f32[2,32,64], index: 9, kind: output, shape index: {0}]   ;;  %s6484_s10 = inlined_call_operand.hbm [shape: f32[2,8,32,32], index: 10, kind: output, shape index: {1}]  }
   0x1   :  { %6646 = sst [smem:[#allocation101_spill]] %s6474_s0 }
   0x2   :  { %6647 = sst [smem:[#allocation102_spill]] %s6475_s1 }
   0x3   :  { %6648 = sst [smem:[#allocation103_spill]] %s6476_s2 }
   0x4   :  { %6649 = sst [smem:[#allocation104_spill]] %s6477_s3 }
   0x5   :  { %6650 = sst [smem:[#allocation105_spill]] %s6478_s4 }
   0x6   :  { %6651 = sst [smem:[#allocation106_spill]] %s6479_s5 }
   0x7   :  { %6652 = sst [smem:[#allocation107_spill]] %s6480_s6 }
   0x8   :  { %6653 = sst [smem:[#allocation108_spill]] %s6481_s7 }
   0x9   :  { %6654 = sst [smem:[#allocation109_spill]] %s6482_s8 }
   0xa   :  { %6655 = sst [smem:[#allocation110_spill]] %s6483_s9 }
   0xb   :  { %6656 = sst [smem:[#allocation111_spill]] %s6484_s10 }
   0xc   :  { %16 = vsyncpa [#allocation5], 0 }
   0xd   :  { %18 = vsyncpa [#allocation5 + $0x1], 0 }
   0xe   :  { %19 = vsyncpa [#allocation9], 0 }
   0xf   :  { %20 = vsyncpa [#allocation7], 0 }
  0x10   :  { %21 = vsyncpa [#allocation13], 0 }
  0x11   :  { %22 = vsyncpa [#allocation15], 0 }
  0x12   :  { %23 = vsyncpa [#allocation6], 0 }
  0x13   :  { %25 = vsyncpa [#allocation6 + $0x1], 0 }
  0x14   :  { %26 = vsyncpa [#allocation18], 0 }
  0x15   :  { %28 = vsyncpa [#allocation18 + $0x1], 0  ;;  %s4934_s13 = smov 0   ;;  %s4936_s14 = smov 0  }
  0x16   :  { %s4938_s15 = smov 0   ;;  %s4940_s16 = smov 0  }
  0x17   :  { %s4942_s17 = smov 0   ;;  %s4944_s18 = smov 0  }
  0x18   :  { %s4946_s19 = smov 0   ;;  %s4948_s20 = smov 0  }
  0x19   :  { %s4950_s21 = smov 0   ;;  %s4952_s22 = smov 0  }
  0x1a   :  { %s4954_s23 = smov 0  }
  0x1b LB: > { %6657 = sst [smem:[#allocation28_spill]] %s4805_s13  ;;  %s3383_s24 = sadd.s32 4294967295, %s4845_s23   ;;  %s4845_s23 = sphi %s4954_s23, %s34_s23   ;;  %s4841_s22 = sphi %s4952_s22, %s6967_s22   ;;  %s4837_s21 = sphi %s4950_s21, %s6966_s21   ;;  %s4833_s20 = sphi %s4948_s20, %s6965_s20   ;;  %s4829_s19 = sphi %s4946_s19, %s6964_s19   ;;  %s4825_s18 = sphi %s4944_s18, %s6963_s18   ;;  %s4821_s17 = sphi %s4942_s17, %s6962_s17   ;;  %s4817_s16 = sphi %s4940_s16, %s6961_s16   ;;  %s4813_s15 = sphi %s4938_s15, %s6960_s15   ;;  %s4809_s14 = sphi %s4936_s14, %s6959_s14   ;;  %s4805_s13 = sphi %s4934_s13, %s6958_s13  }
  0x1c   : > { %6658 = sst [smem:[#allocation29_spill]] %s4809_s14  ;;  %p3385_p0 = scmp.ge.s32.totalorder %s4845_s23, 1 }
  0x1d   : > { %6659 = sst [smem:[#allocation30_spill]] %s4813_s15  ;;  %p4991_p1 = scmp.eq.s32.totalorder %s3383_s24, 0 }
  0x1e   : > { %6660 = sst [smem:[#allocation31_spill]] %s4821_s17  ;;  %p4995_p2 = scmp.eq.s32.totalorder %s3383_s24, 3 }
  0x1f   : > { %6661 = sst [smem:[#allocation32_spill]] %s4825_s18  ;;  %p301_p3 = scmp.lt.s32.totalorder %s4845_s23, 5 }
  0x20   : > { %6662 = sst [smem:[#allocation33_spill]] %s4829_s19  ;;  %s4847_s28 = smov [#allocation8]  }
  0x21   : > { %6663 = sst [smem:[#allocation34_spill]] %s4833_s20  ;;  %p5000_p4 = pnand %p3385_p0, %p301_p3 }
  0x22   : > { %6664 = sst [smem:[#allocation35_spill]] %s4837_s21  ;;  %s313_s29 = sshll.u32 %s4847_s28, 4  ;;  %s5004_s29 = int_to_ptr.vmem [resolvable:$true] %s313_s29 }
  0x23   : > { %6665 = sst [smem:[#allocation36_spill]] %s4841_s22  ;;  %p4188_p5 = pneg %p5000_p4 }
  0x24   : > { %6666 = sst [smem:[#allocation37_spill]] %s4845_s23  ;;  %s6671_s5 = sld [smem:[#allocation106_spill]] }
  0x25   : > { %s6667_s25 = scalar_select %p4991_p1, 1, 0 }
  0x26   : > { %s6668_s26 = scalar_select %p4995_p2, 1, 0 }
  0x27   : > { %s6669_s27 = scalar_select %p5000_p4, 1, 0 }
  0x28   : > { %p5013_p6 = pnand %p4188_p5, %p4991_p1  ;;  %s4848_s10 = smov [#allocation10]  }
  0x29   : > { %6670 = sst [smem:[#allocation38_spill]] %s6669_s27  ;;  %s329_s9 = sshll.u32 %s4848_s10, 4  ;;  %s5017_s9 = int_to_ptr.vmem [resolvable:$true] %s329_s9 }
  0x2a   : > { %s346_s12 = sshll.u32 %s6671_s5, 4  ;;  %s6673_s1 = sld [smem:[#allocation102_spill]]  ;;  %s5019_s12 = int_to_ptr.vmem [resolvable:$true] %s346_s12 }
  0x2b   : > { %p5029_p8 = pneg %p5013_p6 }
  0x30   : > { %s4559_s20 = scalar_lea.hbm %s6673_s1, 1024 }
  0x31   : > { %p4560_p7 = scmp.ne.s32.totalorder %s6673_s1, %s4559_s20  ;;  %p4566_p11 = scmp.lt.u32.totalorder %s4559_s20, %s6673_s1 }
  0x33   : > { %p4562_p9 = pnand %p5029_p8, %p4560_p7 }
  0x35   : > { %p4563_p10 = pneg %p4562_p9 }
  0x37   : > { %p4568_p12 = pnand %p4566_p11, %p4563_p10 }
  0x39   : > { %4571 = shalt.err (!%p4568_p12)
}
  0x3a   : > { %s4572_s2 = scalar_lea.vmem %s5004_s29, 1024  ;;  %p4580_p5 = scmp.lt.s32.totalorder %s5004_s29, %s5004_s29 }
  0x3b   : > { %p4573_p13 = scmp.ne.s32.totalorder %s5004_s29, %s4572_s2  ;;  %p4581_p4 = scmp.lt.s32.totalorder %s4572_s2, %s4572_s2 }
  0x3d   : > { %p4575_p0 = pnand %p4573_p13, %p5029_p8  ;;  %p4582_p7 = por %p4581_p4, %p4580_p5 }
  0x3f   : > { %p4576_p3 = pneg %p4575_p0 }
  0x41   : > { %p4583_p9 = pnand %p4582_p7, %p4576_p3 }
  0x43   : > { %4586 = shalt.err (!%p4583_p9)
}
  0x44   : > { %s6493_s4 = smov 128   ;;  %s6494_s8 = smov 8  }
  0x45   : > { %4191 = dma.hbm_to_vmem [thread:$0]  (!%p5013_p6), %s6673_s1, 1024, %s5004_s29, [#allocation9], %s6493_s4, %s6493_s4, %s6494_s8  }
  0x46   : > { %s6675_s3 = sld [smem:[#allocation104_spill]] }
  0x4c   : > { %s4587_s2 = scalar_lea.hbm %s6675_s3, 1024 }
  0x4d   : > { %p4588_p4 = scmp.ne.s32.totalorder %s6675_s3, %s4587_s2  ;;  %p4594_p12 = scmp.lt.u32.totalorder %s4587_s2, %s6675_s3 }
  0x4f   : > { %p4590_p10 = pnand %p4588_p4, %p5029_p8 }
  0x51   : > { %p4591_p11 = pneg %p4590_p10 }
  0x53   : > { %p4596_p13 = pnand %p4594_p12, %p4591_p11 }
  0x55   : > { %4599 = shalt.err (!%p4596_p13)
}
  0x56   : > { %s4600_s29 = scalar_lea.vmem %s5017_s9, 1024  ;;  %p4608_p7 = scmp.lt.s32.totalorder %s5017_s9, %s5017_s9 }
  0x57   : > { %p4601_p0 = scmp.ne.s32.totalorder %s5017_s9, %s4600_s29  ;;  %p4609_p9 = scmp.lt.s32.totalorder %s4600_s29, %s4600_s29 }
  0x59   : > { %p4603_p3 = pnand %p4601_p0, %p5029_p8  ;;  %p4610_p4 = por %p4609_p9, %p4608_p7 }
  0x5b   : > { %p4604_p5 = pneg %p4603_p3 }
  0x5d   : > { %p4611_p10 = pnand %p4610_p4, %p4604_p5 }
  0x5f   : > { %4614 = shalt.err (!%p4611_p10)
}
  0x60   : > { %4194 = dma.hbm_to_vmem [thread:$0]  (!%p5013_p6), %s6675_s3, 1024, %s5017_s9, [#allocation9], %s6493_s4, %s6493_s4, %s6494_s8  }
  0x61   : > { %s4615_s19 = scalar_lea.vmem %s5019_s12, 128  ;;  %p4623_p0 = scmp.lt.s32.totalorder %s5019_s12, %s5019_s12 }
  0x62   : > { %p4616_p11 = scmp.ne.s32.totalorder %s5019_s12, %s4615_s19  ;;  %p4624_p3 = scmp.lt.s32.totalorder %s4615_s19, %s4615_s19 }
  0x64   : > { %p4618_p12 = pnand %p4616_p11, %p5029_p8  ;;  %p4625_p5 = por %p4624_p3, %p4623_p0 }
  0x66   : > { %p4619_p13 = pneg %p4618_p12 }
  0x68   : > { %p4626_p7 = pnand %p4625_p5, %p4619_p13 }
  0x6a   : > { %4629 = shalt.err (!%p4626_p7)
}
  0x6b   : > { %s4851_s27 = smov [#allocation11]   ;;  %s6676_s6 = sld [smem:[#allocation107_spill]] }
  0x6c   : > { %4197 = dma.vmem_to_smem (!%p5013_p6), %s5019_s12, 128, %s4851_s27, [#allocation7]  }
  0x71   : > { %s357_s9 = sshll.u32 %s6676_s6, 4  ;;  %s358_s9 = int_to_ptr.vmem [resolvable:$true] %s357_s9 }
  0x72   : > { %s4630_s10 = scalar_lea.vmem %s358_s9, 16  ;;  %p4638_p11 = scmp.lt.s32.totalorder %s358_s9, %s358_s9 }
  0x73   : > { %p4631_p9 = scmp.ne.s32.totalorder %s358_s9, %s4630_s10  ;;  %p4639_p12 = scmp.lt.s32.totalorder %s4630_s10, %s4630_s10 }
  0x75   : > { %p4633_p4 = pnand %p4631_p9, %p5029_p8  ;;  %p4640_p13 = por %p4639_p12, %p4638_p11 }
  0x77   : > { %p4634_p10 = pneg %p4633_p4 }
  0x79   : > { %p4641_p0 = pnand %p4640_p13, %p4634_p10 }
  0x7b   : > { %4644 = shalt.err (!%p4641_p0)
}
  0x7c   : > { %s4852_s11 = smov [#allocation12]   ;;  %s4853_s12 = smov [#allocation14]  }
  0x7d   : > { %4200 = dma.vmem_to_smem (!%p5013_p6), %s358_s9, 16, %s4852_s11, [#allocation13]  }
  0x7e   : > { %s367_s2 = sshll.u32 %s4853_s12, 4  ;;  %s6677_s7 = sld [smem:[#allocation108_spill]]  ;;  %s368_s2 = int_to_ptr.vmem [resolvable:$true] %s367_s2 }
  0x84   : > { %s4645_s5 = scalar_lea.hbm %s6677_s7, 1024 }
  0x85   : > { %p4646_p3 = scmp.ne.s32.totalorder %s6677_s7, %s4645_s5  ;;  %p4652_p9 = scmp.lt.u32.totalorder %s4645_s5, %s6677_s7 }
  0x87   : > { %p4648_p5 = pnand %p4646_p3, %p5029_p8 }
  0x89   : > { %p4649_p7 = pneg %p4648_p5 }
  0x8b   : > { %p4654_p4 = pnand %p4652_p9, %p4649_p7 }
  0x8d   : > { %4657 = shalt.err (!%p4654_p4)
}
  0x8e   : > { %s4658_s9 = scalar_lea.vmem %s368_s2, 1024  ;;  %p4666_p13 = scmp.lt.s32.totalorder %s368_s2, %s368_s2 }
  0x8f   : > { %p4659_p10 = scmp.ne.s32.totalorder %s368_s2, %s4658_s9  ;;  %p4667_p0 = scmp.lt.s32.totalorder %s4658_s9, %s4658_s9 }
  0x91   : > { %p4661_p11 = pnand %p4659_p10, %p5029_p8  ;;  %p4668_p2 = por %p4667_p0, %p4666_p13 }
  0x93   : > { %p4662_p12 = pneg %p4661_p11 }
  0x95   : > { %p4669_p1 = pnand %p4668_p2, %p4662_p12 }
  0x97   : > { %4672 = shalt.err (!%p4669_p1)
}
  0x98   : > { %4203 = dma.hbm_to_vmem [thread:$0]  (!%p5013_p6), %s6677_s7, 1024, %s368_s2, [#allocation15], %s6493_s4, %s6493_s4, %s6494_s8  }
  0x99   : > { %s3384_s24 = sadd.s32 4294967294, %s4845_s23   ;;  %s43_s30 = sadd.s32 1, %s4837_s21 }
  0x9a   : > { %p44_p1 = scmp.ge.s32.totalorder %s43_s30, 2  ;;  %s46_s12 = sadd.s32 1, %s4841_s22 }
  0x9b   : > { %s53_s29 = sadd.s32 1, %s4825_s18  ;;  %p60_p2 = scmp.ne.s32.totalorder %s4825_s18, %s4821_s17 }
  0x9c   : > { %s6969_s30 = smov (%p44_p1, %s43_s30), 0  ;;  %s6971_s12 = smov (!%p44_p1, %s46_s12), %s4841_s22 }
  0x9d   : > { %6678 = sst [smem:[#allocation39_spill]] %s6969_s30  ;;  %p61_p8 = scmp.eq.s32.totalorder %s4845_s23, 0 }
  0x9e   : > { %p66_p6 = scmp.ne.s32.totalorder %s4821_s17, %s4817_s16  ;;  %p48_p3 = scmp.ge.s32.totalorder %s6971_s12, 2 }
  0x9f   : > { %s245_s2 = ssub.s32 %s4837_s21, %s6969_s30  ;;  %p5130_p5 = por %p61_p8, %p60_p2 }
  0xa0   : > { %p6680_p7 = scmp.ne.s32.totalorder %s6667_s25, 0  ;;  %s6973_s12 = smov (%p48_p3, %s6971_s12), 0 }
  0xa1   : > { %6682 = sst [smem:[#allocation40_spill]] %s6973_s12  ;;  %s249_s19 = sadd.s32 1, %s4813_s15 }
  0xa2   : > { %p5136_p9 = por %p6680_p7, %p66_p6  ;;  %p259_p4 = scmp.ne.s32.totalorder %s4813_s15, %s4809_s14 }
  0xa3   : > { %s50_s16 = ssub.s32 %s4841_s22, %s6973_s12  ;;  %p265_p10 = scmp.ne.s32.totalorder %s4809_s14, %s4805_s13 }
  0xa4   : > { %p51_p11 = scmp.eq.s32.totalorder %s50_s16, 0  ;;  %s246_s27 = sor.u32 %s245_s2, %s50_s16 }
  0xa5   : > { %p247_p12 = scmp.eq.s32.totalorder %s246_s27, 0  ;;  %p6683_p13 = scmp.ne.s32.totalorder %s6668_s26, 0 }
  0xa6   : > { %s5156_s28 = scalar_select %p51_p11, %s4825_s18, %s53_s29  }
  0xa7   : > { %p5151_p0 = por %p6683_p13, %p259_p4  ;;  %p266_p1 = scmp.eq.s32.totalorder %s3384_s24, 3 }
  0xa8   : > { %6686 = sst [smem:[#allocation42_spill]] %s5156_s28  ;;  %p4220_p2 = scmp.lt.s32.totalorder %s4845_s23, 4 }
  0xa9   : > { %s6684_s20 = scalar_select %p5151_p0, 1, 0 }
  0xaa   : > { %s5159_s9 = scalar_select %p247_p12, %s4813_s15, %s249_s19  }
  0xab   : > { %6685 = sst [smem:[#allocation41_spill]] %s6684_s20  ;;  %s384_s10 = sand.u32 1, %s4825_s18  }
  0xac   : > { %6687 = sst [smem:[#allocation43_spill]] %s5159_s9  ;;  %s3575_s11 = sshll.u32 %s4841_s22, 9 }
  0xad   : > { %p5164_p8 = por %p266_p1, %p265_p10  ;;  %s3392_s8 = sshll.u32 %s384_s10, 5 }
  0xae   : > { %s6690_s26 = sld [smem:[#allocation101_spill]]  ;;  %p5175_p6 = pnand %p4220_p2, %p5130_p5 }
  0xaf   : > { %s6688_s4 = scalar_select %p5164_p8, 1, 0 }
  0xb0   : > { %s388_s29 = scalar_lea.vmem [#allocation4], %s3392_s8  ;;  %s5181_s1 = scalar_lea.sflag [#allocation5], %s384_s10 }
  0xb1   : > { %6689 = sst [smem:[#allocation44_spill]] %s6688_s4  ;;  %s395_s19 = sshll.u32 %s388_s29, 4  ;;  %s5179_s19 = int_to_ptr.vmem [resolvable:$true] %s395_s19 }
  0xb2   : > { %p4675_p7 = pneg %p5175_p6 }
  0xb4   : > { %s5171_s27 = scalar_lea.hbm %s6690_s26, %s3575_s11  ;;  %s4678_s16 = scalar_lea.hbm %s6690_s26, 1024 }
  0xb5   : > { %s4673_s2 = scalar_lea.hbm %s5171_s27, 512  ;;  %p4679_p5 = scmp.lt.u32.totalorder %s5171_s27, %s6690_s26 }
  0xb6   : > { %p4674_p3 = scmp.ne.s32.totalorder %s5171_s27, %s4673_s2  ;;  %p4680_p11 = scmp.lt.u32.totalorder %s4678_s16, %s4673_s2 }
  0xb7   : > { %p4682_p13 = scmp.lt.u32.totalorder %s4673_s2, %s5171_s27 }
  0xb8   : > { %p4676_p4 = pnand %p4675_p7, %p4674_p3  ;;  %p4681_p12 = por %p4680_p11, %p4679_p5 }
  0xba   : > { %p4677_p10 = pneg %p4676_p4  ;;  %p4683_p1 = por %p4682_p13, %p4681_p12 }
  0xbc   : > { %p4684_p2 = pnand %p4683_p1, %p4677_p10 }
  0xbe   : > { %4687 = shalt.err (!%p4684_p2)
}
  0xbf   : > { %s4688_s8 = scalar_lea.vmem %s5179_s19, 512  ;;  %s4854_s10 = smov [#allocation4]  }
  0xc0   : > { %p4689_p3 = scmp.ne.s32.totalorder %s5179_s19, %s4688_s8  ;;  %s4693_s29 = sshll.u32 %s4854_s10, 4  ;;  %s4694_s29 = int_to_ptr.vmem [resolvable:$false] %s4693_s29 }
  0xc1   : > { %s4695_s3 = scalar_lea.vmem %s4694_s29, 1024  ;;  %p4696_p0 = scmp.lt.s32.totalorder %s5179_s19, %s4694_s29 }
  0xc2   : > { %p4691_p4 = pnand %p4689_p3, %p4675_p7  ;;  %p4697_p5 = scmp.lt.s32.totalorder %s4695_s3, %s4688_s8 }
  0xc4   : > { %p4692_p8 = pneg %p4691_p4  ;;  %p4698_p11 = por %p4697_p5, %p4696_p0 }
  0xc6   : > { %p4699_p12 = pnand %p4698_p11, %p4692_p8 }
  0xc8   : > { %4702 = shalt.err (!%p4699_p12)
}
  0xc9   : > { %s6692_s6 = smov 8   ;;  %s6693_s2 = smov 128  }
  0xca   : > { %4207 = dma.hbm_to_vmem [thread:$0]  (!%p5175_p6), %s5171_s27, 512, %s5179_s19, %s5181_s1, %s6693_s2, %s6693_s2, %s6692_s6  }
  0xcb   : > { %s6694_s0 = sld [smem:[#allocation38_spill]] }
  0xd1   : > { %p6695_p7 = scmp.ne.s32.totalorder %s6694_s0, 0 }
  0xd3   : > { %407 = sbr.rel (%p6695_p7) target bundleno = 2094 (0x82e), region = 56 }
  0xda   : > { %s409_s11 = sand.u32 1, %s4821_s17  }
  0xdb   : > { %s3396_s16 = sshll.u32 %s409_s11, 5  ;;  %s410_s8 = scalar_lea.sflag [#allocation5], %s409_s11 }
  0xdc   : > { %s5215_s10 = scalar_lea.vmem [#allocation4], %s3396_s16 }
  0xdd   : > { %4776 = dma.done.wait (%p5136_p9), %s410_s8, 512  }
  0xde   : > { %4778 = vsyncadd (%p5136_p9), %s410_s8, 4294966784  ;;  %p6696_p0 = scmp.ne.s32.totalorder %s6667_s25, 0 }
  0xe0   : > { %4780 = dma.done.wait (%p6696_p0), [#allocation9], 2048  }
  0xe1   : > { %4782 = vsyncadd (%p6696_p0), [#allocation9], 4294965248 }
  0xe2   : > { %4784 = dma.done.wait (%p6696_p0), [#allocation7], 128  }
  0xe3   : > { %4786 = vsyncadd (%p6696_p0), [#allocation7], 4294967168 }
  0xe4   : > { %4788 = dma.done.wait (%p6696_p0), [#allocation13], 16  }
  0xe5   : > { %4790 = vsyncadd (%p6696_p0), [#allocation13], 4294967280 }
  0xe6   : > { %4792 = dma.done.wait (%p6696_p0), [#allocation15], 1024  }
  0xe7   : > { %4794 = vsyncadd (%p6696_p0), [#allocation15], 4294966272 }
  0xe8   : > { %438 = sfence }
  0xe9   : > { %s5238_s1 = sand.u32 1, %s4809_s14   ;;  %s6700_s29 = sld [smem:[#allocation33_spill]] }
  0xea   : > { %6697 = sst [smem:[#allocation45_spill]] %s5238_s1  ;;  %s3402_s5 = sshll.u32 %s5238_s1, 4 }
  0xeb   : > { %s3403_s27 = sshll.u32 %s5238_s1, 7  ;;  %s5242_s24 = scalar_lea.vmem [#allocation16], %s3402_s5 }
  0xec   : > { %6698 = sst [smem:[#allocation46_spill]] %s5242_s24  ;;  %s5244_s19 = scalar_lea.vmem [#allocation17], %s3403_s27 }
  0xed   : > { %6699 = sst [smem:[#allocation47_spill]] %s5244_s19 }
  0xef   : > { %p3404_p9 = scmp.ne.s32.totalorder %s6700_s29, 0 }
  0xf0   : > { %v486_v0 = vld [vmem:[#allocation10] sm:$0xff] (!%p3404_p9)  ;;  %v487_v1 = vld [vmem:[#allocation10 + $0x8] sm:$0xff] (!%p3404_p9)  ;;  %v488_v2 = vld [vmem:[#allocation10 + $0x10] sm:$0xff] (!%p3404_p9)  ;;  %vm501_vm0 = vcmask (!%p3404_p9), 523264   ;;  %s6701_s6 = sld [smem:[#allocation105_spill]] (!%p3404_p9) }
  0xf1   : > { %481 = sbr.rel (%p3404_p9) target bundleno = 475 (0x1db), region = 84  ;;  %v3940_v3 = vpack.c.bf16 (!%p3404_p9), %v487_v1, %v486_v0  ;;  %v489_v4 = vld [vmem:[#allocation10 + $0x18] sm:$0xff] (!%p3404_p9)  ;;  %v490_v6 = vld [vmem:[#allocation10 + $0x20] sm:$0xff] (!%p3404_p9)  ;;  %v491_v7 = vld [vmem:[#allocation10 + $0x28] sm:$0xff] (!%p3404_p9) }
  0xf2   : > { %v3944_v5 = vpack.c.bf16 (!%p3404_p9), %v489_v4, %v488_v2  ;;  %v482_v8 = vld [vmem:[%s5215_s10] sm:$0xff] (!%p3404_p9)  ;;  %v484_v9 = vld [vmem:[%s5215_s10 + $0x10] sm:$0xff] (!%p3404_p9)  ;;  %v3948_v10 = vpack.c.bf16 (!%p3404_p9), %v491_v7, %v490_v6  ;;  %v493_v12 = vld [vmem:[#allocation10 + $0x38] sm:$0xff] (!%p3404_p9) }
  0xf3   : > { %3941 = vmatprep.subr.bf16.mxu0 (!%p3404_p9), %v3940_v3  ;;  %4148 = vmatprep.subr.bf16.mxu1 (!%p3404_p9), %v3940_v3  ;;  %v492_v11 = vld [vmem:[#allocation10 + $0x30] sm:$0xff] (!%p3404_p9)  ;;  %v483_v14 = vld [vmem:[%s5215_s10 + $0x8] sm:$0xff] (!%p3404_p9)  ;;  %v485_v15 = vld [vmem:[%s5215_s10 + $0x18] sm:$0xff] (!%p3404_p9) }
  0xf4   : > { %3943 = vmatpush3.bf16.msra.mxu0 (!%p3404_p9), %v3940_v3  ;;  %4152 = vmatpush3.bf16.msra.mxu1 (!%p3404_p9), %v3940_v3  ;;  %v3952_v13 = vpack.c.bf16 (!%p3404_p9), %v493_v12, %v492_v11 }
  0xf5   : > { %3945 = vmatprep.subr.bf16.mxu0 (!%p3404_p9), %v3944_v5  ;;  %4149 = vmatprep.subr.bf16.mxu1 (!%p3404_p9), %v3944_v5 }
  0xf6   : > { %3720 = vmatprep.mubr.msk.f32.mxu0 (!%p3404_p9), %vm501_vm0, %v482_v8  ;;  %3723 = vmatprep.mubr.msk.f32.mxu1 (!%p3404_p9), %vm501_vm0, %v484_v9  ;;  %v3405_v16 = vld [vmem:[%s6701_s6] ss:$0 sm:$0xff] (!%p3404_p9) }
  0xf8   : > { %3947 = vmatpush3.bf16.msra.mxu0 %v3944_v5  ;;  %4153 = vmatpush3.bf16.msra.mxu1 %v3944_v5 }
  0xf9   : > { %3949 = vmatprep.subr.bf16.mxu0 %v3948_v10  ;;  %4150 = vmatprep.subr.bf16.mxu1 %v3948_v10 }
  0xfc   : > { %3951 = vmatpush3.bf16.msra.mxu0 %v3948_v10  ;;  %4154 = vmatpush3.bf16.msra.mxu1 %v3948_v10 }
  0xfd   : > { %3953 = vmatprep.subr.bf16.mxu0 %v3952_v13  ;;  %4151 = vmatprep.subr.bf16.mxu1 %v3952_v13 }
 0x100   : > { %3955 = vmatpush3.bf16.msra.mxu0 %v3952_v13  ;;  %4155 = vmatpush3.bf16.msra.mxu1 %v3952_v13 }
 0x103   : > { %3721 = vmatmul.mubr.msk.f32.vlgmr.msra.gmra.mrb[0].mxu0 %vm501_vm0, %v483_v14  ;;  %3724 = vmatmul.mubr.msk.f32.vlgmr.msra.gmra.mrb[0].mxu1 %vm501_vm0, %v485_v15 }
 0x1d6   : > { %v3722_v17 = vpop.f32.mrb[0].mxu0  ;;  %v3725_v18 = vpop.f32.mrb[0].mxu1 }
 0x1d7   : > { %v586_v19 = vadd.f32 %v3722_v17, %v3405_v16  ;;  %v596_v20 = vadd.f32 %v3725_v18, %v3405_v16  ;;  %v580_v21 = vpop.f32.mrb[1].mxu0  ;;  %v590_v22 = vpop.f32.mrb[1].mxu1 }
 0x1d8   : > { %v581_v23 = vadd.f32 %v3405_v16, %v580_v21  ;;  %v591_v24 = vadd.f32 %v3405_v16, %v590_v22 }
 0x1d9   : > { %600 = vst [vmem:[#allocation2 + $0x8] sm:$0xff] %v586_v19  ;;  %602 = vst [vmem:[#allocation2 + $0x18] sm:$0xff] %v596_v20 }
 0x1da   : > { %599 = vst [vmem:[#allocation2] sm:$0xff] %v581_v23  ;;  %601 = vst [vmem:[#allocation2 + $0x10] sm:$0xff] %v591_v24 }
 0x1db PF: > { %v607_v25 = vld [vmem:[#allocation8] sm:$0xff]  ;;  %s6702_s2 = sld [smem:[#allocation33_spill]]  ;;  %v608_v26 = vld [vmem:[#allocation8 + $0x8] sm:$0xff]  ;;  %v609_v27 = vld [vmem:[#allocation8 + $0x10] sm:$0xff]  ;;  %vm622_vm1 = vcmask 523264   ;;  %vm710_vm2 = vcmask 64512  }
 0x1dc   : > { %v3956_v28 = vpack.c.bf16 %v608_v26, %v607_v25  ;;  %v610_v29 = vld [vmem:[#allocation8 + $0x18] sm:$0xff]  ;;  %v611_v31 = vld [vmem:[#allocation8 + $0x20] sm:$0xff]  ;;  %v612_v32 = vld [vmem:[#allocation8 + $0x28] sm:$0xff]  ;;  %s4855_s16 = smov 120   ;;  %s4856_s8 = smov 112   ;;  %vm804_vm4 = vcmask 261120  }
 0x1dd   : > { %v3960_v30 = vpack.c.bf16 %v610_v29, %v609_v27  ;;  %vm5268_vm3 = vmpackc.low %vm710_vm2, %vm710_vm2  ;;  %v3964_v41 = vpack.c.bf16 %v612_v32, %v611_v31  ;;  %v613_v43 = vld [vmem:[#allocation8 + $0x30] sm:$0xff]  ;;  %v614_v44 = vld [vmem:[#allocation8 + $0x38] sm:$0xff]  ;;  %s6705_s29 = sld [smem:[#allocation103_spill]]  ;;  %s4858_s25 = smov 96   ;;  %vm2047_vm5 = vcmask 130112   ;;  %vm2212_vm6 = vcmask 195712  }
 0x1de   : > { %3957 = vmatprep.subr.bf16.mxu0 %v3956_v28  ;;  %v3968_v46 = vpack.c.bf16 %v614_v44, %v613_v43  ;;  %s4859_s3 = smov 88   ;;  %s4860_s6 = smov 80   ;;  %vm2377_vm7 = vcmask 261312   ;;  %vm2542_vm8 = vcmask 326912   ;;  %vm2707_vm9 = vcmask 392512  }
 0x1df   : > { %3959 = vmatpush3.bf16.msra.mxu0 %v3956_v28  ;;  %s6508_s5 = smov 32   ;;  %s6502_s27 = smov 16   ;;  %vm2872_vm10 = vcmask 458112   ;;  %vm3037_vm11 = vcmask 523712  }
 0x1e0   : > { %v828_v35 = vld [vmem:[#allocation2 + $0x8] sm:$0xff]  ;;  %v830_v40 = vld [vmem:[#allocation2 + $0x18] sm:$0xff]  ;;  %3961 = vmatprep.subr.bf16.mxu0 %v3960_v30  ;;  %s5573_s7 = sld [smem:[#allocation11 + $0x301]]  ;;  %s5577_s12 = sld [smem:[#allocation11 + $0x2]] }
 0x1e1   : > { %s3410_s0 = sshll.u32 %s6702_s2, 4  ;;  %v827_v34 = vld [vmem:[#allocation2] sm:$0xff]  ;;  %v829_v39 = vld [vmem:[#allocation2 + $0x10] sm:$0xff]  ;;  %s5575_s26 = sld [smem:[#allocation11 + $0x101]] }
 0x1e2   : > { %s5260_s11 = scalar_lea.vmem %s5215_s10, %s3410_s0 [#allocation4]  ;;  %v5264_v36 = vpack.i.bf16 %v828_v35, %v827_v34  ;;  %v3972_v37 = vpack.c.bf16 %v828_v35, %v827_v34  ;;  %v3978_v42 = vpack.c.bf16 %v830_v40, %v829_v39  ;;  %v5276_v45 = vpack.i.bf16 %v830_v40, %v829_v39  ;;  %s4857_s10 = smov 104  }
 0x1e3   : > { %v605_v33 = vld [vmem:[%s5260_s11] sm:$0xff]  ;;  %3963 = vmatpush3.bf16.msra.mxu0 %v3960_v30  ;;  %v606_v47 = vld [vmem:[%s5260_s11 + $0x8] sm:$0xff]  ;;  %s4861_s0 = smov 72   ;;  %s4862_s11 = smov 64  }
 0x1e4   : > { %3742 = vmatprep.mubr.msk.f32.mxu0 %vm622_vm1, %v605_v33  ;;  %4346 = vrot.lane.b32.xlu0 %v5264_v36, %s4855_s16  ;;  %v3411_v0 = vld [vmem:[%s6705_s29] ss:$0 sm:$0xff]  ;;  %s6500_s29 = smov 24   ;;  %s5579_s30 = sld [smem:[#allocation11 + $0x181]] }
 0x1e5   : > { %3974 = vmatprep.subr.msk.bf16.mxu1 %vm5268_vm3, %v3972_v37  ;;  %4356 = vrot.lane.b32.xlu1 %v5264_v36, %s4856_s8  ;;  %s5581_s22 = sld [smem:[#allocation11 + $0x202]]  ;;  %s5589_s17 = sld [smem:[#allocation11 + $0x3]] }
 0x1e6   : > { %3977 = vmatpush3.bf16.xpose.msk.msra.mxu1 %vm5268_vm3, %v3972_v37  ;;  %3965 = vmatprep.subr.bf16.mxu0 %v3964_v41  ;;  %6717 = sst [smem:[#allocation59_spill]] %s5573_s7  ;;  %s5583_s21 = sld [smem:[#allocation11 + $0x82]] }
 0x1e7   : > { %3980 = vmatprep.subr.msk.bf16.mxu1 %vm5268_vm3, %v3978_v42  ;;  %3967 = vmatpush3.bf16.msra.mxu0 %v3964_v41  ;;  %6718 = sst [smem:[#allocation60_spill]] %s5575_s26  ;;  %s5585_s28 = sld [smem:[#allocation11 + $0x302]] }
 0x1e8   : > { %4351 = vrot.lane.b32.xlu0 %v5276_v45, %s4855_s16  ;;  %3969 = vmatprep.subr.bf16.mxu0 %v3968_v46  ;;  %6719 = sst [smem:[#allocation61_spill]] %s5577_s12  ;;  %s5587_s18 = sld [smem:[#allocation11 + $0x102]] }
 0x1e9   : > { %4361 = vrot.lane.b32.xlu1 %v5264_v36, %s4857_s10  ;;  %s5591_s9 = sld [smem:[#allocation11 + $0x281]]  ;;  %s5594_s15 = sld [smem:[#allocation11 + $0x203]] }
 0x1ea   : > { %6720 = sst [smem:[#allocation62_spill]] %s5579_s30  ;;  %s5596_s14 = sld [smem:[#allocation11 + $0x83]] }
 0x1eb   : > { %3971 = vmatpush3.bf16.msra.mxu0 %v3968_v46  ;;  %6721 = sst [smem:[#allocation63_spill]] %s5581_s22  ;;  %s5604_s23 = sld [smem:[#allocation11 + $0x4]] }
 0x1ec   : > { %6722 = sst [smem:[#allocation64_spill]] %s5583_s21  ;;  %s5600_s4 = sld [smem:[#allocation11 + $0x303]] }
 0x1ed   : > { %6723 = sst [smem:[#allocation65_spill]] %s5585_s28  ;;  %s5602_s13 = sld [smem:[#allocation11 + $0x103]] }
 0x1ee   : > { %3983 = vmatpush3.bf16.xpose.msk.msra.mxu1 %vm5268_vm3, %v3978_v42  ;;  %3743 = vmatmul.mubr.msk.f32.vlgmr.msra.gmra.mrb[0].mxu0 %vm622_vm1, %v606_v47  ;;  %6724 = sst [smem:[#allocation66_spill]] %s5587_s18  ;;  %s5606_s20 = sld [smem:[#allocation11 + $0x182]] }
 0x1ef   : > { %6725 = sst [smem:[#allocation67_spill]] %s5589_s17  ;;  %s5608_s1 = sld [smem:[#allocation11 + $0x204]] }
 0x1f0   : > { %6726 = sst [smem:[#allocation68_spill]] %s5591_s9  ;;  %s5610_s24 = sld [smem:[#allocation11 + $0x84]] }
 0x1f1   : > { %6727 = sst [smem:[#allocation69_spill]] %s5594_s15  ;;  %s5612_s2 = sld [smem:[#allocation11 + $0x5]] }
 0x1f2   : > { %6728 = sst [smem:[#allocation70_spill]] %s5596_s14  ;;  %s5614_s19 = sld [smem:[#allocation11 + $0x304]] }
 0x1f3   : > { %6729 = sst [smem:[#allocation71_spill]] %s5600_s4  ;;  %s5616_s4 = sld [smem:[#allocation11 + $0x205]] }
 0x1f4   : > { %6730 = sst [smem:[#allocation72_spill]] %s5602_s13  ;;  %s5618_s13 = sld [smem:[#allocation11 + $0x85]] }
 0x1f5   : > { %6731 = sst [smem:[#allocation73_spill]] %s5604_s23  ;;  %s5621_s23 = sld [smem:[#allocation11 + $0x104]] }
 0x1f6   : > { %6732 = sst [smem:[#allocation74_spill]] %s5606_s20 }
 0x1f7   : > { %6733 = sst [smem:[#allocation75_spill]] %s5608_s1  ;;  %s5623_s1 = sld [smem:[#allocation11 + $0x183]] }
 0x1f8   : > { %6734 = sst [smem:[#allocation76_spill]] %s5612_s2  ;;  %s5644_s2 = sld [smem:[#allocation11 + $0x206]] }
 0x1f9   : > { %6735 = sst [smem:[#allocation77_spill]] %s5614_s19 }
 0x1fa   : > { %6736 = sst [smem:[#allocation78_spill]] %s5616_s4  ;;  %s5633_s4 = sld [smem:[#allocation11 + $0x381]] }
 0x1fb   : > { %6737 = sst [smem:[#allocation79_spill]] %s5618_s13  ;;  %s5630_s13 = sld [smem:[#allocation11 + $0x305]] }
 0x1fc   : > { %6738 = sst [smem:[#allocation80_spill]] %s5621_s23  ;;  %s5636_s23 = sld [smem:[#allocation11 + $0x6]] }
 0x1fd   : > { %6739 = sst [smem:[#allocation81_spill]] %s5623_s1 }
 0x1fe   : > { %s5638_s1 = sld [smem:[#allocation11 + $0x105]]  ;;  %6744 = sst [smem:[#allocation86_spill]] %s5644_s2 }
 0x200   : > { %6741 = sst [smem:[#allocation83_spill]] %s5633_s4 }
 0x201   : > { %6740 = sst [smem:[#allocation82_spill]] %s5630_s13 }
 0x202   : > { %6742 = sst [smem:[#allocation84_spill]] %s5636_s23  ;;  %s5647_s13 = sld [smem:[#allocation11 + $0x86]] }
 0x203   : > { %s6886_s4 = sld [smem:[#allocation82_spill]] }
 0x204   : > { %6743 = sst [smem:[#allocation85_spill]] %s5638_s1  ;;  %s6777_s1 = sld [smem:[#allocation60_spill]] }
 0x208   : > { %6745 = sst [smem:[#allocation87_spill]] %s5647_s13 }
 0x256   : > { %v4347_v48 = vpop.permute.xlu0 %4346 }
 0x257   : > { %v4357_v49 = vpop.permute.xlu1 %4356  ;;  %v4349_v50 = vunpack.i.h.bf16 %v4347_v48  ;;  %v4348_v51 = vunpack.i.l.bf16 %v4347_v48 }
 0x258   : > { %v4359_v52 = vunpack.i.h.bf16 %v4357_v49  ;;  %v4358_v53 = vunpack.i.l.bf16 %v4357_v49 }
 0x259   : > { %v3984_v54 = vpack.c.bf16 %v4349_v50, %v4348_v51 }
 0x25a   : > { %v3996_v55 = vpack.c.bf16 %v4359_v52, %v4358_v53  ;;  %v4352_v56 = vpop.permute.xlu0 %4351 }
 0x25b   : > { %3986 = vmatprep.subr.msk.bf16.mxu0 %vm5268_vm3, %v3984_v54  ;;  %v4354_v57 = vunpack.i.h.bf16 %v4352_v56  ;;  %v4353_v58 = vunpack.i.l.bf16 %v4352_v56  ;;  %v4362_v60 = vpop.permute.xlu1 %4361 }
 0x25c   : > { %3998 = vmatprep.subr.msk.bf16.mxu1 %vm5268_vm3, %v3996_v55  ;;  %3989 = vmatpush3.bf16.xpose.msk.msra.mxu0 %vm5268_vm3, %v3984_v54  ;;  %v4364_v61 = vunpack.i.h.bf16 %v4362_v60  ;;  %v4363_v62 = vunpack.i.l.bf16 %v4362_v60 }
 0x25d   : > { %v3990_v59 = vpack.c.bf16 %v4354_v57, %v4353_v58 }
 0x25e   : > { %v4008_v63 = vpack.c.bf16 %v4364_v61, %v4363_v62 }
 0x25f   : > { %3992 = vmatprep.subr.msk.bf16.mxu0 %vm5268_vm3, %v3990_v59 }
 0x264   : > { %3995 = vmatpush3.bf16.xpose.msk.msra.mxu0 %vm5268_vm3, %v3990_v59 }
 0x265   : > { %4010 = vmatprep.subr.msk.bf16.mxu0 %vm5268_vm3, %v4008_v63 }
 0x2c1   : > { %v3744_v1 = vpop.f32.mrb[0].mxu0 }
 0x2c2   : > { %v701_v2 = vadd.f32 %v3744_v1, %v3411_v0  ;;  %v695_v3 = vpop.f32.mrb[1].mxu0 }
 0x2c3   : > { %v696_v4 = vadd.f32 %v3411_v0, %v695_v3 }
 0x2c4   : > { %v705_v5 = vmul.f32 0.35355338, %v701_v2 }
 0x2c5   : > { %v704_v6 = vmul.f32 0.35355338, %v696_v4 }
 0x2c6   : > { %833 = vrot.lane.b32.xlu1 %v705_v5, %s4855_s16 }
 0x2c7   : > { %831 = vrot.lane.b32.xlu0 %v704_v6, %s4855_s16  ;;  %3753 = vmatprep.mubr.msk.f32.mxu1 %vm710_vm2, %v704_v6  ;;  %s6496_s16 = smov 56  }
 0x2c8   : > { %3754 = vmatmul.mubr.msk.f32.vlgmr.msra.gmra.mrb[0].mxu1 %vm710_vm2, %v705_v5 }
 0x2c9   : > { %4001 = vmatpush3.bf16.xpose.msk.msra.mxu1 %vm5268_vm3, %v3996_v55 }
 0x2ca   : > { %4371 = vrot.lane.b32.xlu1 %v5276_v45, %s4857_s10 }
 0x2cb   : > { %4366 = vrot.lane.b32.xlu0 %v5276_v45, %s4856_s8 }
 0x2ce   : > { %962 = vrot.lane.b32.xlu1 %v705_v5, %s4856_s8 }
 0x2cf   : > { %4376 = vrot.lane.b32.xlu0 %v5264_v36, %s4858_s25 }
 0x2d2   : > { %960 = vrot.lane.b32.xlu1 %v704_v6, %s4856_s8  ;;  %s6504_s8 = smov 48  }
 0x2d3   : > { %4381 = vrot.lane.b32.xlu0 %v5264_v36, %s4859_s3 }
 0x2d6   : > { %1091 = vrot.lane.b32.xlu1 %v705_v5, %s4857_s10 }
 0x2d7   : > { %1089 = vrot.lane.b32.xlu0 %v704_v6, %s4857_s10  ;;  %s6498_s10 = smov 40  }
 0x2da   : > { %4391 = vrot.lane.b32.xlu1 %v5276_v45, %s4859_s3 }
 0x2db   : > { %4386 = vrot.lane.b32.xlu0 %v5276_v45, %s4858_s25 }
 0x2de   : > { %1220 = vrot.lane.b32.xlu1 %v705_v5, %s4858_s25 }
 0x2df   : > { %4396 = vrot.lane.b32.xlu0 %v5264_v36, %s4860_s6 }
 0x2e2   : > { %1218 = vrot.lane.b32.xlu1 %v704_v6, %s4858_s25  ;;  %s6506_s25 = smov 8  }
 0x2e3   : > { %4401 = vrot.lane.b32.xlu0 %v5264_v36, %s4861_s0 }
 0x2e6   : > { %1349 = vrot.lane.b32.xlu1 %v705_v5, %s4859_s3 }
 0x2e7   : > { %1347 = vrot.lane.b32.xlu0 %v704_v6, %s4859_s3  ;;  %s5551_s3 = sld [smem:[#allocation11]] }
 0x2ea   : > { %4411 = vrot.lane.b32.xlu1 %v5276_v45, %s4861_s0 }
 0x2eb   : > { %4406 = vrot.lane.b32.xlu0 %v5276_v45, %s4860_s6 }
 0x2ed   : > { %6706 = sst [smem:[#allocation48_spill]] %s5551_s3 }
 0x2ee   : > { %1478 = vrot.lane.b32.xlu1 %v705_v5, %s4860_s6 }
 0x2ef   : > { %1476 = vrot.lane.b32.xlu0 %v704_v6, %s4860_s6  ;;  %s5553_s6 = sld [smem:[#allocation11 + $0x200]] }
 0x2f2   : > { %1607 = vrot.lane.b32.xlu1 %v705_v5, %s4861_s0 }
 0x2f3   : > { %1605 = vrot.lane.b32.xlu0 %v704_v6, %s4861_s0  ;;  %s5555_s0 = sld [smem:[#allocation11 + $0x80]] }
 0x2f5   : > { %6707 = sst [smem:[#allocation49_spill]] %s5553_s6 }
 0x2f9   : > { %6708 = sst [smem:[#allocation50_spill]] %s5555_s0 }
 0x338   : > { %v834_v7 = vpop.permute.xlu1 %833 }
 0x339   : > { %v832_v8 = vpop.permute.xlu0 %831 }
 0x33a   : > { %3764 = vmatprep.mubr.msk.f32.mxu0 %vm710_vm2, %v832_v8 }
 0x33b   : > { %3765 = vmatmul.mubr.msk.f32.vlgmr.msra.gmra.mrb[2].mxu0 %vm710_vm2, %v834_v7 }
 0x33c   : > { %4013 = vmatpush3.bf16.xpose.msk.msra.mxu0 %vm5268_vm3, %v4008_v63  ;;  %v4372_v9 = vpop.permute.xlu1 %4371 }
 0x33d   : > { %v4374_v10 = vunpack.i.h.bf16 %v4372_v9  ;;  %v4373_v11 = vunpack.i.l.bf16 %v4372_v9  ;;  %v4367_v12 = vpop.permute.xlu0 %4366 }
 0x33e   : > { %v4369_v13 = vunpack.i.h.bf16 %v4367_v12  ;;  %v4368_v14 = vunpack.i.l.bf16 %v4367_v12 }
 0x33f   : > { %v4014_v15 = vpack.c.bf16 %v4374_v10, %v4373_v11 }
 0x340   : > { %v4002_v16 = vpack.c.bf16 %v4369_v13, %v4368_v14  ;;  %v963_v17 = vpop.permute.xlu1 %962 }
 0x341   : > { %v4377_v18 = vpop.permute.xlu0 %4376  ;;  %4016 = vmatprep.subr.msk.bf16.mxu0 %vm5268_vm3, %v4014_v15 }
 0x342   : > { %v4379_v19 = vunpack.i.h.bf16 %v4377_v18  ;;  %v4378_v20 = vunpack.i.l.bf16 %v4377_v18  ;;  %4004 = vmatprep.subr.msk.bf16.mxu1 %vm5268_vm3, %v4002_v16 }
 0x343   : > { %4007 = vmatpush3.bf16.xpose.msk.msra.mxu1 %vm5268_vm3, %v4002_v16 }
 0x344   : > { %v4020_v21 = vpack.c.bf16 %v4379_v19, %v4378_v20  ;;  %4019 = vmatpush3.bf16.xpose.msk.msra.mxu0 %vm5268_vm3, %v4014_v15  ;;  %v961_v22 = vpop.permute.xlu1 %960 }
 0x345   : > { %v4382_v23 = vpop.permute.xlu0 %4381  ;;  %3775 = vmatprep.mubr.msk.f32.mxu1 %vm710_vm2, %v961_v22 }
 0x346   : > { %v4384_v24 = vunpack.i.h.bf16 %v4382_v23  ;;  %v4383_v25 = vunpack.i.l.bf16 %v4382_v23  ;;  %4022 = vmatprep.subr.msk.bf16.mxu1 %vm5268_vm3, %v4020_v21 }
 0x348   : > { %v4032_v26 = vpack.c.bf16 %v4384_v24, %v4383_v25  ;;  %v1092_v27 = vpop.permute.xlu1 %1091 }
 0x349   : > { %v1090_v28 = vpop.permute.xlu0 %1089 }
 0x34a   : > { %3776 = vmatmul.mubr.msk.f32.vlgmr.msra.gmra.mrb[2].mxu1 %vm710_vm2, %v963_v17  ;;  %3786 = vmatprep.mubr.msk.f32.mxu0 %vm710_vm2, %v1090_v28 }
 0x34b   : > { %4034 = vmatprep.subr.msk.bf16.mxu0 %vm5268_vm3, %v4032_v26  ;;  %3787 = vmatmul.mubr.msk.f32.vlgmr.msra.gmra.mrb[4].mxu0 %vm710_vm2, %v1092_v27 }
 0x34c   : > { %4025 = vmatpush3.bf16.xpose.msk.msra.mxu1 %vm5268_vm3, %v4020_v21  ;;  %4037 = vmatpush3.bf16.xpose.msk.msra.mxu0 %vm5268_vm3, %v4032_v26  ;;  %v4392_v29 = vpop.permute.xlu1 %4391 }
 0x34d   : > { %v4394_v30 = vunpack.i.h.bf16 %v4392_v29  ;;  %v4393_v31 = vunpack.i.l.bf16 %v4392_v29  ;;  %v4387_v32 = vpop.permute.xlu0 %4386 }
 0x34e   : > { %v4389_v33 = vunpack.i.h.bf16 %v4387_v32  ;;  %v4388_v34 = vunpack.i.l.bf16 %v4387_v32 }
 0x34f   : > { %v4038_v35 = vpack.c.bf16 %v4394_v30, %v4393_v31 }
 0x350   : > { %v4026_v37 = vpack.c.bf16 %v4389_v33, %v4388_v34  ;;  %v1221_v39 = vpop.permute.xlu1 %1220 }
 0x351   : > { %v4397_v40 = vpop.permute.xlu0 %4396  ;;  %4040 = vmatprep.subr.msk.bf16.mxu0 %vm5268_vm3, %v4038_v35 }
 0x352   : > { %v4399_v41 = vunpack.i.h.bf16 %v4397_v40  ;;  %v4398_v42 = vunpack.i.l.bf16 %v4397_v40  ;;  %4028 = vmatprep.subr.msk.bf16.mxu1 %vm5268_vm3, %v4026_v37 }
 0x354   : > { %v4044_v43 = vpack.c.bf16 %v4399_v41, %v4398_v42  ;;  %4031 = vmatpush3.bf16.xpose.msk.msra.mxu1 %vm5268_vm3, %v4026_v37  ;;  %4043 = vmatpush3.bf16.xpose.msk.msra.mxu0 %vm5268_vm3, %v4038_v35  ;;  %v1219_v44 = vpop.permute.xlu1 %1218 }
 0x355   : > { %v4402_v46 = vpop.permute.xlu0 %4401  ;;  %3797 = vmatprep.mubr.msk.f32.mxu1 %vm710_vm2, %v1219_v44 }
 0x356   : > { %v4404_v47 = vunpack.i.h.bf16 %v4402_v46  ;;  %v4403_v48 = vunpack.i.l.bf16 %v4402_v46  ;;  %4046 = vmatprep.subr.msk.bf16.mxu1 %vm5268_vm3, %v4044_v43 }
 0x358   : > { %v4056_v49 = vpack.c.bf16 %v4404_v47, %v4403_v48  ;;  %v1350_v50 = vpop.permute.xlu1 %1349 }
 0x359   : > { %v1348_v51 = vpop.permute.xlu0 %1347 }
 0x35a   : > { %3808 = vmatprep.mubr.msk.f32.mxu0 %vm710_vm2, %v1348_v51  ;;  %4058 = vmatprep.subr.msk.bf16.mxu0 %vm5268_vm3, %v4056_v49 }
 0x35b   : > { %3798 = vmatmul.mubr.msk.f32.vlgmr.msra.gmra.mrb[4].mxu1 %vm710_vm2, %v1221_v39  ;;  %3809 = vmatmul.mubr.msk.f32.vlgmr.msra.gmra.mrb[6].mxu0 %vm710_vm2, %v1350_v50 }
 0x35c   : > { %4049 = vmatpush3.bf16.xpose.msk.msra.mxu1 %vm5268_vm3, %v4044_v43  ;;  %4061 = vmatpush3.bf16.xpose.msk.msra.mxu0 %vm5268_vm3, %v4056_v49  ;;  %v4412_v52 = vpop.permute.xlu1 %4411 }
 0x35d   : > { %v4414_v53 = vunpack.i.h.bf16 %v4412_v52  ;;  %v4413_v54 = vunpack.i.l.bf16 %v4412_v52  ;;  %v4407_v55 = vpop.permute.xlu0 %4406 }
 0x35e   : > { %v4409_v56 = vunpack.i.h.bf16 %v4407_v55  ;;  %v4408_v57 = vunpack.i.l.bf16 %v4407_v55 }
 0x35f   : > { %v4062_v58 = vpack.c.bf16 %v4414_v53, %v4413_v54 }
 0x360   : > { %v4050_v59 = vpack.c.bf16 %v4409_v56, %v4408_v57  ;;  %v1479_v61 = vpop.permute.xlu1 %1478 }
 0x361   : > { %v1477_v60 = vpop.permute.xlu0 %1476  ;;  %4064 = vmatprep.subr.msk.bf16.mxu0 %vm5268_vm3, %v4062_v58 }
 0x362   : > { %4052 = vmatprep.subr.msk.bf16.mxu1 %vm5268_vm3, %v4050_v59  ;;  %3819 = vmatprep.mubr.msk.f32.mxu1 %vm710_vm2, %v1477_v60 }
 0x364   : > { %4055 = vmatpush3.bf16.xpose.msk.msra.mxu1 %vm5268_vm3, %v4050_v59  ;;  %4067 = vmatpush3.bf16.xpose.msk.msra.mxu0 %vm5268_vm3, %v4062_v58  ;;  %v1608_v63 = vpop.permute.xlu1 %1607 }
 0x365   : > { %v1606_v62 = vpop.permute.xlu0 %1605 }
 0x366   : > { %3830 = vmatprep.mubr.msk.f32.mxu0 %vm710_vm2, %v1606_v62 }
 0x36b   : > { %3820 = vmatmul.mubr.msk.f32.vlgmr.msra.gmra.mrb[6].mxu1 %vm710_vm2, %v1479_v61  ;;  %3831 = vmatmul.mubr.msk.f32.vlgmr.msra.gmra.mrb[8].mxu0 %vm710_vm2, %v1608_v63 }
 0x39b   : > { %v3755_v0 = vpop.f32.mrb[0].mxu1 }
 0x39c   : > { %v795_v1 = vpop.f32.mrb[1].mxu1  ;;  %v808_v2 = vsel %vm804_vm4, %v3755_v0, -inf }
 0x39d   : > { %809 = vmax.xlane.f32.xlu0 %v808_v2  ;;  %v805_v3 = vsel %vm804_vm4, %v795_v1, -inf }
 0x3a1   : > { %806 = vmax.xlane.f32.xlu0 %v805_v3 }
 0x40e   : > { %v3766_v4 = vpop.f32.mrb[2].mxu0 }
 0x40f   : > { %v5387_v38 = vpop.f32.mrb[3].mxu0  ;;  %v937_v5 = vsel %vm804_vm4, %v3766_v4, -inf }
 0x410   : > { %938 = vmax.xlane.f32.xlu0 %v937_v5  ;;  %v934_v6 = vsel %vm804_vm4, %v5387_v38, -inf }
 0x411   : > { %935 = vmax.xlane.f32.xlu1 %v934_v6 }
 0x41d   : > { %v5392_v7 = vpop.f32.mrb[2].mxu1 }
 0x41e   : > { %v5394_v8 = vpop.f32.mrb[3].mxu1  ;;  %v5396_v9 = vpop.f32.mrb[4].mxu0  ;;  %v1066_v10 = vsel %vm804_vm4, %v5392_v7, -inf }
 0x41f   : > { %v5400_v11 = vpop.f32.mrb[5].mxu0  ;;  %1067 = vmax.xlane.f32.xlu0 %v1066_v10  ;;  %v1063_v12 = vsel %vm804_vm4, %v5394_v8, -inf  ;;  %v1195_v13 = vsel %vm804_vm4, %v5396_v9, -inf }
 0x420   : > { %1064 = vmax.xlane.f32.xlu1 %v1063_v12  ;;  %v1192_v14 = vsel %vm804_vm4, %v5400_v11, -inf }
 0x423   : > { %1196 = vmax.xlane.f32.xlu0 %v1195_v13 }
 0x424   : > { %1193 = vmax.xlane.f32.xlu1 %v1192_v14 }
 0x42a   : > { %v810_v15 = vpop.xlane.xlu0 %809 }
 0x42b   : > { %v812_v24 = vsub.f32 %v3755_v0, %v810_v15 }
 0x42d   : > { %v815_v28 = vmul.f32 1.442695, %v812_v24 }
 0x42e   : > { %v5408_v16 = vpop.f32.mrb[4].mxu1  ;;  %v5410_v17 = vpop.f32.mrb[6].mxu0 }
 0x42f   : > { %v5412_v18 = vpop.f32.mrb[5].mxu1  ;;  %v807_v19 = vpop.xlane.xlu0 %806  ;;  %v1324_v20 = vsel %vm804_vm4, %v5408_v16, -inf  ;;  %v1453_v26 = vsel %vm804_vm4, %v5410_v17, -inf }
 0x430   : > { %v811_v21 = vsub.f32 %v795_v1, %v807_v19  ;;  %v5416_v22 = vpop.f32.mrb[7].mxu0  ;;  %1325 = vmax.xlane.f32.xlu0 %v1324_v20  ;;  %v1321_v23 = vsel %vm804_vm4, %v5412_v18, -inf }
 0x431   : > { %1322 = vmax.xlane.f32.xlu1 %v1321_v23  ;;  %v1450_v27 = vsel %vm804_vm4, %v5416_v22, -inf }
 0x432   : > { %v813_v25 = vmul.f32 1.442695, %v811_v21 }
 0x434   : > { %1454 = vmax.xlane.f32.xlu0 %v1453_v26  ;;  %4495 = vpow2.f32 %v813_v25 }
 0x435   : > { %1451 = vmax.xlane.f32.xlu1 %v1450_v27  ;;  %4497 = vpow2.f32 %v815_v28 }
 0x43e   : > { %v5424_v29 = vpop.f32.mrb[6].mxu1  ;;  %v5426_v30 = vpop.f32.mrb[8].mxu0 }
 0x43f   : > { %v5428_v31 = vpop.f32.mrb[7].mxu1  ;;  %v5430_v32 = vpop.f32.mrb[9].mxu0  ;;  %v1582_v33 = vsel %vm804_vm4, %v5424_v29, -inf  ;;  %v1711_v37 = vsel %vm804_vm4, %v5426_v30, -inf }
 0x440   : > { %1583 = vmax.xlane.f32.xlu0 %v1582_v33  ;;  %v1579_v34 = vsel %vm804_vm4, %v5428_v31, -inf  ;;  %v5436_v35 = vpop.eup %4495  ;;  %v1708_v42 = vsel %vm804_vm4, %v5430_v32, -inf }
 0x441   : > { %1580 = vmax.xlane.f32.xlu1 %v1579_v34  ;;  %v817_v39 = vsel %vm804_vm4, %v5436_v35, 0.0  ;;  %v5442_v40 = vpop.eup %4497 }
 0x442   : > { %v820_v41 = vsel %vm804_vm4, %v5442_v40, 0.0 }
 0x444   : > { %1712 = vmax.xlane.f32.xlu0 %v1711_v37 }
 0x445   : > { %818 = vadd.xlane.f32.xlu1 %v817_v39 }
 0x449   : > { %821 = vadd.xlane.f32.xlu1 %v820_v41 }
 0x44d   : > { %1709 = vmax.xlane.f32.xlu1 %v1708_v42 }
 0x45e   : > { %4416 = vrot.lane.b32.xlu1 %v5264_v36, %s4862_s11 }
 0x49d   : > { %v939_v43 = vpop.xlane.xlu0 %938 }
 0x49e   : > { %v941_v44 = vsub.f32 %v3766_v4, %v939_v43  ;;  %v936_v47 = vpop.xlane.xlu1 %935 }
 0x49f   : > { %v940_v48 = vsub.f32 %v5387_v38, %v936_v47 }
 0x4a0   : > { %v944_v46 = vmul.f32 1.442695, %v941_v44 }
 0x4a1   : > { %v942_v55 = vmul.f32 1.442695, %v940_v48 }
 0x4a2   : > { %4499 = vpow2.f32 %v944_v46 }
 0x4ac   : > { %v5451_v49 = vpop.eup %4499  ;;  %v1068_v50 = vpop.xlane.xlu0 %1067 }
 0x4ad   : > { %v1070_v51 = vsub.f32 %v5392_v7, %v1068_v50  ;;  %v1065_v52 = vpop.xlane.xlu1 %1064  ;;  %v949_v53 = vsel %vm804_vm4, %v5451_v49, 0.0 }
 0x4ae   : > { %v1069_v54 = vsub.f32 %v5394_v8, %v1065_v52  ;;  %950 = vadd.xlane.f32.xlu0 %v949_v53 }
 0x4af   : > { %v1073_v56 = vmul.f32 1.442695, %v1070_v51 }
 0x4b0   : > { %v1071_v57 = vmul.f32 1.442695, %v1069_v54  ;;  %v1197_v58 = vpop.xlane.xlu0 %1196 }
 0x4b1   : > { %4501 = vpow2.f32 %v1073_v56  ;;  %v1199_v59 = vsub.f32 %v5396_v9, %v1197_v58  ;;  %v1194_v60 = vpop.xlane.xlu1 %1193 }
 0x4b2   : > { %4503 = vpow2.f32 %v1071_v57  ;;  %v1198_v61 = vsub.f32 %v5400_v11, %v1194_v60 }
 0x4b3   : > { %4505 = vpow2.f32 %v942_v55  ;;  %v1202_v62 = vmul.f32 1.442695, %v1199_v59 }
 0x4b4   : > { %v1200_v63 = vmul.f32 1.442695, %v1198_v61 }
 0x4b6   : > { %4507 = vpow2.f32 %v1200_v63 }
 0x4b7   : > { %4509 = vpow2.f32 %v1202_v62  ;;  %v6588_v62 = vstv %s5551_s3  ;;  %s6760_s3 = sld [smem:[#allocation76_spill]] }
 0x4bb   : > { %v5459_v0 = vpop.eup %4501 }
 0x4bc   : > { %v5461_v1 = vpop.eup %4503  ;;  %v1078_v2 = vsel %vm804_vm4, %v5459_v0, 0.0 }
 0x4bd   : > { %v5465_v3 = vpop.eup %4505  ;;  %v1326_v4 = vpop.xlane.xlu0 %1325  ;;  %1079 = vadd.xlane.f32.xlu0 %v1078_v2  ;;  %v1075_v38 = vsel %vm804_vm4, %v5461_v1, 0.0 }
 0x4be   : > { %v1328_v5 = vsub.f32 %v5408_v16, %v1326_v4  ;;  %v1323_v6 = vpop.xlane.xlu1 %1322  ;;  %1076 = vadd.xlane.f32.xlu1 %v1075_v38  ;;  %v946_v10 = vsel %vm804_vm4, %v5465_v3, 0.0  ;;  %v6587_v38 = vstv %s5553_s6  ;;  %s6762_s6 = sld [smem:[#allocation78_spill]] }
 0x4bf   : > { %v1327_v7 = vsub.f32 %v5412_v18, %v1323_v6 }
 0x4c0   : > { %v5471_v8 = vpop.eup %4507  ;;  %v1331_v9 = vmul.f32 1.442695, %v1328_v5  ;;  %v6586_v5 = vstv %s5555_s0  ;;  %s6797_s0 = sld [smem:[#allocation85_spill]] }
 0x4c1   : > { %v5475_v11 = vpop.eup %4509  ;;  %v1329_v12 = vmul.f32 1.442695, %v1327_v7  ;;  %v1455_v13 = vpop.xlane.xlu0 %1454  ;;  %947 = vadd.xlane.f32.xlu0 %v946_v10  ;;  %v1204_v14 = vsel %vm804_vm4, %v5471_v8, 0.0 }
 0x4c2   : > { %4511 = vpow2.f32 %v1331_v9  ;;  %v1457_v15 = vsub.f32 %v5410_v17, %v1455_v13  ;;  %v1452_v16 = vpop.xlane.xlu1 %1451  ;;  %1205 = vadd.xlane.f32.xlu1 %v1204_v14  ;;  %v1207_v20 = vsel %vm804_vm4, %v5475_v11, 0.0 }
 0x4c3   : > { %4513 = vpow2.f32 %v1329_v12  ;;  %v1456_v18 = vsub.f32 %v5416_v22, %v1452_v16  ;;  %v6608_v16 = vstv %s5573_s7  ;;  %s5661_s7 = sld [smem:[#allocation11 + $0x207]] }
 0x4c4   : > { %v1460_v19 = vmul.f32 1.442695, %v1457_v15 }
 0x4c5   : > { %v1458_v21 = vmul.f32 1.442695, %v1456_v18  ;;  %1208 = vadd.xlane.f32.xlu0 %v1207_v20  ;;  %v6609_v18 = vstv %s5575_s26  ;;  %s6750_s26 = sld [smem:[#allocation72_spill]] }
 0x4c6   : > { %4515 = vpow2.f32 %v1460_v19 }
 0x4c7   : > { %4517 = vpow2.f32 %v1458_v21  ;;  %v1741_v21 = vstv %s5577_s12  ;;  %s5670_s12 = sld [smem:[#allocation11 + $0x306]] }
 0x4c9   : > { %6749 = sst [smem:[#allocation90_spill]] %s5661_s7 }
 0x4cc   : > { %v5483_v23 = vpop.eup %4511 }
 0x4cd   : > { %v5485_v24 = vpop.eup %4513  ;;  %v1584_v25 = vpop.xlane.xlu0 %1583  ;;  %v1336_v17 = vsel %vm804_vm4, %v5483_v23, 0.0  ;;  %6752 = sst [smem:[#allocation92_spill]] %s5670_s12 }
 0x4ce   : > { %v1586_v26 = vsub.f32 %v5424_v29, %v1584_v25  ;;  %v1581_v27 = vpop.xlane.xlu1 %1580  ;;  %1337 = vadd.xlane.f32.xlu0 %v1336_v17  ;;  %v1333_v22 = vsel %vm804_vm4, %v5485_v24, 0.0  ;;  %v6610_v25 = vstv %s5579_s30  ;;  %s5737_s30 = sld [smem:[#allocation11 + $0x107]] }
 0x4cf   : > { %v1585_v28 = vsub.f32 %v5428_v31, %v1581_v27  ;;  %1334 = vadd.xlane.f32.xlu1 %v1333_v22  ;;  %v6616_v27 = vstv %s5583_s21  ;;  %v6614_v22 = vstv %s5587_s18  ;;  %s6755_s18 = sld [smem:[#allocation73_spill]]  ;;  %s5697_s21 = sld [smem:[#allocation12 + $0x4]] }
 0x4d0   : > { %v5493_v33 = vpop.eup %4515  ;;  %v1589_v34 = vmul.f32 1.442695, %v1586_v26  ;;  %v2391_v26 = vstv %s5581_s22  ;;  %s5672_s22 = sld [smem:[#allocation11 + $0x185]] }
 0x4d1   : > { %v5495_v37 = vpop.eup %4517  ;;  %v1587_v39 = vmul.f32 1.442695, %v1585_v28  ;;  %v1713_v41 = vpop.xlane.xlu0 %1712  ;;  %v1465_v42 = vsel %vm804_vm4, %v5493_v33, 0.0  ;;  %v6612_v28 = vstv %s5589_s17  ;;  %s5685_s17 = sld [smem:[#allocation11 + $0x282]] }
 0x4d2   : > { %4519 = vpow2.f32 %v1589_v34  ;;  %v1715_v29 = vsub.f32 %v5426_v30, %v1713_v41  ;;  %v5500_v43 = vpop.xlane.xlu1 %818  ;;  %1466 = vadd.xlane.f32.xlu0 %v1465_v42  ;;  %v1462_v31 = vsel %vm804_vm4, %v5495_v37, 0.0  ;;  %v6613_v34 = vstv %s5594_s15  ;;  %s6756_s15 = sld [smem:[#allocation75_spill]] }
 0x4d3   : > { %4521 = vpow2.f32 %v1587_v39  ;;  %1463 = vadd.xlane.f32.xlu1 %v1462_v31  ;;  %v6611_v39 = vstv %s5591_s9  ;;  %v2067_v31 = vstv %s6750_s26  ;;  %s5704_s26 = sld [smem:[#allocation12 + $0x1]]  ;;  %s5719_s9 = sld [smem:[#allocation11 + $0x106]] }
 0x4d4   : > { %v1718_v44 = vmul.f32 1.442695, %v1715_v29  ;;  %v6617_v29 = vstv %s5596_s14  ;;  %6769 = sst [smem:[#allocation97_spill]] %s5737_s30  ;;  %s6782_s14 = sld [smem:[#allocation64_spill]] }
 0x4d5   : > { %6758 = sst [smem:[#allocation95_spill]] %s5697_s21  ;;  %s6783_s21 = sld [smem:[#allocation65_spill]] }
 0x4d6   : > { %4523 = vpow2.f32 %v1718_v44  ;;  %v822_v46 = vpop.xlane.xlu1 %821  ;;  %6753 = sst [smem:[#allocation93_spill]] %s5672_s22 }
 0x4d7   : > { %6757 = sst [smem:[#allocation73_spill]] %s5685_s17  ;;  %s6862_s17 = sld [smem:[#allocation70_spill]] }
 0x4d9   : > { %6759 = sst [smem:[#allocation96_spill]] %s5704_s26 }
 0x4da   : > { %v1710_v47 = vpop.xlane.xlu1 %1709  ;;  %6764 = sst [smem:[#allocation78_spill]] %s5719_s9  ;;  %s6784_s9 = sld [smem:[#allocation67_spill]] }
 0x4db   : > { %v1714_v58 = vsub.f32 %v5430_v32, %v1710_v47  ;;  %v2226_v47 = vstv %s5606_s20  ;;  %s6767_s20 = sld [smem:[#allocation81_spill]] }
 0x4dc   : > { %v5504_v48 = vpop.eup %4519 }
 0x4dd   : > { %v5506_v50 = vpop.eup %4521  ;;  %v1594_v51 = vsel %vm804_vm4, %v5504_v48, 0.0  ;;  %v1716_v59 = vmul.f32 1.442695, %v1714_v58  ;;  %v1908_v58 = vstv %s5610_s24  ;;  %s6883_s24 = sld [smem:[#allocation73_spill]] }
 0x4de   : > { %1595 = vadd.xlane.f32.xlu0 %v1594_v51  ;;  %v1591_v30 = vsel %vm804_vm4, %v5506_v50, 0.0  ;;  %v4417_v52 = vpop.permute.xlu1 %4416 }
 0x4df   : > { %1592 = vadd.xlane.f32.xlu1 %v1591_v30  ;;  %v4419_v53 = vunpack.i.h.bf16 %v4417_v52  ;;  %v4418_v54 = vunpack.i.l.bf16 %v4417_v52  ;;  %4525 = vpow2.f32 %v1716_v59  ;;  %v6620_v59 = vstv %s5614_s19  ;;  %s5751_s19 = sld [smem:[#allocation11 + $0x187]] }
 0x4e0   : > { %v5512_v55 = vpop.eup %4523  ;;  %4527 = vrcp.f32 %v822_v46 }
 0x4e1   : > { %v1723_v56 = vsel %vm804_vm4, %v5512_v55, 0.0  ;;  %v4068_v57 = vpack.c.bf16 %v4419_v53, %v4418_v54  ;;  %4529 = vrcp.f32 %v5500_v43 }
 0x4e2   : > { %1724 = vadd.xlane.f32.xlu0 %v1723_v56  ;;  %v1753_v56 = vstv %s6755_s18  ;;  %s6878_s18 = sld [smem:[#allocation80_spill]] }
 0x4e3   : > { %4069 = vmatprep.subr.bf16.mxu1 %v4068_v57 }
 0x4e4   : > { %4071 = vmatpush3.bf16.msra.mxu1 %v4068_v57  ;;  %v2403_v57 = vstv %s6756_s15  ;;  %s6794_s15 = sld [smem:[#allocation80_spill]] }
 0x4e5   : > { %6772 = sst [smem:[#allocation100_spill]] %s5751_s19 }
 0x4e9   : > { %v5531_v60 = vpop.eup %4525 }
 0x4ea   : > { %v1720_v32 = vsel %vm804_vm4, %v5531_v60, 0.0  ;;  %v4528_v63 = vpop.eup %4527 }
 0x4eb   : > { %v4530_v19 = vpop.eup %4529  ;;  %v5652_v20 = vmul.f32 %v4528_v63, %v5442_v40  ;;  %v6615_v40 = vstv %s5585_s28  ;;  %s5680_s28 = sld [smem:[#allocation12]]  ;;  %v6621_v63 = vstv %s6762_s6 }
 0x4ec   : > { %v5676_v41 = vmul.f32 %v4530_v19, %v5436_v35 }
 0x4ed   : > { %v5690_v44 = vmul.f32 %v6588_v62, %v5652_v20  ;;  %v5695_v35 = vmul.f32 %v6587_v38, %v5652_v20  ;;  %v5702_v46 = vmul.f32 %v6586_v5, %v5652_v20 }
 0x4f0   : > { %4426 = vrot.lane.b32.xlu1 %v5264_v36, %s6496_s16 }
 0x4f1   : > { %6754 = sst [smem:[#allocation94_spill]] %s5680_s28 }
 0x4f8   : > { %4421 = vrot.lane.b32.xlu0 %v5276_v45, %s4862_s11  ;;  %s5557_s11 = sld [smem:[#allocation11 + $0x300]] }
 0x4fc   : > { %4436 = vrot.lane.b32.xlu0 %v5264_v36, %s6504_s8 }
 0x4fe   : > { %6709 = sst [smem:[#allocation51_spill]] %s5557_s11  ;;  %v6585_v6 = vstv %s5557_s11  ;;  %s6785_s11 = sld [smem:[#allocation69_spill]] }
 0x4ff   : > { %v5710_v51 = vmul.f32 %v6585_v6, %v5652_v20 }
 0x500   : > { %4446 = vrot.lane.b32.xlu0 %v5264_v36, %s6498_s10 }
 0x504   : > { %4456 = vrot.lane.b32.xlu0 %v5264_v36, %s6508_s5 }
 0x508   : > { %4466 = vrot.lane.b32.xlu0 %v5276_v45, %s6508_s5  ;;  %s5571_s5 = sld [smem:[#allocation11 + $0x81]] }
 0x50c   : > { %4476 = vrot.lane.b32.xlu0 %v5264_v36, %s6502_s27 }
 0x50e   : > { %6716 = sst [smem:[#allocation58_spill]] %s5571_s5  ;;  %v6606_v15 = vstv %s5571_s5  ;;  %s6748_s5 = sld [smem:[#allocation71_spill]] }
 0x510   : > { %4486 = vrot.lane.b32.xlu0 %v5276_v45, %s6502_s27  ;;  %s5565_s27 = sld [smem:[#allocation11 + $0x1]] }
 0x514   : > { %1721 = vadd.xlane.f32.xlu1 %v1720_v32  ;;  %v2727_v43 = vstv %s6748_s5  ;;  %s5712_s5 = sld [smem:[#allocation11 + $0x307]] }
 0x516   : > { %6713 = sst [smem:[#allocation55_spill]] %s5565_s27  ;;  %v6601_v9 = vstv %s5565_s27  ;;  %s5664_s27 = sld [smem:[#allocation11 + $0x87]] }
 0x51a   : > { %6761 = sst [smem:[#allocation76_spill]] %s5712_s5 }
 0x51c   : > { %6751 = sst [smem:[#allocation91_spill]] %s5664_s27  ;;  %s6793_s27 = sld [smem:[#allocation82_spill]] }
 0x525   : > { %4431 = vrot.lane.b32.xlu1 %v5276_v45, %s6496_s16  ;;  %s5559_s16 = sld [smem:[#allocation11 + $0x100]] }
 0x529   : > { %4441 = vrot.lane.b32.xlu1 %v5276_v45, %s6504_s8  ;;  %s5567_s8 = sld [smem:[#allocation11 + $0x380]] }
 0x52b   : > { %6710 = sst [smem:[#allocation52_spill]] %s5559_s16  ;;  %v6584_v7 = vstv %s5559_s16  ;;  %s5735_s16 = sld [smem:[#allocation12 + $0x6]] }
 0x52c   : > { %v5717_v30 = vmul.f32 %v6584_v7, %v5652_v20 }
 0x52d   : > { %4451 = vrot.lane.b32.xlu1 %v5276_v45, %s6498_s10  ;;  %s5561_s10 = sld [smem:[#allocation11 + $0x180]] }
 0x52f   : > { %6714 = sst [smem:[#allocation56_spill]] %s5567_s8  ;;  %s5655_s8 = sld [smem:[#allocation11 + $0x7]] }
 0x531   : > { %4461 = vrot.lane.b32.xlu1 %v5264_v36, %s6500_s29  ;;  %6768 = sst [smem:[#allocation81_spill]] %s5735_s16 }
 0x533   : > { %6711 = sst [smem:[#allocation53_spill]] %s5561_s10  ;;  %v6583_v10 = vstv %s5561_s10  ;;  %s5746_s10 = sld [smem:[#allocation11 + $0x283]] }
 0x534   : > { %v5724_v52 = vmul.f32 %v6583_v10, %v5652_v20 }
 0x535   : > { %4471 = vrot.lane.b32.xlu1 %v5276_v45, %s6500_s29  ;;  %s5563_s29 = sld [smem:[#allocation11 + $0x280]]  ;;  %6746 = sst [smem:[#allocation88_spill]] %s5655_s8 }
 0x536   : > { %s6792_s8 = sld [smem:[#allocation79_spill]]  ;;  %s6914_s26 = sld [smem:[#allocation88_spill]] }
 0x539   : > { %4481 = vrot.lane.b32.xlu1 %v5264_v36, %s6506_s25  ;;  %6771 = sst [smem:[#allocation99_spill]] %s5746_s10 }
 0x53b   : > { %v951_v61 = vpop.xlane.xlu0 %950  ;;  %6712 = sst [smem:[#allocation54_spill]] %s5563_s29  ;;  %v6580_v12 = vstv %s5563_s29  ;;  %s5744_s29 = sld [smem:[#allocation11 + $0x186]] }
 0x53c   : > { %4531 = vrcp.f32 %v951_v61  ;;  %v5729_v53 = vmul.f32 %v6580_v12, %v5652_v20 }
 0x53d   : > { %4491 = vrot.lane.b32.xlu1 %v5276_v45, %s6506_s25  ;;  %s5569_s25 = sld [smem:[#allocation11 + $0x201]] }
 0x541   : > { %6770 = sst [smem:[#allocation98_spill]] %s5744_s29 }
 0x543   : > { %6715 = sst [smem:[#allocation57_spill]] %s5569_s25  ;;  %v6607_v14 = vstv %s5569_s25  ;;  %s5658_s25 = sld [smem:[#allocation11 + $0x184]] }
 0x546   : > { %v4532_v54 = vpop.eup %4531 }
 0x547   : > { %v5755_v7 = vmul.f32 %v4532_v54, %v5451_v49  ;;  %v6625_v49 = vstv %s5670_s12  ;;  %s5933_s12 = sld [smem:[#allocation11 + $0x284]] }
 0x549   : > { %6747 = sst [smem:[#allocation89_spill]] %s5658_s25  ;;  %v1737_v54 = vmul.f32 %v6601_v9, %v5755_v7  ;;  %v2387_v38 = vmul.f32 %v6607_v14, %v5755_v7  ;;  %v2717_v5 = vmul.f32 %v6608_v16, %v5755_v7  ;;  %v2222_v14 = vmul.f32 %v6610_v25, %v5755_v7 }
 0x54a   : > { %v1080_v36 = vpop.xlane.xlu0 %1079 }
 0x54b   : > { %v5625_v2 = vpop.xlane.xlu1 %1076  ;;  %4533 = vrcp.f32 %v1080_v36  ;;  %v6626_v36 = vstv %s6760_s3  ;;  %v1739_v19 = vadd.f32 %v1737_v54, %v5690_v44  ;;  %v2389_v25 = vadd.f32 %v2387_v38, %v5695_v35 }
 0x54c   : > { %v2719_v54 = vadd.f32 %v2717_v5, %v5710_v51 }
 0x54d   : > { %6811 = sst [smem:[#allocation63_spill]] %s5933_s12 }
 0x54e   : > { %v5598_v45 = vpop.xlane.xlu0 %947 }
 0x54f   : > { %v5678_v42 = vpop.xlane.xlu1 %1205 }
 0x552   : > { %v1209_v4 = vpop.xlane.xlu0 %1208 }
 0x553   : > { %4535 = vrcp.f32 %v1209_v4 }
 0x555   : > { %v4534_v62 = vpop.eup %4533 }
 0x556   : > { %v5772_v12 = vmul.f32 %v4534_v62, %v5459_v0 }
 0x558   : > { %v1743_v9 = vmul.f32 %v1741_v21, %v5772_v12  ;;  %v2063_v38 = vmul.f32 %v6614_v22, %v5772_v12  ;;  %v2224_v22 = vadd.f32 %v2222_v14, %v5724_v52 }
 0x55a   : > { %v1745_v5 = vadd.f32 %v1743_v9, %v1739_v19 }
 0x55b   : > { %v1338_v17 = vpop.xlane.xlu0 %1337 }
 0x55c   : > { %4537 = vrcp.f32 %v1338_v17  ;;  %v5739_v32 = vpop.xlane.xlu1 %1334  ;;  %v6619_v17 = vstv %s6767_s20 }
 0x55d   : > { %v4536_v6 = vpop.eup %4535 }
 0x55e   : > { %v5790_v62 = vmul.f32 %v4536_v6, %v5475_v11  ;;  %v5807_v11 = vmul.f32 %v6611_v39, %v5755_v7  ;;  %v1898_v39 = vmul.f32 %v6616_v27, %v5772_v12 }
 0x55f   : > { %v1467_v61 = vpop.xlane.xlu0 %1466 }
 0x560   : > { %4539 = vrcp.f32 %v1467_v61  ;;  %v5774_v10 = vpop.xlane.xlu1 %1463  ;;  %v1892_v61 = vmul.f32 %v6606_v15, %v5755_v7  ;;  %v2057_v15 = vmul.f32 %v6609_v18, %v5755_v7  ;;  %v2393_v18 = vmul.f32 %v2391_v26, %v5772_v12 }
 0x561   : > { %v1749_v13 = vmul.f32 %v6612_v28, %v5790_v62  ;;  %v2399_v44 = vmul.f32 %v6613_v34, %v5790_v62  ;;  %v1904_v28 = vmul.f32 %v6617_v29, %v5790_v62 }
 0x562   : > { %v1894_v0 = vadd.f32 %v1892_v61, %v5702_v46  ;;  %v2059_v34 = vadd.f32 %v2057_v15, %v5717_v30  ;;  %v2395_v51 = vadd.f32 %v2393_v18, %v2389_v25 }
 0x563   : > { %v1751_v15 = vadd.f32 %v1749_v13, %v1745_v5 }
 0x564   : > { %v1900_v27 = vadd.f32 %v1898_v39, %v1894_v0  ;;  %v2401_v9 = vadd.f32 %v2399_v44, %v2395_v51  ;;  %v2065_v30 = vadd.f32 %v2063_v38, %v2059_v34 }
 0x566   : > { %v4538_v6 = vpop.eup %4537  ;;  %v1906_v39 = vadd.f32 %v1904_v28, %v1900_v27 }
 0x567   : > { %v5838_v46 = vmul.f32 %v4538_v6, %v5483_v23  ;;  %v2729_v23 = vmul.f32 %v2727_v43, %v5790_v62  ;;  %v2069_v6 = vmul.f32 %v2067_v31, %v5790_v62 }
 0x569   : > { %v1755_v14 = vmul.f32 %v1753_v56, %v5838_v46  ;;  %v2405_v25 = vmul.f32 %v2403_v57, %v5838_v46  ;;  %v1910_v52 = vmul.f32 %v1908_v58, %v5838_v46  ;;  %v2071_v44 = vadd.f32 %v2069_v6, %v2065_v30 }
 0x56a   : > { %v4540_v35 = vpop.eup %4539  ;;  %v6796_v6 = vstv %s6793_s27  ;;  %s6802_s27 = sld [smem:[#allocation88_spill]] }
 0x56b   : > { %v1596_v4 = vpop.xlane.xlu0 %1595  ;;  %v5852_v29 = vmul.f32 %v4540_v35, %v5493_v33  ;;  %v2234_v35 = vmul.f32 %v6619_v17, %v5790_v62  ;;  %v1757_v51 = vadd.f32 %v1755_v14, %v1751_v15  ;;  %v6798_v17 = vstv %s6794_s15  ;;  %s6815_s15 = sld [smem:[#allocation78_spill]] }
 0x56c   : > { %4541 = vrcp.f32 %v1596_v4  ;;  %v5809_v16 = vpop.xlane.xlu1 %1592  ;;  %v2723_v4 = vmul.f32 %v6615_v40, %v5772_v12  ;;  %v6799_v15 = vstv %s5636_s23  ;;  %s6804_s23 = sld [smem:[#allocation91_spill]] }
 0x56d   : > { %4543 = vrcp.f32 %v5598_v45  ;;  %v1761_v28 = vmul.f32 %v6626_v36, %v5852_v29  ;;  %v2741_v30 = vmul.f32 %v6796_v6, %v5852_v29  ;;  %v6801_v6 = vstv %s5647_s13  ;;  %s5919_s13 = sld [smem:[#allocation12 + $0x3]] }
 0x56e   : > { %v2725_v45 = vadd.f32 %v2723_v4, %v2719_v54  ;;  %v2735_v4 = vmul.f32 %v6620_v59, %v5838_v46  ;;  %v2228_v54 = vmul.f32 %v2226_v47, %v5772_v12 }
 0x56f   : > { %v1725_v61 = vpop.xlane.xlu0 %1724 }
 0x570   : > { %4545 = vrcp.f32 %v1725_v61  ;;  %v4427_v40 = vpop.permute.xlu1 %4426  ;;  %v2731_v0 = vadd.f32 %v2729_v23, %v2725_v45  ;;  %v6795_v45 = vstv %s6792_s8 }
 0x571   : > { %v4429_v33 = vunpack.i.h.bf16 %v4427_v40  ;;  %v4428_v19 = vunpack.i.l.bf16 %v4427_v40  ;;  %v2411_v40 = vmul.f32 %v6621_v63, %v5852_v29  ;;  %v1916_v23 = vmul.f32 %v6795_v45, %v5852_v29 }
 0x572   : > { %v6800_v45 = vstv %s5644_s2  ;;  %s5912_s2 = sld [smem:[#allocation12 + $0x2]]  ;;  %4547 = vrcp.f32 %v5625_v2  ;;  %v6829_v2 = vstv %s5744_s29  ;;  %s6002_s29 = sld [smem:[#allocation11 + $0x385]] }
 0x573   : > { %v4422_v18 = vpop.permute.xlu0 %4421  ;;  %6806 = sst [smem:[#allocation61_spill]] %s5919_s13  ;;  %4549 = vrcp.f32 %v5678_v42 }
 0x574   : > { %v4424_v13 = vunpack.i.h.bf16 %v4422_v18  ;;  %v4423_v34 = vunpack.i.l.bf16 %v4422_v18  ;;  %v5889_v18 = vpack.c.bf16 %v4429_v33, %v4428_v19  ;;  %v2737_v19 = vadd.f32 %v2735_v4, %v2731_v0 }
 0x575   : > { %4551 = vrcp.f32 %v5739_v32 }
 0x576   : > { %v4542_v38 = vpop.eup %4541  ;;  %v4072_v27 = vpack.c.bf16 %v4424_v13, %v4423_v34  ;;  %v2407_v13 = vadd.f32 %v2405_v25, %v2401_v9  ;;  %v1912_v34 = vadd.f32 %v1910_v52, %v1906_v39  ;;  %v1763_v9 = vadd.f32 %v1761_v28, %v1757_v51 }
 0x577   : > { %v5879_v61 = vmul.f32 %v4542_v38, %v5504_v48  ;;  %v5881_v5 = vpop.permute.xlu0 %4436  ;;  %v2075_v48 = vmul.f32 %v6798_v17, %v5838_v46  ;;  %v5894_v38 = vpop.eup %4543  ;;  %v6803_v39 = vstv %s6797_s0  ;;  %v2230_v28 = vadd.f32 %v2228_v54, %v2224_v22  ;;  %s6813_s0 = sld [smem:[#allocation95_spill]] }
 0x578   : > { %4073 = vmatprep.subr.bf16.mxu1 %v4072_v27  ;;  %v2413_v17 = vadd.f32 %v2411_v40, %v2407_v13  ;;  %v2081_v52 = vmul.f32 %v6803_v39, %v5852_v29  ;;  %6805 = sst [smem:[#allocation60_spill]] %s5912_s2  ;;  %v1918_v4 = vadd.f32 %v1916_v23, %v1912_v34  ;;  %v6808_v39 = vstv %s6802_s27  ;;  %s5938_s27 = sld [smem:[#allocation11 + $0x285]] }
 0x579   : > { %4075 = vmatpush3.bf16.msra.mxu1 %v4072_v27  ;;  %v1767_v14 = vmul.f32 %v6799_v15, %v5879_v61  ;;  %v2417_v59 = vmul.f32 %v6800_v45, %v5879_v61  ;;  %v1922_v33 = vmul.f32 %v6801_v6, %v5879_v61  ;;  %v2747_v25 = vmul.f32 %v6625_v49, %v5879_v61 }
 0x57a   : > { %v4546_v63 = vpop.eup %4545  ;;  %4077 = vmatprep.subr.bf16.mxu1 %v5889_v18  ;;  %v2743_v15 = vadd.f32 %v2741_v30, %v2737_v19  ;;  %v2077_v13 = vadd.f32 %v2075_v48, %v2071_v44  ;;  %v6807_v45 = vstv %s5658_s25  ;;  %v6810_v23 = vstv %s6804_s23  ;;  %s6814_s25 = sld [smem:[#allocation96_spill]]  ;;  %s5943_s23 = sld [smem:[#allocation11 + $0x286]] }
 0x57b   : > { %v5915_v27 = vmul.f32 %v4546_v63, %v5512_v55  ;;  %v5917_v0 = vpop.permute.xlu0 %4446  ;;  %v1769_v40 = vadd.f32 %v1767_v14, %v1763_v9  ;;  %v2419_v51 = vadd.f32 %v2417_v59, %v2413_v17  ;;  %v2240_v6 = vmul.f32 %v6807_v45, %v5838_v46 }
 0x57c   : > { %v6809_v55 = vstv %s5661_s7  ;;  %v1924_v36 = vadd.f32 %v1922_v33, %v1918_v4  ;;  %v2749_v22 = vadd.f32 %v2747_v25, %v2743_v15  ;;  %v6812_v59 = vstv %s5712_s5  ;;  %s6819_s5 = sld [smem:[#allocation47_spill]]  ;;  %s5960_s7 = sld [smem:[#allocation11 + $0x382]] }
 0x57d   : > { %v1773_v49 = vmul.f32 %v6808_v39, %v5915_v27  ;;  %v2423_v63 = vmul.f32 %v6809_v55, %v5915_v27  ;;  %v1928_v30 = vmul.f32 %v6810_v23, %v5915_v27  ;;  %v2753_v44 = vmul.f32 %v6812_v59, %v5915_v27 }
 0x57e   : > { %v2083_v54 = vadd.f32 %v2081_v52, %v2077_v13  ;;  %v2236_v34 = vadd.f32 %v2234_v35, %v2230_v28  ;;  %6816 = sst [smem:[#allocation64_spill]] %s5938_s27  ;;  %v6817_v9 = vstv %s5672_s22  ;;  %v6820_v15 = vstv %s5680_s28  ;;  %s6831_s28 = sld [smem:[#allocation83_spill]] }
 0x57f   : > { %v4457_v48 = vpop.permute.xlu0 %4456  ;;  %v1775_v14 = vadd.f32 %v1773_v49, %v1769_v40  ;;  %v2425_v33 = vadd.f32 %v2423_v63, %v2419_v51  ;;  %v1930_v19 = vadd.f32 %v1928_v30, %v1924_v36  ;;  %v2246_v17 = vmul.f32 %v6817_v9, %v5852_v29  ;;  %s6843_s22 = sld [smem:[#allocation50_spill]] }
 0x580   : > { %6818 = sst [smem:[#allocation65_spill]] %s5943_s23  ;;  %v4459_v25 = vunpack.i.h.bf16 %v4457_v48  ;;  %v4458_v4 = vunpack.i.l.bf16 %v4457_v48  ;;  %v2755_v52 = vadd.f32 %v2753_v44, %v2749_v22  ;;  %v2242_v35 = vadd.f32 %v2240_v6, %v2236_v34 }
 0x581   : > { %v5947_v28 = vadd.f32 %v6820_v15, %v1775_v14  ;;  %v6821_v49 = vstv %s6813_s0  ;;  %v6822_v51 = vstv %s6814_s25  ;;  %v6823_v13 = vstv %s6815_s15  ;;  %s5970_s25 = sld [smem:[#allocation11 + $0x287]]  ;;  %s5992_s0 = sld [smem:[#allocation11 + $0x384]] }
 0x582   : > { %v5951_v40 = vadd.f32 %v6821_v49, %v2425_v33  ;;  %v5955_v36 = vadd.f32 %v6822_v51, %v1930_v19  ;;  %v2087_v45 = vmul.f32 %v6823_v13, %v5879_v61  ;;  %6824 = sst [smem:[#allocation67_spill]] %s5960_s7  ;;  %v4100_v39 = vpack.c.bf16 %v4459_v25, %v4458_v4  ;;  %s6018_s15 = sld [smem:[#allocation11 + $0x386]] }
 0x583   : > { %v6825_v55 = vstv %s5735_s16  ;;  %v6826_v6 = vstv %s5737_s30  ;;  %v2097_v30 = vstv %s5912_s2  ;;  %v4467_v22 = vpop.permute.xlu0 %4466  ;;  %1781 = vst.msk [vmem:[%s6819_s5 + $0x8] sm:$0xff] %vm804_vm4, %v5947_v28  ;;  %s6828_s16 = sld [smem:[#allocation73_spill]]  ;;  %v2248_v44 = vadd.f32 %v2246_v17, %v2242_v35  ;;  %s6000_s30 = sld [smem:[#allocation11 + $0x383]] }
 0x584   : > { %v5964_v63 = vadd.f32 %v6825_v55, %v2755_v52  ;;  %v2093_v23 = vmul.f32 %v6826_v6, %v5915_v27  ;;  %3520 = vst.msk [vmem:[%s6819_s5 + $0x48] sm:$0xff] %vm804_vm4, %v5951_v40  ;;  %3481 = vst.msk [vmem:[%s6819_s5 + $0x18] sm:$0xff] %vm804_vm4, %v5955_v36  ;;  %v2089_v59 = vadd.f32 %v2087_v45, %v2083_v54  ;;  %v6645_v34 = vstv %s5919_s13  ;;  %s6031_s2 = sld [smem:[#allocation11 + $0x387]]  ;;  %s6838_s13 = sld [smem:[#allocation55_spill]] }
 0x585   : > { %v4469_v48 = vunpack.i.h.bf16 %v4467_v22  ;;  %v4468_v14 = vunpack.i.l.bf16 %v4467_v22  ;;  %4101 = vmatprep.subr.bf16.mxu0 %v4100_v39  ;;  %v2252_v33 = vmul.f32 %v6829_v2, %v5879_v61  ;;  %v6830_v19 = vstv %s5751_s19  ;;  %s6013_s19 = sld [smem:[#allocation12 + $0x5]] }
 0x586   : > { %3546 = vst.msk [vmem:[%s6819_s5 + $0x68] sm:$0xff] %vm804_vm4, %v5964_v63  ;;  %v2258_v9 = vmul.f32 %v6830_v19, %v5915_v27  ;;  %4103 = vmatpush3.bf16.msra.mxu0 %v4100_v39  ;;  %v2095_v54 = vadd.f32 %v2093_v23, %v2089_v59  ;;  %v2554_v17 = vadd.f32 %v5807_v11, %v5729_v53  ;;  %v2568_v52 = vstv %s5933_s12  ;;  %s6837_s12 = sld [smem:[#allocation48_spill]] }
 0x587   : > { %6827 = sst [smem:[#allocation69_spill]] %s5970_s25  ;;  %v4104_v35 = vpack.c.bf16 %v4469_v48, %v4468_v14  ;;  %v2254_v15 = vadd.f32 %v2252_v33, %v2248_v44  ;;  %v6833_v49 = vstv %s5746_s10  ;;  %v2574_v13 = vstv %s5938_s27  ;;  %v4477_v45 = vpop.permute.xlu0 %4476  ;;  %s6835_s10 = sld [smem:[#allocation56_spill]] }
 0x588   : > { %v2564_v51 = vmul.f32 %v6833_v49, %v5790_v62  ;;  %v6010_v53 = vadd.f32 %v2097_v30, %v2095_v54  ;;  %v2580_v39 = vstv %s5943_s23  ;;  %v6834_v55 = vstv %s6831_s28  ;;  %s6839_s23 = sld [smem:[#allocation57_spill]]  ;;  %s6840_s27 = sld [smem:[#allocation58_spill]] }
 0x589   : > { %v6832_v25 = vstv %s6828_s16  ;;  %v2882_v6 = vmul.f32 %v6834_v55, %v5755_v7  ;;  %v4479_v23 = vunpack.i.h.bf16 %v4477_v45  ;;  %v4478_v22 = vunpack.i.l.bf16 %v4477_v45  ;;  %4105 = vmatprep.subr.bf16.mxu0 %v4104_v35  ;;  %s6845_s16 = sld [smem:[#allocation59_spill]] }
 0x58a   : > { %v2558_v4 = vmul.f32 %v6832_v25, %v5772_v12  ;;  %v2260_v59 = vadd.f32 %v2258_v9, %v2254_v15  ;;  %v2570_v44 = vmul.f32 %v2568_v52, %v5838_v46  ;;  %4107 = vmatpush3.bf16.msra.mxu0 %v4104_v35  ;;  %3494 = vst.msk [vmem:[%s6819_s5 + $0x28] sm:$0xff] %vm804_vm4, %v6010_v53  ;;  %v2886_v14 = vstv %s5960_s7  ;;  %v4548_v35 = vpop.eup %4547  ;;  %s6842_s7 = sld [smem:[#allocation49_spill]]  ;;  %s6076_s28 = sld [smem:[#allocation12 + $0x7]] }
 0x58b   : > { %v2576_v48 = vmul.f32 %v2574_v13, %v5852_v29  ;;  %v6033_v2 = vpack.c.bf16 %v4479_v23, %v4478_v22  ;;  %v2586_v33 = vstv %s5970_s25  ;;  %v6049_v25 = vmul.f32 %v5894_v38, %v5465_v3  ;;  %s6844_s25 = sld [smem:[#allocation51_spill]] }
 0x58c   : > { %v2560_v11 = vadd.f32 %v2558_v4, %v2554_v17  ;;  %v6037_v42 = vadd.f32 %v6645_v34, %v2260_v59  ;;  %v2582_v17 = vmul.f32 %v2580_v39, %v5879_v61  ;;  %v2888_v32 = vmul.f32 %v2886_v14, %v5772_v12 }
 0x58d   : > { %v6836_v19 = vstv %s6835_s10  ;;  %4117 = vmatprep.subr.bf16.mxu0 %v6033_v2  ;;  %v2898_v4 = vstv %s5992_s0  ;;  %v2588_v3 = vmul.f32 %v2586_v33, %v5915_v27  ;;  %v2892_v38 = vstv %s6000_s30  ;;  %s6918_s30 = sld [smem:[#allocation97_spill]] }
 0x58e   : > { %v2566_v7 = vadd.f32 %v2564_v51, %v2560_v11  ;;  %v2878_v9 = vmul.f32 %v6836_v19, %v5652_v20  ;;  %3507 = vst.msk [vmem:[%s6819_s5 + $0x38] sm:$0xff] %vm804_vm4, %v6037_v42  ;;  %v2904_v49 = vstv %s6002_s29  ;;  %4553 = vrcp.f32 %v5774_v10  ;;  %s6932_s29 = sld [smem:[#allocation61_spill]] }
 0x58f   : > { %v6841_v51 = vstv %s6837_s12  ;;  %v2894_v11 = vmul.f32 %v2892_v38, %v5790_v62  ;;  %v2900_v23 = vmul.f32 %v2898_v4, %v5838_v46  ;;  %v2910_v22 = vstv %s6018_s15  ;;  %s6847_s12 = sld [smem:[#allocation52_spill]] }
 0x590   : > { %v2572_v54 = vadd.f32 %v2570_v44, %v2566_v7  ;;  %v2884_v20 = vadd.f32 %v2882_v6, %v2878_v9  ;;  %v1732_v45 = vmul.f32 %v6841_v51, %v5676_v41  ;;  %v2592_v6 = vstv %s6013_s19  ;;  %s6939_s19 = smov 8  }
 0x591   : > { %v6846_v10 = vstv %s6838_s13  ;;  %v6848_v44 = vstv %s6839_s23  ;;  %v6088_v19 = vmul.f32 %v4548_v35, %v5461_v1  ;;  %v6849_v46 = vstv %s6840_s27  ;;  %s6852_s13 = sld [smem:[#allocation53_spill]]  ;;  %s6863_s23 = sld [smem:[#allocation66_spill]] }
 0x592   : > { %v2578_v15 = vadd.f32 %v2576_v48, %v2572_v54  ;;  %v2890_v12 = vadd.f32 %v2888_v32, %v2884_v20  ;;  %v1736_v59 = vmul.f32 %v6846_v10, %v6049_v25  ;;  %v2386_v7 = vmul.f32 %v6848_v44, %v6049_v25  ;;  %s6889_s27 = sld [smem:[#allocation85_spill]] }
 0x593   : > { %v2906_v48 = vmul.f32 %v2904_v49, %v5852_v29  ;;  %v1891_v9 = vmul.f32 %v6849_v46, %v6049_v25  ;;  %v6850_v20 = vstv %s6842_s7  ;;  %v2912_v1 = vmul.f32 %v2910_v22, %v5879_v61  ;;  %v4550_v29 = vpop.eup %4549  ;;  %s6856_s7 = sld [smem:[#allocation54_spill]] }
 0x594   : > { %v2584_v55 = vadd.f32 %v2582_v17, %v2578_v15  ;;  %v2896_v62 = vadd.f32 %v2894_v11, %v2890_v12  ;;  %v2916_v17 = vstv %s6031_s2  ;;  %v2382_v32 = vmul.f32 %v6850_v20, %v5676_v41  ;;  %s6940_s2 = smov 48  }
 0x595   : > { %v6851_v15 = vstv %s6843_s22  ;;  %v6853_v35 = vstv %s6844_s25  ;;  %v6855_v10 = vstv %s6847_s12  ;;  %v2918_v20 = vmul.f32 %v2916_v17, %v5915_v27  ;;  %s6858_s22 = sld [smem:[#allocation62_spill]]  ;;  %s6897_s12 = sld [smem:[#allocation99_spill]] }
 0x596   : > { %v2590_v54 = vadd.f32 %v2588_v3, %v2584_v55  ;;  %v1887_v51 = vmul.f32 %v6851_v15, %v5676_v41  ;;  %v2902_v12 = vadd.f32 %v2900_v23, %v2896_v62  ;;  %v2712_v11 = vmul.f32 %v6853_v35, %v5676_v41  ;;  %v4552_v15 = vpop.eup %4551  ;;  %s6891_s25 = sld [smem:[#allocation86_spill]] }
 0x597   : > { %v6854_v3 = vstv %s6845_s16  ;;  %v2052_v44 = vmul.f32 %v6855_v10, %v5676_v41  ;;  %v1738_v23 = vadd.f32 %v1736_v59, %v1732_v45  ;;  %v2388_v62 = vadd.f32 %v2386_v7, %v2382_v32  ;;  %s6876_s16 = sld [smem:[#allocation83_spill]] }
 0x598   : > { %v2716_v55 = vmul.f32 %v6854_v3, %v6049_v25  ;;  %v6114_v46 = vadd.f32 %v2592_v6, %v2590_v54  ;;  %v2908_v61 = vadd.f32 %v2906_v48, %v2902_v12  ;;  %4555 = vrcp.f32 %v5809_v16 }
 0x599   : > { %v1742_v35 = vmul.f32 %v1741_v21, %v6088_v19  ;;  %v1893_v3 = vadd.f32 %v1891_v9, %v1887_v51  ;;  %v6857_v10 = vstv %s6852_s13  ;;  %v6130_v45 = vmul.f32 %v4550_v29, %v5471_v8  ;;  %v4554_v51 = vpop.eup %4553 }
 0x59a   : > { %v2217_v34 = vmul.f32 %v6857_v10, %v5676_v41  ;;  %3533 = vst.msk [vmem:[%s6819_s5 + $0x58] sm:$0xff] %vm804_vm4, %v6114_v46  ;;  %v2392_v27 = vmul.f32 %v2391_v26, %v6088_v19  ;;  %v6859_v16 = vstv %s6777_s1  ;;  %v2914_v59 = vadd.f32 %v2912_v1, %v2908_v61  ;;  %s6871_s1 = sld [smem:[#allocation68_spill]] }
 0x59b   : > { %v2056_v21 = vmul.f32 %v6859_v16, %v6049_v25  ;;  %v6860_v7 = vstv %s6782_s14  ;;  %v2718_v9 = vadd.f32 %v2716_v55, %v2712_v11  ;;  %v6861_v54 = vstv %s6856_s7  ;;  %s6900_s7 = sld [smem:[#allocation78_spill]]  ;;  %s6915_s14 = sld [smem:[#allocation90_spill]] }
 0x59c   : > { %v1897_v48 = vmul.f32 %v6860_v7, %v6088_v19  ;;  %v2547_v32 = vmul.f32 %v6861_v54, %v5676_v41  ;;  %v2922_v8 = vstv %s6076_s28  ;;  %v6146_v26 = vmul.f32 %v4552_v15, %v5485_v24  ;;  %s6938_s28 = smov 32  }
 0x59d   : > { %v1744_v12 = vadd.f32 %v1742_v35, %v1738_v23  ;;  %v2394_v29 = vadd.f32 %v2392_v27, %v2388_v62  ;;  %v2920_v10 = vadd.f32 %v2918_v20, %v2914_v59  ;;  %v6865_v61 = vstv %s6783_s21  ;;  %s6917_s21 = sld [smem:[#allocation76_spill]] }
 0x59e   : > { %v1899_v1 = vadd.f32 %v1897_v48, %v1893_v3  ;;  %v2722_v11 = vmul.f32 %v6865_v61, %v6088_v19  ;;  %v6866_v55 = vstv %s6858_s22  ;;  %v6868_v7 = vstv %s6835_s10  ;;  %s6887_s10 = sld [smem:[#allocation89_spill]]  ;;  %s6902_s22 = sld [smem:[#allocation98_spill]] }
 0x59f   : > { %v2221_v16 = vmul.f32 %v6866_v55, %v6049_v25  ;;  %v2877_v54 = vmul.f32 %v6868_v7, %v5676_v41  ;;  %v6869_v24 = vstv %s6784_s9  ;;  %v6870_v23 = vstv %s6785_s11  ;;  %s6875_s9 = sld [smem:[#allocation77_spill]]  ;;  %s6895_s11 = sld [smem:[#allocation92_spill]] }
 0x5a0   : > { %v1748_v15 = vmul.f32 %v6869_v24, %v6130_v45  ;;  %v2398_v62 = vmul.f32 %v6870_v23, %v6130_v45  ;;  %v2058_v20 = vadd.f32 %v2056_v21, %v2052_v44  ;;  %v6165_v35 = vadd.f32 %v2922_v8, %v2920_v10 }
 0x5a1   : > { %v6168_v3 = vmul.f32 %v4554_v51, %v5495_v37  ;;  %v6873_v27 = vstv %s6862_s17  ;;  %v2724_v59 = vadd.f32 %v2722_v11, %v2718_v9  ;;  %v6874_v48 = vstv %s6863_s23 }
 0x5a2   : > { %v1903_v41 = vmul.f32 %v6873_v27, %v6130_v45  ;;  %v2062_v61 = vmul.f32 %v6874_v48, %v6088_v19  ;;  %v1750_v55 = vadd.f32 %v1748_v15, %v1744_v12  ;;  %v1754_v44 = vmul.f32 %v1753_v56, %v6146_v26  ;;  %3559 = vst.msk [vmem:[%s6819_s5 + $0x78] sm:$0xff] %vm804_vm4, %v6165_v35  ;;  %v4556_v24 = vpop.eup %4555 }
 0x5a3   : > { %v2400_v21 = vadd.f32 %v2398_v62, %v2394_v29  ;;  %v2728_v37 = vmul.f32 %v2727_v43, %v6130_v45  ;;  %v2404_v9 = vmul.f32 %v2403_v57, %v6146_v26  ;;  %v2223_v10 = vadd.f32 %v2221_v16, %v2217_v34 }
 0x5a4   : > { %v1905_v51 = vadd.f32 %v1903_v41, %v1899_v1  ;;  %v6877_v12 = vstv %s6871_s1  ;;  %v1909_v56 = vmul.f32 %v1908_v58, %v6146_v26  ;;  %v2064_v29 = vadd.f32 %v2062_v61, %v2058_v20  ;;  %v1722_v61 = vpop.xlane.xlu1 %1721  ;;  %s6916_s1 = sld [smem:[#allocation91_spill]] }
 0x5a5   : > { %v2551_v11 = vmul.f32 %v6877_v12, %v6049_v25  ;;  %v2068_v43 = vmul.f32 %v2067_v31, %v6130_v45  ;;  %v2227_v7 = vmul.f32 %v2226_v47, %v6088_v19  ;;  %v6879_v57 = vstv %s6760_s3  ;;  %s6946_s3 = sld [smem:[#allocation34_spill]] }
 0x5a6   : > { %v1760_v15 = vmul.f32 %v6879_v57, %v6168_v3  ;;  %v6880_v34 = vstv %s6762_s6  ;;  %v2730_v16 = vadd.f32 %v2728_v37, %v2724_v59  ;;  %v6881_v23 = vstv %s6875_s9  ;;  %s6894_s6 = sld [smem:[#allocation87_spill]]  ;;  %s6919_s9 = sld [smem:[#allocation100_spill]] }
 0x5a7   : > { %v2410_v1 = vmul.f32 %v6880_v34, %v6168_v3  ;;  %v2734_v62 = vmul.f32 %v6881_v23, %v6146_v26  ;;  %v1756_v27 = vadd.f32 %v1754_v44, %v1750_v55  ;;  %v6882_v58 = vstv %s6792_s8  ;;  %s6890_s8 = sld [smem:[#allocation84_spill]] }
 0x5a8   : > { %v1915_v20 = vmul.f32 %v6882_v58, %v6168_v3  ;;  %v6884_v31 = vstv %s6767_s20  ;;  %v6885_v47 = vstv %s6876_s16  ;;  %v2406_v12 = vadd.f32 %v2404_v9, %v2400_v21  ;;  %s6892_s20 = sld [smem:[#allocation93_spill]]  ;;  %s6924_s16 = sld [smem:[#allocation94_spill]] }
 0x5a9   : > { %v2233_v41 = vmul.f32 %v6884_v31, %v6130_v45  ;;  %v2881_v48 = vmul.f32 %v6885_v47, %v6049_v25  ;;  %v6888_v59 = vstv %s6878_s18  ;;  %v2229_v57 = vadd.f32 %v2227_v7, %v2223_v10  ;;  %s6926_s18 = sld [smem:[#allocation95_spill]] }
 0x5aa   : > { %v2074_v37 = vmul.f32 %v6888_v59, %v6146_v26  ;;  %v2553_v55 = vadd.f32 %v2551_v11, %v2547_v32  ;;  %v1598_v44 = vmul.f32 %v4556_v24, %v5506_v50  ;;  %4557 = vrcp.f32 %v1722_v61 }
 0x5ab   : > { %v1911_v34 = vadd.f32 %v1909_v56, %v1905_v51  ;;  %v2070_v23 = vadd.f32 %v2068_v43, %v2064_v29  ;;  %v1762_v58 = vadd.f32 %v1760_v15, %v1756_v27  ;;  %v2412_v25 = vadd.f32 %v2410_v1, %v2406_v12  ;;  %s3568_s13 = sshll.u32 %s6946_s3, 2 }
 0x5ac   : > { %v2736_v21 = vadd.f32 %v2734_v62, %v2730_v16  ;;  %v6896_v9 = vstv %s6883_s24  ;;  %v6899_v50 = vstv %s6886_s4  ;;  %v6901_v51 = vstv %s6887_s10  ;;  %s6927_s24 = sld [smem:[#allocation96_spill]]  ;;  %s6929_s4 = sld [smem:[#allocation81_spill]] }
 0x5ad   : > { %v2557_v31 = vmul.f32 %v6896_v9, %v6088_v19  ;;  %v1917_v32 = vadd.f32 %v1915_v20, %v1911_v34  ;;  %v2740_v10 = vmul.f32 %v6899_v50, %v6168_v3  ;;  %v2239_v11 = vmul.f32 %v6901_v51, %v6146_v26  ;;  %s6941_s10 = smov 16  }
 0x5ae   : > { %v2883_v56 = vadd.f32 %v2881_v48, %v2877_v54  ;;  %v2076_v29 = vadd.f32 %v2074_v37, %v2070_v23  ;;  %v6903_v43 = vstv %s6889_s27  ;;  %v2235_v24 = vadd.f32 %v2233_v41, %v2229_v57  ;;  %s6942_s27 = smov 24  }
 0x5af   : > { %v2080_v7 = vmul.f32 %v6903_v43, %v6168_v3  ;;  %v2559_v15 = vadd.f32 %v2557_v31, %v2553_v55  ;;  %v6904_v1 = vstv %s6890_s8  ;;  %v6906_v62 = vstv %s6891_s25  ;;  %s6943_s8 = smov 40   ;;  %s6944_s25 = smov 56  }
 0x5b0   : > { %v1766_v16 = vmul.f32 %v6904_v1, %v1598_v44  ;;  %v2416_v27 = vmul.f32 %v6906_v62, %v1598_v44  ;;  %v6907_v20 = vstv %s6892_s20  ;;  %v2887_v61 = vmul.f32 %v2886_v14, %v6088_v19  ;;  %v4487_v1 = vpop.permute.xlu0 %4486  ;;  %s6945_s20 = sld [smem:[#allocation33_spill]] }
 0x5b1   : > { %v2245_v47 = vmul.f32 %v6907_v20, %v6168_v3  ;;  %v6908_v12 = vstv %s6894_s6  ;;  %v6909_v48 = vstv %s6895_s11  ;;  %v6910_v41 = vstv %s6897_s12  ;;  %s6947_s6 = sld [smem:[#allocation46_spill]]  ;;  %s6948_s11 = sld [smem:[#allocation45_spill]] }
 0x5b2   : > { %v1921_v54 = vmul.f32 %v6908_v12, %v1598_v44  ;;  %v2746_v59 = vmul.f32 %v6909_v48, %v1598_v44  ;;  %v2563_v37 = vmul.f32 %v6910_v41, %v6130_v45  ;;  %v2569_v57 = vmul.f32 %v2568_v52, %v6146_v26 }
 0x5b3   : > { %v6911_v55 = vstv %s6900_s7  ;;  %v2241_v23 = vadd.f32 %v2239_v11, %v2235_v24  ;;  %v6912_v9 = vstv %s6902_s22  ;;  %v2889_v50 = vadd.f32 %v2887_v61, %v2883_v56  ;;  %v4432_v11 = vpop.permute.xlu1 %4431  ;;  %s6949_s7 = sld [smem:[#allocation41_spill]] }
 0x5b4   : > { %v2086_v34 = vmul.f32 %v6911_v55, %v1598_v44  ;;  %v2251_v31 = vmul.f32 %v6912_v9, %v1598_v44  ;;  %v2742_v51 = vadd.f32 %v2740_v10, %v2736_v21  ;;  %v2082_v14 = vadd.f32 %v2080_v7, %v2076_v29 }
 0x5b5   : > { %v2565_v19 = vadd.f32 %v2563_v37, %v2559_v15  ;;  %v2575_v43 = vmul.f32 %v2574_v13, %v6168_v3  ;;  %v1768_v62 = vadd.f32 %v1766_v16, %v1762_v58  ;;  %v2247_v20 = vadd.f32 %v2245_v47, %v2241_v23  ;;  %v4558_v13 = vpop.eup %4557 }
 0x5b6   : > { %v2893_v12 = vmul.f32 %v2892_v38, %v6130_v45  ;;  %v2899_v52 = vmul.f32 %v2898_v4, %v6146_v26  ;;  %v2418_v24 = vadd.f32 %v2416_v27, %v2412_v25  ;;  %v1923_v21 = vadd.f32 %v1921_v54, %v1917_v32  ;;  %s3567_s12 = sshll.u32 %s6945_s20, 1 }
 0x5b7   : > { %v2748_v10 = vadd.f32 %v2746_v59, %v2742_v51  ;;  %v2571_v56 = vadd.f32 %v2569_v57, %v2565_v19  ;;  %v2088_v58 = vadd.f32 %v2086_v34, %v2082_v14  ;;  %v2253_v29 = vadd.f32 %v2251_v31, %v2247_v20  ;;  %v4442_v31 = vpop.permute.xlu1 %4441  ;;  %s3158_s22 = sadd.s32 %s3568_s13, %s3567_s12 }
 0x5b8   : > { %v2581_v38 = vmul.f32 %v2580_v39, %v1598_v44  ;;  %v2895_v45 = vadd.f32 %v2893_v12, %v2889_v50  ;;  %v1727_v4 = vmul.f32 %v4558_v13, %v5531_v60  ;;  %v4489_v26 = vunpack.i.h.bf16 %v4487_v1 }
 0x5b9   : > { %v4488_v25 = vunpack.i.l.bf16 %v4487_v1  ;;  %v2577_v32 = vadd.f32 %v2575_v43, %v2571_v56  ;;  %v4434_v7 = vunpack.i.h.bf16 %v4432_v11  ;;  %v2905_v16 = vmul.f32 %v2904_v49, %v6168_v3  ;;  %p6952_p6 = scmp.ne.s32.totalorder %s6949_s7, 0 }
 0x5ba   : > { %v2901_v15 = vadd.f32 %v2899_v52, %v2895_v45  ;;  %v2911_v27 = vmul.f32 %v2910_v22, %v1598_v44  ;;  %v6921_v47 = vstv %s6914_s26  ;;  %v6922_v54 = vstv %s6915_s14  ;;  %s6950_s26 = sld [smem:[#allocation109_spill]]  ;;  %s3161_s14 = sshll.u32 %s6947_s6, 4  ;;  %s6379_s14 = int_to_ptr.vmem [resolvable:$true] %s3161_s14 }
 0x5bb   : > { %v1772_v61 = vmul.f32 %v6921_v47, %v1727_v4  ;;  %v2422_v48 = vmul.f32 %v6922_v54, %v1727_v4  ;;  %v6923_v39 = vstv %s6916_s1  ;;  %v6925_v41 = vstv %s6917_s21  ;;  %s3569_s1 = sshll.u32 %s3158_s22, 7 }
 0x5bc   : > { %v1927_v59 = vmul.f32 %v6923_v39, %v1727_v4  ;;  %v2752_v60 = vmul.f32 %v6925_v41, %v1727_v4  ;;  %v4433_v37 = vunpack.i.l.bf16 %v4432_v11  ;;  %v6928_v57 = vstv %s6918_s30 }
 0x5bd   : > { %v2092_v55 = vmul.f32 %v6928_v57, %v1727_v4  ;;  %v6930_v34 = vstv %s6919_s9  ;;  %v2587_v49 = vmul.f32 %v2586_v33, %v1727_v4  ;;  %v1774_v22 = vadd.f32 %v1772_v61, %v1768_v62  ;;  %s6951_s9 = sld [smem:[#allocation110_spill]] }
 0x5be   : > { %v2257_v23 = vmul.f32 %v6930_v34, %v1727_v4  ;;  %v2424_v3 = vadd.f32 %v2422_v48, %v2418_v24  ;;  %v1929_v44 = vadd.f32 %v1927_v59, %v1923_v21  ;;  %v2754_v9 = vadd.f32 %v2752_v60, %v2748_v10 }
 0x5bf   : > { %v2094_v50 = vadd.f32 %v2092_v55, %v2088_v58  ;;  %v2583_v14 = vadd.f32 %v2581_v38, %v2577_v32  ;;  %v2907_v19 = vadd.f32 %v2905_v16, %v2901_v15  ;;  %v6933_v43 = vstv %s6924_s16  ;;  %s3141_s16 = scalar_lea.sflag [#allocation6], %s6948_s11 }
 0x5c0   : > { %v2259_v51 = vadd.f32 %v2257_v23, %v2253_v29  ;;  %v1778_v1 = vadd.f32 %v6933_v43, %v1774_v22  ;;  %v6934_v20 = vstv %s6926_s18  ;;  %v6935_v52 = vstv %s6927_s24  ;;  %s4703_s18 = scalar_lea.vmem %s6379_s14, 256  ;;  %s4870_s24 = smov [#allocation16]  }
 0x5c1   : > { %v2428_v12 = vadd.f32 %v6934_v20, %v2424_v3  ;;  %v1933_v33 = vadd.f32 %v6935_v52, %v1929_v44  ;;  %v6936_v62 = vstv %s6929_s4  ;;  %v4120_v24 = vpack.c.bf16 %v4489_v26, %v4488_v25  ;;  %v3046_v20 = vld [vmem:[#allocation14 + $0x20] sm:$0xff]  ;;  %v3048_v52 = vld [vmem:[#allocation14 + $0x30] sm:$0xff]  ;;  %p4704_p8 = scmp.ne.s32.totalorder %s6379_s14, %s4703_s18  ;;  %s4707_s4 = sshll.u32 %s4870_s24, 4  ;;  %s4708_s4 = int_to_ptr.vmem [resolvable:$false] %s4707_s4 }
 0x5c2   : > { %v2758_v11 = vadd.f32 %v6936_v62, %v2754_v9  ;;  %v2098_v21 = vadd.f32 %v2097_v30, %v2094_v50  ;;  %v6937_v10 = vstv %s6932_s29  ;;  %v2589_v13 = vadd.f32 %v2587_v49, %v2583_v14  ;;  %1780 = vst.msk [vmem:[%s6819_s5] sm:$0xff] %vm804_vm4, %v1778_v1  ;;  %3841 = vmatprep.mubr.msk.f32.mxu1 %vm804_vm4, %v1778_v1  ;;  %v4452_v30 = vpop.permute.xlu1 %4451  ;;  %v3042_v9 = vld [vmem:[#allocation14] sm:$0xff]  ;;  %v3044_v50 = vld [vmem:[#allocation14 + $0x10] sm:$0xff]  ;;  %v3045_v14 = vld [vmem:[#allocation14 + $0x18] sm:$0xff]  ;;  %s4709_s15 = scalar_lea.vmem %s4708_s4, 512  ;;  %p4710_p1 = scmp.lt.s32.totalorder %s6379_s14, %s4708_s4 }
 0x5c3   : > { %v2263_v56 = vadd.f32 %v6937_v10, %v2259_v51  ;;  %v4080_v58 = vpack.c.bf16 %v4434_v7, %v4433_v37  ;;  %3519 = vst.msk [vmem:[%s6819_s5 + $0x40] sm:$0xff] %vm804_vm4, %v2428_v12  ;;  %3885 = vmatprep.mubr.msk.f32.mxu0 %vm804_vm4, %v2428_v12  ;;  %3480 = vst.msk [vmem:[%s6819_s5 + $0x10] sm:$0xff] %vm804_vm4, %v1933_v33  ;;  %v2913_v29 = vadd.f32 %v2911_v27, %v2907_v19  ;;  %v3047_v12 = vld [vmem:[#allocation14 + $0x28] sm:$0xff]  ;;  %v3049_v62 = vld [vmem:[#allocation14 + $0x38] sm:$0xff]  ;;  %s6384_s0 = scalar_lea.hbm %s6951_s9, %s3569_s1  ;;  %p4705_p10 = pnand %p4704_p8, %p6952_p6 }
 0x5c4   : > { %3545 = vst.msk [vmem:[%s6819_s5 + $0x60] sm:$0xff] %vm804_vm4, %v2758_v11  ;;  %v2917_v38 = vmul.f32 %v2916_v17, %v1727_v4  ;;  %v4439_v45 = vunpack.i.h.bf16 %v5881_v5  ;;  %v4438_v26 = vunpack.i.l.bf16 %v5881_v5  ;;  %3842 = vmatmul.mubr.msk.f32.vlgmr.msra.gmra.mrb[8].mxu1 %vm804_vm4, %v5947_v28  ;;  %3886 = vmatmul.mubr.msk.f32.vlgmr.msra.gmra.mrb[10].mxu0 %vm804_vm4, %v5951_v40  ;;  %3493 = vst.msk [vmem:[%s6819_s5 + $0x20] sm:$0xff] %vm804_vm4, %v2098_v21  ;;  %v4444_v5 = vunpack.i.h.bf16 %v4442_v31  ;;  %p4711_p2 = scmp.lt.s32.totalorder %s4709_s15, %s4703_s18 }
 0x5c5   : > { %3506 = vst.msk [vmem:[%s6819_s5 + $0x30] sm:$0xff] %vm804_vm4, %v2263_v56  ;;  %v2593_v25 = vadd.f32 %v2592_v6, %v2589_v13  ;;  %4079 = vmatpush3.bf16.msra.mxu1 %v5889_v18  ;;  %4119 = vmatpush3.bf16.msra.mxu0 %v6033_v2  ;;  %v4443_v28 = vunpack.i.l.bf16 %v4442_v31  ;;  %v4449_v2 = vunpack.i.h.bf16 %v5917_v0  ;;  %v4448_v32 = vunpack.i.l.bf16 %v5917_v0  ;;  %v3043_v31 = vld [vmem:[#allocation14 + $0x8] sm:$0xff]  ;;  %p4706_p13 = pneg %p4705_p10 }
 0x5c6   : > { %v2919_v17 = vadd.f32 %v2917_v38, %v2913_v29  ;;  %3852 = vmatprep.mubr.msk.f32.mxu1 %vm804_vm4, %v1933_v33  ;;  %3907 = vmatprep.mubr.msk.f32.mxu0 %vm804_vm4, %v2758_v11  ;;  %v4084_v4 = vpack.c.bf16 %v4439_v45, %v4438_v26  ;;  %v4462_v6 = vpop.permute.xlu1 %4461  ;;  %v4453_v7 = vunpack.i.l.bf16 %v4452_v30  ;;  %v4132_v51 = vpack.c.bf16 %v3043_v31, %v3042_v9  ;;  %p4712_p3 = por %p4711_p2, %p4710_p1 }
 0x5c7   : > { %3532 = vst.msk [vmem:[%s6819_s5 + $0x50] sm:$0xff] %vm804_vm4, %v2593_v25  ;;  %4081 = vmatprep.subr.bf16.mxu1 %v4080_v58  ;;  %4121 = vmatprep.subr.bf16.mxu0 %v4120_v24  ;;  %v4088_v18 = vpack.c.bf16 %v4444_v5, %v4443_v28  ;;  %v4092_v16 = vpack.c.bf16 %v4449_v2, %v4448_v32  ;;  %v4464_v47 = vunpack.i.h.bf16 %v4462_v6  ;;  %v4463_v61 = vunpack.i.l.bf16 %v4462_v6  ;;  %v3562_v32 = vld [vmem:[%s6950_s26] ss:$0 sm:$0xff] }
 0x5c8   : > { %v2923_v40 = vadd.f32 %v2922_v8, %v2919_v17  ;;  %v4454_v8 = vunpack.i.h.bf16 %v4452_v30  ;;  %v4136_v19 = vpack.c.bf16 %v3045_v14, %v3044_v50  ;;  %v4140_v33 = vpack.c.bf16 %v3047_v12, %v3046_v20  ;;  %p4713_p4 = pnand %p4712_p3, %p4706_p13 }
 0x5c9   : > { %4083 = vmatpush3.bf16.msra.mxu1 %v4080_v58  ;;  %4123 = vmatpush3.bf16.msra.mxu0 %v4120_v24  ;;  %v4144_v11 = vpack.c.bf16 %v3049_v62, %v3048_v52 }
 0x5ca   : > { %3558 = vst.msk [vmem:[%s6819_s5 + $0x70] sm:$0xff] %vm804_vm4, %v2923_v40  ;;  %4085 = vmatprep.subr.bf16.mxu1 %v4084_v4  ;;  %v4472_v15 = vpop.permute.xlu1 %4471  ;;  %v4096_v27 = vpack.c.bf16 %v4454_v8, %v4453_v7  ;;  %4133 = vmatprep.subr.bf16.mxu0 %v4132_v51 }
 0x5cb   : > { %v4473_v54 = vunpack.i.l.bf16 %v4472_v15 }
 0x5cc   : > { %3853 = vmatmul.mubr.msk.f32.vlgmr.msra.gmra.mrb[10].mxu1 %vm804_vm4, %v5955_v36  ;;  %3908 = vmatmul.mubr.msk.f32.vlgmr.msra.gmra.mrb[12].mxu0 %vm804_vm4, %v5964_v63  ;;  %v4108_v36 = vpack.c.bf16 %v4464_v47, %v4463_v61  ;;  %v4474_v63 = vunpack.i.h.bf16 %v4472_v15 }
 0x5cd   : > { %4087 = vmatpush3.bf16.msra.mxu1 %v4084_v4  ;;  %3863 = vmatprep.mubr.msk.f32.mxu1 %vm804_vm4, %v2098_v21 }
 0x5ce   : > { %4089 = vmatprep.subr.bf16.mxu1 %v4088_v18  ;;  %v4482_v0 = vpop.permute.xlu1 %4481  ;;  %v4112_v48 = vpack.c.bf16 %v4474_v63, %v4473_v54  ;;  %4135 = vmatpush3.bf16.msra.mxu0 %v4132_v51 }
 0x5cf   : > { %v4484_v39 = vunpack.i.h.bf16 %v4482_v0  ;;  %v4483_v59 = vunpack.i.l.bf16 %v4482_v0  ;;  %4137 = vmatprep.subr.bf16.mxu0 %v4136_v19 }
 0x5d1   : > { %4091 = vmatpush3.bf16.msra.mxu1 %v4088_v18 }
 0x5d2   : > { %4093 = vmatprep.subr.bf16.mxu1 %v4092_v16  ;;  %v4492_v41 = vpop.permute.xlu1 %4491  ;;  %4139 = vmatpush3.bf16.msra.mxu0 %v4136_v19 }
 0x5d3   : > { %v4494_v60 = vunpack.i.h.bf16 %v4492_v41  ;;  %v4493_v37 = vunpack.i.l.bf16 %v4492_v41  ;;  %4141 = vmatprep.subr.bf16.mxu0 %v4140_v33 }
 0x5d4   : > { %3864 = vmatmul.mubr.msk.f32.vlgmr.msra.gmra.mrb[12].mxu1 %vm804_vm4, %v6010_v53  ;;  %v4124_v53 = vpack.c.bf16 %v4484_v39, %v4483_v59 }
 0x5d5   : > { %4095 = vmatpush3.bf16.msra.mxu1 %v4092_v16  ;;  %3874 = vmatprep.mubr.msk.f32.mxu1 %vm804_vm4, %v2263_v56  ;;  %v4128_v57 = vpack.c.bf16 %v4494_v60, %v4493_v37 }
 0x5d6   : > { %4097 = vmatprep.subr.bf16.mxu1 %v4096_v27  ;;  %4143 = vmatpush3.bf16.msra.mxu0 %v4140_v33 }
 0x5d7   : > { %4145 = vmatprep.subr.bf16.mxu0 %v4144_v11 }
 0x5d9   : > { %4099 = vmatpush3.bf16.msra.mxu1 %v4096_v27 }
 0x5da   : > { %4109 = vmatprep.subr.bf16.mxu1 %v4108_v36  ;;  %4147 = vmatpush3.bf16.msra.mxu0 %v4144_v11 }
 0x5dc   : > { %3875 = vmatmul.mubr.msk.f32.vlgmr.msra.gmra.mrb[14].mxu1 %vm804_vm4, %v6037_v42 }
 0x5dd   : > { %4111 = vmatpush3.bf16.msra.mxu1 %v4108_v36  ;;  %3896 = vmatprep.mubr.msk.f32.mxu1 %vm804_vm4, %v2593_v25 }
 0x5de   : > { %4113 = vmatprep.subr.bf16.mxu1 %v4112_v48 }
 0x5e1   : > { %4115 = vmatpush3.bf16.msra.mxu1 %v4112_v48 }
 0x5e2   : > { %4125 = vmatprep.subr.bf16.mxu1 %v4124_v53 }
 0x5e4   : > { %3897 = vmatmul.mubr.msk.f32.vlgmr.msra.gmra.mrb[16].mxu1 %vm804_vm4, %v6114_v46 }
 0x5e5   : > { %4127 = vmatpush3.bf16.msra.mxu1 %v4124_v53  ;;  %3918 = vmatprep.mubr.msk.f32.mxu1 %vm804_vm4, %v2923_v40 }
 0x5e6   : > { %4129 = vmatprep.subr.bf16.mxu1 %v4128_v57 }
 0x5e9   : > { %4131 = vmatpush3.bf16.msra.mxu1 %v4128_v57 }
 0x5ec   : > { %3919 = vmatmul.mubr.msk.f32.vlgmr.msra.gmra.mrb[18].mxu1 %vm804_vm4, %v6165_v35 }
 0x697   : > { %v3843_v42 = vpop.f32.mrb[8].mxu1  ;;  %v3887_v55 = vpop.f32.mrb[10].mxu0 }
 0x698   : > { %1884 = vst.msk [vmem:[#allocation3 + $0x8] sm:$0xff] %vm710_vm2, %v3843_v42  ;;  %2538 = vrot.lane.b32.xlu1 %v3887_v55, %s6938_s28  ;;  %v1874_v34 = vpop.f32.mrb[9].mxu1  ;;  %v2525_v23 = vpop.f32.mrb[11].mxu0 }
 0x699   : > { %1883 = vst.msk [vmem:[#allocation3] sm:$0xff] %vm710_vm2, %v1874_v34  ;;  %2536 = vrot.lane.b32.xlu0 %v2525_v23, %s6938_s28 }
 0x69f   : > { %v3854_v46 = vpop.f32.mrb[10].mxu1  ;;  %v3909_v49 = vpop.f32.mrb[12].mxu0 }
 0x6a0   : > { %v2855_v22 = vpop.f32.mrb[13].mxu0  ;;  %2043 = vrot.lane.b32.xlu1 %v3854_v46, %s6939_s19  ;;  %v2030_v3 = vpop.f32.mrb[11].mxu1 }
 0x6a1   : > { %2041 = vrot.lane.b32.xlu0 %v2030_v3, %s6939_s19 }
 0x6a4   : > { %2868 = vrot.lane.b32.xlu1 %v3909_v49, %s6940_s2 }
 0x6a5   : > { %2866 = vrot.lane.b32.xlu0 %v2855_v22, %s6940_s2 }
 0x6a7   : > { %v3865_v35 = vpop.f32.mrb[12].mxu1 }
 0x6a8   : > { %2208 = vrot.lane.b32.xlu1 %v3865_v35, %s6941_s10  ;;  %v2195_v44 = vpop.f32.mrb[13].mxu1 }
 0x6a9   : > { %2206 = vrot.lane.b32.xlu0 %v2195_v44, %s6941_s10 }
 0x6af   : > { %v3876_v43 = vpop.f32.mrb[14].mxu1 }
 0x6b0   : > { %2373 = vrot.lane.b32.xlu1 %v3876_v43, %s6942_s27  ;;  %v2360_v1 = vpop.f32.mrb[15].mxu1 }
 0x6b1   : > { %2371 = vrot.lane.b32.xlu0 %v2360_v1, %s6942_s27 }
 0x6b7   : > { %v3898_v24 = vpop.f32.mrb[16].mxu1 }
 0x6b8   : > { %2703 = vrot.lane.b32.xlu1 %v3898_v24, %s6943_s8  ;;  %v2690_v21 = vpop.f32.mrb[17].mxu1 }
 0x6b9   : > { %2701 = vrot.lane.b32.xlu0 %v2690_v21, %s6943_s8 }
 0x6bf   : > { %v3920_v10 = vpop.f32.mrb[18].mxu1 }
 0x6c0   : > { %3033 = vrot.lane.b32.xlu1 %v3920_v10, %s6944_s25  ;;  %v3020_v56 = vpop.f32.mrb[19].mxu1 }
 0x6c1   : > { %3031 = vrot.lane.b32.xlu0 %v3020_v56, %s6944_s25 }
 0x70a   : > { %v2539_v13 = vpop.permute.xlu1 %2538 }
 0x70b   : > { %v2537_v58 = vpop.permute.xlu0 %2536 }
 0x712   : > { %v2044_v30 = vpop.permute.xlu1 %2043 }
 0x713   : > { %2049 = vst.msk [vmem:[#allocation3 + $0x8] sm:$0xff] %vm2047_vm5, %v2044_v30  ;;  %v2042_v29 = vpop.permute.xlu0 %2041 }
 0x714   : > { %2048 = vst.msk [vmem:[#allocation3] sm:$0xff] %vm2047_vm5, %v2042_v29 }
 0x716   : > { %v2869_v38 = vpop.permute.xlu1 %2868 }
 0x717   : > { %v2867_v45 = vpop.permute.xlu0 %2866 }
 0x71a   : > { %v2209_v26 = vpop.permute.xlu1 %2208 }
 0x71b   : > { %2214 = vst.msk [vmem:[#allocation3 + $0x8] sm:$0xff] %vm2212_vm6, %v2209_v26  ;;  %v2207_v25 = vpop.permute.xlu0 %2206 }
 0x71c   : > { %2213 = vst.msk [vmem:[#allocation3] sm:$0xff] %vm2212_vm6, %v2207_v25 }
 0x722   : > { %v2374_v17 = vpop.permute.xlu1 %2373 }
 0x723   : > { %2379 = vst.msk [vmem:[#allocation3 + $0x8] sm:$0xff] %vm2377_vm7, %v2374_v17  ;;  %v2372_v5 = vpop.permute.xlu0 %2371 }
 0x724   : > { %2378 = vst.msk [vmem:[#allocation3] sm:$0xff] %vm2377_vm7, %v2372_v5 }
 0x725   : > { %2544 = vst.msk [vmem:[#allocation3 + $0x8] sm:$0xff] %vm2542_vm8, %v2539_v13  ;;  %2543 = vst.msk [vmem:[#allocation3] sm:$0xff] %vm2542_vm8, %v2537_v58 }
 0x72a   : > { %v2704_v28 = vpop.permute.xlu1 %2703 }
 0x72b   : > { %2709 = vst.msk [vmem:[#allocation3 + $0x8] sm:$0xff] %vm2707_vm9, %v2704_v28  ;;  %v2702_v40 = vpop.permute.xlu0 %2701 }
 0x72c   : > { %2708 = vst.msk [vmem:[#allocation3] sm:$0xff] %vm2707_vm9, %v2702_v40 }
 0x72d   : > { %2874 = vst.msk [vmem:[#allocation3 + $0x8] sm:$0xff] %vm2872_vm10, %v2869_v38  ;;  %2873 = vst.msk [vmem:[#allocation3] sm:$0xff] %vm2872_vm10, %v2867_v45 }
 0x732   : > { %v3034_v4 = vpop.permute.xlu1 %3033 }
 0x733   : > { %3039 = vst.msk [vmem:[#allocation3 + $0x8] sm:$0xff] %vm3037_vm11, %v3034_v4  ;;  %v3032_v6 = vpop.permute.xlu0 %3031 }
 0x734   : > { %3038 = vst.msk [vmem:[#allocation3] sm:$0xff] %vm3037_vm11, %v3032_v6 }
 0x73a   : > { %v3041_v2 = vld [vmem:[#allocation3 + $0x8] sm:$0xff] }
 0x73b   : > { %v3040_v18 = vld [vmem:[#allocation3] sm:$0xff] }
 0x73c   : > { %3937 = vmatprep.mubr.msk.f32.mxu0 %vm622_vm1, %v3040_v18 }
 0x73d   : > { %3938 = vmatmul.mubr.msk.f32.vlgmr.msra.gmra.mrb[14].mxu0 %vm622_vm1, %v3041_v2 }
 0x810   : > { %v3939_v8 = vpop.f32.mrb[14].mxu0 }
 0x811   : > { %v3135_v7 = vadd.f32 %v3939_v8, %v3562_v32  ;;  %v3129_v15 = vpop.f32.mrb[15].mxu0 }
 0x812   : > { %v3130_v16 = vadd.f32 %v3562_v32, %v3129_v15 }
 0x813   : > { %3139 = vst.msk [vmem:[%s6947_s6 + $0x8] sm:$0xff] %vm622_vm1, %v3135_v7 }
 0x814   : > { %3138 = vst.msk [vmem:[%s6947_s6] sm:$0xff] %vm622_vm1, %v3130_v16 }
 0x815   : > { %4716 = shalt.err (!%p4713_p4)
}
 0x816   : > { %s4717_s29 = scalar_lea.hbm %s6384_s0, 256  ;;  %s4721_s10 = scalar_lea.hbm %s6951_s9, 1024 }
 0x817   : > { %p4718_p5 = scmp.ne.s32.totalorder %s6384_s0, %s4717_s29  ;;  %p4722_p7 = scmp.lt.u32.totalorder %s6384_s0, %s6951_s9 }
 0x818   : > { %p4723_p0 = scmp.lt.u32.totalorder %s4721_s10, %s4717_s29  ;;  %p4725_p8 = scmp.lt.u32.totalorder %s4717_s29, %s6384_s0 }
 0x819   : > { %p4719_p11 = pnand %p4718_p5, %p6952_p6 }
 0x81a   : > { %p4724_p9 = por %p4723_p0, %p4722_p7 }
 0x81b   : > { %p4720_p12 = pneg %p4719_p11 }
 0x81c   : > { %p4726_p10 = por %p4725_p8, %p4724_p9 }
 0x81e   : > { %p4727_p13 = pnand %p4726_p10, %p4720_p12 }
 0x820   : > { %4730 = shalt.err (!%p4727_p13)
}
 0x821   : > { %s4871_s25 = smov 128   ;;  %s3146_s6 = scalar_lea.sflag [#allocation18], %s6948_s11 }
 0x822   : > { %4178 = dma.vmem_to_hbm [thread:$0]  (%p6952_p6), %s6379_s14, 256, %s6384_s0, %s3141_s16, %s4871_s25, %s4871_s25, %s6939_s19  }
 0x823   : > { %s3571_s13 = sshll.u32 %s6946_s3, 5  ;;  %s3195_s22 = sshll.u32 %s6819_s5, 4  ;;  %s3196_s22 = int_to_ptr.vmem [resolvable:$true] %s3195_s22 }
 0x824   : > { %s3176_s17 = sadd.s32 %s3571_s13, %s3567_s12  ;;  %s6953_s19 = sld [smem:[#allocation111_spill]] }
 0x825   : > { %s3572_s23 = sshll.u32 %s3176_s17, 7  ;;  %s4872_s14 = smov 256  }
 0x826   : > { %4179 = sst [smem:[#allocation20]] (%p6952_p6), %s4872_s14  ;;  %s4873_s21 = smov 512  }
 0x827   : > { %4180 = sst [smem:[#allocation20 + $0x1]] (%p6952_p6), %s4873_s21  ;;  %s4874_s30 = smov 2  }
 0x828   : > { %4181 = sst [smem:[#allocation20 + $0x2]] (%p6952_p6), %s4874_s30  ;;  %s4875_s3 = smov 128  }
 0x829   : > { %4182 = sst [smem:[#allocation20 + $0x3]] (%p6952_p6), %s4875_s3  ;;  %s4876_s5 = smov 8  }
 0x82a   : > { %s3178_s11 = scalar_lea.hbm %s6953_s19, %s3572_s23  ;;  %4183 = sst [smem:[#allocation20 + $0x4]] (%p6952_p6), %s4875_s3 }
 0x82b   : > { %4184 = sst [smem:[#allocation20 + $0x5]] (%p6952_p6), %s4876_s5  ;;  %s4877_s20 = smov [#allocation19]  }
 0x82c   : > { %s4878_s12 = smov 0  }
 0x82d   : > { %4185 = dma.general (%p6952_p6), %s3196_s22, 2048, %s3178_s11, %s3146_s6, %s4877_s20, [#allocation20], %s4878_s12, 0  }
 0x82e PF: > { %s6954_s0 = sld [smem:[#allocation37_spill]]  ;;  %s6955_s16 = sld [smem:[#allocation28_spill]] }
 0x82f   : > { %s6956_s18 = sld [smem:[#allocation44_spill]] }
 0x834   : > { %p4226_p1 = scmp.ge.s32.totalorder %s6954_s0, 2  ;;  %s3223_s24 = sand.u32 1, %s6955_s16  }
 0x835   : > { %p6957_p2 = scmp.ne.s32.totalorder %s6956_s18, 0  ;;  %s3224_s4 = scalar_lea.sflag [#allocation6], %s3223_s24 }
 0x837   : > { %p4209_p3 = pnand %p4226_p1, %p6957_p2 }
 0x839   : > { %4796 = dma.done.wait (!%p4209_p3), %s3224_s4, 256  }
 0x83a   : > { %4798 = vsyncadd (!%p4209_p3), %s3224_s4, 4294967040  ;;  %s3233_s15 = scalar_lea.sflag [#allocation18], %s3223_s24 }
 0x83b   : > { %4800 = dma.done.wait (!%p4209_p3), %s3233_s15, 2048  }
 0x83c   : > { %4802 = vsyncadd (!%p4209_p3), %s3233_s15, 4294965248  ;;  %s34_s23 = sadd.s32 1, %s6954_s0   ;;  %s6958_s13 = sld [smem:[#allocation29_spill]] }
 0x83d   : > { %p31_p4 = scmp.ge.s32.totalorder %s34_s23, 6   ;;  %s6959_s14 = sld [smem:[#allocation30_spill]] }
 0x83e   : > { %s6960_s15 = sld [smem:[#allocation43_spill]]  ;;  %s6961_s16 = sld [smem:[#allocation31_spill]] }
 0x83f   : > { %s6962_s17 = sld [smem:[#allocation32_spill]]  ;;  %s6963_s18 = sld [smem:[#allocation42_spill]] }
 0x840   : > { %s6964_s19 = sld [smem:[#allocation35_spill]]  ;;  %s6965_s20 = sld [smem:[#allocation36_spill]] }
 0x841   : > { %s6966_s21 = sld [smem:[#allocation39_spill]]  ;;  %s6967_s22 = sld [smem:[#allocation40_spill]] }
 0x842   :  { %33 = sbr.rel (!%p31_p4) target bundleno = 27 (0x1b), region = 156 }
 0x849   :  { %3238 = vsyncpa [#allocation5], 1 }
 0x84a   :  { %3240 = vsyncpa [#allocation5 + $0x1], 1 }
 0x84b   :  { %3241 = vsyncpa [#allocation9], 1 }
 0x84c   :  { %3242 = vsyncpa [#allocation15], 1 }
 0x84d   :  { %3243 = vsyncpa [#allocation6], 1 }
 0x84e   :  { %3245 = vsyncpa [#allocation6 + $0x1], 1 }
 0x84f   :  { %3246 = vsyncpa [#allocation18], 1 }
 0x850   :  { %3248 = vsyncpa [#allocation18 + $0x1], 1 }
 0x851   :  { %3249 = vsyncpa [#allocation7], 1 }
 0x852   :  { %3251 = vsyncpa [#allocation7 + $0x1], 1 }
 0x853   :  { %3252 = vsyncpa [#allocation13], 1 }

// kernel: tpu_custom_call.1
= control target key start
LH: loop header
LB: loop body
LE: loop exit
PB: predicated region body
PF: predicated region fallthrough
CT: control target
= control target key end

     0   :  { %s6474_s0 = inlined_call_operand.hbm [shape: f32[2,32,64], index: 0, kind: input, shape index: {}]   ;;  %s6475_s1 = inlined_call_operand.hbm [shape: f32[64,64], index: 1, kind: input, shape index: {}]   ;;  %s6476_s2 = inlined_call_operand.vmem [shape: f32[1,64], index: 2, kind: input, shape index: {}]   ;;  %s6477_s3 = inlined_call_operand.hbm [shape: f32[64,128], index: 3, kind: input, shape index: {}]   ;;  %s6478_s4 = inlined_call_operand.vmem [shape: f32[1,128], index: 4, kind: input, shape index: {}]   ;;  %s6479_s5 = inlined_call_operand.vmem [shape: f32[8,8], index: 5, kind: input, shape index: {}]   ;;  %s6480_s6 = inlined_call_operand.vmem [shape: f32[8], index: 6, kind: input, shape index: {}]   ;;  %s6481_s7 = inlined_call_operand.hbm [shape: f32[64,64], index: 7, kind: input, shape index: {}]   ;;  %s6482_s8 = inlined_call_operand.vmem [shape: f32[1,64], index: 8, kind: input, shape index: {}]   ;;  %s6483_s9 = inlined_call_operand.hbm [shape: f32[2,32,64], index: 9, kind: output, shape index: {0}]   ;;  %s6484_s10 = inlined_call_operand.hbm [shape: f32[2,8,32,32], index: 10, kind: output, shape index: {1}]  }
   0x1   :  { %6646 = sst [smem:[#allocation101_spill]] %s6474_s0 }
   0x2   :  { %6647 = sst [smem:[#allocation102_spill]] %s6475_s1 }
   0x3   :  { %6648 = sst [smem:[#allocation103_spill]] %s6476_s2 }
   0x4   :  { %6649 = sst [smem:[#allocation104_spill]] %s6477_s3 }
   0x5   :  { %6650 = sst [smem:[#allocation105_spill]] %s6478_s4 }
   0x6   :  { %6651 = sst [smem:[#allocation106_spill]] %s6479_s5 }
   0x7   :  { %6652 = sst [smem:[#allocation107_spill]] %s6480_s6 }
   0x8   :  { %6653 = sst [smem:[#allocation108_spill]] %s6481_s7 }
   0x9   :  { %6654 = sst [smem:[#allocation109_spill]] %s6482_s8 }
   0xa   :  { %6655 = sst [smem:[#allocation110_spill]] %s6483_s9 }
   0xb   :  { %6656 = sst [smem:[#allocation111_spill]] %s6484_s10 }
   0xc   :  { %16 = vsyncpa [#allocation5], 0 }
   0xd   :  { %18 = vsyncpa [#allocation5 + $0x1], 0 }
   0xe   :  { %19 = vsyncpa [#allocation9], 0 }
   0xf   :  { %20 = vsyncpa [#allocation7], 0 }
  0x10   :  { %21 = vsyncpa [#allocation13], 0 }
  0x11   :  { %22 = vsyncpa [#allocation15], 0 }
  0x12   :  { %23 = vsyncpa [#allocation6], 0 }
  0x13   :  { %25 = vsyncpa [#allocation6 + $0x1], 0 }
  0x14   :  { %26 = vsyncpa [#allocation18], 0 }
  0x15   :  { %28 = vsyncpa [#allocation18 + $0x1], 0  ;;  %s4934_s13 = smov 0   ;;  %s4936_s14 = smov 0  }
  0x16   :  { %s4938_s15 = smov 0   ;;  %s4940_s16 = smov 0  }
  0x17   :  { %s4942_s17 = smov 0   ;;  %s4944_s18 = smov 0  }
  0x18   :  { %s4946_s19 = smov 0   ;;  %s4948_s20 = smov 0  }
  0x19   :  { %s4950_s21 = smov 0   ;;  %s4952_s22 = smov 0  }
  0x1a   :  { %s4954_s23 = smov 0  }
  0x1b LB: > { %6657 = sst [smem:[#allocation28_spill]] %s4805_s13  ;;  %s3383_s24 = sadd.s32 4294967295, %s4845_s23   ;;  %s4845_s23 = sphi %s4954_s23, %s34_s23   ;;  %s4841_s22 = sphi %s4952_s22, %s6967_s22   ;;  %s4837_s21 = sphi %s4950_s21, %s6966_s21   ;;  %s4833_s20 = sphi %s4948_s20, %s6965_s20   ;;  %s4829_s19 = sphi %s4946_s19, %s6964_s19   ;;  %s4825_s18 = sphi %s4944_s18, %s6963_s18   ;;  %s4821_s17 = sphi %s4942_s17, %s6962_s17   ;;  %s4817_s16 = sphi %s4940_s16, %s6961_s16   ;;  %s4813_s15 = sphi %s4938_s15, %s6960_s15   ;;  %s4809_s14 = sphi %s4936_s14, %s6959_s14   ;;  %s4805_s13 = sphi %s4934_s13, %s6958_s13  }
  0x1c   : > { %6658 = sst [smem:[#allocation29_spill]] %s4809_s14  ;;  %p3385_p0 = scmp.ge.s32.totalorder %s4845_s23, 1 }
  0x1d   : > { %6659 = sst [smem:[#allocation30_spill]] %s4813_s15  ;;  %p4991_p1 = scmp.eq.s32.totalorder %s3383_s24, 0 }
  0x1e   : > { %6660 = sst [smem:[#allocation31_spill]] %s4821_s17  ;;  %p4995_p2 = scmp.eq.s32.totalorder %s3383_s24, 3 }
  0x1f   : > { %6661 = sst [smem:[#allocation32_spill]] %s4825_s18  ;;  %p301_p3 = scmp.lt.s32.totalorder %s4845_s23, 5 }
  0x20   : > { %6662 = sst [smem:[#allocation33_spill]] %s4829_s19  ;;  %s4847_s28 = smov [#allocation8]  }
  0x21   : > { %6663 = sst [smem:[#allocation34_spill]] %s4833_s20  ;;  %p5000_p4 = pnand %p3385_p0, %p301_p3 }
  0x22   : > { %6664 = sst [smem:[#allocation35_spill]] %s4837_s21  ;;  %s313_s29 = sshll.u32 %s4847_s28, 4  ;;  %s5004_s29 = int_to_ptr.vmem [resolvable:$true] %s313_s29 }
  0x23   : > { %6665 = sst [smem:[#allocation36_spill]] %s4841_s22  ;;  %p4188_p5 = pneg %p5000_p4 }
  0x24   : > { %6666 = sst [smem:[#allocation37_spill]] %s4845_s23  ;;  %s6671_s5 = sld [smem:[#allocation106_spill]] }
  0x25   : > { %s6667_s25 = scalar_select %p4991_p1, 1, 0 }
  0x26   : > { %s6668_s26 = scalar_select %p4995_p2, 1, 0 }
  0x27   : > { %s6669_s27 = scalar_select %p5000_p4, 1, 0 }
  0x28   : > { %p5013_p6 = pnand %p4188_p5, %p4991_p1  ;;  %s4848_s10 = smov [#allocation10]  }
  0x29   : > { %6670 = sst [smem:[#allocation38_spill]] %s6669_s27  ;;  %s329_s9 = sshll.u32 %s4848_s10, 4  ;;  %s5017_s9 = int_to_ptr.vmem [resolvable:$true] %s329_s9 }
  0x2a   : > { %s346_s12 = sshll.u32 %s6671_s5, 4  ;;  %s6673_s1 = sld [smem:[#allocation102_spill]]  ;;  %s5019_s12 = int_to_ptr.vmem [resolvable:$true] %s346_s12 }
  0x2b   : > { %p5029_p8 = pneg %p5013_p6 }
  0x30   : > { %s4559_s20 = scalar_lea.hbm %s6673_s1, 1024 }
  0x31   : > { %p4560_p7 = scmp.ne.s32.totalorder %s6673_s1, %s4559_s20  ;;  %p4566_p11 = scmp.lt.u32.totalorder %s4559_s20, %s6673_s1 }
  0x33   : > { %p4562_p9 = pnand %p5029_p8, %p4560_p7 }
  0x35   : > { %p4563_p10 = pneg %p4562_p9 }
  0x37   : > { %p4568_p12 = pnand %p4566_p11, %p4563_p10 }
  0x39   : > { %4571 = shalt.err (!%p4568_p12)
}
  0x3a   : > { %s4572_s2 = scalar_lea.vmem %s5004_s29, 1024  ;;  %p4580_p5 = scmp.lt.s32.totalorder %s5004_s29, %s5004_s29 }
  0x3b   : > { %p4573_p13 = scmp.ne.s32.totalorder %s5004_s29, %s4572_s2  ;;  %p4581_p4 = scmp.lt.s32.totalorder %s4572_s2, %s4572_s2 }
  0x3d   : > { %p4575_p0 = pnand %p4573_p13, %p5029_p8  ;;  %p4582_p7 = por %p4581_p4, %p4580_p5 }
  0x3f   : > { %p4576_p3 = pneg %p4575_p0 }
  0x41   : > { %p4583_p9 = pnand %p4582_p7, %p4576_p3 }
  0x43   : > { %4586 = shalt.err (!%p4583_p9)
}
  0x44   : > { %s6493_s4 = smov 128   ;;  %s6494_s8 = smov 8  }
  0x45   : > { %4191 = dma.hbm_to_vmem [thread:$0]  (!%p5013_p6), %s6673_s1, 1024, %s5004_s29, [#allocation9], %s6493_s4, %s6493_s4, %s6494_s8  }
  0x46   : > { %s6675_s3 = sld [smem:[#allocation104_spill]] }
  0x4c   : > { %s4587_s2 = scalar_lea.hbm %s6675_s3, 1024 }
  0x4d   : > { %p4588_p4 = scmp.ne.s32.totalorder %s6675_s3, %s4587_s2  ;;  %p4594_p12 = scmp.lt.u32.totalorder %s4587_s2, %s6675_s3 }
  0x4f   : > { %p4590_p10 = pnand %p4588_p4, %p5029_p8 }
  0x51   : > { %p4591_p11 = pneg %p4590_p10 }
  0x53   : > { %p4596_p13 = pnand %p4594_p12, %p4591_p11 }
  0x55   : > { %4599 = shalt.err (!%p4596_p13)
}
  0x56   : > { %s4600_s29 = scalar_lea.vmem %s5017_s9, 1024  ;;  %p4608_p7 = scmp.lt.s32.totalorder %s5017_s9, %s5017_s9 }
  0x57   : > { %p4601_p0 = scmp.ne.s32.totalorder %s5017_s9, %s4600_s29  ;;  %p4609_p9 = scmp.lt.s32.totalorder %s4600_s29, %s4600_s29 }
  0x59   : > { %p4603_p3 = pnand %p4601_p0, %p5029_p8  ;;  %p4610_p4 = por %p4609_p9, %p4608_p7 }
  0x5b   : > { %p4604_p5 = pneg %p4603_p3 }
  0x5d   : > { %p4611_p10 = pnand %p4610_p4, %p4604_p5 }
  0x5f   : > { %4614 = shalt.err (!%p4611_p10)
}
  0x60   : > { %4194 = dma.hbm_to_vmem [thread:$0]  (!%p5013_p6), %s6675_s3, 1024, %s5017_s9, [#allocation9], %s6493_s4, %s6493_s4, %s6494_s8  }
  0x61   : > { %s4615_s19 = scalar_lea.vmem %s5019_s12, 128  ;;  %p4623_p0 = scmp.lt.s32.totalorder %s5019_s12, %s5019_s12 }
  0x62   : > { %p4616_p11 = scmp.ne.s32.totalorder %s5019_s12, %s4615_s19  ;;  %p4624_p3 = scmp.lt.s32.totalorder %s4615_s19, %s4615_s19 }
  0x64   : > { %p4618_p12 = pnand %p4616_p11, %p5029_p8  ;;  %p4625_p5 = por %p4624_p3, %p4623_p0 }
  0x66   : > { %p4619_p13 = pneg %p4618_p12 }
  0x68   : > { %p4626_p7 = pnand %p4625_p5, %p4619_p13 }
  0x6a   : > { %4629 = shalt.err (!%p4626_p7)
}
  0x6b   : > { %s4851_s27 = smov [#allocation11]   ;;  %s6676_s6 = sld [smem:[#allocation107_spill]] }
  0x6c   : > { %4197 = dma.vmem_to_smem (!%p5013_p6), %s5019_s12, 128, %s4851_s27, [#allocation7]  }
  0x71   : > { %s357_s9 = sshll.u32 %s6676_s6, 4  ;;  %s358_s9 = int_to_ptr.vmem [resolvable:$true] %s357_s9 }
  0x72   : > { %s4630_s10 = scalar_lea.vmem %s358_s9, 16  ;;  %p4638_p11 = scmp.lt.s32.totalorder %s358_s9, %s358_s9 }
  0x73   : > { %p4631_p9 = scmp.ne.s32.totalorder %s358_s9, %s4630_s10  ;;  %p4639_p12 = scmp.lt.s32.totalorder %s4630_s10, %s4630_s10 }
  0x75   : > { %p4633_p4 = pnand %p4631_p9, %p5029_p8  ;;  %p4640_p13 = por %p4639_p12, %p4638_p11 }
  0x77   : > { %p4634_p10 = pneg %p4633_p4 }
  0x79   : > { %p4641_p0 = pnand %p4640_p13, %p4634_p10 }
  0x7b   : > { %4644 = shalt.err (!%p4641_p0)
}
  0x7c   : > { %s4852_s11 = smov [#allocation12]   ;;  %s4853_s12 = smov [#allocation14]  }
  0x7d   : > { %4200 = dma.vmem_to_smem (!%p5013_p6), %s358_s9, 16, %s4852_s11, [#allocation13]  }
  0x7e   : > { %s367_s2 = sshll.u32 %s4853_s12, 4  ;;  %s6677_s7 = sld [smem:[#allocation108_spill]]  ;;  %s368_s2 = int_to_ptr.vmem [resolvable:$true] %s367_s2 }
  0x84   : > { %s4645_s5 = scalar_lea.hbm %s6677_s7, 1024 }
  0x85   : > { %p4646_p3 = scmp.ne.s32.totalorder %s6677_s7, %s4645_s5  ;;  %p4652_p9 = scmp.lt.u32.totalorder %s4645_s5, %s6677_s7 }
  0x87   : > { %p4648_p5 = pnand %p4646_p3, %p5029_p8 }
  0x89   : > { %p4649_p7 = pneg %p4648_p5 }
  0x8b   : > { %p4654_p4 = pnand %p4652_p9, %p4649_p7 }
  0x8d   : > { %4657 = shalt.err (!%p4654_p4)
}
  0x8e   : > { %s4658_s9 = scalar_lea.vmem %s368_s2, 1024  ;;  %p4666_p13 = scmp.lt.s32.totalorder %s368_s2, %s368_s2 }
  0x8f   : > { %p4659_p10 = scmp.ne.s32.totalorder %s368_s2, %s4658_s9  ;;  %p4667_p0 = scmp.lt.s32.totalorder %s4658_s9, %s4658_s9 }
  0x91   : > { %p4661_p11 = pnand %p4659_p10, %p5029_p8  ;;  %p4668_p2 = por %p4667_p0, %p4666_p13 }
  0x93   : > { %p4662_p12 = pneg %p4661_p11 }
  0x95   : > { %p4669_p1 = pnand %p4668_p2, %p4662_p12 }
  0x97   : > { %4672 = shalt.err (!%p4669_p1)
}
  0x98   : > { %4203 = dma.hbm_to_vmem [thread:$0]  (!%p5013_p6), %s6677_s7, 1024, %s368_s2, [#allocation15], %s6493_s4, %s6493_s4, %s6494_s8  }
  0x99   : > { %s3384_s24 = sadd.s32 4294967294, %s4845_s23   ;;  %s43_s30 = sadd.s32 1, %s4837_s21 }
  0x9a   : > { %p44_p1 = scmp.ge.s32.totalorder %s43_s30, 2  ;;  %s46_s12 = sadd.s32 1, %s4841_s22 }
  0x9b   : > { %s53_s29 = sadd.s32 1, %s4825_s18  ;;  %p60_p2 = scmp.ne.s32.totalorder %s4825_s18, %s4821_s17 }
  0x9c   : > { %s6969_s30 = smov (%p44_p1, %s43_s30), 0  ;;  %s6971_s12 = smov (!%p44_p1, %s46_s12), %s4841_s22 }
  0x9d   : > { %6678 = sst [smem:[#allocation39_spill]] %s6969_s30  ;;  %p61_p8 = scmp.eq.s32.totalorder %s4845_s23, 0 }
  0x9e   : > { %p66_p6 = scmp.ne.s32.totalorder %s4821_s17, %s4817_s16  ;;  %p48_p3 = scmp.ge.s32.totalorder %s6971_s12, 2 }
  0x9f   : > { %s245_s2 = ssub.s32 %s4837_s21, %s6969_s30  ;;  %p5130_p5 = por %p61_p8, %p60_p2 }
  0xa0   : > { %p6680_p7 = scmp.ne.s32.totalorder %s6667_s25, 0  ;;  %s6973_s12 = smov (%p48_p3, %s6971_s12), 0 }
  0xa1   : > { %6682 = sst [smem:[#allocation40_spill]] %s6973_s12  ;;  %s249_s19 = sadd.s32 1, %s4813_s15 }
  0xa2   : > { %p5136_p9 = por %p6680_p7, %p66_p6  ;;  %p259_p4 = scmp.ne.s32.totalorder %s4813_s15, %s4809_s14 }
  0xa3   : > { %s50_s16 = ssub.s32 %s4841_s22, %s6973_s12  ;;  %p265_p10 = scmp.ne.s32.totalorder %s4809_s14, %s4805_s13 }
  0xa4   : > { %p51_p11 = scmp.eq.s32.totalorder %s50_s16, 0  ;;  %s246_s27 = sor.u32 %s245_s2, %s50_s16 }
  0xa5   : > { %p247_p12 = scmp.eq.s32.totalorder %s246_s27, 0  ;;  %p6683_p13 = scmp.ne.s32.totalorder %s6668_s26, 0 }
  0xa6   : > { %s5156_s28 = scalar_select %p51_p11, %s4825_s18, %s53_s29  }
  0xa7   : > { %p5151_p0 = por %p6683_p13, %p259_p4  ;;  %p266_p1 = scmp.eq.s32.totalorder %s3384_s24, 3 }
  0xa8   : > { %6686 = sst [smem:[#allocation42_spill]] %s5156_s28  ;;  %p4220_p2 = scmp.lt.s32.totalorder %s4845_s23, 4 }
  0xa9   : > { %s6684_s20 = scalar_select %p5151_p0, 1, 0 }
  0xaa   : > { %s5159_s9 = scalar_select %p247_p12, %s4813_s15, %s249_s19  }
  0xab   : > { %6685 = sst [smem:[#allocation41_spill]] %s6684_s20  ;;  %s384_s10 = sand.u32 1, %s4825_s18  }
  0xac   : > { %6687 = sst [smem:[#allocation43_spill]] %s5159_s9  ;;  %s3575_s11 = sshll.u32 %s4841_s22, 9 }
  0xad   : > { %p5164_p8 = por %p266_p1, %p265_p10  ;;  %s3392_s8 = sshll.u32 %s384_s10, 5 }
  0xae   : > { %s6690_s26 = sld [smem:[#allocation101_spill]]  ;;  %p5175_p6 = pnand %p4220_p2, %p5130_p5 }
  0xaf   : > { %s6688_s4 = scalar_select %p5164_p8, 1, 0 }
  0xb0   : > { %s388_s29 = scalar_lea.vmem [#allocation4], %s3392_s8  ;;  %s5181_s1 = scalar_lea.sflag [#allocation5], %s384_s10 }
  0xb1   : > { %6689 = sst [smem:[#allocation44_spill]] %s6688_s4  ;;  %s395_s19 = sshll.u32 %s388_s29, 4  ;;  %s5179_s19 = int_to_ptr.vmem [resolvable:$true] %s395_s19 }
  0xb2   : > { %p4675_p7 = pneg %p5175_p6 }
  0xb4   : > { %s5171_s27 = scalar_lea.hbm %s6690_s26, %s3575_s11  ;;  %s4678_s16 = scalar_lea.hbm %s6690_s26, 1024 }
  0xb5   : > { %s4673_s2 = scalar_lea.hbm %s5171_s27, 512  ;;  %p4679_p5 = scmp.lt.u32.totalorder %s5171_s27, %s6690_s26 }
  0xb6   : > { %p4674_p3 = scmp.ne.s32.totalorder %s5171_s27, %s4673_s2  ;;  %p4680_p11 = scmp.lt.u32.totalorder %s4678_s16, %s4673_s2 }
  0xb7   : > { %p4682_p13 = scmp.lt.u32.totalorder %s4673_s2, %s5171_s27 }
  0xb8   : > { %p4676_p4 = pnand %p4675_p7, %p4674_p3  ;;  %p4681_p12 = por %p4680_p11, %p4679_p5 }
  0xba   : > { %p4677_p10 = pneg %p4676_p4  ;;  %p4683_p1 = por %p4682_p13, %p4681_p12 }
  0xbc   : > { %p4684_p2 = pnand %p4683_p1, %p4677_p10 }
  0xbe   : > { %4687 = shalt.err (!%p4684_p2)
}
  0xbf   : > { %s4688_s8 = scalar_lea.vmem %s5179_s19, 512  ;;  %s4854_s10 = smov [#allocation4]  }
  0xc0   : > { %p4689_p3 = scmp.ne.s32.totalorder %s5179_s19, %s4688_s8  ;;  %s4693_s29 = sshll.u32 %s4854_s10, 4  ;;  %s4694_s29 = int_to_ptr.vmem [resolvable:$false] %s4693_s29 }
  0xc1   : > { %s4695_s3 = scalar_lea.vmem %s4694_s29, 1024  ;;  %p4696_p0 = scmp.lt.s32.totalorder %s5179_s19, %s4694_s29 }
  0xc2   : > { %p4691_p4 = pnand %p4689_p3, %p4675_p7  ;;  %p4697_p5 = scmp.lt.s32.totalorder %s4695_s3, %s4688_s8 }
  0xc4   : > { %p4692_p8 = pneg %p4691_p4  ;;  %p4698_p11 = por %p4697_p5, %p4696_p0 }
  0xc6   : > { %p4699_p12 = pnand %p4698_p11, %p4692_p8 }
  0xc8   : > { %4702 = shalt.err (!%p4699_p12)
}
  0xc9   : > { %s6692_s6 = smov 8   ;;  %s6693_s2 = smov 128  }
  0xca   : > { %4207 = dma.hbm_to_vmem [thread:$0]  (!%p5175_p6), %s5171_s27, 512, %s5179_s19, %s5181_s1, %s6693_s2, %s6693_s2, %s6692_s6  }
  0xcb   : > { %s6694_s0 = sld [smem:[#allocation38_spill]] }
  0xd1   : > { %p6695_p7 = scmp.ne.s32.totalorder %s6694_s0, 0 }
  0xd3   : > { %407 = sbr.rel (%p6695_p7) target bundleno = 2094 (0x82e), region = 56 }
  0xda   : > { %s409_s11 = sand.u32 1, %s4821_s17  }
  0xdb   : > { %s3396_s16 = sshll.u32 %s409_s11, 5  ;;  %s410_s8 = scalar_lea.sflag [#allocation5], %s409_s11 }
  0xdc   : > { %s5215_s10 = scalar_lea.vmem [#allocation4], %s3396_s16 }
  0xdd   : > { %4776 = dma.done.wait (%p5136_p9), %s410_s8, 512  }
  0xde   : > { %4778 = vsyncadd (%p5136_p9), %s410_s8, 4294966784  ;;  %p6696_p0 = scmp.ne.s32.totalorder %s6667_s25, 0 }
  0xe0   : > { %4780 = dma.done.wait (%p6696_p0), [#allocation9], 2048  }
  0xe1   : > { %4782 = vsyncadd (%p6696_p0), [#allocation9], 4294965248 }
  0xe2   : > { %4784 = dma.done.wait (%p6696_p0), [#allocation7], 128  }
  0xe3   : > { %4786 = vsyncadd (%p6696_p0), [#allocation7], 4294967168 }
  0xe4   : > { %4788 = dma.done.wait (%p6696_p0), [#allocation13], 16  }
  0xe5   : > { %4790 = vsyncadd (%p6696_p0), [#allocation13], 4294967280 }
  0xe6   : > { %4792 = dma.done.wait (%p6696_p0), [#allocation15], 1024  }
  0xe7   : > { %4794 = vsyncadd (%p6696_p0), [#allocation15], 4294966272 }
  0xe8   : > { %438 = sfence }
  0xe9   : > { %s5238_s1 = sand.u32 1, %s4809_s14   ;;  %s6700_s29 = sld [smem:[#allocation33_spill]] }
  0xea   : > { %6697 = sst [smem:[#allocation45_spill]] %s5238_s1  ;;  %s3402_s5 = sshll.u32 %s5238_s1, 4 }
  0xeb   : > { %s3403_s27 = sshll.u32 %s5238_s1, 7  ;;  %s5242_s24 = scalar_lea.vmem [#allocation16], %s3402_s5 }
  0xec   : > { %6698 = sst [smem:[#allocation46_spill]] %s5242_s24  ;;  %s5244_s19 = scalar_lea.vmem [#allocation17], %s3403_s27 }
  0xed   : > { %6699 = sst [smem:[#allocation47_spill]] %s5244_s19 }
  0xef   : > { %p3404_p9 = scmp.ne.s32.totalorder %s6700_s29, 0 }
  0xf0   : > { %v486_v0 = vld [vmem:[#allocation10] sm:$0xff] (!%p3404_p9)  ;;  %v487_v1 = vld [vmem:[#allocation10 + $0x8] sm:$0xff] (!%p3404_p9)  ;;  %v488_v2 = vld [vmem:[#allocation10 + $0x10] sm:$0xff] (!%p3404_p9)  ;;  %vm501_vm0 = vcmask (!%p3404_p9), 523264   ;;  %s6701_s6 = sld [smem:[#allocation105_spill]] (!%p3404_p9) }
  0xf1   : > { %481 = sbr.rel (%p3404_p9) target bundleno = 475 (0x1db), region = 84  ;;  %v3940_v3 = vpack.c.bf16 (!%p3404_p9), %v487_v1, %v486_v0  ;;  %v489_v4 = vld [vmem:[#allocation10 + $0x18] sm:$0xff] (!%p3404_p9)  ;;  %v490_v6 = vld [vmem:[#allocation10 + $0x20] sm:$0xff] (!%p3404_p9)  ;;  %v491_v7 = vld [vmem:[#allocation10 + $0x28] sm:$0xff] (!%p3404_p9) }
  0xf2   : > { %v3944_v5 = vpack.c.bf16 (!%p3404_p9), %v489_v4, %v488_v2  ;;  %v482_v8 = vld [vmem:[%s5215_s10] sm:$0xff] (!%p3404_p9)  ;;  %v484_v9 = vld [vmem:[%s5215_s10 + $0x10] sm:$0xff] (!%p3404_p9)  ;;  %v3948_v10 = vpack.c.bf16 (!%p3404_p9), %v491_v7, %v490_v6  ;;  %v493_v12 = vld [vmem:[#allocation10 + $0x38] sm:$0xff] (!%p3404_p9) }
  0xf3   : > { %3941 = vmatprep.subr.bf16.mxu0 (!%p3404_p9), %v3940_v3  ;;  %4148 = vmatprep.subr.bf16.mxu1 (!%p3404_p9), %v3940_v3  ;;  %v492_v11 = vld [vmem:[#allocation10 + $0x30] sm:$0xff] (!%p3404_p9)  ;;  %v483_v14 = vld [vmem:[%s5215_s10 + $0x8] sm:$0xff] (!%p3404_p9)  ;;  %v485_v15 = vld [vmem:[%s5215_s10 + $0x18] sm:$0xff] (!%p3404_p9) }
  0xf4   : > { %3943 = vmatpush3.bf16.msra.mxu0 (!%p3404_p9), %v3940_v3  ;;  %4152 = vmatpush3.bf16.msra.mxu1 (!%p3404_p9), %v3940_v3  ;;  %v3952_v13 = vpack.c.bf16 (!%p3404_p9), %v493_v12, %v492_v11 }
  0xf5   : > { %3945 = vmatprep.subr.bf16.mxu0 (!%p3404_p9), %v3944_v5  ;;  %4149 = vmatprep.subr.bf16.mxu1 (!%p3404_p9), %v3944_v5 }
  0xf6   : > { %3720 = vmatprep.mubr.msk.f32.mxu0 (!%p3404_p9), %vm501_vm0, %v482_v8  ;;  %3723 = vmatprep.mubr.msk.f32.mxu1 (!%p3404_p9), %vm501_vm0, %v484_v9  ;;  %v3405_v16 = vld [vmem:[%s6701_s6] ss:$0 sm:$0xff] (!%p3404_p9) }
  0xf8   : > { %3947 = vmatpush3.bf16.msra.mxu0 %v3944_v5  ;;  %4153 = vmatpush3.bf16.msra.mxu1 %v3944_v5 }
  0xf9   : > { %3949 = vmatprep.subr.bf16.mxu0 %v3948_v10  ;;  %4150 = vmatprep.subr.bf16.mxu1 %v3948_v10 }
  0xfc   : > { %3951 = vmatpush3.bf16.msra.mxu0 %v3948_v10  ;;  %4154 = vmatpush3.bf16.msra.mxu1 %v3948_v10 }
  0xfd   : > { %3953 = vmatprep.subr.bf16.mxu0 %v3952_v13  ;;  %4151 = vmatprep.subr.bf16.mxu1 %v3952_v13 }
 0x100   : > { %3955 = vmatpush3.bf16.msra.mxu0 %v3952_v13  ;;  %4155 = vmatpush3.bf16.msra.mxu1 %v3952_v13 }
 0x103   : > { %3721 = vmatmul.mubr.msk.f32.vlgmr.msra.gmra.mrb[0].mxu0 %vm501_vm0, %v483_v14  ;;  %3724 = vmatmul.mubr.msk.f32.vlgmr.msra.gmra.mrb[0].mxu1 %vm501_vm0, %v485_v15 }
 0x1d6   : > { %v3722_v17 = vpop.f32.mrb[0].mxu0  ;;  %v3725_v18 = vpop.f32.mrb[0].mxu1 }
 0x1d7   : > { %v586_v19 = vadd.f32 %v3722_v17, %v3405_v16  ;;  %v596_v20 = vadd.f32 %v3725_v18, %v3405_v16  ;;  %v580_v21 = vpop.f32.mrb[1].mxu0  ;;  %v590_v22 = vpop.f32.mrb[1].mxu1 }
 0x1d8   : > { %v581_v23 = vadd.f32 %v3405_v16, %v580_v21  ;;  %v591_v24 = vadd.f32 %v3405_v16, %v590_v22 }
 0x1d9   : > { %600 = vst [vmem:[#allocation2 + $0x8] sm:$0xff] %v586_v19  ;;  %602 = vst [vmem:[#allocation2 + $0x18] sm:$0xff] %v596_v20 }
 0x1da   : > { %599 = vst [vmem:[#allocation2] sm:$0xff] %v581_v23  ;;  %601 = vst [vmem:[#allocation2 + $0x10] sm:$0xff] %v591_v24 }
 0x1db PF: > { %v607_v25 = vld [vmem:[#allocation8] sm:$0xff]  ;;  %s6702_s2 = sld [smem:[#allocation33_spill]]  ;;  %v608_v26 = vld [vmem:[#allocation8 + $0x8] sm:$0xff]  ;;  %v609_v27 = vld [vmem:[#allocation8 + $0x10] sm:$0xff]  ;;  %vm622_vm1 = vcmask 523264   ;;  %vm710_vm2 = vcmask 64512  }
 0x1dc   : > { %v3956_v28 = vpack.c.bf16 %v608_v26, %v607_v25  ;;  %v610_v29 = vld [vmem:[#allocation8 + $0x18] sm:$0xff]  ;;  %v611_v31 = vld [vmem:[#allocation8 + $0x20] sm:$0xff]  ;;  %v612_v32 = vld [vmem:[#allocation8 + $0x28] sm:$0xff]  ;;  %s4855_s16 = smov 120   ;;  %s4856_s8 = smov 112   ;;  %vm804_vm4 = vcmask 261120  }
 0x1dd   : > { %v3960_v30 = vpack.c.bf16 %v610_v29, %v609_v27  ;;  %vm5268_vm3 = vmpackc.low %vm710_vm2, %vm710_vm2  ;;  %v3964_v41 = vpack.c.bf16 %v612_v32, %v611_v31  ;;  %v613_v43 = vld [vmem:[#allocation8 + $0x30] sm:$0xff]  ;;  %v614_v44 = vld [vmem:[#allocation8 + $0x38] sm:$0xff]  ;;  %s6705_s29 = sld [smem:[#allocation103_spill]]  ;;  %s4858_s25 = smov 96   ;;  %vm2047_vm5 = vcmask 130112   ;;  %vm2212_vm6 = vcmask 195712  }
 0x1de   : > { %3957 = vmatprep.subr.bf16.mxu0 %v3956_v28  ;;  %v3968_v46 = vpack.c.bf16 %v614_v44, %v613_v43  ;;  %s4859_s3 = smov 88   ;;  %s4860_s6 = smov 80   ;;  %vm2377_vm7 = vcmask 261312   ;;  %vm2542_vm8 = vcmask 326912   ;;  %vm2707_vm9 = vcmask 392512  }
 0x1df   : > { %3959 = vmatpush3.bf16.msra.mxu0 %v3956_v28  ;;  %s6508_s5 = smov 32   ;;  %s6502_s27 = smov 16   ;;  %vm2872_vm10 = vcmask 458112   ;;  %vm3037_vm11 = vcmask 523712  }
 0x1e0   : > { %v828_v35 = vld [vmem:[#allocation2 + $0x8] sm:$0xff]  ;;  %v830_v40 = vld [vmem:[#allocation2 + $0x18] sm:$0xff]  ;;  %3961 = vmatprep.subr.bf16.mxu0 %v3960_v30  ;;  %s5573_s7 = sld [smem:[#allocation11 + $0x301]]  ;;  %s5577_s12 = sld [smem:[#allocation11 + $0x2]] }
 0x1e1   : > { %s3410_s0 = sshll.u32 %s6702_s2, 4  ;;  %v827_v34 = vld [vmem:[#allocation2] sm:$0xff]  ;;  %v829_v39 = vld [vmem:[#allocation2 + $0x10] sm:$0xff]  ;;  %s5575_s26 = sld [smem:[#allocation11 + $0x101]] }
 0x1e2   : > { %s5260_s11 = scalar_lea.vmem %s5215_s10, %s3410_s0 [#allocation4]  ;;  %v5264_v36 = vpack.i.bf16 %v828_v35, %v827_v34  ;;  %v3972_v37 = vpack.c.bf16 %v828_v35, %v827_v34  ;;  %v3978_v42 = vpack.c.bf16 %v830_v40, %v829_v39  ;;  %v5276_v45 = vpack.i.bf16 %v830_v40, %v829_v39  ;;  %s4857_s10 = smov 104  }
 0x1e3   : > { %v605_v33 = vld [vmem:[%s5260_s11] sm:$0xff]  ;;  %3963 = vmatpush3.bf16.msra.mxu0 %v3960_v30  ;;  %v606_v47 = vld [vmem:[%s5260_s11 + $0x8] sm:$0xff]  ;;  %s4861_s0 = smov 72   ;;  %s4862_s11 = smov 64  }
 0x1e4   : > { %3742 = vmatprep.mubr.msk.f32.mxu0 %vm622_vm1, %v605_v33  ;;  %4346 = vrot.lane.b32.xlu0 %v5264_v36, %s4855_s16  ;;  %v3411_v0 = vld [vmem:[%s6705_s29] ss:$0 sm:$0xff]  ;;  %s6500_s29 = smov 24   ;;  %s5579_s30 = sld [smem:[#allocation11 + $0x181]] }
 0x1e5   : > { %3974 = vmatprep.subr.msk.bf16.mxu1 %vm5268_vm3, %v3972_v37  ;;  %4356 = vrot.lane.b32.xlu1 %v5264_v36, %s4856_s8  ;;  %s5581_s22 = sld [smem:[#allocation11 + $0x202]]  ;;  %s5589_s17 = sld [smem:[#allocation11 + $0x3]] }
 0x1e6   : > { %3977 = vmatpush3.bf16.xpose.msk.msra.mxu1 %vm5268_vm3, %v3972_v37  ;;  %3965 = vmatprep.subr.bf16.mxu0 %v3964_v41  ;;  %6717 = sst [smem:[#allocation59_spill]] %s5573_s7  ;;  %s5583_s21 = sld [smem:[#allocation11 + $0x82]] }
 0x1e7   : > { %3980 = vmatprep.subr.msk.bf16.mxu1 %vm5268_vm3, %v3978_v42  ;;  %3967 = vmatpush3.bf16.msra.mxu0 %v3964_v41  ;;  %6718 = sst [smem:[#allocation60_spill]] %s5575_s26  ;;  %s5585_s28 = sld [smem:[#allocation11 + $0x302]] }
 0x1e8   : > { %4351 = vrot.lane.b32.xlu0 %v5276_v45, %s4855_s16  ;;  %3969 = vmatprep.subr.bf16.mxu0 %v3968_v46  ;;  %6719 = sst [smem:[#allocation61_spill]] %s5577_s12  ;;  %s5587_s18 = sld [smem:[#allocation11 + $0x102]] }
 0x1e9   : > { %4361 = vrot.lane.b32.xlu1 %v5264_v36, %s4857_s10  ;;  %s5591_s9 = sld [smem:[#allocation11 + $0x281]]  ;;  %s5594_s15 = sld [smem:[#allocation11 + $0x203]] }
 0x1ea   : > { %6720 = sst [smem:[#allocation62_spill]] %s5579_s30  ;;  %s5596_s14 = sld [smem:[#allocation11 + $0x83]] }
 0x1eb   : > { %3971 = vmatpush3.bf16.msra.mxu0 %v3968_v46  ;;  %6721 = sst [smem:[#allocation63_spill]] %s5581_s22  ;;  %s5604_s23 = sld [smem:[#allocation11 + $0x4]] }
 0x1ec   : > { %6722 = sst [smem:[#allocation64_spill]] %s5583_s21  ;;  %s5600_s4 = sld [smem:[#allocation11 + $0x303]] }
 0x1ed   : > { %6723 = sst [smem:[#allocation65_spill]] %s5585_s28  ;;  %s5602_s13 = sld [smem:[#allocation11 + $0x103]] }
 0x1ee   : > { %3983 = vmatpush3.bf16.xpose.msk.msra.mxu1 %vm5268_vm3, %v3978_v42  ;;  %3743 = vmatmul.mubr.msk.f32.vlgmr.msra.gmra.mrb[0].mxu0 %vm622_vm1, %v606_v47  ;;  %6724 = sst [smem:[#allocation66_spill]] %s5587_s18  ;;  %s5606_s20 = sld [smem:[#allocation11 + $0x182]] }
 0x1ef   : > { %6725 = sst [smem:[#allocation67_spill]] %s5589_s17  ;;  %s5608_s1 = sld [smem:[#allocation11 + $0x204]] }
 0x1f0   : > { %6726 = sst [smem:[#allocation68_spill]] %s5591_s9  ;;  %s5610_s24 = sld [smem:[#allocation11 + $0x84]] }
 0x1f1   : > { %6727 = sst [smem:[#allocation69_spill]] %s5594_s15  ;;  %s5612_s2 = sld [smem:[#allocation11 + $0x5]] }
 0x1f2   : > { %6728 = sst [smem:[#allocation70_spill]] %s5596_s14  ;;  %s5614_s19 = sld [smem:[#allocation11 + $0x304]] }
 0x1f3   : > { %6729 = sst [smem:[#allocation71_spill]] %s5600_s4  ;;  %s5616_s4 = sld [smem:[#allocation11 + $0x205]] }
 0x1f4   : > { %6730 = sst [smem:[#allocation72_spill]] %s5602_s13  ;;  %s5618_s13 = sld [smem:[#allocation11 + $0x85]] }
 0x1f5   : > { %6731 = sst [smem:[#allocation73_spill]] %s5604_s23  ;;  %s5621_s23 = sld [smem:[#allocation11 + $0x104]] }
 0x1f6   : > { %6732 = sst [smem:[#allocation74_spill]] %s5606_s20 }
 0x1f7   : > { %6733 = sst [smem:[#allocation75_spill]] %s5608_s1  ;;  %s5623_s1 = sld [smem:[#allocation11 + $0x183]] }
 0x1f8   : > { %6734 = sst [smem:[#allocation76_spill]] %s5612_s2  ;;  %s5644_s2 = sld [smem:[#allocation11 + $0x206]] }
 0x1f9   : > { %6735 = sst [smem:[#allocation77_spill]] %s5614_s19 }
 0x1fa   : > { %6736 = sst [smem:[#allocation78_spill]] %s5616_s4  ;;  %s5633_s4 = sld [smem:[#allocation11 + $0x381]] }
 0x1fb   : > { %6737 = sst [smem:[#allocation79_spill]] %s5618_s13  ;;  %s5630_s13 = sld [smem:[#allocation11 + $0x305]] }
 0x1fc   : > { %6738 = sst [smem:[#allocation80_spill]] %s5621_s23  ;;  %s5636_s23 = sld [smem:[#allocation11 + $0x6]] }
 0x1fd   : > { %6739 = sst [smem:[#allocation81_spill]] %s5623_s1 }
 0x1fe   : > { %s5638_s1 = sld [smem:[#allocation11 + $0x105]]  ;;  %6744 = sst [smem:[#allocation86_spill]] %s5644_s2 }
 0x200   : > { %6741 = sst [smem:[#allocation83_spill]] %s5633_s4 }
 0x201   : > { %6740 = sst [smem:[#allocation82_spill]] %s5630_s13 }
 0x202   : > { %6742 = sst [smem:[#allocation84_spill]] %s5636_s23  ;;  %s5647_s13 = sld [smem:[#allocation11 + $0x86]] }
 0x203   : > { %s6886_s4 = sld [smem:[#allocation82_spill]] }
 0x204   : > { %6743 = sst [smem:[#allocation85_spill]] %s5638_s1  ;;  %s6777_s1 = sld [smem:[#allocation60_spill]] }
 0x208   : > { %6745 = sst [smem:[#allocation87_spill]] %s5647_s13 }
 0x256   : > { %v4347_v48 = vpop.permute.xlu0 %4346 }
 0x257   : > { %v4357_v49 = vpop.permute.xlu1 %4356  ;;  %v4349_v50 = vunpack.i.h.bf16 %v4347_v48  ;;  %v4348_v51 = vunpack.i.l.bf16 %v4347_v48 }
 0x258   : > { %v4359_v52 = vunpack.i.h.bf16 %v4357_v49  ;;  %v4358_v53 = vunpack.i.l.bf16 %v4357_v49 }
 0x259   : > { %v3984_v54 = vpack.c.bf16 %v4349_v50, %v4348_v51 }
 0x25a   : > { %v3996_v55 = vpack.c.bf16 %v4359_v52, %v4358_v53  ;;  %v4352_v56 = vpop.permute.xlu0 %4351 }
 0x25b   : > { %3986 = vmatprep.subr.msk.bf16.mxu0 %vm5268_vm3, %v3984_v54  ;;  %v4354_v57 = vunpack.i.h.bf16 %v4352_v56  ;;  %v4353_v58 = vunpack.i.l.bf16 %v4352_v56  ;;  %v4362_v60 = vpop.permute.xlu1 %4361 }
 0x25c   : > { %3998 = vmatprep.subr.msk.bf16.mxu1 %vm5268_vm3, %v3996_v55  ;;  %3989 = vmatpush3.bf16.xpose.msk.msra.mxu0 %vm5268_vm3, %v3984_v54  ;;  %v4364_v61 = vunpack.i.h.bf16 %v4362_v60  ;;  %v4363_v62 = vunpack.i.l.bf16 %v4362_v60 }
 0x25d   : > { %v3990_v59 = vpack.c.bf16 %v4354_v57, %v4353_v58 }
 0x25e   : > { %v4008_v63 = vpack.c.bf16 %v4364_v61, %v4363_v62 }
 0x25f   : > { %3992 = vmatprep.subr.msk.bf16.mxu0 %vm5268_vm3, %v3990_v59 }
 0x264   : > { %3995 = vmatpush3.bf16.xpose.msk.msra.mxu0 %vm5268_vm3, %v3990_v59 }
 0x265   : > { %4010 = vmatprep.subr.msk.bf16.mxu0 %vm5268_vm3, %v4008_v63 }
 0x2c1   : > { %v3744_v1 = vpop.f32.mrb[0].mxu0 }
 0x2c2   : > { %v701_v2 = vadd.f32 %v3744_v1, %v3411_v0  ;;  %v695_v3 = vpop.f32.mrb[1].mxu0 }
 0x2c3   : > { %v696_v4 = vadd.f32 %v3411_v0, %v695_v3 }
 0x2c4   : > { %v705_v5 = vmul.f32 0.35355338, %v701_v2 }
 0x2c5   : > { %v704_v6 = vmul.f32 0.35355338, %v696_v4 }
 0x2c6   : > { %833 = vrot.lane.b32.xlu1 %v705_v5, %s4855_s16 }
 0x2c7   : > { %831 = vrot.lane.b32.xlu0 %v704_v6, %s4855_s16  ;;  %3753 = vmatprep.mubr.msk.f32.mxu1 %vm710_vm2, %v704_v6  ;;  %s6496_s16 = smov 56  }
 0x2c8   : > { %3754 = vmatmul.mubr.msk.f32.vlgmr.msra.gmra.mrb[0].mxu1 %vm710_vm2, %v705_v5 }
 0x2c9   : > { %4001 = vmatpush3.bf16.xpose.msk.msra.mxu1 %vm5268_vm3, %v3996_v55 }
 0x2ca   : > { %4371 = vrot.lane.b32.xlu1 %v5276_v45, %s4857_s10 }
 0x2cb   : > { %4366 = vrot.lane.b32.xlu0 %v5276_v45, %s4856_s8 }
 0x2ce   : > { %962 = vrot.lane.b32.xlu1 %v705_v5, %s4856_s8 }
 0x2cf   : > { %4376 = vrot.lane.b32.xlu0 %v5264_v36, %s4858_s25 }
 0x2d2   : > { %960 = vrot.lane.b32.xlu1 %v704_v6, %s4856_s8  ;;  %s6504_s8 = smov 48  }
 0x2d3   : > { %4381 = vrot.lane.b32.xlu0 %v5264_v36, %s4859_s3 }
 0x2d6   : > { %1091 = vrot.lane.b32.xlu1 %v705_v5, %s4857_s10 }
 0x2d7   : > { %1089 = vrot.lane.b32.xlu0 %v704_v6, %s4857_s10  ;;  %s6498_s10 = smov 40  }
 0x2da   : > { %4391 = vrot.lane.b32.xlu1 %v5276_v45, %s4859_s3 }
 0x2db   : > { %4386 = vrot.lane.b32.xlu0 %v5276_v45, %s4858_s25 }
 0x2de   : > { %1220 = vrot.lane.b32.xlu1 %v705_v5, %s4858_s25 }
 0x2df   : > { %4396 = vrot.lane.b32.xlu0 %v5264_v36, %s4860_s6 }
 0x2e2   : > { %1218 = vrot.lane.b32.xlu1 %v704_v6, %s4858_s25  ;;  %s6506_s25 = smov 8  }
 0x2e3   : > { %4401 = vrot.lane.b32.xlu0 %v5264_v36, %s4861_s0 }
 0x2e6   : > { %1349 = vrot.lane.b32.xlu1 %v705_v5, %s4859_s3 }
 0x2e7   : > { %1347 = vrot.lane.b32.xlu0 %v704_v6, %s4859_s3  ;;  %s5551_s3 = sld [smem:[#allocation11]] }
 0x2ea   : > { %4411 = vrot.lane.b32.xlu1 %v5276_v45, %s4861_s0 }
 0x2eb   : > { %4406 = vrot.lane.b32.xlu0 %v5276_v45, %s4860_s6 }
 0x2ed   : > { %6706 = sst [smem:[#allocation48_spill]] %s5551_s3 }
 0x2ee   : > { %1478 = vrot.lane.b32.xlu1 %v705_v5, %s4860_s6 }
 0x2ef   : > { %1476 = vrot.lane.b32.xlu0 %v704_v6, %s4860_s6  ;;  %s5553_s6 = sld [smem:[#allocation11 + $0x200]] }
 0x2f2   : > { %1607 = vrot.lane.b32.xlu1 %v705_v5, %s4861_s0 }
 0x2f3   : > { %1605 = vrot.lane.b32.xlu0 %v704_v6, %s4861_s0  ;;  %s5555_s0 = sld [smem:[#allocation11 + $0x80]] }
 0x2f5   : > { %6707 = sst [smem:[#allocation49_spill]] %s5553_s6 }
 0x2f9   : > { %6708 = sst [smem:[#allocation50_spill]] %s5555_s0 }
 0x338   : > { %v834_v7 = vpop.permute.xlu1 %833 }
 0x339   : > { %v832_v8 = vpop.permute.xlu0 %831 }
 0x33a   : > { %3764 = vmatprep.mubr.msk.f32.mxu0 %vm710_vm2, %v832_v8 }
 0x33b   : > { %3765 = vmatmul.mubr.msk.f32.vlgmr.msra.gmra.mrb[2].mxu0 %vm710_vm2, %v834_v7 }
 0x33c   : > { %4013 = vmatpush3.bf16.xpose.msk.msra.mxu0 %vm5268_vm3, %v4008_v63  ;;  %v4372_v9 = vpop.permute.xlu1 %4371 }
 0x33d   : > { %v4374_v10 = vunpack.i.h.bf16 %v4372_v9  ;;  %v4373_v11 = vunpack.i.l.bf16 %v4372_v9  ;;  %v4367_v12 = vpop.permute.xlu0 %4366 }
 0x33e   : > { %v4369_v13 = vunpack.i.h.bf16 %v4367_v12  ;;  %v4368_v14 = vunpack.i.l.bf16 %v4367_v12 }
 0x33f   : > { %v4014_v15 = vpack.c.bf16 %v4374_v10, %v4373_v11 }
 0x340   : > { %v4002_v16 = vpack.c.bf16 %v4369_v13, %v4368_v14  ;;  %v963_v17 = vpop.permute.xlu1 %962 }
 0x341   : > { %v4377_v18 = vpop.permute.xlu0 %4376  ;;  %4016 = vmatprep.subr.msk.bf16.mxu0 %vm5268_vm3, %v4014_v15 }
 0x342   : > { %v4379_v19 = vunpack.i.h.bf16 %v4377_v18  ;;  %v4378_v20 = vunpack.i.l.bf16 %v4377_v18  ;;  %4004 = vmatprep.subr.msk.bf16.mxu1 %vm5268_vm3, %v4002_v16 }
 0x343   : > { %4007 = vmatpush3.bf16.xpose.msk.msra.mxu1 %vm5268_vm3, %v4002_v16 }
 0x344   : > { %v4020_v21 = vpack.c.bf16 %v4379_v19, %v4378_v20  ;;  %4019 = vmatpush3.bf16.xpose.msk.msra.mxu0 %vm5268_vm3, %v4014_v15  ;;  %v961_v22 = vpop.permute.xlu1 %960 }
 0x345   : > { %v4382_v23 = vpop.permute.xlu0 %4381  ;;  %3775 = vmatprep.mubr.msk.f32.mxu1 %vm710_vm2, %v961_v22 }
 0x346   : > { %v4384_v24 = vunpack.i.h.bf16 %v4382_v23  ;;  %v4383_v25 = vunpack.i.l.bf16 %v4382_v23  ;;  %4022 = vmatprep.subr.msk.bf16.mxu1 %vm5268_vm3, %v4020_v21 }
 0x348   : > { %v4032_v26 = vpack.c.bf16 %v4384_v24, %v4383_v25  ;;  %v1092_v27 = vpop.permute.xlu1 %1091 }
 0x349   : > { %v1090_v28 = vpop.permute.xlu0 %1089 }
 0x34a   : > { %3776 = vmatmul.mubr.msk.f32.vlgmr.msra.gmra.mrb[2].mxu1 %vm710_vm2, %v963_v17  ;;  %3786 = vmatprep.mubr.msk.f32.mxu0 %vm710_vm2, %v1090_v28 }
 0x34b   : > { %4034 = vmatprep.subr.msk.bf16.mxu0 %vm5268_vm3, %v4032_v26  ;;  %3787 = vmatmul.mubr.msk.f32.vlgmr.msra.gmra.mrb[4].mxu0 %vm710_vm2, %v1092_v27 }
 0x34c   : > { %4025 = vmatpush3.bf16.xpose.msk.msra.mxu1 %vm5268_vm3, %v4020_v21  ;;  %4037 = vmatpush3.bf16.xpose.msk.msra.mxu0 %vm5268_vm3, %v4032_v26  ;;  %v4392_v29 = vpop.permute.xlu1 %4391 }
 0x34d   : > { %v4394_v30 = vunpack.i.h.bf16 %v4392_v29  ;;  %v4393_v31 = vunpack.i.l.bf16 %v4392_v29  ;;  %v4387_v32 = vpop.permute.xlu0 %4386 }
 0x34e   : > { %v4389_v33 = vunpack.i.h.bf16 %v4387_v32  ;;  %v4388_v34 = vunpack.i.l.bf16 %v4387_v32 }
 0x34f   : > { %v4038_v35 = vpack.c.bf16 %v4394_v30, %v4393_v31 }
 0x350   : > { %v4026_v37 = vpack.c.bf16 %v4389_v33, %v4388_v34  ;;  %v1221_v39 = vpop.permute.xlu1 %1220 }
 0x351   : > { %v4397_v40 = vpop.permute.xlu0 %4396  ;;  %4040 = vmatprep.subr.msk.bf16.mxu0 %vm5268_vm3, %v4038_v35 }
 0x352   : > { %v4399_v41 = vunpack.i.h.bf16 %v4397_v40  ;;  %v4398_v42 = vunpack.i.l.bf16 %v4397_v40  ;;  %4028 = vmatprep.subr.msk.bf16.mxu1 %vm5268_vm3, %v4026_v37 }
 0x354   : > { %v4044_v43 = vpack.c.bf16 %v4399_v41, %v4398_v42  ;;  %4031 = vmatpush3.bf16.xpose.msk.msra.mxu1 %vm5268_vm3, %v4026_v37  ;;  %4043 = vmatpush3.bf16.xpose.msk.msra.mxu0 %vm5268_vm3, %v4038_v35  ;;  %v1219_v44 = vpop.permute.xlu1 %1218 }
 0x355   : > { %v4402_v46 = vpop.permute.xlu0 %4401  ;;  %3797 = vmatprep.mubr.msk.f32.mxu1 %vm710_vm2, %v1219_v44 }
 0x356   : > { %v4404_v47 = vunpack.i.h.bf16 %v4402_v46  ;;  %v4403_v48 = vunpack.i.l.bf16 %v4402_v46  ;;  %4046 = vmatprep.subr.msk.bf16.mxu1 %vm5268_vm3, %v4044_v43 }
 0x358   : > { %v4056_v49 = vpack.c.bf16 %v4404_v47, %v4403_v48  ;;  %v1350_v50 = vpop.permute.xlu1 %1349 }
 0x359   : > { %v1348_v51 = vpop.permute.xlu0 %1347 }
 0x35a   : > { %3808 = vmatprep.mubr.msk.f32.mxu0 %vm710_vm2, %v1348_v51  ;;  %4058 = vmatprep.subr.msk.bf16.mxu0 %vm5268_vm3, %v4056_v49 }
 0x35b   : > { %3798 = vmatmul.mubr.msk.f32.vlgmr.msra.gmra.mrb[4].mxu1 %vm710_vm2, %v1221_v39  ;;  %3809 = vmatmul.mubr.msk.f32.vlgmr.msra.gmra.mrb[6].mxu0 %vm710_vm2, %v1350_v50 }
 0x35c   : > { %4049 = vmatpush3.bf16.xpose.msk.msra.mxu1 %vm5268_vm3, %v4044_v43  ;;  %4061 = vmatpush3.bf16.xpose.msk.msra.mxu0 %vm5268_vm3, %v4056_v49  ;;  %v4412_v52 = vpop.permute.xlu1 %4411 }
 0x35d   : > { %v4414_v53 = vunpack.i.h.bf16 %v4412_v52  ;;  %v4413_v54 = vunpack.i.l.bf16 %v4412_v52  ;;  %v4407_v55 = vpop.permute.xlu0 %4406 }
 0x35e   : > { %v4409_v56 = vunpack.i.h.bf16 %v4407_v55  ;;  %v4408_v57 = vunpack.i.l.bf16 %v4407_v55 }
 0x35f   : > { %v4062_v58 = vpack.c.bf16 %v4414_v53, %v4413_v54 }
 0x360   : > { %v4050_v59 = vpack.c.bf16 %v4409_v56, %v4408_v57  ;;  %v1479_v61 = vpop.permute.xlu1 %1478 }
 0x361   : > { %v1477_v60 = vpop.permute.xlu0 %1476  ;;  %4064 = vmatprep.subr.msk.bf16.mxu0 %vm5268_vm3, %v4062_v58 }
 0x362   : > { %4052 = vmatprep.subr.msk.bf16.mxu1 %vm5268_vm3, %v4050_v59  ;;  %3819 = vmatprep.mubr.msk.f32.mxu1 %vm710_vm2, %v1477_v60 }
 0x364   : > { %4055 = vmatpush3.bf16.xpose.msk.msra.mxu1 %vm5268_vm3, %v4050_v59  ;;  %4067 = vmatpush3.bf16.xpose.msk.msra.mxu0 %vm5268_vm3, %v4062_v58  ;;  %v1608_v63 = vpop.permute.xlu1 %1607 }
 0x365   : > { %v1606_v62 = vpop.permute.xlu0 %1605 }
 0x366   : > { %3830 = vmatprep.mubr.msk.f32.mxu0 %vm710_vm2, %v1606_v62 }
 0x36b   : > { %3820 = vmatmul.mubr.msk.f32.vlgmr.msra.gmra.mrb[6].mxu1 %vm710_vm2, %v1479_v61  ;;  %3831 = vmatmul.mubr.msk.f32.vlgmr.msra.gmra.mrb[8].mxu0 %vm710_vm2, %v1608_v63 }
 0x39b   : > { %v3755_v0 = vpop.f32.mrb[0].mxu1 }
 0x39c   : > { %v795_v1 = vpop.f32.mrb[1].mxu1  ;;  %v808_v2 = vsel %vm804_vm4, %v3755_v0, -inf }
 0x39d   : > { %809 = vmax.xlane.f32.xlu0 %v808_v2  ;;  %v805_v3 = vsel %vm804_vm4, %v795_v1, -inf }
 0x3a1   : > { %806 = vmax.xlane.f32.xlu0 %v805_v3 }
 0x40e   : > { %v3766_v4 = vpop.f32.mrb[2].mxu0 }
 0x40f   : > { %v5387_v38 = vpop.f32.mrb[3].mxu0  ;;  %v937_v5 = vsel %vm804_vm4, %v3766_v4, -inf }
 0x410   : > { %938 = vmax.xlane.f32.xlu0 %v937_v5  ;;  %v934_v6 = vsel %vm804_vm4, %v5387_v38, -inf }
 0x411   : > { %935 = vmax.xlane.f32.xlu1 %v934_v6 }
 0x41d   : > { %v5392_v7 = vpop.f32.mrb[2].mxu1 }
 0x41e   : > { %v5394_v8 = vpop.f32.mrb[3].mxu1  ;;  %v5396_v9 = vpop.f32.mrb[4].mxu0  ;;  %v1066_v10 = vsel %vm804_vm4, %v5392_v7, -inf }
 0x41f   : > { %v5400_v11 = vpop.f32.mrb[5].mxu0  ;;  %1067 = vmax.xlane.f32.xlu0 %v1066_v10  ;;  %v1063_v12 = vsel %vm804_vm4, %v5394_v8, -inf  ;;  %v1195_v13 = vsel %vm804_vm4, %v5396_v9, -inf }
 0x420   : > { %1064 = vmax.xlane.f32.xlu1 %v1063_v12  ;;  %v1192_v14 = vsel %vm804_vm4, %v5400_v11, -inf }
 0x423   : > { %1196 = vmax.xlane.f32.xlu0 %v1195_v13 }
 0x424   : > { %1193 = vmax.xlane.f32.xlu1 %v1192_v14 }
 0x42a   : > { %v810_v15 = vpop.xlane.xlu0 %809 }
 0x42b   : > { %v812_v24 = vsub.f32 %v3755_v0, %v810_v15 }
 0x42d   : > { %v815_v28 = vmul.f32 1.442695, %v812_v24 }
 0x42e   : > { %v5408_v16 = vpop.f32.mrb[4].mxu1  ;;  %v5410_v17 = vpop.f32.mrb[6].mxu0 }
 0x42f   : > { %v5412_v18 = vpop.f32.mrb[5].mxu1  ;;  %v807_v19 = vpop.xlane.xlu0 %806  ;;  %v1324_v20 = vsel %vm804_vm4, %v5408_v16, -inf  ;;  %v1453_v26 = vsel %vm804_vm4, %v5410_v17, -inf }
 0x430   : > { %v811_v21 = vsub.f32 %v795_v1, %v807_v19  ;;  %v5416_v22 = vpop.f32.mrb[7].mxu0  ;;  %1325 = vmax.xlane.f32.xlu0 %v1324_v20  ;;  %v1321_v23 = vsel %vm804_vm4, %v5412_v18, -inf }
 0x431   : > { %1322 = vmax.xlane.f32.xlu1 %v1321_v23  ;;  %v1450_v27 = vsel %vm804_vm4, %v5416_v22, -inf }
 0x432   : > { %v813_v25 = vmul.f32 1.442695, %v811_v21 }
 0x434   : > { %1454 = vmax.xlane.f32.xlu0 %v1453_v26  ;;  %4495 = vpow2.f32 %v813_v25 }
 0x435   : > { %1451 = vmax.xlane.f32.xlu1 %v1450_v27  ;;  %4497 = vpow2.f32 %v815_v28 }
 0x43e   : > { %v5424_v29 = vpop.f32.mrb[6].mxu1  ;;  %v5426_v30 = vpop.f32.mrb[8].mxu0 }
 0x43f   : > { %v5428_v31 = vpop.f32.mrb[7].mxu1  ;;  %v5430_v32 = vpop.f32.mrb[9].mxu0  ;;  %v1582_v33 = vsel %vm804_vm4, %v5424_v29, -inf  ;;  %v1711_v37 = vsel %vm804_vm4, %v5426_v30, -inf }
 0x440   : > { %1583 = vmax.xlane.f32.xlu0 %v1582_v33  ;;  %v1579_v34 = vsel %vm804_vm4, %v5428_v31, -inf  ;;  %v5436_v35 = vpop.eup %4495  ;;  %v1708_v42 = vsel %vm804_vm4, %v5430_v32, -inf }
 0x441   : > { %1580 = vmax.xlane.f32.xlu1 %v1579_v34  ;;  %v817_v39 = vsel %vm804_vm4, %v5436_v35, 0.0  ;;  %v5442_v40 = vpop.eup %4497 }
 0x442   : > { %v820_v41 = vsel %vm804_vm4, %v5442_v40, 0.0 }
 0x444   : > { %1712 = vmax.xlane.f32.xlu0 %v1711_v37 }
 0x445   : > { %818 = vadd.xlane.f32.xlu1 %v817_v39 }
 0x449   : > { %821 = vadd.xlane.f32.xlu1 %v820_v41 }
 0x44d   : > { %1709 = vmax.xlane.f32.xlu1 %v1708_v42 }
 0x45e   : > { %4416 = vrot.lane.b32.xlu1 %v5264_v36, %s4862_s11 }
 0x49d   : > { %v939_v43 = vpop.xlane.xlu0 %938 }
 0x49e   : > { %v941_v44 = vsub.f32 %v3766_v4, %v939_v43  ;;  %v936_v47 = vpop.xlane.xlu1 %935 }
 0x49f   : > { %v940_v48 = vsub.f32 %v5387_v38, %v936_v47 }
 0x4a0   : > { %v944_v46 = vmul.f32 1.442695, %v941_v44 }
 0x4a1   : > { %v942_v55 = vmul.f32 1.442695, %v940_v48 }
 0x4a2   : > { %4499 = vpow2.f32 %v944_v46 }
 0x4ac   : > { %v5451_v49 = vpop.eup %4499  ;;  %v1068_v50 = vpop.xlane.xlu0 %1067 }
 0x4ad   : > { %v1070_v51 = vsub.f32 %v5392_v7, %v1068_v50  ;;  %v1065_v52 = vpop.xlane.xlu1 %1064  ;;  %v949_v53 = vsel %vm804_vm4, %v5451_v49, 0.0 }
 0x4ae   : > { %v1069_v54 = vsub.f32 %v5394_v8, %v1065_v52  ;;  %950 = vadd.xlane.f32.xlu0 %v949_v53 }
 0x4af   : > { %v1073_v56 = vmul.f32 1.442695, %v1070_v51 }
 0x4b0   : > { %v1071_v57 = vmul.f32 1.442695, %v1069_v54  ;;  %v1197_v58 = vpop.xlane.xlu0 %1196 }
 0x4b1   : > { %4501 = vpow2.f32 %v1073_v56  ;;  %v1199_v59 = vsub.f32 %v5396_v9, %v1197_v58  ;;  %v1194_v60 = vpop.xlane.xlu1 %1193 }
 0x4b2   : > { %4503 = vpow2.f32 %v1071_v57  ;;  %v1198_v61 = vsub.f32 %v5400_v11, %v1194_v60 }
 0x4b3   : > { %4505 = vpow2.f32 %v942_v55  ;;  %v1202_v62 = vmul.f32 1.442695, %v1199_v59 }
 0x4b4   : > { %v1200_v63 = vmul.f32 1.442695, %v1198_v61 }
 0x4b6   : > { %4507 = vpow2.f32 %v1200_v63 }
 0x4b7   : > { %4509 = vpow2.f32 %v1202_v62  ;;  %v6588_v62 = vstv %s5551_s3  ;;  %s6760_s3 = sld [smem:[#allocation76_spill]] }
 0x4bb   : > { %v5459_v0 = vpop.eup %4501 }
 0x4bc   : > { %v5461_v1 = vpop.eup %4503  ;;  %v1078_v2 = vsel %vm804_vm4, %v5459_v0, 0.0 }
 0x4bd   : > { %v5465_v3 = vpop.eup %4505  ;;  %v1326_v4 = vpop.xlane.xlu0 %1325  ;;  %1079 = vadd.xlane.f32.xlu0 %v1078_v2  ;;  %v1075_v38 = vsel %vm804_vm4, %v5461_v1, 0.0 }
 0x4be   : > { %v1328_v5 = vsub.f32 %v5408_v16, %v1326_v4  ;;  %v1323_v6 = vpop.xlane.xlu1 %1322  ;;  %1076 = vadd.xlane.f32.xlu1 %v1075_v38  ;;  %v946_v10 = vsel %vm804_vm4, %v5465_v3, 0.0  ;;  %v6587_v38 = vstv %s5553_s6  ;;  %s6762_s6 = sld [smem:[#allocation78_spill]] }
 0x4bf   : > { %v1327_v7 = vsub.f32 %v5412_v18, %v1323_v6 }
 0x4c0   : > { %v5471_v8 = vpop.eup %4507  ;;  %v1331_v9 = vmul.f32 1.442695, %v1328_v5  ;;  %v6586_v5 = vstv %s5555_s0  ;;  %s6797_s0 = sld [smem:[#allocation85_spill]] }
 0x4c1   : > { %v5475_v11 = vpop.eup %4509  ;;  %v1329_v12 = vmul.f32 1.442695, %v1327_v7  ;;  %v1455_v13 = vpop.xlane.xlu0 %1454  ;;  %947 = vadd.xlane.f32.xlu0 %v946_v10  ;;  %v1204_v14 = vsel %vm804_vm4, %v5471_v8, 0.0 }
 0x4c2   : > { %4511 = vpow2.f32 %v1331_v9  ;;  %v1457_v15 = vsub.f32 %v5410_v17, %v1455_v13  ;;  %v1452_v16 = vpop.xlane.xlu1 %1451  ;;  %1205 = vadd.xlane.f32.xlu1 %v1204_v14  ;;  %v1207_v20 = vsel %vm804_vm4, %v5475_v11, 0.0 }
 0x4c3   : > { %4513 = vpow2.f32 %v1329_v12  ;;  %v1456_v18 = vsub.f32 %v5416_v22, %v1452_v16  ;;  %v6608_v16 = vstv %s5573_s7  ;;  %s5661_s7 = sld [smem:[#allocation11 + $0x207]] }
 0x4c4   : > { %v1460_v19 = vmul.f32 1.442695, %v1457_v15 }
 0x4c5   : > { %v1458_v21 = vmul.f32 1.442695, %v1456_v18  ;;  %1208 = vadd.xlane.f32.xlu0 %v1207_v20  ;;  %v6609_v18 = vstv %s5575_s26  ;;  %s6750_s26 = sld [smem:[#allocation72_spill]] }
 0x4c6   : > { %4515 = vpow2.f32 %v1460_v19 }
 0x4c7   : > { %4517 = vpow2.f32 %v1458_v21  ;;  %v1741_v21 = vstv %s5577_s12  ;;  %s5670_s12 = sld [smem:[#allocation11 + $0x306]] }
 0x4c9   : > { %6749 = sst [smem:[#allocation90_spill]] %s5661_s7 }
 0x4cc   : > { %v5483_v23 = vpop.eup %4511 }
 0x4cd   : > { %v5485_v24 = vpop.eup %4513  ;;  %v1584_v25 = vpop.xlane.xlu0 %1583  ;;  %v1336_v17 = vsel %vm804_vm4, %v5483_v23, 0.0  ;;  %6752 = sst [smem:[#allocation92_spill]] %s5670_s12 }
 0x4ce   : > { %v1586_v26 = vsub.f32 %v5424_v29, %v1584_v25  ;;  %v1581_v27 = vpop.xlane.xlu1 %1580  ;;  %1337 = vadd.xlane.f32.xlu0 %v1336_v17  ;;  %v1333_v22 = vsel %vm804_vm4, %v5485_v24, 0.0  ;;  %v6610_v25 = vstv %s5579_s30  ;;  %s5737_s30 = sld [smem:[#allocation11 + $0x107]] }
 0x4cf   : > { %v1585_v28 = vsub.f32 %v5428_v31, %v1581_v27  ;;  %1334 = vadd.xlane.f32.xlu1 %v1333_v22  ;;  %v6616_v27 = vstv %s5583_s21  ;;  %v6614_v22 = vstv %s5587_s18  ;;  %s6755_s18 = sld [smem:[#allocation73_spill]]  ;;  %s5697_s21 = sld [smem:[#allocation12 + $0x4]] }
 0x4d0   : > { %v5493_v33 = vpop.eup %4515  ;;  %v1589_v34 = vmul.f32 1.442695, %v1586_v26  ;;  %v2391_v26 = vstv %s5581_s22  ;;  %s5672_s22 = sld [smem:[#allocation11 + $0x185]] }
 0x4d1   : > { %v5495_v37 = vpop.eup %4517  ;;  %v1587_v39 = vmul.f32 1.442695, %v1585_v28  ;;  %v1713_v41 = vpop.xlane.xlu0 %1712  ;;  %v1465_v42 = vsel %vm804_vm4, %v5493_v33, 0.0  ;;  %v6612_v28 = vstv %s5589_s17  ;;  %s5685_s17 = sld [smem:[#allocation11 + $0x282]] }
 0x4d2   : > { %4519 = vpow2.f32 %v1589_v34  ;;  %v1715_v29 = vsub.f32 %v5426_v30, %v1713_v41  ;;  %v5500_v43 = vpop.xlane.xlu1 %818  ;;  %1466 = vadd.xlane.f32.xlu0 %v1465_v42  ;;  %v1462_v31 = vsel %vm804_vm4, %v5495_v37, 0.0  ;;  %v6613_v34 = vstv %s5594_s15  ;;  %s6756_s15 = sld [smem:[#allocation75_spill]] }
 0x4d3   : > { %4521 = vpow2.f32 %v1587_v39  ;;  %1463 = vadd.xlane.f32.xlu1 %v1462_v31  ;;  %v6611_v39 = vstv %s5591_s9  ;;  %v2067_v31 = vstv %s6750_s26  ;;  %s5704_s26 = sld [smem:[#allocation12 + $0x1]]  ;;  %s5719_s9 = sld [smem:[#allocation11 + $0x106]] }
 0x4d4   : > { %v1718_v44 = vmul.f32 1.442695, %v1715_v29  ;;  %v6617_v29 = vstv %s5596_s14  ;;  %6769 = sst [smem:[#allocation97_spill]] %s5737_s30  ;;  %s6782_s14 = sld [smem:[#allocation64_spill]] }
 0x4d5   : > { %6758 = sst [smem:[#allocation95_spill]] %s5697_s21  ;;  %s6783_s21 = sld [smem:[#allocation65_spill]] }
 0x4d6   : > { %4523 = vpow2.f32 %v1718_v44  ;;  %v822_v46 = vpop.xlane.xlu1 %821  ;;  %6753 = sst [smem:[#allocation93_spill]] %s5672_s22 }
 0x4d7   : > { %6757 = sst [smem:[#allocation73_spill]] %s5685_s17  ;;  %s6862_s17 = sld [smem:[#allocation70_spill]] }
 0x4d9   : > { %6759 = sst [smem:[#allocation96_spill]] %s5704_s26 }
 0x4da   : > { %v1710_v47 = vpop.xlane.xlu1 %1709  ;;  %6764 = sst [smem:[#allocation78_spill]] %s5719_s9  ;;  %s6784_s9 = sld [smem:[#allocation67_spill]] }
 0x4db   : > { %v1714_v58 = vsub.f32 %v5430_v32, %v1710_v47  ;;  %v2226_v47 = vstv %s5606_s20  ;;  %s6767_s20 = sld [smem:[#allocation81_spill]] }
 0x4dc   : > { %v5504_v48 = vpop.eup %4519 }
 0x4dd   : > { %v5506_v50 = vpop.eup %4521  ;;  %v1594_v51 = vsel %vm804_vm4, %v5504_v48, 0.0  ;;  %v1716_v59 = vmul.f32 1.442695, %v1714_v58  ;;  %v1908_v58 = vstv %s5610_s24  ;;  %s6883_s24 = sld [smem:[#allocation73_spill]] }
 0x4de   : > { %1595 = vadd.xlane.f32.xlu0 %v1594_v51  ;;  %v1591_v30 = vsel %vm804_vm4, %v5506_v50, 0.0  ;;  %v4417_v52 = vpop.permute.xlu1 %4416 }
 0x4df   : > { %1592 = vadd.xlane.f32.xlu1 %v1591_v30  ;;  %v4419_v53 = vunpack.i.h.bf16 %v4417_v52  ;;  %v4418_v54 = vunpack.i.l.bf16 %v4417_v52  ;;  %4525 = vpow2.f32 %v1716_v59  ;;  %v6620_v59 = vstv %s5614_s19  ;;  %s5751_s19 = sld [smem:[#allocation11 + $0x187]] }
 0x4e0   : > { %v5512_v55 = vpop.eup %4523  ;;  %4527 = vrcp.f32 %v822_v46 }
 0x4e1   : > { %v1723_v56 = vsel %vm804_vm4, %v5512_v55, 0.0  ;;  %v4068_v57 = vpack.c.bf16 %v4419_v53, %v4418_v54  ;;  %4529 = vrcp.f32 %v5500_v43 }
 0x4e2   : > { %1724 = vadd.xlane.f32.xlu0 %v1723_v56  ;;  %v1753_v56 = vstv %s6755_s18  ;;  %s6878_s18 = sld [smem:[#allocation80_spill]] }
 0x4e3   : > { %4069 = vmatprep.subr.bf16.mxu1 %v4068_v57 }
 0x4e4   : > { %4071 = vmatpush3.bf16.msra.mxu1 %v4068_v57  ;;  %v2403_v57 = vstv %s6756_s15  ;;  %s6794_s15 = sld [smem:[#allocation80_spill]] }
 0x4e5   : > { %6772 = sst [smem:[#allocation100_spill]] %s5751_s19 }
 0x4e9   : > { %v5531_v60 = vpop.eup %4525 }
 0x4ea   : > { %v1720_v32 = vsel %vm804_vm4, %v5531_v60, 0.0  ;;  %v4528_v63 = vpop.eup %4527 }
 0x4eb   : > { %v4530_v19 = vpop.eup %4529  ;;  %v5652_v20 = vmul.f32 %v4528_v63, %v5442_v40  ;;  %v6615_v40 = vstv %s5585_s28  ;;  %s5680_s28 = sld [smem:[#allocation12]]  ;;  %v6621_v63 = vstv %s6762_s6 }
 0x4ec   : > { %v5676_v41 = vmul.f32 %v4530_v19, %v5436_v35 }
 0x4ed   : > { %v5690_v44 = vmul.f32 %v6588_v62, %v5652_v20  ;;  %v5695_v35 = vmul.f32 %v6587_v38, %v5652_v20  ;;  %v5702_v46 = vmul.f32 %v6586_v5, %v5652_v20 }
 0x4f0   : > { %4426 = vrot.lane.b32.xlu1 %v5264_v36, %s6496_s16 }
 0x4f1   : > { %6754 = sst [smem:[#allocation94_spill]] %s5680_s28 }
 0x4f8   : > { %4421 = vrot.lane.b32.xlu0 %v5276_v45, %s4862_s11  ;;  %s5557_s11 = sld [smem:[#allocation11 + $0x300]] }
 0x4fc   : > { %4436 = vrot.lane.b32.xlu0 %v5264_v36, %s6504_s8 }
 0x4fe   : > { %6709 = sst [smem:[#allocation51_spill]] %s5557_s11  ;;  %v6585_v6 = vstv %s5557_s11  ;;  %s6785_s11 = sld [smem:[#allocation69_spill]] }
 0x4ff   : > { %v5710_v51 = vmul.f32 %v6585_v6, %v5652_v20 }
 0x500   : > { %4446 = vrot.lane.b32.xlu0 %v5264_v36, %s6498_s10 }
 0x504   : > { %4456 = vrot.lane.b32.xlu0 %v5264_v36, %s6508_s5 }
 0x508   : > { %4466 = vrot.lane.b32.xlu0 %v5276_v45, %s6508_s5  ;;  %s5571_s5 = sld [smem:[#allocation11 + $0x81]] }
 0x50c   : > { %4476 = vrot.lane.b32.xlu0 %v5264_v36, %s6502_s27 }
 0x50e   : > { %6716 = sst [smem:[#allocation58_spill]] %s5571_s5  ;;  %v6606_v15 = vstv %s5571_s5  ;;  %s6748_s5 = sld [smem:[#allocation71_spill]] }
 0x510   : > { %4486 = vrot.lane.b32.xlu0 %v5276_v45, %s6502_s27  ;;  %s5565_s27 = sld [smem:[#allocation11 + $0x1]] }
 0x514   : > { %1721 = vadd.xlane.f32.xlu1 %v1720_v32  ;;  %v2727_v43 = vstv %s6748_s5  ;;  %s5712_s5 = sld [smem:[#allocation11 + $0x307]] }
 0x516   : > { %6713 = sst [smem:[#allocation55_spill]] %s5565_s27  ;;  %v6601_v9 = vstv %s5565_s27  ;;  %s5664_s27 = sld [smem:[#allocation11 + $0x87]] }
 0x51a   : > { %6761 = sst [smem:[#allocation76_spill]] %s5712_s5 }
 0x51c   : > { %6751 = sst [smem:[#allocation91_spill]] %s5664_s27  ;;  %s6793_s27 = sld [smem:[#allocation82_spill]] }
 0x525   : > { %4431 = vrot.lane.b32.xlu1 %v5276_v45, %s6496_s16  ;;  %s5559_s16 = sld [smem:[#allocation11 + $0x100]] }
 0x529   : > { %4441 = vrot.lane.b32.xlu1 %v5276_v45, %s6504_s8  ;;  %s5567_s8 = sld [smem:[#allocation11 + $0x380]] }
 0x52b   : > { %6710 = sst [smem:[#allocation52_spill]] %s5559_s16  ;;  %v6584_v7 = vstv %s5559_s16  ;;  %s5735_s16 = sld [smem:[#allocation12 + $0x6]] }
 0x52c   : > { %v5717_v30 = vmul.f32 %v6584_v7, %v5652_v20 }
 0x52d   : > { %4451 = vrot.lane.b32.xlu1 %v5276_v45, %s6498_s10  ;;  %s5561_s10 = sld [smem:[#allocation11 + $0x180]] }
 0x52f   : > { %6714 = sst [smem:[#allocation56_spill]] %s5567_s8  ;;  %s5655_s8 = sld [smem:[#allocation11 + $0x7]] }
 0x531   : > { %4461 = vrot.lane.b32.xlu1 %v5264_v36, %s6500_s29  ;;  %6768 = sst [smem:[#allocation81_spill]] %s5735_s16 }
 0x533   : > { %6711 = sst [smem:[#allocation53_spill]] %s5561_s10  ;;  %v6583_v10 = vstv %s5561_s10  ;;  %s5746_s10 = sld [smem:[#allocation11 + $0x283]] }
 0x534   : > { %v5724_v52 = vmul.f32 %v6583_v10, %v5652_v20 }
 0x535   : > { %4471 = vrot.lane.b32.xlu1 %v5276_v45, %s6500_s29  ;;  %s5563_s29 = sld [smem:[#allocation11 + $0x280]]  ;;  %6746 = sst [smem:[#allocation88_spill]] %s5655_s8 }
 0x536   : > { %s6792_s8 = sld [smem:[#allocation79_spill]]  ;;  %s6914_s26 = sld [smem:[#allocation88_spill]] }
 0x539   : > { %4481 = vrot.lane.b32.xlu1 %v5264_v36, %s6506_s25  ;;  %6771 = sst [smem:[#allocation99_spill]] %s5746_s10 }
 0x53b   : > { %v951_v61 = vpop.xlane.xlu0 %950  ;;  %6712 = sst [smem:[#allocation54_spill]] %s5563_s29  ;;  %v6580_v12 = vstv %s5563_s29  ;;  %s5744_s29 = sld [smem:[#allocation11 + $0x186]] }
 0x53c   : > { %4531 = vrcp.f32 %v951_v61  ;;  %v5729_v53 = vmul.f32 %v6580_v12, %v5652_v20 }
 0x53d   : > { %4491 = vrot.lane.b32.xlu1 %v5276_v45, %s6506_s25  ;;  %s5569_s25 = sld [smem:[#allocation11 + $0x201]] }
 0x541   : > { %6770 = sst [smem:[#allocation98_spill]] %s5744_s29 }
 0x543   : > { %6715 = sst [smem:[#allocation57_spill]] %s5569_s25  ;;  %v6607_v14 = vstv %s5569_s25  ;;  %s5658_s25 = sld [smem:[#allocation11 + $0x184]] }
 0x546   : > { %v4532_v54 = vpop.eup %4531 }
 0x547   : > { %v5755_v7 = vmul.f32 %v4532_v54, %v5451_v49  ;;  %v6625_v49 = vstv %s5670_s12  ;;  %s5933_s12 = sld [smem:[#allocation11 + $0x284]] }
 0x549   : > { %6747 = sst [smem:[#allocation89_spill]] %s5658_s25  ;;  %v1737_v54 = vmul.f32 %v6601_v9, %v5755_v7  ;;  %v2387_v38 = vmul.f32 %v6607_v14, %v5755_v7  ;;  %v2717_v5 = vmul.f32 %v6608_v16, %v5755_v7  ;;  %v2222_v14 = vmul.f32 %v6610_v25, %v5755_v7 }
 0x54a   : > { %v1080_v36 = vpop.xlane.xlu0 %1079 }
 0x54b   : > { %v5625_v2 = vpop.xlane.xlu1 %1076  ;;  %4533 = vrcp.f32 %v1080_v36  ;;  %v6626_v36 = vstv %s6760_s3  ;;  %v1739_v19 = vadd.f32 %v1737_v54, %v5690_v44  ;;  %v2389_v25 = vadd.f32 %v2387_v38, %v5695_v35 }
 0x54c   : > { %v2719_v54 = vadd.f32 %v2717_v5, %v5710_v51 }
 0x54d   : > { %6811 = sst [smem:[#allocation63_spill]] %s5933_s12 }
 0x54e   : > { %v5598_v45 = vpop.xlane.xlu0 %947 }
 0x54f   : > { %v5678_v42 = vpop.xlane.xlu1 %1205 }
 0x552   : > { %v1209_v4 = vpop.xlane.xlu0 %1208 }
 0x553   : > { %4535 = vrcp.f32 %v1209_v4 }
 0x555   : > { %v4534_v62 = vpop.eup %4533 }
 0x556   : > { %v5772_v12 = vmul.f32 %v4534_v62, %v5459_v0 }
 0x558   : > { %v1743_v9 = vmul.f32 %v1741_v21, %v5772_v12  ;;  %v2063_v38 = vmul.f32 %v6614_v22, %v5772_v12  ;;  %v2224_v22 = vadd.f32 %v2222_v14, %v5724_v52 }
 0x55a   : > { %v1745_v5 = vadd.f32 %v1743_v9, %v1739_v19 }
 0x55b   : > { %v1338_v17 = vpop.xlane.xlu0 %1337 }
 0x55c   : > { %4537 = vrcp.f32 %v1338_v17  ;;  %v5739_v32 = vpop.xlane.xlu1 %1334  ;;  %v6619_v17 = vstv %s6767_s20 }
 0x55d   : > { %v4536_v6 = vpop.eup %4535 }
 0x55e   : > { %v5790_v62 = vmul.f32 %v4536_v6, %v5475_v11  ;;  %v5807_v11 = vmul.f32 %v6611_v39, %v5755_v7  ;;  %v1898_v39 = vmul.f32 %v6616_v27, %v5772_v12 }
 0x55f   : > { %v1467_v61 = vpop.xlane.xlu0 %1466 }
 0x560   : > { %4539 = vrcp.f32 %v1467_v61  ;;  %v5774_v10 = vpop.xlane.xlu1 %1463  ;;  %v1892_v61 = vmul.f32 %v6606_v15, %v5755_v7  ;;  %v2057_v15 = vmul.f32 %v6609_v18, %v5755_v7  ;;  %v2393_v18 = vmul.f32 %v2391_v26, %v5772_v12 }
 0x561   : > { %v1749_v13 = vmul.f32 %v6612_v28, %v5790_v62  ;;  %v2399_v44 = vmul.f32 %v6613_v34, %v5790_v62  ;;  %v1904_v28 = vmul.f32 %v6617_v29, %v5790_v62 }
 0x562   : > { %v1894_v0 = vadd.f32 %v1892_v61, %v5702_v46  ;;  %v2059_v34 = vadd.f32 %v2057_v15, %v5717_v30  ;;  %v2395_v51 = vadd.f32 %v2393_v18, %v2389_v25 }
 0x563   : > { %v1751_v15 = vadd.f32 %v1749_v13, %v1745_v5 }
 0x564   : > { %v1900_v27 = vadd.f32 %v1898_v39, %v1894_v0  ;;  %v2401_v9 = vadd.f32 %v2399_v44, %v2395_v51  ;;  %v2065_v30 = vadd.f32 %v2063_v38, %v2059_v34 }
 0x566   : > { %v4538_v6 = vpop.eup %4537  ;;  %v1906_v39 = vadd.f32 %v1904_v28, %v1900_v27 }
 0x567   : > { %v5838_v46 = vmul.f32 %v4538_v6, %v5483_v23  ;;  %v2729_v23 = vmul.f32 %v2727_v43, %v5790_v62  ;;  %v2069_v6 = vmul.f32 %v2067_v31, %v5790_v62 }
 0x569   : > { %v1755_v14 = vmul.f32 %v1753_v56, %v5838_v46  ;;  %v2405_v25 = vmul.f32 %v2403_v57, %v5838_v46  ;;  %v1910_v52 = vmul.f32 %v1908_v58, %v5838_v46  ;;  %v2071_v44 = vadd.f32 %v2069_v6, %v2065_v30 }
 0x56a   : > { %v4540_v35 = vpop.eup %4539  ;;  %v6796_v6 = vstv %s6793_s27  ;;  %s6802_s27 = sld [smem:[#allocation88_spill]] }
 0x56b   : > { %v1596_v4 = vpop.xlane.xlu0 %1595  ;;  %v5852_v29 = vmul.f32 %v4540_v35, %v5493_v33  ;;  %v2234_v35 = vmul.f32 %v6619_v17, %v5790_v62  ;;  %v1757_v51 = vadd.f32 %v1755_v14, %v1751_v15  ;;  %v6798_v17 = vstv %s6794_s15  ;;  %s6815_s15 = sld [smem:[#allocation78_spill]] }
 0x56c   : > { %4541 = vrcp.f32 %v1596_v4  ;;  %v5809_v16 = vpop.xlane.xlu1 %1592  ;;  %v2723_v4 = vmul.f32 %v6615_v40, %v5772_v12  ;;  %v6799_v15 = vstv %s5636_s23  ;;  %s6804_s23 = sld [smem:[#allocation91_spill]] }
 0x56d   : > { %4543 = vrcp.f32 %v5598_v45  ;;  %v1761_v28 = vmul.f32 %v6626_v36, %v5852_v29  ;;  %v2741_v30 = vmul.f32 %v6796_v6, %v5852_v29  ;;  %v6801_v6 = vstv %s5647_s13  ;;  %s5919_s13 = sld [smem:[#allocation12 + $0x3]] }
 0x56e   : > { %v2725_v45 = vadd.f32 %v2723_v4, %v2719_v54  ;;  %v2735_v4 = vmul.f32 %v6620_v59, %v5838_v46  ;;  %v2228_v54 = vmul.f32 %v2226_v47, %v5772_v12 }
 0x56f   : > { %v1725_v61 = vpop.xlane.xlu0 %1724 }
 0x570   : > { %4545 = vrcp.f32 %v1725_v61  ;;  %v4427_v40 = vpop.permute.xlu1 %4426  ;;  %v2731_v0 = vadd.f32 %v2729_v23, %v2725_v45  ;;  %v6795_v45 = vstv %s6792_s8 }
 0x571   : > { %v4429_v33 = vunpack.i.h.bf16 %v4427_v40  ;;  %v4428_v19 = vunpack.i.l.bf16 %v4427_v40  ;;  %v2411_v40 = vmul.f32 %v6621_v63, %v5852_v29  ;;  %v1916_v23 = vmul.f32 %v6795_v45, %v5852_v29 }
 0x572   : > { %v6800_v45 = vstv %s5644_s2  ;;  %s5912_s2 = sld [smem:[#allocation12 + $0x2]]  ;;  %4547 = vrcp.f32 %v5625_v2  ;;  %v6829_v2 = vstv %s5744_s29  ;;  %s6002_s29 = sld [smem:[#allocation11 + $0x385]] }
 0x573   : > { %v4422_v18 = vpop.permute.xlu0 %4421  ;;  %6806 = sst [smem:[#allocation61_spill]] %s5919_s13  ;;  %4549 = vrcp.f32 %v5678_v42 }
 0x574   : > { %v4424_v13 = vunpack.i.h.bf16 %v4422_v18  ;;  %v4423_v34 = vunpack.i.l.bf16 %v4422_v18  ;;  %v5889_v18 = vpack.c.bf16 %v4429_v33, %v4428_v19  ;;  %v2737_v19 = vadd.f32 %v2735_v4, %v2731_v0 }
 0x575   : > { %4551 = vrcp.f32 %v5739_v32 }
 0x576   : > { %v4542_v38 = vpop.eup %4541  ;;  %v4072_v27 = vpack.c.bf16 %v4424_v13, %v4423_v34  ;;  %v2407_v13 = vadd.f32 %v2405_v25, %v2401_v9  ;;  %v1912_v34 = vadd.f32 %v1910_v52, %v1906_v39  ;;  %v1763_v9 = vadd.f32 %v1761_v28, %v1757_v51 }
 0x577   : > { %v5879_v61 = vmul.f32 %v4542_v38, %v5504_v48  ;;  %v5881_v5 = vpop.permute.xlu0 %4436  ;;  %v2075_v48 = vmul.f32 %v6798_v17, %v5838_v46  ;;  %v5894_v38 = vpop.eup %4543  ;;  %v6803_v39 = vstv %s6797_s0  ;;  %v2230_v28 = vadd.f32 %v2228_v54, %v2224_v22  ;;  %s6813_s0 = sld [smem:[#allocation95_spill]] }
 0x578   : > { %4073 = vmatprep.subr.bf16.mxu1 %v4072_v27  ;;  %v2413_v17 = vadd.f32 %v2411_v40, %v2407_v13  ;;  %v2081_v52 = vmul.f32 %v6803_v39, %v5852_v29  ;;  %6805 = sst [smem:[#allocation60_spill]] %s5912_s2  ;;  %v1918_v4 = vadd.f32 %v1916_v23, %v1912_v34  ;;  %v6808_v39 = vstv %s6802_s27  ;;  %s5938_s27 = sld [smem:[#allocation11 + $0x285]] }
 0x579   : > { %4075 = vmatpush3.bf16.msra.mxu1 %v4072_v27  ;;  %v1767_v14 = vmul.f32 %v6799_v15, %v5879_v61  ;;  %v2417_v59 = vmul.f32 %v6800_v45, %v5879_v61  ;;  %v1922_v33 = vmul.f32 %v6801_v6, %v5879_v61  ;;  %v2747_v25 = vmul.f32 %v6625_v49, %v5879_v61 }
 0x57a   : > { %v4546_v63 = vpop.eup %4545  ;;  %4077 = vmatprep.subr.bf16.mxu1 %v5889_v18  ;;  %v2743_v15 = vadd.f32 %v2741_v30, %v2737_v19  ;;  %v2077_v13 = vadd.f32 %v2075_v48, %v2071_v44  ;;  %v6807_v45 = vstv %s5658_s25  ;;  %v6810_v23 = vstv %s6804_s23  ;;  %s6814_s25 = sld [smem:[#allocation96_spill]]  ;;  %s5943_s23 = sld [smem:[#allocation11 + $0x286]] }
 0x57b   : > { %v5915_v27 = vmul.f32 %v4546_v63, %v5512_v55  ;;  %v5917_v0 = vpop.permute.xlu0 %4446  ;;  %v1769_v40 = vadd.f32 %v1767_v14, %v1763_v9  ;;  %v2419_v51 = vadd.f32 %v2417_v59, %v2413_v17  ;;  %v2240_v6 = vmul.f32 %v6807_v45, %v5838_v46 }
 0x57c   : > { %v6809_v55 = vstv %s5661_s7  ;;  %v1924_v36 = vadd.f32 %v1922_v33, %v1918_v4  ;;  %v2749_v22 = vadd.f32 %v2747_v25, %v2743_v15  ;;  %v6812_v59 = vstv %s5712_s5  ;;  %s6819_s5 = sld [smem:[#allocation47_spill]]  ;;  %s5960_s7 = sld [smem:[#allocation11 + $0x382]] }
 0x57d   : > { %v1773_v49 = vmul.f32 %v6808_v39, %v5915_v27  ;;  %v2423_v63 = vmul.f32 %v6809_v55, %v5915_v27  ;;  %v1928_v30 = vmul.f32 %v6810_v23, %v5915_v27  ;;  %v2753_v44 = vmul.f32 %v6812_v59, %v5915_v27 }
 0x57e   : > { %v2083_v54 = vadd.f32 %v2081_v52, %v2077_v13  ;;  %v2236_v34 = vadd.f32 %v2234_v35, %v2230_v28  ;;  %6816 = sst [smem:[#allocation64_spill]] %s5938_s27  ;;  %v6817_v9 = vstv %s5672_s22  ;;  %v6820_v15 = vstv %s5680_s28  ;;  %s6831_s28 = sld [smem:[#allocation83_spill]] }
 0x57f   : > { %v4457_v48 = vpop.permute.xlu0 %4456  ;;  %v1775_v14 = vadd.f32 %v1773_v49, %v1769_v40  ;;  %v2425_v33 = vadd.f32 %v2423_v63, %v2419_v51  ;;  %v1930_v19 = vadd.f32 %v1928_v30, %v1924_v36  ;;  %v2246_v17 = vmul.f32 %v6817_v9, %v5852_v29  ;;  %s6843_s22 = sld [smem:[#allocation50_spill]] }
 0x580   : > { %6818 = sst [smem:[#allocation65_spill]] %s5943_s23  ;;  %v4459_v25 = vunpack.i.h.bf16 %v4457_v48  ;;  %v4458_v4 = vunpack.i.l.bf16 %v4457_v48  ;;  %v2755_v52 = vadd.f32 %v2753_v44, %v2749_v22  ;;  %v2242_v35 = vadd.f32 %v2240_v6, %v2236_v34 }
 0x581   : > { %v5947_v28 = vadd.f32 %v6820_v15, %v1775_v14  ;;  %v6821_v49 = vstv %s6813_s0  ;;  %v6822_v51 = vstv %s6814_s25  ;;  %v6823_v13 = vstv %s6815_s15  ;;  %s5970_s25 = sld [smem:[#allocation11 + $0x287]]  ;;  %s5992_s0 = sld [smem:[#allocation11 + $0x384]] }
 0x582   : > { %v5951_v40 = vadd.f32 %v6821_v49, %v2425_v33  ;;  %v5955_v36 = vadd.f32 %v6822_v51, %v1930_v19  ;;  %v2087_v45 = vmul.f32 %v6823_v13, %v5879_v61  ;;  %6824 = sst [smem:[#allocation67_spill]] %s5960_s7  ;;  %v4100_v39 = vpack.c.bf16 %v4459_v25, %v4458_v4  ;;  %s6018_s15 = sld [smem:[#allocation11 + $0x386]] }
 0x583   : > { %v6825_v55 = vstv %s5735_s16  ;;  %v6826_v6 = vstv %s5737_s30  ;;  %v2097_v30 = vstv %s5912_s2  ;;  %v4467_v22 = vpop.permute.xlu0 %4466  ;;  %1781 = vst.msk [vmem:[%s6819_s5 + $0x8] sm:$0xff] %vm804_vm4, %v5947_v28  ;;  %s6828_s16 = sld [smem:[#allocation73_spill]]  ;;  %v2248_v44 = vadd.f32 %v2246_v17, %v2242_v35  ;;  %s6000_s30 = sld [smem:[#allocation11 + $0x383]] }
 0x584   : > { %v5964_v63 = vadd.f32 %v6825_v55, %v2755_v52  ;;  %v2093_v23 = vmul.f32 %v6826_v6, %v5915_v27  ;;  %3520 = vst.msk [vmem:[%s6819_s5 + $0x48] sm:$0xff] %vm804_vm4, %v5951_v40  ;;  %3481 = vst.msk [vmem:[%s6819_s5 + $0x18] sm:$0xff] %vm804_vm4, %v5955_v36  ;;  %v2089_v59 = vadd.f32 %v2087_v45, %v2083_v54  ;;  %v6645_v34 = vstv %s5919_s13  ;;  %s6031_s2 = sld [smem:[#allocation11 + $0x387]]  ;;  %s6838_s13 = sld [smem:[#allocation55_spill]] }
 0x585   : > { %v4469_v48 = vunpack.i.h.bf16 %v4467_v22  ;;  %v4468_v14 = vunpack.i.l.bf16 %v4467_v22  ;;  %4101 = vmatprep.subr.bf16.mxu0 %v4100_v39  ;;  %v2252_v33 = vmul.f32 %v6829_v2, %v5879_v61  ;;  %v6830_v19 = vstv %s5751_s19  ;;  %s6013_s19 = sld [smem:[#allocation12 + $0x5]] }
 0x586   : > { %3546 = vst.msk [vmem:[%s6819_s5 + $0x68] sm:$0xff] %vm804_vm4, %v5964_v63  ;;  %v2258_v9 = vmul.f32 %v6830_v19, %v5915_v27  ;;  %4103 = vmatpush3.bf16.msra.mxu0 %v4100_v39  ;;  %v2095_v54 = vadd.f32 %v2093_v23, %v2089_v59  ;;  %v2554_v17 = vadd.f32 %v5807_v11, %v5729_v53  ;;  %v2568_v52 = vstv %s5933_s12  ;;  %s6837_s12 = sld [smem:[#allocation48_spill]] }
 0x587   : > { %6827 = sst [smem:[#allocation69_spill]] %s5970_s25  ;;  %v4104_v35 = vpack.c.bf16 %v4469_v48, %v4468_v14  ;;  %v2254_v15 = vadd.f32 %v2252_v33, %v2248_v44  ;;  %v6833_v49 = vstv %s5746_s10  ;;  %v2574_v13 = vstv %s5938_s27  ;;  %v4477_v45 = vpop.permute.xlu0 %4476  ;;  %s6835_s10 = sld [smem:[#allocation56_spill]] }
 0x588   : > { %v2564_v51 = vmul.f32 %v6833_v49, %v5790_v62  ;;  %v6010_v53 = vadd.f32 %v2097_v30, %v2095_v54  ;;  %v2580_v39 = vstv %s5943_s23  ;;  %v6834_v55 = vstv %s6831_s28  ;;  %s6839_s23 = sld [smem:[#allocation57_spill]]  ;;  %s6840_s27 = sld [smem:[#allocation58_spill]] }
 0x589   : > { %v6832_v25 = vstv %s6828_s16  ;;  %v2882_v6 = vmul.f32 %v6834_v55, %v5755_v7  ;;  %v4479_v23 = vunpack.i.h.bf16 %v4477_v45  ;;  %v4478_v22 = vunpack.i.l.bf16 %v4477_v45  ;;  %4105 = vmatprep.subr.bf16.mxu0 %v4104_v35  ;;  %s6845_s16 = sld [smem:[#allocation59_spill]] }
 0x58a   : > { %v2558_v4 = vmul.f32 %v6832_v25, %v5772_v12  ;;  %v2260_v59 = vadd.f32 %v2258_v9, %v2254_v15  ;;  %v2570_v44 = vmul.f32 %v2568_v52, %v5838_v46  ;;  %4107 = vmatpush3.bf16.msra.mxu0 %v4104_v35  ;;  %3494 = vst.msk [vmem:[%s6819_s5 + $0x28] sm:$0xff] %vm804_vm4, %v6010_v53  ;;  %v2886_v14 = vstv %s5960_s7  ;;  %v4548_v35 = vpop.eup %4547  ;;  %s6842_s7 = sld [smem:[#allocation49_spill]]  ;;  %s6076_s28 = sld [smem:[#allocation12 + $0x7]] }
 0x58b   : > { %v2576_v48 = vmul.f32 %v2574_v13, %v5852_v29  ;;  %v6033_v2 = vpack.c.bf16 %v4479_v23, %v4478_v22  ;;  %v2586_v33 = vstv %s5970_s25  ;;  %v6049_v25 = vmul.f32 %v5894_v38, %v5465_v3  ;;  %s6844_s25 = sld [smem:[#allocation51_spill]] }
 0x58c   : > { %v2560_v11 = vadd.f32 %v2558_v4, %v2554_v17  ;;  %v6037_v42 = vadd.f32 %v6645_v34, %v2260_v59  ;;  %v2582_v17 = vmul.f32 %v2580_v39, %v5879_v61  ;;  %v2888_v32 = vmul.f32 %v2886_v14, %v5772_v12 }
 0x58d   : > { %v6836_v19 = vstv %s6835_s10  ;;  %4117 = vmatprep.subr.bf16.mxu0 %v6033_v2  ;;  %v2898_v4 = vstv %s5992_s0  ;;  %v2588_v3 = vmul.f32 %v2586_v33, %v5915_v27  ;;  %v2892_v38 = vstv %s6000_s30  ;;  %s6918_s30 = sld [smem:[#allocation97_spill]] }
 0x58e   : > { %v2566_v7 = vadd.f32 %v2564_v51, %v2560_v11  ;;  %v2878_v9 = vmul.f32 %v6836_v19, %v5652_v20  ;;  %3507 = vst.msk [vmem:[%s6819_s5 + $0x38] sm:$0xff] %vm804_vm4, %v6037_v42  ;;  %v2904_v49 = vstv %s6002_s29  ;;  %4553 = vrcp.f32 %v5774_v10  ;;  %s6932_s29 = sld [smem:[#allocation61_spill]] }
 0x58f   : > { %v6841_v51 = vstv %s6837_s12  ;;  %v2894_v11 = vmul.f32 %v2892_v38, %v5790_v62  ;;  %v2900_v23 = vmul.f32 %v2898_v4, %v5838_v46  ;;  %v2910_v22 = vstv %s6018_s15  ;;  %s6847_s12 = sld [smem:[#allocation52_spill]] }
 0x590   : > { %v2572_v54 = vadd.f32 %v2570_v44, %v2566_v7  ;;  %v2884_v20 = vadd.f32 %v2882_v6, %v2878_v9  ;;  %v1732_v45 = vmul.f32 %v6841_v51, %v5676_v41  ;;  %v2592_v6 = vstv %s6013_s19  ;;  %s6939_s19 = smov 8  }
 0x591   : > { %v6846_v10 = vstv %s6838_s13  ;;  %v6848_v44 = vstv %s6839_s23  ;;  %v6088_v19 = vmul.f32 %v4548_v35, %v5461_v1  ;;  %v6849_v46 = vstv %s6840_s27  ;;  %s6852_s13 = sld [smem:[#allocation53_spill]]  ;;  %s6863_s23 = sld [smem:[#allocation66_spill]] }
 0x592   : > { %v2578_v15 = vadd.f32 %v2576_v48, %v2572_v54  ;;  %v2890_v12 = vadd.f32 %v2888_v32, %v2884_v20  ;;  %v1736_v59 = vmul.f32 %v6846_v10, %v6049_v25  ;;  %v2386_v7 = vmul.f32 %v6848_v44, %v6049_v25  ;;  %s6889_s27 = sld [smem:[#allocation85_spill]] }
 0x593   : > { %v2906_v48 = vmul.f32 %v2904_v49, %v5852_v29  ;;  %v1891_v9 = vmul.f32 %v6849_v46, %v6049_v25  ;;  %v6850_v20 = vstv %s6842_s7  ;;  %v2912_v1 = vmul.f32 %v2910_v22, %v5879_v61  ;;  %v4550_v29 = vpop.eup %4549  ;;  %s6856_s7 = sld [smem:[#allocation54_spill]] }
 0x594   : > { %v2584_v55 = vadd.f32 %v2582_v17, %v2578_v15  ;;  %v2896_v62 = vadd.f32 %v2894_v11, %v2890_v12  ;;  %v2916_v17 = vstv %s6031_s2  ;;  %v2382_v32 = vmul.f32 %v6850_v20, %v5676_v41  ;;  %s6940_s2 = smov 48  }
 0x595   : > { %v6851_v15 = vstv %s6843_s22  ;;  %v6853_v35 = vstv %s6844_s25  ;;  %v6855_v10 = vstv %s6847_s12  ;;  %v2918_v20 = vmul.f32 %v2916_v17, %v5915_v27  ;;  %s6858_s22 = sld [smem:[#allocation62_spill]]  ;;  %s6897_s12 = sld [smem:[#allocation99_spill]] }
 0x596   : > { %v2590_v54 = vadd.f32 %v2588_v3, %v2584_v55  ;;  %v1887_v51 = vmul.f32 %v6851_v15, %v5676_v41  ;;  %v2902_v12 = vadd.f32 %v2900_v23, %v2896_v62  ;;  %v2712_v11 = vmul.f32 %v6853_v35, %v5676_v41  ;;  %v4552_v15 = vpop.eup %4551  ;;  %s6891_s25 = sld [smem:[#allocation86_spill]] }
 0x597   : > { %v6854_v3 = vstv %s6845_s16  ;;  %v2052_v44 = vmul.f32 %v6855_v10, %v5676_v41  ;;  %v1738_v23 = vadd.f32 %v1736_v59, %v1732_v45  ;;  %v2388_v62 = vadd.f32 %v2386_v7, %v2382_v32  ;;  %s6876_s16 = sld [smem:[#allocation83_spill]] }
 0x598   : > { %v2716_v55 = vmul.f32 %v6854_v3, %v6049_v25  ;;  %v6114_v46 = vadd.f32 %v2592_v6, %v2590_v54  ;;  %v2908_v61 = vadd.f32 %v2906_v48, %v2902_v12  ;;  %4555 = vrcp.f32 %v5809_v16 }
 0x599   : > { %v1742_v35 = vmul.f32 %v1741_v21, %v6088_v19  ;;  %v1893_v3 = vadd.f32 %v1891_v9, %v1887_v51  ;;  %v6857_v10 = vstv %s6852_s13  ;;  %v6130_v45 = vmul.f32 %v4550_v29, %v5471_v8  ;;  %v4554_v51 = vpop.eup %4553 }
 0x59a   : > { %v2217_v34 = vmul.f32 %v6857_v10, %v5676_v41  ;;  %3533 = vst.msk [vmem:[%s6819_s5 + $0x58] sm:$0xff] %vm804_vm4, %v6114_v46  ;;  %v2392_v27 = vmul.f32 %v2391_v26, %v6088_v19  ;;  %v6859_v16 = vstv %s6777_s1  ;;  %v2914_v59 = vadd.f32 %v2912_v1, %v2908_v61  ;;  %s6871_s1 = sld [smem:[#allocation68_spill]] }
 0x59b   : > { %v2056_v21 = vmul.f32 %v6859_v16, %v6049_v25  ;;  %v6860_v7 = vstv %s6782_s14  ;;  %v2718_v9 = vadd.f32 %v2716_v55, %v2712_v11  ;;  %v6861_v54 = vstv %s6856_s7  ;;  %s6900_s7 = sld [smem:[#allocation78_spill]]  ;;  %s6915_s14 = sld [smem:[#allocation90_spill]] }
 0x59c   : > { %v1897_v48 = vmul.f32 %v6860_v7, %v6088_v19  ;;  %v2547_v32 = vmul.f32 %v6861_v54, %v5676_v41  ;;  %v2922_v8 = vstv %s6076_s28  ;;  %v6146_v26 = vmul.f32 %v4552_v15, %v5485_v24  ;;  %s6938_s28 = smov 32  }
 0x59d   : > { %v1744_v12 = vadd.f32 %v1742_v35, %v1738_v23  ;;  %v2394_v29 = vadd.f32 %v2392_v27, %v2388_v62  ;;  %v2920_v10 = vadd.f32 %v2918_v20, %v2914_v59  ;;  %v6865_v61 = vstv %s6783_s21  ;;  %s6917_s21 = sld [smem:[#allocation76_spill]] }
 0x59e   : > { %v1899_v1 = vadd.f32 %v1897_v48, %v1893_v3  ;;  %v2722_v11 = vmul.f32 %v6865_v61, %v6088_v19  ;;  %v6866_v55 = vstv %s6858_s22  ;;  %v6868_v7 = vstv %s6835_s10  ;;  %s6887_s10 = sld [smem:[#allocation89_spill]]  ;;  %s6902_s22 = sld [smem:[#allocation98_spill]] }
 0x59f   : > { %v2221_v16 = vmul.f32 %v6866_v55, %v6049_v25  ;;  %v2877_v54 = vmul.f32 %v6868_v7, %v5676_v41  ;;  %v6869_v24 = vstv %s6784_s9  ;;  %v6870_v23 = vstv %s6785_s11  ;;  %s6875_s9 = sld [smem:[#allocation77_spill]]  ;;  %s6895_s11 = sld [smem:[#allocation92_spill]] }
 0x5a0   : > { %v1748_v15 = vmul.f32 %v6869_v24, %v6130_v45  ;;  %v2398_v62 = vmul.f32 %v6870_v23, %v6130_v45  ;;  %v2058_v20 = vadd.f32 %v2056_v21, %v2052_v44  ;;  %v6165_v35 = vadd.f32 %v2922_v8, %v2920_v10 }
 0x5a1   : > { %v6168_v3 = vmul.f32 %v4554_v51, %v5495_v37  ;;  %v6873_v27 = vstv %s6862_s17  ;;  %v2724_v59 = vadd.f32 %v2722_v11, %v2718_v9  ;;  %v6874_v48 = vstv %s6863_s23 }
 0x5a2   : > { %v1903_v41 = vmul.f32 %v6873_v27, %v6130_v45  ;;  %v2062_v61 = vmul.f32 %v6874_v48, %v6088_v19  ;;  %v1750_v55 = vadd.f32 %v1748_v15, %v1744_v12  ;;  %v1754_v44 = vmul.f32 %v1753_v56, %v6146_v26  ;;  %3559 = vst.msk [vmem:[%s6819_s5 + $0x78] sm:$0xff] %vm804_vm4, %v6165_v35  ;;  %v4556_v24 = vpop.eup %4555 }
 0x5a3   : > { %v2400_v21 = vadd.f32 %v2398_v62, %v2394_v29  ;;  %v2728_v37 = vmul.f32 %v2727_v43, %v6130_v45  ;;  %v2404_v9 = vmul.f32 %v2403_v57, %v6146_v26  ;;  %v2223_v10 = vadd.f32 %v2221_v16, %v2217_v34 }
 0x5a4   : > { %v1905_v51 = vadd.f32 %v1903_v41, %v1899_v1  ;;  %v6877_v12 = vstv %s6871_s1  ;;  %v1909_v56 = vmul.f32 %v1908_v58, %v6146_v26  ;;  %v2064_v29 = vadd.f32 %v2062_v61, %v2058_v20  ;;  %v1722_v61 = vpop.xlane.xlu1 %1721  ;;  %s6916_s1 = sld [smem:[#allocation91_spill]] }
 0x5a5   : > { %v2551_v11 = vmul.f32 %v6877_v12, %v6049_v25  ;;  %v2068_v43 = vmul.f32 %v2067_v31, %v6130_v45  ;;  %v2227_v7 = vmul.f32 %v2226_v47, %v6088_v19  ;;  %v6879_v57 = vstv %s6760_s3  ;;  %s6946_s3 = sld [smem:[#allocation34_spill]] }
 0x5a6   : > { %v1760_v15 = vmul.f32 %v6879_v57, %v6168_v3  ;;  %v6880_v34 = vstv %s6762_s6  ;;  %v2730_v16 = vadd.f32 %v2728_v37, %v2724_v59  ;;  %v6881_v23 = vstv %s6875_s9  ;;  %s6894_s6 = sld [smem:[#allocation87_spill]]  ;;  %s6919_s9 = sld [smem:[#allocation100_spill]] }
 0x5a7   : > { %v2410_v1 = vmul.f32 %v6880_v34, %v6168_v3  ;;  %v2734_v62 = vmul.f32 %v6881_v23, %v6146_v26  ;;  %v1756_v27 = vadd.f32 %v1754_v44, %v1750_v55  ;;  %v6882_v58 = vstv %s6792_s8  ;;  %s6890_s8 = sld [smem:[#allocation84_spill]] }
 0x5a8   : > { %v1915_v20 = vmul.f32 %v6882_v58, %v6168_v3  ;;  %v6884_v31 = vstv %s6767_s20  ;;  %v6885_v47 = vstv %s6876_s16  ;;  %v2406_v12 = vadd.f32 %v2404_v9, %v2400_v21  ;;  %s6892_s20 = sld [smem:[#allocation93_spill]]  ;;  %s6924_s16 = sld [smem:[#allocation94_spill]] }
 0x5a9   : > { %v2233_v41 = vmul.f32 %v6884_v31, %v6130_v45  ;;  %v2881_v48 = vmul.f32 %v6885_v47, %v6049_v25  ;;  %v6888_v59 = vstv %s6878_s18  ;;  %v2229_v57 = vadd.f32 %v2227_v7, %v2223_v10  ;;  %s6926_s18 = sld [smem:[#allocation95_spill]] }
 0x5aa   : > { %v2074_v37 = vmul.f32 %v6888_v59, %v6146_v26  ;;  %v2553_v55 = vadd.f32 %v2551_v11, %v2547_v32  ;;  %v1598_v44 = vmul.f32 %v4556_v24, %v5506_v50  ;;  %4557 = vrcp.f32 %v1722_v61 }
 0x5ab   : > { %v1911_v34 = vadd.f32 %v1909_v56, %v1905_v51  ;;  %v2070_v23 = vadd.f32 %v2068_v43, %v2064_v29  ;;  %v1762_v58 = vadd.f32 %v1760_v15, %v1756_v27  ;;  %v2412_v25 = vadd.f32 %v2410_v1, %v2406_v12  ;;  %s3568_s13 = sshll.u32 %s6946_s3, 2 }
 0x5ac   : > { %v2736_v21 = vadd.f32 %v2734_v62, %v2730_v16  ;;  %v6896_v9 = vstv %s6883_s24  ;;  %v6899_v50 = vstv %s6886_s4  ;;  %v6901_v51 = vstv %s6887_s10  ;;  %s6927_s24 = sld [smem:[#allocation96_spill]]  ;;  %s6929_s4 = sld [smem:[#allocation81_spill]] }
 0x5ad   : > { %v2557_v31 = vmul.f32 %v6896_v9, %v6088_v19  ;;  %v1917_v32 = vadd.f32 %v1915_v20, %v1911_v34  ;;  %v2740_v10 = vmul.f32 %v6899_v50, %v6168_v3  ;;  %v2239_v11 = vmul.f32 %v6901_v51, %v6146_v26  ;;  %s6941_s10 = smov 16  }
 0x5ae   : > { %v2883_v56 = vadd.f32 %v2881_v48, %v2877_v54  ;;  %v2076_v29 = vadd.f32 %v2074_v37, %v2070_v23  ;;  %v6903_v43 = vstv %s6889_s27  ;;  %v2235_v24 = vadd.f32 %v2233_v41, %v2229_v57  ;;  %s6942_s27 = smov 24  }
 0x5af   : > { %v2080_v7 = vmul.f32 %v6903_v43, %v6168_v3  ;;  %v2559_v15 = vadd.f32 %v2557_v31, %v2553_v55  ;;  %v6904_v1 = vstv %s6890_s8  ;;  %v6906_v62 = vstv %s6891_s25  ;;  %s6943_s8 = smov 40   ;;  %s6944_s25 = smov 56  }
 0x5b0   : > { %v1766_v16 = vmul.f32 %v6904_v1, %v1598_v44  ;;  %v2416_v27 = vmul.f32 %v6906_v62, %v1598_v44  ;;  %v6907_v20 = vstv %s6892_s20  ;;  %v2887_v61 = vmul.f32 %v2886_v14, %v6088_v19  ;;  %v4487_v1 = vpop.permute.xlu0 %4486  ;;  %s6945_s20 = sld [smem:[#allocation33_spill]] }
 0x5b1   : > { %v2245_v47 = vmul.f32 %v6907_v20, %v6168_v3  ;;  %v6908_v12 = vstv %s6894_s6  ;;  %v6909_v48 = vstv %s6895_s11  ;;  %v6910_v41 = vstv %s6897_s12  ;;  %s6947_s6 = sld [smem:[#allocation46_spill]]  ;;  %s6948_s11 = sld [smem:[#allocation45_spill]] }
 0x5b2   : > { %v1921_v54 = vmul.f32 %v6908_v12, %v1598_v44  ;;  %v2746_v59 = vmul.f32 %v6909_v48, %v1598_v44  ;;  %v2563_v37 = vmul.f32 %v6910_v41, %v6130_v45  ;;  %v2569_v57 = vmul.f32 %v2568_v52, %v6146_v26 }
 0x5b3   : > { %v6911_v55 = vstv %s6900_s7  ;;  %v2241_v23 = vadd.f32 %v2239_v11, %v2235_v24  ;;  %v6912_v9 = vstv %s6902_s22  ;;  %v2889_v50 = vadd.f32 %v2887_v61, %v2883_v56  ;;  %v4432_v11 = vpop.permute.xlu1 %4431  ;;  %s6949_s7 = sld [smem:[#allocation41_spill]] }
 0x5b4   : > { %v2086_v34 = vmul.f32 %v6911_v55, %v1598_v44  ;;  %v2251_v31 = vmul.f32 %v6912_v9, %v1598_v44  ;;  %v2742_v51 = vadd.f32 %v2740_v10, %v2736_v21  ;;  %v2082_v14 = vadd.f32 %v2080_v7, %v2076_v29 }
 0x5b5   : > { %v2565_v19 = vadd.f32 %v2563_v37, %v2559_v15  ;;  %v2575_v43 = vmul.f32 %v2574_v13, %v6168_v3  ;;  %v1768_v62 = vadd.f32 %v1766_v16, %v1762_v58  ;;  %v2247_v20 = vadd.f32 %v2245_v47, %v2241_v23  ;;  %v4558_v13 = vpop.eup %4557 }
 0x5b6   : > { %v2893_v12 = vmul.f32 %v2892_v38, %v6130_v45  ;;  %v2899_v52 = vmul.f32 %v2898_v4, %v6146_v26  ;;  %v2418_v24 = vadd.f32 %v2416_v27, %v2412_v25  ;;  %v1923_v21 = vadd.f32 %v1921_v54, %v1917_v32  ;;  %s3567_s12 = sshll.u32 %s6945_s20, 1 }
 0x5b7   : > { %v2748_v10 = vadd.f32 %v2746_v59, %v2742_v51  ;;  %v2571_v56 = vadd.f32 %v2569_v57, %v2565_v19  ;;  %v2088_v58 = vadd.f32 %v2086_v34, %v2082_v14  ;;  %v2253_v29 = vadd.f32 %v2251_v31, %v2247_v20  ;;  %v4442_v31 = vpop.permute.xlu1 %4441  ;;  %s3158_s22 = sadd.s32 %s3568_s13, %s3567_s12 }
 0x5b8   : > { %v2581_v38 = vmul.f32 %v2580_v39, %v1598_v44  ;;  %v2895_v45 = vadd.f32 %v2893_v12, %v2889_v50  ;;  %v1727_v4 = vmul.f32 %v4558_v13, %v5531_v60  ;;  %v4489_v26 = vunpack.i.h.bf16 %v4487_v1 }
 0x5b9   : > { %v4488_v25 = vunpack.i.l.bf16 %v4487_v1  ;;  %v2577_v32 = vadd.f32 %v2575_v43, %v2571_v56  ;;  %v4434_v7 = vunpack.i.h.bf16 %v4432_v11  ;;  %v2905_v16 = vmul.f32 %v2904_v49, %v6168_v3  ;;  %p6952_p6 = scmp.ne.s32.totalorder %s6949_s7, 0 }
 0x5ba   : > { %v2901_v15 = vadd.f32 %v2899_v52, %v2895_v45  ;;  %v2911_v27 = vmul.f32 %v2910_v22, %v1598_v44  ;;  %v6921_v47 = vstv %s6914_s26  ;;  %v6922_v54 = vstv %s6915_s14  ;;  %s6950_s26 = sld [smem:[#allocation109_spill]]  ;;  %s3161_s14 = sshll.u32 %s6947_s6, 4  ;;  %s6379_s14 = int_to_ptr.vmem [resolvable:$true] %s3161_s14 }
 0x5bb   : > { %v1772_v61 = vmul.f32 %v6921_v47, %v1727_v4  ;;  %v2422_v48 = vmul.f32 %v6922_v54, %v1727_v4  ;;  %v6923_v39 = vstv %s6916_s1  ;;  %v6925_v41 = vstv %s6917_s21  ;;  %s3569_s1 = sshll.u32 %s3158_s22, 7 }
 0x5bc   : > { %v1927_v59 = vmul.f32 %v6923_v39, %v1727_v4  ;;  %v2752_v60 = vmul.f32 %v6925_v41, %v1727_v4  ;;  %v4433_v37 = vunpack.i.l.bf16 %v4432_v11  ;;  %v6928_v57 = vstv %s6918_s30 }
 0x5bd   : > { %v2092_v55 = vmul.f32 %v6928_v57, %v1727_v4  ;;  %v6930_v34 = vstv %s6919_s9  ;;  %v2587_v49 = vmul.f32 %v2586_v33, %v1727_v4  ;;  %v1774_v22 = vadd.f32 %v1772_v61, %v1768_v62  ;;  %s6951_s9 = sld [smem:[#allocation110_spill]] }
 0x5be   : > { %v2257_v23 = vmul.f32 %v6930_v34, %v1727_v4  ;;  %v2424_v3 = vadd.f32 %v2422_v48, %v2418_v24  ;;  %v1929_v44 = vadd.f32 %v1927_v59, %v1923_v21  ;;  %v2754_v9 = vadd.f32 %v2752_v60, %v2748_v10 }
 0x5bf   : > { %v2094_v50 = vadd.f32 %v2092_v55, %v2088_v58  ;;  %v2583_v14 = vadd.f32 %v2581_v38, %v2577_v32  ;;  %v2907_v19 = vadd.f32 %v2905_v16, %v2901_v15  ;;  %v6933_v43 = vstv %s6924_s16  ;;  %s3141_s16 = scalar_lea.sflag [#allocation6], %s6948_s11 }
 0x5c0   : > { %v2259_v51 = vadd.f32 %v2257_v23, %v2253_v29  ;;  %v1778_v1 = vadd.f32 %v6933_v43, %v1774_v22  ;;  %v6934_v20 = vstv %s6926_s18  ;;  %v6935_v52 = vstv %s6927_s24  ;;  %s4703_s18 = scalar_lea.vmem %s6379_s14, 256  ;;  %s4870_s24 = smov [#allocation16]  }
 0x5c1   : > { %v2428_v12 = vadd.f32 %v6934_v20, %v2424_v3  ;;  %v1933_v33 = vadd.f32 %v6935_v52, %v1929_v44  ;;  %v6936_v62 = vstv %s6929_s4  ;;  %v4120_v24 = vpack.c.bf16 %v4489_v26, %v4488_v25  ;;  %v3046_v20 = vld [vmem:[#allocation14 + $0x20] sm:$0xff]  ;;  %v3048_v52 = vld [vmem:[#allocation14 + $0x30] sm:$0xff]  ;;  %p4704_p8 = scmp.ne.s32.totalorder %s6379_s14, %s4703_s18  ;;  %s4707_s4 = sshll.u32 %s4870_s24, 4  ;;  %s4708_s4 = int_to_ptr.vmem [resolvable:$false] %s4707_s4 }
 0x5c2   : > { %v2758_v11 = vadd.f32 %v6936_v62, %v2754_v9  ;;  %v2098_v21 = vadd.f32 %v2097_v30, %v2094_v50  ;;  %v6937_v10 = vstv %s6932_s29  ;;  %v2589_v13 = vadd.f32 %v2587_v49, %v2583_v14  ;;  %1780 = vst.msk [vmem:[%s6819_s5] sm:$0xff] %vm804_vm4, %v1778_v1  ;;  %3841 = vmatprep.mubr.msk.f32.mxu1 %vm804_vm4, %v1778_v1  ;;  %v4452_v30 = vpop.permute.xlu1 %4451  ;;  %v3042_v9 = vld [vmem:[#allocation14] sm:$0xff]  ;;  %v3044_v50 = vld [vmem:[#allocation14 + $0x10] sm:$0xff]  ;;  %v3045_v14 = vld [vmem:[#allocation14 + $0x18] sm:$0xff]  ;;  %s4709_s15 = scalar_lea.vmem %s4708_s4, 512  ;;  %p4710_p1 = scmp.lt.s32.totalorder %s6379_s14, %s4708_s4 }
 0x5c3   : > { %v2263_v56 = vadd.f32 %v6937_v10, %v2259_v51  ;;  %v4080_v58 = vpack.c.bf16 %v4434_v7, %v4433_v37  ;;  %3519 = vst.msk [vmem:[%s6819_s5 + $0x40] sm:$0xff] %vm804_vm4, %v2428_v12  ;;  %3885 = vmatprep.mubr.msk.f32.mxu0 %vm804_vm4, %v2428_v12  ;;  %3480 = vst.msk [vmem:[%s6819_s5 + $0x10] sm:$0xff] %vm804_vm4, %v1933_v33  ;;  %v2913_v29 = vadd.f32 %v2911_v27, %v2907_v19  ;;  %v3047_v12 = vld [vmem:[#allocation14 + $0x28] sm:$0xff]  ;;  %v3049_v62 = vld [vmem:[#allocation14 + $0x38] sm:$0xff]  ;;  %s6384_s0 = scalar_lea.hbm %s6951_s9, %s3569_s1  ;;  %p4705_p10 = pnand %p4704_p8, %p6952_p6 }
 0x5c4   : > { %3545 = vst.msk [vmem:[%s6819_s5 + $0x60] sm:$0xff] %vm804_vm4, %v2758_v11  ;;  %v2917_v38 = vmul.f32 %v2916_v17, %v1727_v4  ;;  %v4439_v45 = vunpack.i.h.bf16 %v5881_v5  ;;  %v4438_v26 = vunpack.i.l.bf16 %v5881_v5  ;;  %3842 = vmatmul.mubr.msk.f32.vlgmr.msra.gmra.mrb[8].mxu1 %vm804_vm4, %v5947_v28  ;;  %3886 = vmatmul.mubr.msk.f32.vlgmr.msra.gmra.mrb[10].mxu0 %vm804_vm4, %v5951_v40  ;;  %3493 = vst.msk [vmem:[%s6819_s5 + $0x20] sm:$0xff] %vm804_vm4, %v2098_v21  ;;  %v4444_v5 = vunpack.i.h.bf16 %v4442_v31  ;;  %p4711_p2 = scmp.lt.s32.totalorder %s4709_s15, %s4703_s18 }
 0x5c5   : > { %3506 = vst.msk [vmem:[%s6819_s5 + $0x30] sm:$0xff] %vm804_vm4, %v2263_v56  ;;  %v2593_v25 = vadd.f32 %v2592_v6, %v2589_v13  ;;  %4079 = vmatpush3.bf16.msra.mxu1 %v5889_v18  ;;  %4119 = vmatpush3.bf16.msra.mxu0 %v6033_v2  ;;  %v4443_v28 = vunpack.i.l.bf16 %v4442_v31  ;;  %v4449_v2 = vunpack.i.h.bf16 %v5917_v0  ;;  %v4448_v32 = vunpack.i.l.bf16 %v5917_v0  ;;  %v3043_v31 = vld [vmem:[#allocation14 + $0x8] sm:$0xff]  ;;  %p4706_p13 = pneg %p4705_p10 }
 0x5c6   : > { %v2919_v17 = vadd.f32 %v2917_v38, %v2913_v29  ;;  %3852 = vmatprep.mubr.msk.f32.mxu1 %vm804_vm4, %v1933_v33  ;;  %3907 = vmatprep.mubr.msk.f32.mxu0 %vm804_vm4, %v2758_v11  ;;  %v4084_v4 = vpack.c.bf16 %v4439_v45, %v4438_v26  ;;  %v4462_v6 = vpop.permute.xlu1 %4461  ;;  %v4453_v7 = vunpack.i.l.bf16 %v4452_v30  ;;  %v4132_v51 = vpack.c.bf16 %v3043_v31, %v3042_v9  ;;  %p4712_p3 = por %p4711_p2, %p4710_p1 }
 0x5c7   : > { %3532 = vst.msk [vmem:[%s6819_s5 + $0x50] sm:$0xff] %vm804_vm4, %v2593_v25  ;;  %4081 = vmatprep.subr.bf16.mxu1 %v4080_v58  ;;  %4121 = vmatprep.subr.bf16.mxu0 %v4120_v24  ;;  %v4088_v18 = vpack.c.bf16 %v4444_v5, %v4443_v28  ;;  %v4092_v16 = vpack.c.bf16 %v4449_v2, %v4448_v32  ;;  %v4464_v47 = vunpack.i.h.bf16 %v4462_v6  ;;  %v4463_v61 = vunpack.i.l.bf16 %v4462_v6  ;;  %v3562_v32 = vld [vmem:[%s6950_s26] ss:$0 sm:$0xff] }
 0x5c8   : > { %v2923_v40 = vadd.f32 %v2922_v8, %v2919_v17  ;;  %v4454_v8 = vunpack.i.h.bf16 %v4452_v30  ;;  %v4136_v19 = vpack.c.bf16 %v3045_v14, %v3044_v50  ;;  %v4140_v33 = vpack.c.bf16 %v3047_v12, %v3046_v20  ;;  %p4713_p4 = pnand %p4712_p3, %p4706_p13 }
 0x5c9   : > { %4083 = vmatpush3.bf16.msra.mxu1 %v4080_v58  ;;  %4123 = vmatpush3.bf16.msra.mxu0 %v4120_v24  ;;  %v4144_v11 = vpack.c.bf16 %v3049_v62, %v3048_v52 }
 0x5ca   : > { %3558 = vst.msk [vmem:[%s6819_s5 + $0x70] sm:$0xff] %vm804_vm4, %v2923_v40  ;;  %4085 = vmatprep.subr.bf16.mxu1 %v4084_v4  ;;  %v4472_v15 = vpop.permute.xlu1 %4471  ;;  %v4096_v27 = vpack.c.bf16 %v4454_v8, %v4453_v7  ;;  %4133 = vmatprep.subr.bf16.mxu0 %v4132_v51 }
 0x5cb   : > { %v4473_v54 = vunpack.i.l.bf16 %v4472_v15 }
 0x5cc   : > { %3853 = vmatmul.mubr.msk.f32.vlgmr.msra.gmra.mrb[10].mxu1 %vm804_vm4, %v5955_v36  ;;  %3908 = vmatmul.mubr.msk.f32.vlgmr.msra.gmra.mrb[12].mxu0 %vm804_vm4, %v5964_v63  ;;  %v4108_v36 = vpack.c.bf16 %v4464_v47, %v4463_v61  ;;  %v4474_v63 = vunpack.i.h.bf16 %v4472_v15 }
 0x5cd   : > { %4087 = vmatpush3.bf16.msra.mxu1 %v4084_v4  ;;  %3863 = vmatprep.mubr.msk.f32.mxu1 %vm804_vm4, %v2098_v21 }
 0x5ce   : > { %4089 = vmatprep.subr.bf16.mxu1 %v4088_v18  ;;  %v4482_v0 = vpop.permute.xlu1 %4481  ;;  %v4112_v48 = vpack.c.bf16 %v4474_v63, %v4473_v54  ;;  %4135 = vmatpush3.bf16.msra.mxu0 %v4132_v51 }
 0x5cf   : > { %v4484_v39 = vunpack.i.h.bf16 %v4482_v0  ;;  %v4483_v59 = vunpack.i.l.bf16 %v4482_v0  ;;  %4137 = vmatprep.subr.bf16.mxu0 %v4136_v19 }
 0x5d1   : > { %4091 = vmatpush3.bf16.msra.mxu1 %v4088_v18 }
 0x5d2   : > { %4093 = vmatprep.subr.bf16.mxu1 %v4092_v16  ;;  %v4492_v41 = vpop.permute.xlu1 %4491  ;;  %4139 = vmatpush3.bf16.msra.mxu0 %v4136_v19 }
 0x5d3   : > { %v4494_v60 = vunpack.i.h.bf16 %v4492_v41  ;;  %v4493_v37 = vunpack.i.l.bf16 %v4492_v41  ;;  %4141 = vmatprep.subr.bf16.mxu0 %v4140_v33 }
 0x5d4   : > { %3864 = vmatmul.mubr.msk.f32.vlgmr.msra.gmra.mrb[12].mxu1 %vm804_vm4, %v6010_v53  ;;  %v4124_v53 = vpack.c.bf16 %v4484_v39, %v4483_v59 }
 0x5d5   : > { %4095 = vmatpush3.bf16.msra.mxu1 %v4092_v16  ;;  %3874 = vmatprep.mubr.msk.f32.mxu1 %vm804_vm4, %v2263_v56  ;;  %v4128_v57 = vpack.c.bf16 %v4494_v60, %v4493_v37 }
 0x5d6   : > { %4097 = vmatprep.subr.bf16.mxu1 %v4096_v27  ;;  %4143 = vmatpush3.bf16.msra.mxu0 %v4140_v33 }
 0x5d7   : > { %4145 = vmatprep.subr.bf16.mxu0 %v4144_v11 }
 0x5d9   : > { %4099 = vmatpush3.bf16.msra.mxu1 %v4096_v27 }
 0x5da   : > { %4109 = vmatprep.subr.bf16.mxu1 %v4108_v36  ;;  %4147 = vmatpush3.bf16.msra.mxu0 %v4144_v11 }
 0x5dc   : > { %3875 = vmatmul.mubr.msk.f32.vlgmr.msra.gmra.mrb[14].mxu1 %vm804_vm4, %v6037_v42 }
 0x5dd   : > { %4111 = vmatpush3.bf16.msra.mxu1 %v4108_v36  ;;  %3896 = vmatprep.mubr.msk.f32.mxu1 %vm804_vm4, %v2593_v25 }
 0x5de   : > { %4113 = vmatprep.subr.bf16.mxu1 %v4112_v48 }
 0x5e1   : > { %4115 = vmatpush3.bf16.msra.mxu1 %v4112_v48 }
 0x5e2   : > { %4125 = vmatprep.subr.bf16.mxu1 %v4124_v53 }
 0x5e4   : > { %3897 = vmatmul.mubr.msk.f32.vlgmr.msra.gmra.mrb[16].mxu1 %vm804_vm4, %v6114_v46 }
 0x5e5   : > { %4127 = vmatpush3.bf16.msra.mxu1 %v4124_v53  ;;  %3918 = vmatprep.mubr.msk.f32.mxu1 %vm804_vm4, %v2923_v40 }
 0x5e6   : > { %4129 = vmatprep.subr.bf16.mxu1 %v4128_v57 }
 0x5e9   : > { %4131 = vmatpush3.bf16.msra.mxu1 %v4128_v57 }
 0x5ec   : > { %3919 = vmatmul.mubr.msk.f32.vlgmr.msra.gmra.mrb[18].mxu1 %vm804_vm4, %v6165_v35 }
 0x697   : > { %v3843_v42 = vpop.f32.mrb[8].mxu1  ;;  %v3887_v55 = vpop.f32.mrb[10].mxu0 }
 0x698   : > { %1884 = vst.msk [vmem:[#allocation3 + $0x8] sm:$0xff] %vm710_vm2, %v3843_v42  ;;  %2538 = vrot.lane.b32.xlu1 %v3887_v55, %s6938_s28  ;;  %v1874_v34 = vpop.f32.mrb[9].mxu1  ;;  %v2525_v23 = vpop.f32.mrb[11].mxu0 }
 0x699   : > { %1883 = vst.msk [vmem:[#allocation3] sm:$0xff] %vm710_vm2, %v1874_v34  ;;  %2536 = vrot.lane.b32.xlu0 %v2525_v23, %s6938_s28 }
 0x69f   : > { %v3854_v46 = vpop.f32.mrb[10].mxu1  ;;  %v3909_v49 = vpop.f32.mrb[12].mxu0 }
 0x6a0   : > { %v2855_v22 = vpop.f32.mrb[13].mxu0  ;;  %2043 = vrot.lane.b32.xlu1 %v3854_v46, %s6939_s19  ;;  %v2030_v3 = vpop.f32.mrb[11].mxu1 }
 0x6a1   : > { %2041 = vrot.lane.b32.xlu0 %v2030_v3, %s6939_s19 }
 0x6a4   : > { %2868 = vrot.lane.b32.xlu1 %v3909_v49, %s6940_s2 }
 0x6a5   : > { %2866 = vrot.lane.b32.xlu0 %v2855_v22, %s6940_s2 }
 0x6a7   : > { %v3865_v35 = vpop.f32.mrb[12].mxu1 }
 0x6a8   : > { %2208 = vrot.lane.b32.xlu1 %v3865_v35, %s6941_s10  ;;  %v2195_v44 = vpop.f32.mrb[13].mxu1 }
 0x6a9   : > { %2206 = vrot.lane.b32.xlu0 %v2195_v44, %s6941_s10 }
 0x6af   : > { %v3876_v43 = vpop.f32.mrb[14].mxu1 }
 0x6b0   : > { %2373 = vrot.lane.b32.xlu1 %v3876_v43, %s6942_s27  ;;  %v2360_v1 = vpop.f32.mrb[15].mxu1 }
 0x6b1   : > { %2371 = vrot.lane.b32.xlu0 %v2360_v1, %s6942_s27 }
 0x6b7   : > { %v3898_v24 = vpop.f32.mrb[16].mxu1 }
 0x6b8   : > { %2703 = vrot.lane.b32.xlu1 %v3898_v24, %s6943_s8  ;;  %v2690_v21 = vpop.f32.mrb[17].mxu1 }
 0x6b9   : > { %2701 = vrot.lane.b32.xlu0 %v2690_v21, %s6943_s8 }
 0x6bf   : > { %v3920_v10 = vpop.f32.mrb[18].mxu1 }
 0x6c0   : > { %3033 = vrot.lane.b32.xlu1 %v3920_v10, %s6944_s25  ;;  %v3020_v56 = vpop.f32.mrb[19].mxu1 }
 0x6c1   : > { %3031 = vrot.lane.b32.xlu0 %v3020_v56, %s6944_s25 }
 0x70a   : > { %v2539_v13 = vpop.permute.xlu1 %2538 }
 0x70b   : > { %v2537_v58 = vpop.permute.xlu0 %2536 }
 0x712   : > { %v2044_v30 = vpop.permute.xlu1 %2043 }
 0x713   : > { %2049 = vst.msk [vmem:[#allocation3 + $0x8] sm:$0xff] %vm2047_vm5, %v2044_v30  ;;  %v2042_v29 = vpop.permute.xlu0 %2041 }
 0x714   : > { %2048 = vst.msk [vmem:[#allocation3] sm:$0xff] %vm2047_vm5, %v2042_v29 }
 0x716   : > { %v2869_v38 = vpop.permute.xlu1 %2868 }
 0x717   : > { %v2867_v45 = vpop.permute.xlu0 %2866 }
 0x71a   : > { %v2209_v26 = vpop.permute.xlu1 %2208 }
 0x71b   : > { %2214 = vst.msk [vmem:[#allocation3 + $0x8] sm:$0xff] %vm2212_vm6, %v2209_v26  ;;  %v2207_v25 = vpop.permute.xlu0 %2206 }
 0x71c   : > { %2213 = vst.msk [vmem:[#allocation3] sm:$0xff] %vm2212_vm6, %v2207_v25 }
 0x722   : > { %v2374_v17 = vpop.permute.xlu1 %2373 }
 0x723   : > { %2379 = vst.msk [vmem:[#allocation3 + $0x8] sm:$0xff] %vm2377_vm7, %v2374_v17  ;;  %v2372_v5 = vpop.permute.xlu0 %2371 }
 0x724   : > { %2378 = vst.msk [vmem:[#allocation3] sm:$0xff] %vm2377_vm7, %v2372_v5 }
 0x725   : > { %2544 = vst.msk [vmem:[#allocation3 + $0x8] sm:$0xff] %vm2542_vm8, %v2539_v13  ;;  %2543 = vst.msk [vmem:[#allocation3] sm:$0xff] %vm2542_vm8, %v2537_v58 }
 0x72a   : > { %v2704_v28 = vpop.permute.xlu1 %2703 }
 0x72b   : > { %2709 = vst.msk [vmem:[#allocation3 + $0x8] sm:$0xff] %vm2707_vm9, %v2704_v28  ;;  %v2702_v40 = vpop.permute.xlu0 %2701 }
 0x72c   : > { %2708 = vst.msk [vmem:[#allocation3] sm:$0xff] %vm2707_vm9, %v2702_v40 }
 0x72d   : > { %2874 = vst.msk [vmem:[#allocation3 + $0x8] sm:$0xff] %vm2872_vm10, %v2869_v38  ;;  %2873 = vst.msk [vmem:[#allocation3] sm:$0xff] %vm2872_vm10, %v2867_v45 }
 0x732   : > { %v3034_v4 = vpop.permute.xlu1 %3033 }
 0x733   : > { %3039 = vst.msk [vmem:[#allocation3 + $0x8] sm:$0xff] %vm3037_vm11, %v3034_v4  ;;  %v3032_v6 = vpop.permute.xlu0 %3031 }
 0x734   : > { %3038 = vst.msk [vmem:[#allocation3] sm:$0xff] %vm3037_vm11, %v3032_v6 }
 0x73a   : > { %v3041_v2 = vld [vmem:[#allocation3 + $0x8] sm:$0xff] }
 0x73b   : > { %v3040_v18 = vld [vmem:[#allocation3] sm:$0xff] }
 0x73c   : > { %3937 = vmatprep.mubr.msk.f32.mxu0 %vm622_vm1, %v3040_v18 }
 0x73d   : > { %3938 = vmatmul.mubr.msk.f32.vlgmr.msra.gmra.mrb[14].mxu0 %vm622_vm1, %v3041_v2 }
 0x810   : > { %v3939_v8 = vpop.f32.mrb[14].mxu0 }
 0x811   : > { %v3135_v7 = vadd.f32 %v3939_v8, %v3562_v32  ;;  %v3129_v15 = vpop.f32.mrb[15].mxu0 }
 0x812   : > { %v3130_v16 = vadd.f32 %v3562_v32, %v3129_v15 }
 0x813   : > { %3139 = vst.msk [vmem:[%s6947_s6 + $0x8] sm:$0xff] %vm622_vm1, %v3135_v7 }
 0x814   : > { %3138 = vst.msk [vmem:[%s6947_s6] sm:$0xff] %vm622_vm1, %v3130_v16 }
 0x815   : > { %4716 = shalt.err (!%p4713_p4)
}
 0x816   : > { %s4717_s29 = scalar_lea.hbm %s6384_s0, 256  ;;  %s4721_s10 = scalar_lea.hbm %s6951_s9, 1024 }
 0x817   : > { %p4718_p5 = scmp.ne.s32.totalorder %s6384_s0, %s4717_s29  ;;  %p4722_p7 = scmp.lt.u32.totalorder %s6384_s0, %s6951_s9 }
 0x818   : > { %p4723_p0 = scmp.lt.u32.totalorder %s4721_s10, %s4717_s29  ;;  %p4725_p8 = scmp.lt.u32.totalorder %s4717_s29, %s6384_s0 }
 0x819   : > { %p4719_p11 = pnand %p4718_p5, %p6952_p6 }
 0x81a   : > { %p4724_p9 = por %p4723_p0, %p4722_p7 }
 0x81b   : > { %p4720_p12 = pneg %p4719_p11 }
 0x81c   : > { %p4726_p10 = por %p4725_p8, %p4724_p9 }
 0x81e   : > { %p4727_p13 = pnand %p4726_p10, %p4720_p12 }
 0x820   : > { %4730 = shalt.err (!%p4727_p13)
}
 0x821   : > { %s4871_s25 = smov 128   ;;  %s3146_s6 = scalar_lea.sflag [#allocation18], %s6948_s11 }
 0x822   : > { %4178 = dma.vmem_to_hbm [thread:$0]  (%p6952_p6), %s6379_s14, 256, %s6384_s0, %s3141_s16, %s4871_s25, %s4871_s25, %s6939_s19  }
 0x823   : > { %s3571_s13 = sshll.u32 %s6946_s3, 5  ;;  %s3195_s22 = sshll.u32 %s6819_s5, 4  ;;  %s3196_s22 = int_to_ptr.vmem [resolvable:$true] %s3195_s22 }
 0x824   : > { %s3176_s17 = sadd.s32 %s3571_s13, %s3567_s12  ;;  %s6953_s19 = sld [smem:[#allocation111_spill]] }
 0x825   : > { %s3572_s23 = sshll.u32 %s3176_s17, 7  ;;  %s4872_s14 = smov 256  }
 0x826   : > { %4179 = sst [smem:[#allocation20]] (%p6952_p6), %s4872_s14  ;;  %s4873_s21 = smov 512  }
 0x827   : > { %4180 = sst [smem:[#allocation20 + $0x1]] (%p6952_p6), %s4873_s21  ;;  %s4874_s30 = smov 2  }
 0x828   : > { %4181 = sst [smem:[#allocation20 + $0x2]] (%p6952_p6), %s4874_s30  ;;  %s4875_s3 = smov 128  }
 0x829   : > { %4182 = sst [smem:[#allocation20 + $0x3]] (%p6952_p6), %s4875_s3  ;;  %s4876_s5 = smov 8  }
 0x82a   : > { %s3178_s11 = scalar_lea.hbm %s6953_s19, %s3572_s23  ;;  %4183 = sst [smem:[#allocation20 + $0x4]] (%p6952_p6), %s4875_s3 }
 0x82b   : > { %4184 = sst [smem:[#allocation20 + $0x5]] (%p6952_p6), %s4876_s5  ;;  %s4877_s20 = smov [#allocation19]  }
 0x82c   : > { %s4878_s12 = smov 0  }
 0x82d   : > { %4185 = dma.general (%p6952_p6), %s3196_s22, 2048, %s3178_s11, %s3146_s6, %s4877_s20, [#allocation20], %s4878_s12, 0  }
 0x82e PF: > { %s6954_s0 = sld [smem:[#allocation37_spill]]  ;;  %s6955_s16 = sld [smem:[#allocation28_spill]] }
 0x82f   : > { %s6956_s18 = sld [smem:[#allocation44_spill]] }
 0x834   : > { %p4226_p1 = scmp.ge.s32.totalorder %s6954_s0, 2  ;;  %s3223_s24 = sand.u32 1, %s6955_s16  }
 0x835   : > { %p6957_p2 = scmp.ne.s32.totalorder %s6956_s18, 0  ;;  %s3224_s4 = scalar_lea.sflag [#allocation6], %s3223_s24 }
 0x837   : > { %p4209_p3 = pnand %p4226_p1, %p6957_p2 }
 0x839   : > { %4796 = dma.done.wait (!%p4209_p3), %s3224_s4, 256  }
 0x83a   : > { %4798 = vsyncadd (!%p4209_p3), %s3224_s4, 4294967040  ;;  %s3233_s15 = scalar_lea.sflag [#allocation18], %s3223_s24 }
 0x83b   : > { %4800 = dma.done.wait (!%p4209_p3), %s3233_s15, 2048  }
 0x83c   : > { %4802 = vsyncadd (!%p4209_p3), %s3233_s15, 4294965248  ;;  %s34_s23 = sadd.s32 1, %s6954_s0   ;;  %s6958_s13 = sld [smem:[#allocation29_spill]] }
 0x83d   : > { %p31_p4 = scmp.ge.s32.totalorder %s34_s23, 6   ;;  %s6959_s14 = sld [smem:[#allocation30_spill]] }
 0x83e   : > { %s6960_s15 = sld [smem:[#allocation43_spill]]  ;;  %s6961_s16 = sld [smem:[#allocation31_spill]] }
 0x83f   : > { %s6962_s17 = sld [smem:[#allocation32_spill]]  ;;  %s6963_s18 = sld [smem:[#allocation42_spill]] }
 0x840   : > { %s6964_s19 = sld [smem:[#allocation35_spill]]  ;;  %s6965_s20 = sld [smem:[#allocation36_spill]] }
 0x841   : > { %s6966_s21 = sld [smem:[#allocation39_spill]]  ;;  %s6967_s22 = sld [smem:[#allocation40_spill]] }
 0x842   :  { %33 = sbr.rel (!%p31_p4) target bundleno = 27 (0x1b), region = 156 }
 0x849   :  { %3238 = vsyncpa [#allocation5], 1 }
 0x84a   :  { %3240 = vsyncpa [#allocation5 + $0x1], 1 }
 0x84b   :  { %3241 = vsyncpa [#allocation9], 1 }
 0x84c   :  { %3242 = vsyncpa [#allocation15], 1 }
 0x84d   :  { %3243 = vsyncpa [#allocation6], 1 }
 0x84e   :  { %3245 = vsyncpa [#allocation6 + $0x1], 1 }
 0x84f   :  { %3246 = vsyncpa [#allocation18], 1 }
 0x850   :  { %3248 = vsyncpa [#allocation18 + $0x1], 1 }
 0x851   :  { %3249 = vsyncpa [#allocation7], 1 }
 0x852   :  { %3251 = vsyncpa [#allocation7 + $0x1], 1 }
 0x853   :  { %3252 = vsyncpa [#allocation13], 1 }

</bundles_post_ra>
